<compile_context>
chip_gen: v5e
topology: v5e:2x2
jax: 0.10.0
libtpu: 0.0.40
codegen_flags: <defaults>
</compile_context>

<pallas_src>
import functools

import jax
import jax.numpy as jnp
from jax.experimental import pallas as pl
from jax.experimental.pallas import tpu as pltpu


def _conv3d_z_valid_kernel(*refs, n_planes, tdo, kD, kH, kW, dil,
                           Wp, z_pad, Hf, Wo, Qk):
    """One (batch, output-depth-block) grid step.

    refs[:n_planes] : padded depth planes, each (1, 1, Cin, Hp*Wp); plane s holds
                      padded depth index jb*tdo + s (halo included).
    refs[n_planes]  : weights (kD*kH*kW, Cout, Cin), tap-major.
    refs[n_planes+1]: bias (Cout, 1).
    refs[n_planes+2]: output block (1, Cout, tdo*Hf*Wo), valid positions only.
    """
    x_planes = refs[:n_planes]
    w_ref = refs[n_planes]
    b_ref = refs[n_planes + 1]
    o_ref = refs[n_planes + 2]

    for t in range(tdo):                       # local output-depth plane in this block
        acc = None
        for kd in range(kD):
            xp = x_planes[t + kd * dil]        # padded plane (jb*tdo + t) + kd*dil
            for kh in range(kH):
                for kw in range(kW):
                    # Constant-offset contiguous lane slice on the flattened padded plane;
                    # rows start at z_pad*Wp so only the z-kept H rows are ever computed.
                    sh = z_pad * Wp + dil * (kh * Wp + kw)
                    xs = xp[0, 0, :, sh:sh + Qk]                       # (Cin, Qk)
                    w_t = w_ref[(kd * kH + kh) * kW + kw]              # (Cout, Cin)
                    d = jnp.dot(w_t, xs, preferred_element_type=jnp.float32)
                    acc = d if acc is None else acc + d
        acc = acc + b_ref[...]                 # (Cout, 1) broadcast over lanes
        out = acc.astype(o_ref.dtype)
        # Compact stride-Wp rows -> stride-Wo rows of the lane-dense output slab.
        for h in range(Hf):
            q = (t * Hf + h) * Wo
            o_ref[0, :, q:q + Wo] = out[:, h * Wp:h * Wp + Wo]


def _pick_depth_tile(Do, Hf, Wo, cap=4):
    """Largest depth tile <= cap that divides Do and keeps the output block a
    multiple of 128 lanes (else fall back to the full depth, which is always a
    legal full-dim block)."""
    best = Do
    for t in range(1, min(cap, Do) + 1):
        if Do % t == 0 and (t * Hf * Wo) % 128 == 0:
            best = t
    return best


def conv3d_z_valid_forward(x, weight, bias, *, kernel_size, z_kernel_size,
                           padding, dilation_rate=1):
    """Conv3d((k, k, zk), padding, dilation) + the module's z-valid trim on dim 3."""
    N, Cin, D, H, W = x.shape
    Cout = weight.shape[0]
    kD = kH = kernel_size
    kW = z_kernel_size
    p = padding
    dil = dilation_rate
    z_pad = z_kernel_size // 2
    assert z_kernel_size >= 2, "PyTorch's slice z_pad:-z_pad is empty for zks < 2"

    # Stride-1 conv output extents (the flat-shift trick below assumes stride 1).
    Do = D + 2 * p - dil * (kD - 1)
    Hc = H + 2 * p - dil * (kH - 1)
    Wo = W + 2 * p - dil * (kW - 1)
    Hf = Hc - 2 * z_pad
    assert Do >= 1 and Hf >= 1 and Wo >= 1

    Dp, Hp, Wp = D + 2 * p, H + 2 * p, W + 2 * p
    LP = Hp * Wp                      # flattened padded plane length
    Qk = Hf * Wp                      # accumulator width (only the z-kept rows)
    kTaps = kD * kH * kW
    # In-bounds guarantee for every tap slice (VMEM reads have no runtime OOB check).
    assert dil * (kW - 1) <= z_pad * Wp, "dilation too large for this H/W/padding"

    TDO = _pick_depth_tile(Do, Hf, Wo)            # output-depth planes per grid step
    NDB = Do // TDO
    WIN = TDO + dil * (kD - 1)                    # padded-depth window incl. halo

    # Single wrapper HBM pass: depth-major padded layout so every per-tap plane is a
    # legal (full Cin, full Hp*Wp) block.  TODO(synk): move this padding into the kernel.
    xp = jnp.pad(jnp.moveaxis(x, 1, 2), ((0, 0), (p, p), (0, 0), (p, p), (p, p)))
    x_flat = xp.reshape(N, Dp, Cin, LP)

    # (Cout, Cin, kD, kH, kW) -> (kD, kH, kW, Cout, Cin) -> (kTaps, Cout, Cin)
    w_taps = jnp.transpose(weight, (2, 3, 4, 0, 1)).reshape(kTaps, Cout, Cin)
    b2 = bias.reshape(Cout, 1)

    kernel = functools.partial(
        _conv3d_z_valid_kernel, n_planes=WIN, tdo=TDO, kD=kD, kH=kH, kW=kW,
        dil=dil, Wp=Wp, z_pad=z_pad, Hf=Hf, Wo=Wo, Qk=Qk)

    def plane_spec(s):
        # Plane s of output-depth block jb lives at padded depth jb*TDO + s.
        return pl.BlockSpec((1, 1, Cin, LP),
                            lambda n, jb, s=s: (n, jb * TDO + s, 0, 0))

    out_flat = pl.pallas_call(
        kernel,
        out_shape=jax.ShapeDtypeStruct((N, Cout, Do * Hf * Wo), x.dtype),
        grid=(N, NDB),
        in_specs=([plane_spec(s) for s in range(WIN)]
                  + [pl.BlockSpec((kTaps, Cout, Cin), lambda n, jb: (0, 0, 0)),
                     pl.BlockSpec((Cout, 1), lambda n, jb: (0, 0))]),
        out_specs=pl.BlockSpec((1, Cout, TDO * Hf * Wo), lambda n, jb: (n, 0, jb)),
        compiler_params=pltpu.CompilerParams(
            dimension_semantics=("parallel", "parallel"),
            vmem_limit_bytes=32 * 1024 * 1024),
    )(*([x_flat] * WIN), w_taps, b2)

    # Free contiguous reshape back to NCDHW — no post-kernel slice pass.
    return out_flat.reshape(N, Cout, Do, Hf, Wo)


def _reference(x, weight, bias, *, z_kernel_size, padding, dilation_rate=1):
    """Independent XLA reference: Conv3d + bias, then the z-valid trim on dim 3."""
    dil = dilation_rate
    y = jax.lax.conv_general_dilated(
        x, weight, window_strides=(1, 1, 1),
        padding=[(padding, padding)] * 3,
        rhs_dilation=(dil, dil, dil),
        dimension_numbers=('NCDHW', 'OIDHW', 'NCDHW'),
        precision=jax.lax.Precision.HIGHEST)
    y = y + bias.reshape(1, -1, 1, 1, 1)
    zp = z_kernel_size // 2
    return y[:, :, :, zp:y.shape[3] - zp, :]


if __name__ == "__main__":
    key = jax.random.PRNGKey(0)
    N, Cin, Cout = 2, 2, 4
    D, H, W = 12, 16, 16
    k, zk, pad, dil = 3, 3, 1, 1

    k1, k2, k3 = jax.random.split(key, 3)
    x = jax.random.normal(k1, (N, Cin, D, H, W), jnp.float32)
    fan_in = Cin * k * k * zk
    w = (1.0 / fan_in) ** 0.5 * jax.random.normal(
        k2, (Cout, Cin, k, k, zk), jnp.float32)
    b = 0.1 * jax.random.normal(k3, (Cout,), jnp.float32)

    out = conv3d_z_valid_forward(x, w, b, kernel_size=k, z_kernel_size=zk,
                                 padding=pad, dilation_rate=dil)
    out = jax.block_until_ready(out)

    Do = D + 2 * pad - dil * (k - 1)
    Hf = H + 2 * pad - dil * (k - 1) - 2 * (zk // 2)
    Wo = W + 2 * pad - dil * (zk - 1)
    assert out.shape == (N, Cout, Do, Hf, Wo), out.shape

    ref = _reference(x, w, b, z_kernel_size=zk, padding=pad, dilation_rate=dil)
    max_err = float(jnp.max(jnp.abs(out - ref)))
    assert jnp.allclose(out, ref, atol=1e-3, rtol=1e-3), max_err

    print("KERNEL_OK")
</pallas_src>

<mosaic_0001>
module attributes {stable_mosaic.version = 11 : i64} {
  func.func @_conv3d_z_valid_kernel(%arg0: i32, %arg1: i32, %arg2: memref<1x1x2x324xf32, #tpu.memory_space<vmem>>, %arg3: memref<1x1x2x324xf32, #tpu.memory_space<vmem>>, %arg4: memref<1x1x2x324xf32, #tpu.memory_space<vmem>>, %arg5: memref<1x1x2x324xf32, #tpu.memory_space<vmem>>, %arg6: memref<1x1x2x324xf32, #tpu.memory_space<vmem>>, %arg7: memref<1x1x2x324xf32, #tpu.memory_space<vmem>>, %arg8: memref<27x4x2xf32, #tpu.memory_space<vmem>>, %arg9: memref<4x1xf32, #tpu.memory_space<vmem>>, %arg10: memref<1x4x896xf32, #tpu.memory_space<vmem>>) attributes {dimension_semantics = [#tpu.dimension_semantics<parallel>, #tpu.dimension_semantics<parallel>], iteration_bounds = array<i64: 2, 3>, scalar_prefetch = 0 : i64, scratch_operands = 0 : i64, tpu.core_type = #tpu.core_type<tc>, window_params = [{transform_indices = @transform_0, window_bounds = array<i64: 1, 1, 2, 324>}, {transform_indices = @transform_1, window_bounds = array<i64: 1, 1, 2, 324>}, {transform_indices = @transform_2, window_bounds = array<i64: 1, 1, 2, 324>}, {transform_indices = @transform_3, window_bounds = array<i64: 1, 1, 2, 324>}, {transform_indices = @transform_4, window_bounds = array<i64: 1, 1, 2, 324>}, {transform_indices = @transform_5, window_bounds = array<i64: 1, 1, 2, 324>}, {pipeline_mode = #tpu.pipeline_mode<synchronous>, transform_indices = @transform_6, window_bounds = array<i64: 27, 4, 2>}, {pipeline_mode = #tpu.pipeline_mode<synchronous>, transform_indices = @transform_7, window_bounds = array<i64: 4, 1>}, {transform_indices = @transform_8, window_bounds = array<i64: 1, 4, 896>}]} {
    %c0 = arith.constant 0 : index
    %c0_0 = arith.constant 0 : index
    %c0_1 = arith.constant 0 : index
    %c18 = arith.constant 18 : index
    %0 = vector.load %arg2[%c0, %c0_0, %c0_1, %c18] : memref<1x1x2x324xf32, #tpu.memory_space<vmem>>, vector<1x1x2x252xf32>
    %1 = vector.shape_cast %0 : vector<1x1x2x252xf32> to vector<2x252xf32>
    %c0_2 = arith.constant 0 : index
    %c0_3 = arith.constant 0 : index
    %c0_4 = arith.constant 0 : index
    %2 = vector.load %arg8[%c0_2, %c0_3, %c0_4] : memref<27x4x2xf32, #tpu.memory_space<vmem>>, vector<1x4x2xf32>
    %3 = vector.shape_cast %2 : vector<1x4x2xf32> to vector<4x2xf32>
    %cst = arith.constant dense<0.000000e+00> : vector<4x252xf32>
    %4 = tpu.matmul %3, %1, %cst {dimension_numbers = #tpu.dot_dimension_numbers<[1], [0], [0], [1], [0, 0, 1, 1], [], []>} : vector<4x2xf32>, vector<2x252xf32>, vector<4x252xf32> -> vector<4x252xf32>
    %c0_5 = arith.constant 0 : index
    %c0_6 = arith.constant 0 : index
    %c0_7 = arith.constant 0 : index
    %c19 = arith.constant 19 : index
    %5 = vector.load %arg2[%c0_5, %c0_6, %c0_7, %c19] : memref<1x1x2x324xf32, #tpu.memory_space<vmem>>, vector<1x1x2x252xf32>
    %6 = vector.shape_cast %5 : vector<1x1x2x252xf32> to vector<2x252xf32>
    %c1 = arith.constant 1 : index
    %c0_8 = arith.constant 0 : index
    %c0_9 = arith.constant 0 : index
    %7 = vector.load %arg8[%c1, %c0_8, %c0_9] : memref<27x4x2xf32, #tpu.memory_space<vmem>>, vector<1x4x2xf32>
    %8 = vector.shape_cast %7 : vector<1x4x2xf32> to vector<4x2xf32>
    %cst_10 = arith.constant dense<0.000000e+00> : vector<4x252xf32>
    %9 = tpu.matmul %8, %6, %cst_10 {dimension_numbers = #tpu.dot_dimension_numbers<[1], [0], [0], [1], [0, 0, 1, 1], [], []>} : vector<4x2xf32>, vector<2x252xf32>, vector<4x252xf32> -> vector<4x252xf32>
    %10 = arith.addf %4, %9 : vector<4x252xf32>
    %c0_11 = arith.constant 0 : index
    %c0_12 = arith.constant 0 : index
    %c0_13 = arith.constant 0 : index
    %c20 = arith.constant 20 : index
    %11 = vector.load %arg2[%c0_11, %c0_12, %c0_13, %c20] : memref<1x1x2x324xf32, #tpu.memory_space<vmem>>, vector<1x1x2x252xf32>
    %12 = vector.shape_cast %11 : vector<1x1x2x252xf32> to vector<2x252xf32>
    %c2 = arith.constant 2 : index
    %c0_14 = arith.constant 0 : index
    %c0_15 = arith.constant 0 : index
    %13 = vector.load %arg8[%c2, %c0_14, %c0_15] : memref<27x4x2xf32, #tpu.memory_space<vmem>>, vector<1x4x2xf32>
    %14 = vector.shape_cast %13 : vector<1x4x2xf32> to vector<4x2xf32>
    %cst_16 = arith.constant dense<0.000000e+00> : vector<4x252xf32>
    %15 = tpu.matmul %14, %12, %cst_16 {dimension_numbers = #tpu.dot_dimension_numbers<[1], [0], [0], [1], [0, 0, 1, 1], [], []>} : vector<4x2xf32>, vector<2x252xf32>, vector<4x252xf32> -> vector<4x252xf32>
    %16 = arith.addf %10, %15 : vector<4x252xf32>
    %c0_17 = arith.constant 0 : index
    %c0_18 = arith.constant 0 : index
    %c0_19 = arith.constant 0 : index
    %c36 = arith.constant 36 : index
    %17 = vector.load %arg2[%c0_17, %c0_18, %c0_19, %c36] : memref<1x1x2x324xf32, #tpu.memory_space<vmem>>, vector<1x1x2x252xf32>
    %18 = vector.shape_cast %17 : vector<1x1x2x252xf32> to vector<2x252xf32>
    %c3 = arith.constant 3 : index
    %c0_20 = arith.constant 0 : index
    %c0_21 = arith.constant 0 : index
    %19 = vector.load %arg8[%c3, %c0_20, %c0_21] : memref<27x4x2xf32, #tpu.memory_space<vmem>>, vector<1x4x2xf32>
    %20 = vector.shape_cast %19 : vector<1x4x2xf32> to vector<4x2xf32>
    %cst_22 = arith.constant dense<0.000000e+00> : vector<4x252xf32>
    %21 = tpu.matmul %20, %18, %cst_22 {dimension_numbers = #tpu.dot_dimension_numbers<[1], [0], [0], [1], [0, 0, 1, 1], [], []>} : vector<4x2xf32>, vector<2x252xf32>, vector<4x252xf32> -> vector<4x252xf32>
    %22 = arith.addf %16, %21 : vector<4x252xf32>
    %c0_23 = arith.constant 0 : index
    %c0_24 = arith.constant 0 : index
    %c0_25 = arith.constant 0 : index
    %c37 = arith.constant 37 : index
    %23 = vector.load %arg2[%c0_23, %c0_24, %c0_25, %c37] : memref<1x1x2x324xf32, #tpu.memory_space<vmem>>, vector<1x1x2x252xf32>
    %24 = vector.shape_cast %23 : vector<1x1x2x252xf32> to vector<2x252xf32>
    %c4 = arith.constant 4 : index
    %c0_26 = arith.constant 0 : index
    %c0_27 = arith.constant 0 : index
    %25 = vector.load %arg8[%c4, %c0_26, %c0_27] : memref<27x4x2xf32, #tpu.memory_space<vmem>>, vector<1x4x2xf32>
    %26 = vector.shape_cast %25 : vector<1x4x2xf32> to vector<4x2xf32>
    %cst_28 = arith.constant dense<0.000000e+00> : vector<4x252xf32>
    %27 = tpu.matmul %26, %24, %cst_28 {dimension_numbers = #tpu.dot_dimension_numbers<[1], [0], [0], [1], [0, 0, 1, 1], [], []>} : vector<4x2xf32>, vector<2x252xf32>, vector<4x252xf32> -> vector<4x252xf32>
    %28 = arith.addf %22, %27 : vector<4x252xf32>
    %c0_29 = arith.constant 0 : index
    %c0_30 = arith.constant 0 : index
    %c0_31 = arith.constant 0 : index
    %c38 = arith.constant 38 : index
    %29 = vector.load %arg2[%c0_29, %c0_30, %c0_31, %c38] : memref<1x1x2x324xf32, #tpu.memory_space<vmem>>, vector<1x1x2x252xf32>
    %30 = vector.shape_cast %29 : vector<1x1x2x252xf32> to vector<2x252xf32>
    %c5 = arith.constant 5 : index
    %c0_32 = arith.constant 0 : index
    %c0_33 = arith.constant 0 : index
    %31 = vector.load %arg8[%c5, %c0_32, %c0_33] : memref<27x4x2xf32, #tpu.memory_space<vmem>>, vector<1x4x2xf32>
    %32 = vector.shape_cast %31 : vector<1x4x2xf32> to vector<4x2xf32>
    %cst_34 = arith.constant dense<0.000000e+00> : vector<4x252xf32>
    %33 = tpu.matmul %32, %30, %cst_34 {dimension_numbers = #tpu.dot_dimension_numbers<[1], [0], [0], [1], [0, 0, 1, 1], [], []>} : vector<4x2xf32>, vector<2x252xf32>, vector<4x252xf32> -> vector<4x252xf32>
    %34 = arith.addf %28, %33 : vector<4x252xf32>
    %c0_35 = arith.constant 0 : index
    %c0_36 = arith.constant 0 : index
    %c0_37 = arith.constant 0 : index
    %c54 = arith.constant 54 : index
    %35 = vector.load %arg2[%c0_35, %c0_36, %c0_37, %c54] : memref<1x1x2x324xf32, #tpu.memory_space<vmem>>, vector<1x1x2x252xf32>
    %36 = vector.shape_cast %35 : vector<1x1x2x252xf32> to vector<2x252xf32>
    %c6 = arith.constant 6 : index
    %c0_38 = arith.constant 0 : index
    %c0_39 = arith.constant 0 : index
    %37 = vector.load %arg8[%c6, %c0_38, %c0_39] : memref<27x4x2xf32, #tpu.memory_space<vmem>>, vector<1x4x2xf32>
    %38 = vector.shape_cast %37 : vector<1x4x2xf32> to vector<4x2xf32>
    %cst_40 = arith.constant dense<0.000000e+00> : vector<4x252xf32>
    %39 = tpu.matmul %38, %36, %cst_40 {dimension_numbers = #tpu.dot_dimension_numbers<[1], [0], [0], [1], [0, 0, 1, 1], [], []>} : vector<4x2xf32>, vector<2x252xf32>, vector<4x252xf32> -> vector<4x252xf32>
    %40 = arith.addf %34, %39 : vector<4x252xf32>
    %c0_41 = arith.constant 0 : index
    %c0_42 = arith.constant 0 : index
    %c0_43 = arith.constant 0 : index
    %c55 = arith.constant 55 : index
    %41 = vector.load %arg2[%c0_41, %c0_42, %c0_43, %c55] : memref<1x1x2x324xf32, #tpu.memory_space<vmem>>, vector<1x1x2x252xf32>
    %42 = vector.shape_cast %41 : vector<1x1x2x252xf32> to vector<2x252xf32>
    %c7 = arith.constant 7 : index
    %c0_44 = arith.constant 0 : index
    %c0_45 = arith.constant 0 : index
    %43 = vector.load %arg8[%c7, %c0_44, %c0_45] : memref<27x4x2xf32, #tpu.memory_space<vmem>>, vector<1x4x2xf32>
    %44 = vector.shape_cast %43 : vector<1x4x2xf32> to vector<4x2xf32>
    %cst_46 = arith.constant dense<0.000000e+00> : vector<4x252xf32>
    %45 = tpu.matmul %44, %42, %cst_46 {dimension_numbers = #tpu.dot_dimension_numbers<[1], [0], [0], [1], [0, 0, 1, 1], [], []>} : vector<4x2xf32>, vector<2x252xf32>, vector<4x252xf32> -> vector<4x252xf32>
    %46 = arith.addf %40, %45 : vector<4x252xf32>
    %c0_47 = arith.constant 0 : index
    %c0_48 = arith.constant 0 : index
    %c0_49 = arith.constant 0 : index
    %c56 = arith.constant 56 : index
    %47 = vector.load %arg2[%c0_47, %c0_48, %c0_49, %c56] : memref<1x1x2x324xf32, #tpu.memory_space<vmem>>, vector<1x1x2x252xf32>
    %48 = vector.shape_cast %47 : vector<1x1x2x252xf32> to vector<2x252xf32>
    %c8 = arith.constant 8 : index
    %c0_50 = arith.constant 0 : index
    %c0_51 = arith.constant 0 : index
    %49 = vector.load %arg8[%c8, %c0_50, %c0_51] : memref<27x4x2xf32, #tpu.memory_space<vmem>>, vector<1x4x2xf32>
    %50 = vector.shape_cast %49 : vector<1x4x2xf32> to vector<4x2xf32>
    %cst_52 = arith.constant dense<0.000000e+00> : vector<4x252xf32>
    %51 = tpu.matmul %50, %48, %cst_52 {dimension_numbers = #tpu.dot_dimension_numbers<[1], [0], [0], [1], [0, 0, 1, 1], [], []>} : vector<4x2xf32>, vector<2x252xf32>, vector<4x252xf32> -> vector<4x252xf32>
    %52 = arith.addf %46, %51 : vector<4x252xf32>
    %c0_53 = arith.constant 0 : index
    %c0_54 = arith.constant 0 : index
    %c0_55 = arith.constant 0 : index
    %c18_56 = arith.constant 18 : index
    %53 = vector.load %arg3[%c0_53, %c0_54, %c0_55, %c18_56] : memref<1x1x2x324xf32, #tpu.memory_space<vmem>>, vector<1x1x2x252xf32>
    %54 = vector.shape_cast %53 : vector<1x1x2x252xf32> to vector<2x252xf32>
    %c9 = arith.constant 9 : index
    %c0_57 = arith.constant 0 : index
    %c0_58 = arith.constant 0 : index
    %55 = vector.load %arg8[%c9, %c0_57, %c0_58] : memref<27x4x2xf32, #tpu.memory_space<vmem>>, vector<1x4x2xf32>
    %56 = vector.shape_cast %55 : vector<1x4x2xf32> to vector<4x2xf32>
    %cst_59 = arith.constant dense<0.000000e+00> : vector<4x252xf32>
    %57 = tpu.matmul %56, %54, %cst_59 {dimension_numbers = #tpu.dot_dimension_numbers<[1], [0], [0], [1], [0, 0, 1, 1], [], []>} : vector<4x2xf32>, vector<2x252xf32>, vector<4x252xf32> -> vector<4x252xf32>
    %58 = arith.addf %52, %57 : vector<4x252xf32>
    %c0_60 = arith.constant 0 : index
    %c0_61 = arith.constant 0 : index
    %c0_62 = arith.constant 0 : index
    %c19_63 = arith.constant 19 : index
    %59 = vector.load %arg3[%c0_60, %c0_61, %c0_62, %c19_63] : memref<1x1x2x324xf32, #tpu.memory_space<vmem>>, vector<1x1x2x252xf32>
    %60 = vector.shape_cast %59 : vector<1x1x2x252xf32> to vector<2x252xf32>
    %c10 = arith.constant 10 : index
    %c0_64 = arith.constant 0 : index
    %c0_65 = arith.constant 0 : index
    %61 = vector.load %arg8[%c10, %c0_64, %c0_65] : memref<27x4x2xf32, #tpu.memory_space<vmem>>, vector<1x4x2xf32>
    %62 = vector.shape_cast %61 : vector<1x4x2xf32> to vector<4x2xf32>
    %cst_66 = arith.constant dense<0.000000e+00> : vector<4x252xf32>
    %63 = tpu.matmul %62, %60, %cst_66 {dimension_numbers = #tpu.dot_dimension_numbers<[1], [0], [0], [1], [0, 0, 1, 1], [], []>} : vector<4x2xf32>, vector<2x252xf32>, vector<4x252xf32> -> vector<4x252xf32>
    %64 = arith.addf %58, %63 : vector<4x252xf32>
    %c0_67 = arith.constant 0 : index
    %c0_68 = arith.constant 0 : index
    %c0_69 = arith.constant 0 : index
    %c20_70 = arith.constant 20 : index
    %65 = vector.load %arg3[%c0_67, %c0_68, %c0_69, %c20_70] : memref<1x1x2x324xf32, #tpu.memory_space<vmem>>, vector<1x1x2x252xf32>
    %66 = vector.shape_cast %65 : vector<1x1x2x252xf32> to vector<2x252xf32>
    %c11 = arith.constant 11 : index
    %c0_71 = arith.constant 0 : index
    %c0_72 = arith.constant 0 : index
    %67 = vector.load %arg8[%c11, %c0_71, %c0_72] : memref<27x4x2xf32, #tpu.memory_space<vmem>>, vector<1x4x2xf32>
    %68 = vector.shape_cast %67 : vector<1x4x2xf32> to vector<4x2xf32>
    %cst_73 = arith.constant dense<0.000000e+00> : vector<4x252xf32>
    %69 = tpu.matmul %68, %66, %cst_73 {dimension_numbers = #tpu.dot_dimension_numbers<[1], [0], [0], [1], [0, 0, 1, 1], [], []>} : vector<4x2xf32>, vector<2x252xf32>, vector<4x252xf32> -> vector<4x252xf32>
    %70 = arith.addf %64, %69 : vector<4x252xf32>
    %c0_74 = arith.constant 0 : index
    %c0_75 = arith.constant 0 : index
    %c0_76 = arith.constant 0 : index
    %c36_77 = arith.constant 36 : index
    %71 = vector.load %arg3[%c0_74, %c0_75, %c0_76, %c36_77] : memref<1x1x2x324xf32, #tpu.memory_space<vmem>>, vector<1x1x2x252xf32>
    %72 = vector.shape_cast %71 : vector<1x1x2x252xf32> to vector<2x252xf32>
    %c12 = arith.constant 12 : index
    %c0_78 = arith.constant 0 : index
    %c0_79 = arith.constant 0 : index
    %73 = vector.load %arg8[%c12, %c0_78, %c0_79] : memref<27x4x2xf32, #tpu.memory_space<vmem>>, vector<1x4x2xf32>
    %74 = vector.shape_cast %73 : vector<1x4x2xf32> to vector<4x2xf32>
    %cst_80 = arith.constant dense<0.000000e+00> : vector<4x252xf32>
    %75 = tpu.matmul %74, %72, %cst_80 {dimension_numbers = #tpu.dot_dimension_numbers<[1], [0], [0], [1], [0, 0, 1, 1], [], []>} : vector<4x2xf32>, vector<2x252xf32>, vector<4x252xf32> -> vector<4x252xf32>
    %76 = arith.addf %70, %75 : vector<4x252xf32>
    %c0_81 = arith.constant 0 : index
    %c0_82 = arith.constant 0 : index
    %c0_83 = arith.constant 0 : index
    %c37_84 = arith.constant 37 : index
    %77 = vector.load %arg3[%c0_81, %c0_82, %c0_83, %c37_84] : memref<1x1x2x324xf32, #tpu.memory_space<vmem>>, vector<1x1x2x252xf32>
    %78 = vector.shape_cast %77 : vector<1x1x2x252xf32> to vector<2x252xf32>
    %c13 = arith.constant 13 : index
    %c0_85 = arith.constant 0 : index
    %c0_86 = arith.constant 0 : index
    %79 = vector.load %arg8[%c13, %c0_85, %c0_86] : memref<27x4x2xf32, #tpu.memory_space<vmem>>, vector<1x4x2xf32>
    %80 = vector.shape_cast %79 : vector<1x4x2xf32> to vector<4x2xf32>
    %cst_87 = arith.constant dense<0.000000e+00> : vector<4x252xf32>
    %81 = tpu.matmul %80, %78, %cst_87 {dimension_numbers = #tpu.dot_dimension_numbers<[1], [0], [0], [1], [0, 0, 1, 1], [], []>} : vector<4x2xf32>, vector<2x252xf32>, vector<4x252xf32> -> vector<4x252xf32>
    %82 = arith.addf %76, %81 : vector<4x252xf32>
    %c0_88 = arith.constant 0 : index
    %c0_89 = arith.constant 0 : index
    %c0_90 = arith.constant 0 : index
    %c38_91 = arith.constant 38 : index
    %83 = vector.load %arg3[%c0_88, %c0_89, %c0_90, %c38_91] : memref<1x1x2x324xf32, #tpu.memory_space<vmem>>, vector<1x1x2x252xf32>
    %84 = vector.shape_cast %83 : vector<1x1x2x252xf32> to vector<2x252xf32>
    %c14 = arith.constant 14 : index
    %c0_92 = arith.constant 0 : index
    %c0_93 = arith.constant 0 : index
    %85 = vector.load %arg8[%c14, %c0_92, %c0_93] : memref<27x4x2xf32, #tpu.memory_space<vmem>>, vector<1x4x2xf32>
    %86 = vector.shape_cast %85 : vector<1x4x2xf32> to vector<4x2xf32>
    %cst_94 = arith.constant dense<0.000000e+00> : vector<4x252xf32>
    %87 = tpu.matmul %86, %84, %cst_94 {dimension_numbers = #tpu.dot_dimension_numbers<[1], [0], [0], [1], [0, 0, 1, 1], [], []>} : vector<4x2xf32>, vector<2x252xf32>, vector<4x252xf32> -> vector<4x252xf32>
    %88 = arith.addf %82, %87 : vector<4x252xf32>
    %c0_95 = arith.constant 0 : index
    %c0_96 = arith.constant 0 : index
    %c0_97 = arith.constant 0 : index
    %c54_98 = arith.constant 54 : index
    %89 = vector.load %arg3[%c0_95, %c0_96, %c0_97, %c54_98] : memref<1x1x2x324xf32, #tpu.memory_space<vmem>>, vector<1x1x2x252xf32>
    %90 = vector.shape_cast %89 : vector<1x1x2x252xf32> to vector<2x252xf32>
    %c15 = arith.constant 15 : index
    %c0_99 = arith.constant 0 : index
    %c0_100 = arith.constant 0 : index
    %91 = vector.load %arg8[%c15, %c0_99, %c0_100] : memref<27x4x2xf32, #tpu.memory_space<vmem>>, vector<1x4x2xf32>
    %92 = vector.shape_cast %91 : vector<1x4x2xf32> to vector<4x2xf32>
    %cst_101 = arith.constant dense<0.000000e+00> : vector<4x252xf32>
    %93 = tpu.matmul %92, %90, %cst_101 {dimension_numbers = #tpu.dot_dimension_numbers<[1], [0], [0], [1], [0, 0, 1, 1], [], []>} : vector<4x2xf32>, vector<2x252xf32>, vector<4x252xf32> -> vector<4x252xf32>
    %94 = arith.addf %88, %93 : vector<4x252xf32>
    %c0_102 = arith.constant 0 : index
    %c0_103 = arith.constant 0 : index
    %c0_104 = arith.constant 0 : index
    %c55_105 = arith.constant 55 : index
    %95 = vector.load %arg3[%c0_102, %c0_103, %c0_104, %c55_105] : memref<1x1x2x324xf32, #tpu.memory_space<vmem>>, vector<1x1x2x252xf32>
    %96 = vector.shape_cast %95 : vector<1x1x2x252xf32> to vector<2x252xf32>
    %c16 = arith.constant 16 : index
    %c0_106 = arith.constant 0 : index
    %c0_107 = arith.constant 0 : index
    %97 = vector.load %arg8[%c16, %c0_106, %c0_107] : memref<27x4x2xf32, #tpu.memory_space<vmem>>, vector<1x4x2xf32>
    %98 = vector.shape_cast %97 : vector<1x4x2xf32> to vector<4x2xf32>
    %cst_108 = arith.constant dense<0.000000e+00> : vector<4x252xf32>
    %99 = tpu.matmul %98, %96, %cst_108 {dimension_numbers = #tpu.dot_dimension_numbers<[1], [0], [0], [1], [0, 0, 1, 1], [], []>} : vector<4x2xf32>, vector<2x252xf32>, vector<4x252xf32> -> vector<4x252xf32>
    %100 = arith.addf %94, %99 : vector<4x252xf32>
    %c0_109 = arith.constant 0 : index
    %c0_110 = arith.constant 0 : index
    %c0_111 = arith.constant 0 : index
    %c56_112 = arith.constant 56 : index
    %101 = vector.load %arg3[%c0_109, %c0_110, %c0_111, %c56_112] : memref<1x1x2x324xf32, #tpu.memory_space<vmem>>, vector<1x1x2x252xf32>
    %102 = vector.shape_cast %101 : vector<1x1x2x252xf32> to vector<2x252xf32>
    %c17 = arith.constant 17 : index
    %c0_113 = arith.constant 0 : index
    %c0_114 = arith.constant 0 : index
    %103 = vector.load %arg8[%c17, %c0_113, %c0_114] : memref<27x4x2xf32, #tpu.memory_space<vmem>>, vector<1x4x2xf32>
    %104 = vector.shape_cast %103 : vector<1x4x2xf32> to vector<4x2xf32>
    %cst_115 = arith.constant dense<0.000000e+00> : vector<4x252xf32>
    %105 = tpu.matmul %104, %102, %cst_115 {dimension_numbers = #tpu.dot_dimension_numbers<[1], [0], [0], [1], [0, 0, 1, 1], [], []>} : vector<4x2xf32>, vector<2x252xf32>, vector<4x252xf32> -> vector<4x252xf32>
    %106 = arith.addf %100, %105 : vector<4x252xf32>
    %c0_116 = arith.constant 0 : index
    %c0_117 = arith.constant 0 : index
    %c0_118 = arith.constant 0 : index
    %c18_119 = arith.constant 18 : index
    %107 = vector.load %arg4[%c0_116, %c0_117, %c0_118, %c18_119] : memref<1x1x2x324xf32, #tpu.memory_space<vmem>>, vector<1x1x2x252xf32>
    %108 = vector.shape_cast %107 : vector<1x1x2x252xf32> to vector<2x252xf32>
    %c18_120 = arith.constant 18 : index
    %c0_121 = arith.constant 0 : index
    %c0_122 = arith.constant 0 : index
    %109 = vector.load %arg8[%c18_120, %c0_121, %c0_122] : memref<27x4x2xf32, #tpu.memory_space<vmem>>, vector<1x4x2xf32>
    %110 = vector.shape_cast %109 : vector<1x4x2xf32> to vector<4x2xf32>
    %cst_123 = arith.constant dense<0.000000e+00> : vector<4x252xf32>
    %111 = tpu.matmul %110, %108, %cst_123 {dimension_numbers = #tpu.dot_dimension_numbers<[1], [0], [0], [1], [0, 0, 1, 1], [], []>} : vector<4x2xf32>, vector<2x252xf32>, vector<4x252xf32> -> vector<4x252xf32>
    %112 = arith.addf %106, %111 : vector<4x252xf32>
    %c0_124 = arith.constant 0 : index
    %c0_125 = arith.constant 0 : index
    %c0_126 = arith.constant 0 : index
    %c19_127 = arith.constant 19 : index
    %113 = vector.load %arg4[%c0_124, %c0_125, %c0_126, %c19_127] : memref<1x1x2x324xf32, #tpu.memory_space<vmem>>, vector<1x1x2x252xf32>
    %114 = vector.shape_cast %113 : vector<1x1x2x252xf32> to vector<2x252xf32>
    %c19_128 = arith.constant 19 : index
    %c0_129 = arith.constant 0 : index
    %c0_130 = arith.constant 0 : index
    %115 = vector.load %arg8[%c19_128, %c0_129, %c0_130] : memref<27x4x2xf32, #tpu.memory_space<vmem>>, vector<1x4x2xf32>
    %116 = vector.shape_cast %115 : vector<1x4x2xf32> to vector<4x2xf32>
    %cst_131 = arith.constant dense<0.000000e+00> : vector<4x252xf32>
    %117 = tpu.matmul %116, %114, %cst_131 {dimension_numbers = #tpu.dot_dimension_numbers<[1], [0], [0], [1], [0, 0, 1, 1], [], []>} : vector<4x2xf32>, vector<2x252xf32>, vector<4x252xf32> -> vector<4x252xf32>
    %118 = arith.addf %112, %117 : vector<4x252xf32>
    %c0_132 = arith.constant 0 : index
    %c0_133 = arith.constant 0 : index
    %c0_134 = arith.constant 0 : index
    %c20_135 = arith.constant 20 : index
    %119 = vector.load %arg4[%c0_132, %c0_133, %c0_134, %c20_135] : memref<1x1x2x324xf32, #tpu.memory_space<vmem>>, vector<1x1x2x252xf32>
    %120 = vector.shape_cast %119 : vector<1x1x2x252xf32> to vector<2x252xf32>
    %c20_136 = arith.constant 20 : index
    %c0_137 = arith.constant 0 : index
    %c0_138 = arith.constant 0 : index
    %121 = vector.load %arg8[%c20_136, %c0_137, %c0_138] : memref<27x4x2xf32, #tpu.memory_space<vmem>>, vector<1x4x2xf32>
    %122 = vector.shape_cast %121 : vector<1x4x2xf32> to vector<4x2xf32>
    %cst_139 = arith.constant dense<0.000000e+00> : vector<4x252xf32>
    %123 = tpu.matmul %122, %120, %cst_139 {dimension_numbers = #tpu.dot_dimension_numbers<[1], [0], [0], [1], [0, 0, 1, 1], [], []>} : vector<4x2xf32>, vector<2x252xf32>, vector<4x252xf32> -> vector<4x252xf32>
    %124 = arith.addf %118, %123 : vector<4x252xf32>
    %c0_140 = arith.constant 0 : index
    %c0_141 = arith.constant 0 : index
    %c0_142 = arith.constant 0 : index
    %c36_143 = arith.constant 36 : index
    %125 = vector.load %arg4[%c0_140, %c0_141, %c0_142, %c36_143] : memref<1x1x2x324xf32, #tpu.memory_space<vmem>>, vector<1x1x2x252xf32>
    %126 = vector.shape_cast %125 : vector<1x1x2x252xf32> to vector<2x252xf32>
    %c21 = arith.constant 21 : index
    %c0_144 = arith.constant 0 : index
    %c0_145 = arith.constant 0 : index
    %127 = vector.load %arg8[%c21, %c0_144, %c0_145] : memref<27x4x2xf32, #tpu.memory_space<vmem>>, vector<1x4x2xf32>
    %128 = vector.shape_cast %127 : vector<1x4x2xf32> to vector<4x2xf32>
    %cst_146 = arith.constant dense<0.000000e+00> : vector<4x252xf32>
    %129 = tpu.matmul %128, %126, %cst_146 {dimension_numbers = #tpu.dot_dimension_numbers<[1], [0], [0], [1], [0, 0, 1, 1], [], []>} : vector<4x2xf32>, vector<2x252xf32>, vector<4x252xf32> -> vector<4x252xf32>
    %130 = arith.addf %124, %129 : vector<4x252xf32>
    %c0_147 = arith.constant 0 : index
    %c0_148 = arith.constant 0 : index
    %c0_149 = arith.constant 0 : index
    %c37_150 = arith.constant 37 : index
    %131 = vector.load %arg4[%c0_147, %c0_148, %c0_149, %c37_150] : memref<1x1x2x324xf32, #tpu.memory_space<vmem>>, vector<1x1x2x252xf32>
    %132 = vector.shape_cast %131 : vector<1x1x2x252xf32> to vector<2x252xf32>
    %c22 = arith.constant 22 : index
    %c0_151 = arith.constant 0 : index
    %c0_152 = arith.constant 0 : index
    %133 = vector.load %arg8[%c22, %c0_151, %c0_152] : memref<27x4x2xf32, #tpu.memory_space<vmem>>, vector<1x4x2xf32>
    %134 = vector.shape_cast %133 : vector<1x4x2xf32> to vector<4x2xf32>
    %cst_153 = arith.constant dense<0.000000e+00> : vector<4x252xf32>
    %135 = tpu.matmul %134, %132, %cst_153 {dimension_numbers = #tpu.dot_dimension_numbers<[1], [0], [0], [1], [0, 0, 1, 1], [], []>} : vector<4x2xf32>, vector<2x252xf32>, vector<4x252xf32> -> vector<4x252xf32>
    %136 = arith.addf %130, %135 : vector<4x252xf32>
    %c0_154 = arith.constant 0 : index
    %c0_155 = arith.constant 0 : index
    %c0_156 = arith.constant 0 : index
    %c38_157 = arith.constant 38 : index
    %137 = vector.load %arg4[%c0_154, %c0_155, %c0_156, %c38_157] : memref<1x1x2x324xf32, #tpu.memory_space<vmem>>, vector<1x1x2x252xf32>
    %138 = vector.shape_cast %137 : vector<1x1x2x252xf32> to vector<2x252xf32>
    %c23 = arith.constant 23 : index
    %c0_158 = arith.constant 0 : index
    %c0_159 = arith.constant 0 : index
    %139 = vector.load %arg8[%c23, %c0_158, %c0_159] : memref<27x4x2xf32, #tpu.memory_space<vmem>>, vector<1x4x2xf32>
    %140 = vector.shape_cast %139 : vector<1x4x2xf32> to vector<4x2xf32>
    %cst_160 = arith.constant dense<0.000000e+00> : vector<4x252xf32>
    %141 = tpu.matmul %140, %138, %cst_160 {dimension_numbers = #tpu.dot_dimension_numbers<[1], [0], [0], [1], [0, 0, 1, 1], [], []>} : vector<4x2xf32>, vector<2x252xf32>, vector<4x252xf32> -> vector<4x252xf32>
    %142 = arith.addf %136, %141 : vector<4x252xf32>
    %c0_161 = arith.constant 0 : index
    %c0_162 = arith.constant 0 : index
    %c0_163 = arith.constant 0 : index
    %c54_164 = arith.constant 54 : index
    %143 = vector.load %arg4[%c0_161, %c0_162, %c0_163, %c54_164] : memref<1x1x2x324xf32, #tpu.memory_space<vmem>>, vector<1x1x2x252xf32>
    %144 = vector.shape_cast %143 : vector<1x1x2x252xf32> to vector<2x252xf32>
    %c24 = arith.constant 24 : index
    %c0_165 = arith.constant 0 : index
    %c0_166 = arith.constant 0 : index
    %145 = vector.load %arg8[%c24, %c0_165, %c0_166] : memref<27x4x2xf32, #tpu.memory_space<vmem>>, vector<1x4x2xf32>
    %146 = vector.shape_cast %145 : vector<1x4x2xf32> to vector<4x2xf32>
    %cst_167 = arith.constant dense<0.000000e+00> : vector<4x252xf32>
    %147 = tpu.matmul %146, %144, %cst_167 {dimension_numbers = #tpu.dot_dimension_numbers<[1], [0], [0], [1], [0, 0, 1, 1], [], []>} : vector<4x2xf32>, vector<2x252xf32>, vector<4x252xf32> -> vector<4x252xf32>
    %148 = arith.addf %142, %147 : vector<4x252xf32>
    %c0_168 = arith.constant 0 : index
    %c0_169 = arith.constant 0 : index
    %c0_170 = arith.constant 0 : index
    %c55_171 = arith.constant 55 : index
    %149 = vector.load %arg4[%c0_168, %c0_169, %c0_170, %c55_171] : memref<1x1x2x324xf32, #tpu.memory_space<vmem>>, vector<1x1x2x252xf32>
    %150 = vector.shape_cast %149 : vector<1x1x2x252xf32> to vector<2x252xf32>
    %c25 = arith.constant 25 : index
    %c0_172 = arith.constant 0 : index
    %c0_173 = arith.constant 0 : index
    %151 = vector.load %arg8[%c25, %c0_172, %c0_173] : memref<27x4x2xf32, #tpu.memory_space<vmem>>, vector<1x4x2xf32>
    %152 = vector.shape_cast %151 : vector<1x4x2xf32> to vector<4x2xf32>
    %cst_174 = arith.constant dense<0.000000e+00> : vector<4x252xf32>
    %153 = tpu.matmul %152, %150, %cst_174 {dimension_numbers = #tpu.dot_dimension_numbers<[1], [0], [0], [1], [0, 0, 1, 1], [], []>} : vector<4x2xf32>, vector<2x252xf32>, vector<4x252xf32> -> vector<4x252xf32>
    %154 = arith.addf %148, %153 : vector<4x252xf32>
    %c0_175 = arith.constant 0 : index
    %c0_176 = arith.constant 0 : index
    %c0_177 = arith.constant 0 : index
    %c56_178 = arith.constant 56 : index
    %155 = vector.load %arg4[%c0_175, %c0_176, %c0_177, %c56_178] : memref<1x1x2x324xf32, #tpu.memory_space<vmem>>, vector<1x1x2x252xf32>
    %156 = vector.shape_cast %155 : vector<1x1x2x252xf32> to vector<2x252xf32>
    %c26 = arith.constant 26 : index
    %c0_179 = arith.constant 0 : index
    %c0_180 = arith.constant 0 : index
    %157 = vector.load %arg8[%c26, %c0_179, %c0_180] : memref<27x4x2xf32, #tpu.memory_space<vmem>>, vector<1x4x2xf32>
    %158 = vector.shape_cast %157 : vector<1x4x2xf32> to vector<4x2xf32>
    %cst_181 = arith.constant dense<0.000000e+00> : vector<4x252xf32>
    %159 = tpu.matmul %158, %156, %cst_181 {dimension_numbers = #tpu.dot_dimension_numbers<[1], [0], [0], [1], [0, 0, 1, 1], [], []>} : vector<4x2xf32>, vector<2x252xf32>, vector<4x252xf32> -> vector<4x252xf32>
    %160 = arith.addf %154, %159 : vector<4x252xf32>
    %c0_182 = arith.constant 0 : index
    %c0_183 = arith.constant 0 : index
    %161 = vector.load %arg9[%c0_182, %c0_183] : memref<4x1xf32, #tpu.memory_space<vmem>>, vector<4x1xf32>
    %162 = vector.broadcast %161 : vector<4x1xf32> to vector<4x252xf32>
    %163 = arith.addf %160, %162 : vector<4x252xf32>
    %164 = vector.extract_strided_slice %163 {offsets = [0, 0], sizes = [4, 16], strides = [1, 1]} : vector<4x252xf32> to vector<4x16xf32>
    %c0_184 = arith.constant 0 : index
    %c0_185 = arith.constant 0 : index
    %c0_186 = arith.constant 0 : index
    %165 = vector.load %arg10[%c0_184, %c0_185, %c0_186] : memref<1x4x896xf32, #tpu.memory_space<vmem>>, vector<1x4x16xf32>
    %166 = vector.shape_cast %165 : vector<1x4x16xf32> to vector<4x16xf32>
    %167 = vector.shape_cast %164 : vector<4x16xf32> to vector<1x4x16xf32>
    tpu.vector_store %arg10[%c0_184, %c0_185, %c0_186], %167 {strides = array<i32>} : memref<1x4x896xf32, #tpu.memory_space<vmem>>, vector<1x4x16xf32>,
    %168 = vector.extract_strided_slice %163 {offsets = [0, 18], sizes = [4, 16], strides = [1, 1]} : vector<4x252xf32> to vector<4x16xf32>
    %c0_187 = arith.constant 0 : index
    %c0_188 = arith.constant 0 : index
    %c16_189 = arith.constant 16 : index
    %169 = vector.load %arg10[%c0_187, %c0_188, %c16_189] : memref<1x4x896xf32, #tpu.memory_space<vmem>>, vector<1x4x16xf32>
    %170 = vector.shape_cast %169 : vector<1x4x16xf32> to vector<4x16xf32>
    %171 = vector.shape_cast %168 : vector<4x16xf32> to vector<1x4x16xf32>
    tpu.vector_store %arg10[%c0_187, %c0_188, %c16_189], %171 {strides = array<i32>} : memref<1x4x896xf32, #tpu.memory_space<vmem>>, vector<1x4x16xf32>,
    %172 = vector.extract_strided_slice %163 {offsets = [0, 36], sizes = [4, 16], strides = [1, 1]} : vector<4x252xf32> to vector<4x16xf32>
    %c0_190 = arith.constant 0 : index
    %c0_191 = arith.constant 0 : index
    %c32 = arith.constant 32 : index
    %173 = vector.load %arg10[%c0_190, %c0_191, %c32] : memref<1x4x896xf32, #tpu.memory_space<vmem>>, vector<1x4x16xf32>
    %174 = vector.shape_cast %173 : vector<1x4x16xf32> to vector<4x16xf32>
    %175 = vector.shape_cast %172 : vector<4x16xf32> to vector<1x4x16xf32>
    tpu.vector_store %arg10[%c0_190, %c0_191, %c32], %175 {strides = array<i32>} : memref<1x4x896xf32, #tpu.memory_space<vmem>>, vector<1x4x16xf32>,
    %176 = vector.extract_strided_slice %163 {offsets = [0, 54], sizes = [4, 16], strides = [1, 1]} : vector<4x252xf32> to vector<4x16xf32>
    %c0_192 = arith.constant 0 : index
    %c0_193 = arith.constant 0 : index
    %c48 = arith.constant 48 : index
    %177 = vector.load %arg10[%c0_192, %c0_193, %c48] : memref<1x4x896xf32, #tpu.memory_space<vmem>>, vector<1x4x16xf32>
    %178 = vector.shape_cast %177 : vector<1x4x16xf32> to vector<4x16xf32>
    %179 = vector.shape_cast %176 : vector<4x16xf32> to vector<1x4x16xf32>
    tpu.vector_store %arg10[%c0_192, %c0_193, %c48], %179 {strides = array<i32>} : memref<1x4x896xf32, #tpu.memory_space<vmem>>, vector<1x4x16xf32>,
    %180 = vector.extract_strided_slice %163 {offsets = [0, 72], sizes = [4, 16], strides = [1, 1]} : vector<4x252xf32> to vector<4x16xf32>
    %c0_194 = arith.constant 0 : index
    %c0_195 = arith.constant 0 : index
    %c64 = arith.constant 64 : index
    %181 = vector.load %arg10[%c0_194, %c0_195, %c64] : memref<1x4x896xf32, #tpu.memory_space<vmem>>, vector<1x4x16xf32>
    %182 = vector.shape_cast %181 : vector<1x4x16xf32> to vector<4x16xf32>
    %183 = vector.shape_cast %180 : vector<4x16xf32> to vector<1x4x16xf32>
    tpu.vector_store %arg10[%c0_194, %c0_195, %c64], %183 {strides = array<i32>} : memref<1x4x896xf32, #tpu.memory_space<vmem>>, vector<1x4x16xf32>,
    %184 = vector.extract_strided_slice %163 {offsets = [0, 90], sizes = [4, 16], strides = [1, 1]} : vector<4x252xf32> to vector<4x16xf32>
    %c0_196 = arith.constant 0 : index
    %c0_197 = arith.constant 0 : index
    %c80 = arith.constant 80 : index
    %185 = vector.load %arg10[%c0_196, %c0_197, %c80] : memref<1x4x896xf32, #tpu.memory_space<vmem>>, vector<1x4x16xf32>
    %186 = vector.shape_cast %185 : vector<1x4x16xf32> to vector<4x16xf32>
    %187 = vector.shape_cast %184 : vector<4x16xf32> to vector<1x4x16xf32>
    tpu.vector_store %arg10[%c0_196, %c0_197, %c80], %187 {strides = array<i32>} : memref<1x4x896xf32, #tpu.memory_space<vmem>>, vector<1x4x16xf32>,
    %188 = vector.extract_strided_slice %163 {offsets = [0, 108], sizes = [4, 16], strides = [1, 1]} : vector<4x252xf32> to vector<4x16xf32>
    %c0_198 = arith.constant 0 : index
    %c0_199 = arith.constant 0 : index
    %c96 = arith.constant 96 : index
    %189 = vector.load %arg10[%c0_198, %c0_199, %c96] : memref<1x4x896xf32, #tpu.memory_space<vmem>>, vector<1x4x16xf32>
    %190 = vector.shape_cast %189 : vector<1x4x16xf32> to vector<4x16xf32>
    %191 = vector.shape_cast %188 : vector<4x16xf32> to vector<1x4x16xf32>
    tpu.vector_store %arg10[%c0_198, %c0_199, %c96], %191 {strides = array<i32>} : memref<1x4x896xf32, #tpu.memory_space<vmem>>, vector<1x4x16xf32>,
    %192 = vector.extract_strided_slice %163 {offsets = [0, 126], sizes = [4, 16], strides = [1, 1]} : vector<4x252xf32> to vector<4x16xf32>
    %c0_200 = arith.constant 0 : index
    %c0_201 = arith.constant 0 : index
    %c112 = arith.constant 112 : index
    %193 = vector.load %arg10[%c0_200, %c0_201, %c112] : memref<1x4x896xf32, #tpu.memory_space<vmem>>, vector<1x4x16xf32>
    %194 = vector.shape_cast %193 : vector<1x4x16xf32> to vector<4x16xf32>
    %195 = vector.shape_cast %192 : vector<4x16xf32> to vector<1x4x16xf32>
    tpu.vector_store %arg10[%c0_200, %c0_201, %c112], %195 {strides = array<i32>} : memref<1x4x896xf32, #tpu.memory_space<vmem>>, vector<1x4x16xf32>,
    %196 = vector.extract_strided_slice %163 {offsets = [0, 144], sizes = [4, 16], strides = [1, 1]} : vector<4x252xf32> to vector<4x16xf32>
    %c0_202 = arith.constant 0 : index
    %c0_203 = arith.constant 0 : index
    %c128 = arith.constant 128 : index
    %197 = vector.load %arg10[%c0_202, %c0_203, %c128] : memref<1x4x896xf32, #tpu.memory_space<vmem>>, vector<1x4x16xf32>
    %198 = vector.shape_cast %197 : vector<1x4x16xf32> to vector<4x16xf32>
    %199 = vector.shape_cast %196 : vector<4x16xf32> to vector<1x4x16xf32>
    tpu.vector_store %arg10[%c0_202, %c0_203, %c128], %199 {strides = array<i32>} : memref<1x4x896xf32, #tpu.memory_space<vmem>>, vector<1x4x16xf32>,
    %200 = vector.extract_strided_slice %163 {offsets = [0, 162], sizes = [4, 16], strides = [1, 1]} : vector<4x252xf32> to vector<4x16xf32>
    %c0_204 = arith.constant 0 : index
    %c0_205 = arith.constant 0 : index
    %c144 = arith.constant 144 : index
    %201 = vector.load %arg10[%c0_204, %c0_205, %c144] : memref<1x4x896xf32, #tpu.memory_space<vmem>>, vector<1x4x16xf32>
    %202 = vector.shape_cast %201 : vector<1x4x16xf32> to vector<4x16xf32>
    %203 = vector.shape_cast %200 : vector<4x16xf32> to vector<1x4x16xf32>
    tpu.vector_store %arg10[%c0_204, %c0_205, %c144], %203 {strides = array<i32>} : memref<1x4x896xf32, #tpu.memory_space<vmem>>, vector<1x4x16xf32>,
    %204 = vector.extract_strided_slice %163 {offsets = [0, 180], sizes = [4, 16], strides = [1, 1]} : vector<4x252xf32> to vector<4x16xf32>
    %c0_206 = arith.constant 0 : index
    %c0_207 = arith.constant 0 : index
    %c160 = arith.constant 160 : index
    %205 = vector.load %arg10[%c0_206, %c0_207, %c160] : memref<1x4x896xf32, #tpu.memory_space<vmem>>, vector<1x4x16xf32>
    %206 = vector.shape_cast %205 : vector<1x4x16xf32> to vector<4x16xf32>
    %207 = vector.shape_cast %204 : vector<4x16xf32> to vector<1x4x16xf32>
    tpu.vector_store %arg10[%c0_206, %c0_207, %c160], %207 {strides = array<i32>} : memref<1x4x896xf32, #tpu.memory_space<vmem>>, vector<1x4x16xf32>,
    %208 = vector.extract_strided_slice %163 {offsets = [0, 198], sizes = [4, 16], strides = [1, 1]} : vector<4x252xf32> to vector<4x16xf32>
    %c0_208 = arith.constant 0 : index
    %c0_209 = arith.constant 0 : index
    %c176 = arith.constant 176 : index
    %209 = vector.load %arg10[%c0_208, %c0_209, %c176] : memref<1x4x896xf32, #tpu.memory_space<vmem>>, vector<1x4x16xf32>
    %210 = vector.shape_cast %209 : vector<1x4x16xf32> to vector<4x16xf32>
    %211 = vector.shape_cast %208 : vector<4x16xf32> to vector<1x4x16xf32>
    tpu.vector_store %arg10[%c0_208, %c0_209, %c176], %211 {strides = array<i32>} : memref<1x4x896xf32, #tpu.memory_space<vmem>>, vector<1x4x16xf32>,
    %212 = vector.extract_strided_slice %163 {offsets = [0, 216], sizes = [4, 16], strides = [1, 1]} : vector<4x252xf32> to vector<4x16xf32>
    %c0_210 = arith.constant 0 : index
    %c0_211 = arith.constant 0 : index
    %c192 = arith.constant 192 : index
    %213 = vector.load %arg10[%c0_210, %c0_211, %c192] : memref<1x4x896xf32, #tpu.memory_space<vmem>>, vector<1x4x16xf32>
    %214 = vector.shape_cast %213 : vector<1x4x16xf32> to vector<4x16xf32>
    %215 = vector.shape_cast %212 : vector<4x16xf32> to vector<1x4x16xf32>
    tpu.vector_store %arg10[%c0_210, %c0_211, %c192], %215 {strides = array<i32>} : memref<1x4x896xf32, #tpu.memory_space<vmem>>, vector<1x4x16xf32>,
    %216 = vector.extract_strided_slice %163 {offsets = [0, 234], sizes = [4, 16], strides = [1, 1]} : vector<4x252xf32> to vector<4x16xf32>
    %c0_212 = arith.constant 0 : index
    %c0_213 = arith.constant 0 : index
    %c208 = arith.constant 208 : index
    %217 = vector.load %arg10[%c0_212, %c0_213, %c208] : memref<1x4x896xf32, #tpu.memory_space<vmem>>, vector<1x4x16xf32>
    %218 = vector.shape_cast %217 : vector<1x4x16xf32> to vector<4x16xf32>
    %219 = vector.shape_cast %216 : vector<4x16xf32> to vector<1x4x16xf32>
    tpu.vector_store %arg10[%c0_212, %c0_213, %c208], %219 {strides = array<i32>} : memref<1x4x896xf32, #tpu.memory_space<vmem>>, vector<1x4x16xf32>,
    %c0_214 = arith.constant 0 : index
    %c0_215 = arith.constant 0 : index
    %c0_216 = arith.constant 0 : index
    %c18_217 = arith.constant 18 : index
    %220 = vector.load %arg3[%c0_214, %c0_215, %c0_216, %c18_217] : memref<1x1x2x324xf32, #tpu.memory_space<vmem>>, vector<1x1x2x252xf32>
    %221 = vector.shape_cast %220 : vector<1x1x2x252xf32> to vector<2x252xf32>
    %c0_218 = arith.constant 0 : index
    %c0_219 = arith.constant 0 : index
    %c0_220 = arith.constant 0 : index
    %222 = vector.load %arg8[%c0_218, %c0_219, %c0_220] : memref<27x4x2xf32, #tpu.memory_space<vmem>>, vector<1x4x2xf32>
    %223 = vector.shape_cast %222 : vector<1x4x2xf32> to vector<4x2xf32>
    %cst_221 = arith.constant dense<0.000000e+00> : vector<4x252xf32>
    %224 = tpu.matmul %223, %221, %cst_221 {dimension_numbers = #tpu.dot_dimension_numbers<[1], [0], [0], [1], [0, 0, 1, 1], [], []>} : vector<4x2xf32>, vector<2x252xf32>, vector<4x252xf32> -> vector<4x252xf32>
    %c0_222 = arith.constant 0 : index
    %c0_223 = arith.constant 0 : index
    %c0_224 = arith.constant 0 : index
    %c19_225 = arith.constant 19 : index
    %225 = vector.load %arg3[%c0_222, %c0_223, %c0_224, %c19_225] : memref<1x1x2x324xf32, #tpu.memory_space<vmem>>, vector<1x1x2x252xf32>
    %226 = vector.shape_cast %225 : vector<1x1x2x252xf32> to vector<2x252xf32>
    %c1_226 = arith.constant 1 : index
    %c0_227 = arith.constant 0 : index
    %c0_228 = arith.constant 0 : index
    %227 = vector.load %arg8[%c1_226, %c0_227, %c0_228] : memref<27x4x2xf32, #tpu.memory_space<vmem>>, vector<1x4x2xf32>
    %228 = vector.shape_cast %227 : vector<1x4x2xf32> to vector<4x2xf32>
    %cst_229 = arith.constant dense<0.000000e+00> : vector<4x252xf32>
    %229 = tpu.matmul %228, %226, %cst_229 {dimension_numbers = #tpu.dot_dimension_numbers<[1], [0], [0], [1], [0, 0, 1, 1], [], []>} : vector<4x2xf32>, vector<2x252xf32>, vector<4x252xf32> -> vector<4x252xf32>
    %230 = arith.addf %224, %229 : vector<4x252xf32>
    %c0_230 = arith.constant 0 : index
    %c0_231 = arith.constant 0 : index
    %c0_232 = arith.constant 0 : index
    %c20_233 = arith.constant 20 : index
    %231 = vector.load %arg3[%c0_230, %c0_231, %c0_232, %c20_233] : memref<1x1x2x324xf32, #tpu.memory_space<vmem>>, vector<1x1x2x252xf32>
    %232 = vector.shape_cast %231 : vector<1x1x2x252xf32> to vector<2x252xf32>
    %c2_234 = arith.constant 2 : index
    %c0_235 = arith.constant 0 : index
    %c0_236 = arith.constant 0 : index
    %233 = vector.load %arg8[%c2_234, %c0_235, %c0_236] : memref<27x4x2xf32, #tpu.memory_space<vmem>>, vector<1x4x2xf32>
    %234 = vector.shape_cast %233 : vector<1x4x2xf32> to vector<4x2xf32>
    %cst_237 = arith.constant dense<0.000000e+00> : vector<4x252xf32>
    %235 = tpu.matmul %234, %232, %cst_237 {dimension_numbers = #tpu.dot_dimension_numbers<[1], [0], [0], [1], [0, 0, 1, 1], [], []>} : vector<4x2xf32>, vector<2x252xf32>, vector<4x252xf32> -> vector<4x252xf32>
    %236 = arith.addf %230, %235 : vector<4x252xf32>
    %c0_238 = arith.constant 0 : index
    %c0_239 = arith.constant 0 : index
    %c0_240 = arith.constant 0 : index
    %c36_241 = arith.constant 36 : index
    %237 = vector.load %arg3[%c0_238, %c0_239, %c0_240, %c36_241] : memref<1x1x2x324xf32, #tpu.memory_space<vmem>>, vector<1x1x2x252xf32>
    %238 = vector.shape_cast %237 : vector<1x1x2x252xf32> to vector<2x252xf32>
    %c3_242 = arith.constant 3 : index
    %c0_243 = arith.constant 0 : index
    %c0_244 = arith.constant 0 : index
    %239 = vector.load %arg8[%c3_242, %c0_243, %c0_244] : memref<27x4x2xf32, #tpu.memory_space<vmem>>, vector<1x4x2xf32>
    %240 = vector.shape_cast %239 : vector<1x4x2xf32> to vector<4x2xf32>
    %cst_245 = arith.constant dense<0.000000e+00> : vector<4x252xf32>
    %241 = tpu.matmul %240, %238, %cst_245 {dimension_numbers = #tpu.dot_dimension_numbers<[1], [0], [0], [1], [0, 0, 1, 1], [], []>} : vector<4x2xf32>, vector<2x252xf32>, vector<4x252xf32> -> vector<4x252xf32>
    %242 = arith.addf %236, %241 : vector<4x252xf32>
    %c0_246 = arith.constant 0 : index
    %c0_247 = arith.constant 0 : index
    %c0_248 = arith.constant 0 : index
    %c37_249 = arith.constant 37 : index
    %243 = vector.load %arg3[%c0_246, %c0_247, %c0_248, %c37_249] : memref<1x1x2x324xf32, #tpu.memory_space<vmem>>, vector<1x1x2x252xf32>
    %244 = vector.shape_cast %243 : vector<1x1x2x252xf32> to vector<2x252xf32>
    %c4_250 = arith.constant 4 : index
    %c0_251 = arith.constant 0 : index
    %c0_252 = arith.constant 0 : index
    %245 = vector.load %arg8[%c4_250, %c0_251, %c0_252] : memref<27x4x2xf32, #tpu.memory_space<vmem>>, vector<1x4x2xf32>
    %246 = vector.shape_cast %245 : vector<1x4x2xf32> to vector<4x2xf32>
    %cst_253 = arith.constant dense<0.000000e+00> : vector<4x252xf32>
    %247 = tpu.matmul %246, %244, %cst_253 {dimension_numbers = #tpu.dot_dimension_numbers<[1], [0], [0], [1], [0, 0, 1, 1], [], []>} : vector<4x2xf32>, vector<2x252xf32>, vector<4x252xf32> -> vector<4x252xf32>
    %248 = arith.addf %242, %247 : vector<4x252xf32>
    %c0_254 = arith.constant 0 : index
    %c0_255 = arith.constant 0 : index
    %c0_256 = arith.constant 0 : index
    %c38_257 = arith.constant 38 : index
    %249 = vector.load %arg3[%c0_254, %c0_255, %c0_256, %c38_257] : memref<1x1x2x324xf32, #tpu.memory_space<vmem>>, vector<1x1x2x252xf32>
    %250 = vector.shape_cast %249 : vector<1x1x2x252xf32> to vector<2x252xf32>
    %c5_258 = arith.constant 5 : index
    %c0_259 = arith.constant 0 : index
    %c0_260 = arith.constant 0 : index
    %251 = vector.load %arg8[%c5_258, %c0_259, %c0_260] : memref<27x4x2xf32, #tpu.memory_space<vmem>>, vector<1x4x2xf32>
    %252 = vector.shape_cast %251 : vector<1x4x2xf32> to vector<4x2xf32>
    %cst_261 = arith.constant dense<0.000000e+00> : vector<4x252xf32>
    %253 = tpu.matmul %252, %250, %cst_261 {dimension_numbers = #tpu.dot_dimension_numbers<[1], [0], [0], [1], [0, 0, 1, 1], [], []>} : vector<4x2xf32>, vector<2x252xf32>, vector<4x252xf32> -> vector<4x252xf32>
    %254 = arith.addf %248, %253 : vector<4x252xf32>
    %c0_262 = arith.constant 0 : index
    %c0_263 = arith.constant 0 : index
    %c0_264 = arith.constant 0 : index
    %c54_265 = arith.constant 54 : index
    %255 = vector.load %arg3[%c0_262, %c0_263, %c0_264, %c54_265] : memref<1x1x2x324xf32, #tpu.memory_space<vmem>>, vector<1x1x2x252xf32>
    %256 = vector.shape_cast %255 : vector<1x1x2x252xf32> to vector<2x252xf32>
    %c6_266 = arith.constant 6 : index
    %c0_267 = arith.constant 0 : index
    %c0_268 = arith.constant 0 : index
    %257 = vector.load %arg8[%c6_266, %c0_267, %c0_268] : memref<27x4x2xf32, #tpu.memory_space<vmem>>, vector<1x4x2xf32>
    %258 = vector.shape_cast %257 : vector<1x4x2xf32> to vector<4x2xf32>
    %cst_269 = arith.constant dense<0.000000e+00> : vector<4x252xf32>
    %259 = tpu.matmul %258, %256, %cst_269 {dimension_numbers = #tpu.dot_dimension_numbers<[1], [0], [0], [1], [0, 0, 1, 1], [], []>} : vector<4x2xf32>, vector<2x252xf32>, vector<4x252xf32> -> vector<4x252xf32>
    %260 = arith.addf %254, %259 : vector<4x252xf32>
    %c0_270 = arith.constant 0 : index
    %c0_271 = arith.constant 0 : index
    %c0_272 = arith.constant 0 : index
    %c55_273 = arith.constant 55 : index
    %261 = vector.load %arg3[%c0_270, %c0_271, %c0_272, %c55_273] : memref<1x1x2x324xf32, #tpu.memory_space<vmem>>, vector<1x1x2x252xf32>
    %262 = vector.shape_cast %261 : vector<1x1x2x252xf32> to vector<2x252xf32>
    %c7_274 = arith.constant 7 : index
    %c0_275 = arith.constant 0 : index
    %c0_276 = arith.constant 0 : index
    %263 = vector.load %arg8[%c7_274, %c0_275, %c0_276] : memref<27x4x2xf32, #tpu.memory_space<vmem>>, vector<1x4x2xf32>
    %264 = vector.shape_cast %263 : vector<1x4x2xf32> to vector<4x2xf32>
    %cst_277 = arith.constant dense<0.000000e+00> : vector<4x252xf32>
    %265 = tpu.matmul %264, %262, %cst_277 {dimension_numbers = #tpu.dot_dimension_numbers<[1], [0], [0], [1], [0, 0, 1, 1], [], []>} : vector<4x2xf32>, vector<2x252xf32>, vector<4x252xf32> -> vector<4x252xf32>
    %266 = arith.addf %260, %265 : vector<4x252xf32>
    %c0_278 = arith.constant 0 : index
    %c0_279 = arith.constant 0 : index
    %c0_280 = arith.constant 0 : index
    %c56_281 = arith.constant 56 : index
    %267 = vector.load %arg3[%c0_278, %c0_279, %c0_280, %c56_281] : memref<1x1x2x324xf32, #tpu.memory_space<vmem>>, vector<1x1x2x252xf32>
    %268 = vector.shape_cast %267 : vector<1x1x2x252xf32> to vector<2x252xf32>
    %c8_282 = arith.constant 8 : index
    %c0_283 = arith.constant 0 : index
    %c0_284 = arith.constant 0 : index
    %269 = vector.load %arg8[%c8_282, %c0_283, %c0_284] : memref<27x4x2xf32, #tpu.memory_space<vmem>>, vector<1x4x2xf32>
    %270 = vector.shape_cast %269 : vector<1x4x2xf32> to vector<4x2xf32>
    %cst_285 = arith.constant dense<0.000000e+00> : vector<4x252xf32>
    %271 = tpu.matmul %270, %268, %cst_285 {dimension_numbers = #tpu.dot_dimension_numbers<[1], [0], [0], [1], [0, 0, 1, 1], [], []>} : vector<4x2xf32>, vector<2x252xf32>, vector<4x252xf32> -> vector<4x252xf32>
    %272 = arith.addf %266, %271 : vector<4x252xf32>
    %c0_286 = arith.constant 0 : index
    %c0_287 = arith.constant 0 : index
    %c0_288 = arith.constant 0 : index
    %c18_289 = arith.constant 18 : index
    %273 = vector.load %arg4[%c0_286, %c0_287, %c0_288, %c18_289] : memref<1x1x2x324xf32, #tpu.memory_space<vmem>>, vector<1x1x2x252xf32>
    %274 = vector.shape_cast %273 : vector<1x1x2x252xf32> to vector<2x252xf32>
    %c9_290 = arith.constant 9 : index
    %c0_291 = arith.constant 0 : index
    %c0_292 = arith.constant 0 : index
    %275 = vector.load %arg8[%c9_290, %c0_291, %c0_292] : memref<27x4x2xf32, #tpu.memory_space<vmem>>, vector<1x4x2xf32>
    %276 = vector.shape_cast %275 : vector<1x4x2xf32> to vector<4x2xf32>
    %cst_293 = arith.constant dense<0.000000e+00> : vector<4x252xf32>
    %277 = tpu.matmul %276, %274, %cst_293 {dimension_numbers = #tpu.dot_dimension_numbers<[1], [0], [0], [1], [0, 0, 1, 1], [], []>} : vector<4x2xf32>, vector<2x252xf32>, vector<4x252xf32> -> vector<4x252xf32>
    %278 = arith.addf %272, %277 : vector<4x252xf32>
    %c0_294 = arith.constant 0 : index
    %c0_295 = arith.constant 0 : index
    %c0_296 = arith.constant 0 : index
    %c19_297 = arith.constant 19 : index
    %279 = vector.load %arg4[%c0_294, %c0_295, %c0_296, %c19_297] : memref<1x1x2x324xf32, #tpu.memory_space<vmem>>, vector<1x1x2x252xf32>
    %280 = vector.shape_cast %279 : vector<1x1x2x252xf32> to vector<2x252xf32>
    %c10_298 = arith.constant 10 : index
    %c0_299 = arith.constant 0 : index
    %c0_300 = arith.constant 0 : index
    %281 = vector.load %arg8[%c10_298, %c0_299, %c0_300] : memref<27x4x2xf32, #tpu.memory_space<vmem>>, vector<1x4x2xf32>
    %282 = vector.shape_cast %281 : vector<1x4x2xf32> to vector<4x2xf32>
    %cst_301 = arith.constant dense<0.000000e+00> : vector<4x252xf32>
    %283 = tpu.matmul %282, %280, %cst_301 {dimension_numbers = #tpu.dot_dimension_numbers<[1], [0], [0], [1], [0, 0, 1, 1], [], []>} : vector<4x2xf32>, vector<2x252xf32>, vector<4x252xf32> -> vector<4x252xf32>
    %284 = arith.addf %278, %283 : vector<4x252xf32>
    %c0_302 = arith.constant 0 : index
    %c0_303 = arith.constant 0 : index
    %c0_304 = arith.constant 0 : index
    %c20_305 = arith.constant 20 : index
    %285 = vector.load %arg4[%c0_302, %c0_303, %c0_304, %c20_305] : memref<1x1x2x324xf32, #tpu.memory_space<vmem>>, vector<1x1x2x252xf32>
    %286 = vector.shape_cast %285 : vector<1x1x2x252xf32> to vector<2x252xf32>
    %c11_306 = arith.constant 11 : index
    %c0_307 = arith.constant 0 : index
    %c0_308 = arith.constant 0 : index
    %287 = vector.load %arg8[%c11_306, %c0_307, %c0_308] : memref<27x4x2xf32, #tpu.memory_space<vmem>>, vector<1x4x2xf32>
    %288 = vector.shape_cast %287 : vector<1x4x2xf32> to vector<4x2xf32>
    %cst_309 = arith.constant dense<0.000000e+00> : vector<4x252xf32>
    %289 = tpu.matmul %288, %286, %cst_309 {dimension_numbers = #tpu.dot_dimension_numbers<[1], [0], [0], [1], [0, 0, 1, 1], [], []>} : vector<4x2xf32>, vector<2x252xf32>, vector<4x252xf32> -> vector<4x252xf32>
    %290 = arith.addf %284, %289 : vector<4x252xf32>
    %c0_310 = arith.constant 0 : index
    %c0_311 = arith.constant 0 : index
    %c0_312 = arith.constant 0 : index
    %c36_313 = arith.constant 36 : index
    %291 = vector.load %arg4[%c0_310, %c0_311, %c0_312, %c36_313] : memref<1x1x2x324xf32, #tpu.memory_space<vmem>>, vector<1x1x2x252xf32>
    %292 = vector.shape_cast %291 : vector<1x1x2x252xf32> to vector<2x252xf32>
    %c12_314 = arith.constant 12 : index
    %c0_315 = arith.constant 0 : index
    %c0_316 = arith.constant 0 : index
    %293 = vector.load %arg8[%c12_314, %c0_315, %c0_316] : memref<27x4x2xf32, #tpu.memory_space<vmem>>, vector<1x4x2xf32>
    %294 = vector.shape_cast %293 : vector<1x4x2xf32> to vector<4x2xf32>
    %cst_317 = arith.constant dense<0.000000e+00> : vector<4x252xf32>
    %295 = tpu.matmul %294, %292, %cst_317 {dimension_numbers = #tpu.dot_dimension_numbers<[1], [0], [0], [1], [0, 0, 1, 1], [], []>} : vector<4x2xf32>, vector<2x252xf32>, vector<4x252xf32> -> vector<4x252xf32>
    %296 = arith.addf %290, %295 : vector<4x252xf32>
    %c0_318 = arith.constant 0 : index
    %c0_319 = arith.constant 0 : index
    %c0_320 = arith.constant 0 : index
    %c37_321 = arith.constant 37 : index
    %297 = vector.load %arg4[%c0_318, %c0_319, %c0_320, %c37_321] : memref<1x1x2x324xf32, #tpu.memory_space<vmem>>, vector<1x1x2x252xf32>
    %298 = vector.shape_cast %297 : vector<1x1x2x252xf32> to vector<2x252xf32>
    %c13_322 = arith.constant 13 : index
    %c0_323 = arith.constant 0 : index
    %c0_324 = arith.constant 0 : index
    %299 = vector.load %arg8[%c13_322, %c0_323, %c0_324] : memref<27x4x2xf32, #tpu.memory_space<vmem>>, vector<1x4x2xf32>
    %300 = vector.shape_cast %299 : vector<1x4x2xf32> to vector<4x2xf32>
    %cst_325 = arith.constant dense<0.000000e+00> : vector<4x252xf32>
    %301 = tpu.matmul %300, %298, %cst_325 {dimension_numbers = #tpu.dot_dimension_numbers<[1], [0], [0], [1], [0, 0, 1, 1], [], []>} : vector<4x2xf32>, vector<2x252xf32>, vector<4x252xf32> -> vector<4x252xf32>
    %302 = arith.addf %296, %301 : vector<4x252xf32>
    %c0_326 = arith.constant 0 : index
    %c0_327 = arith.constant 0 : index
    %c0_328 = arith.constant 0 : index
    %c38_329 = arith.constant 38 : index
    %303 = vector.load %arg4[%c0_326, %c0_327, %c0_328, %c38_329] : memref<1x1x2x324xf32, #tpu.memory_space<vmem>>, vector<1x1x2x252xf32>
    %304 = vector.shape_cast %303 : vector<1x1x2x252xf32> to vector<2x252xf32>
    %c14_330 = arith.constant 14 : index
    %c0_331 = arith.constant 0 : index
    %c0_332 = arith.constant 0 : index
    %305 = vector.load %arg8[%c14_330, %c0_331, %c0_332] : memref<27x4x2xf32, #tpu.memory_space<vmem>>, vector<1x4x2xf32>
    %306 = vector.shape_cast %305 : vector<1x4x2xf32> to vector<4x2xf32>
    %cst_333 = arith.constant dense<0.000000e+00> : vector<4x252xf32>
    %307 = tpu.matmul %306, %304, %cst_333 {dimension_numbers = #tpu.dot_dimension_numbers<[1], [0], [0], [1], [0, 0, 1, 1], [], []>} : vector<4x2xf32>, vector<2x252xf32>, vector<4x252xf32> -> vector<4x252xf32>
    %308 = arith.addf %302, %307 : vector<4x252xf32>
    %c0_334 = arith.constant 0 : index
    %c0_335 = arith.constant 0 : index
    %c0_336 = arith.constant 0 : index
    %c54_337 = arith.constant 54 : index
    %309 = vector.load %arg4[%c0_334, %c0_335, %c0_336, %c54_337] : memref<1x1x2x324xf32, #tpu.memory_space<vmem>>, vector<1x1x2x252xf32>
    %310 = vector.shape_cast %309 : vector<1x1x2x252xf32> to vector<2x252xf32>
    %c15_338 = arith.constant 15 : index
    %c0_339 = arith.constant 0 : index
    %c0_340 = arith.constant 0 : index
    %311 = vector.load %arg8[%c15_338, %c0_339, %c0_340] : memref<27x4x2xf32, #tpu.memory_space<vmem>>, vector<1x4x2xf32>
    %312 = vector.shape_cast %311 : vector<1x4x2xf32> to vector<4x2xf32>
    %cst_341 = arith.constant dense<0.000000e+00> : vector<4x252xf32>
    %313 = tpu.matmul %312, %310, %cst_341 {dimension_numbers = #tpu.dot_dimension_numbers<[1], [0], [0], [1], [0, 0, 1, 1], [], []>} : vector<4x2xf32>, vector<2x252xf32>, vector<4x252xf32> -> vector<4x252xf32>
    %314 = arith.addf %308, %313 : vector<4x252xf32>
    %c0_342 = arith.constant 0 : index
    %c0_343 = arith.constant 0 : index
    %c0_344 = arith.constant 0 : index
    %c55_345 = arith.constant 55 : index
    %315 = vector.load %arg4[%c0_342, %c0_343, %c0_344, %c55_345] : memref<1x1x2x324xf32, #tpu.memory_space<vmem>>, vector<1x1x2x252xf32>
    %316 = vector.shape_cast %315 : vector<1x1x2x252xf32> to vector<2x252xf32>
    %c16_346 = arith.constant 16 : index
    %c0_347 = arith.constant 0 : index
    %c0_348 = arith.constant 0 : index
    %317 = vector.load %arg8[%c16_346, %c0_347, %c0_348] : memref<27x4x2xf32, #tpu.memory_space<vmem>>, vector<1x4x2xf32>
    %318 = vector.shape_cast %317 : vector<1x4x2xf32> to vector<4x2xf32>
    %cst_349 = arith.constant dense<0.000000e+00> : vector<4x252xf32>
    %319 = tpu.matmul %318, %316, %cst_349 {dimension_numbers = #tpu.dot_dimension_numbers<[1], [0], [0], [1], [0, 0, 1, 1], [], []>} : vector<4x2xf32>, vector<2x252xf32>, vector<4x252xf32> -> vector<4x252xf32>
    %320 = arith.addf %314, %319 : vector<4x252xf32>
    %c0_350 = arith.constant 0 : index
    %c0_351 = arith.constant 0 : index
    %c0_352 = arith.constant 0 : index
    %c56_353 = arith.constant 56 : index
    %321 = vector.load %arg4[%c0_350, %c0_351, %c0_352, %c56_353] : memref<1x1x2x324xf32, #tpu.memory_space<vmem>>, vector<1x1x2x252xf32>
    %322 = vector.shape_cast %321 : vector<1x1x2x252xf32> to vector<2x252xf32>
    %c17_354 = arith.constant 17 : index
    %c0_355 = arith.constant 0 : index
    %c0_356 = arith.constant 0 : index
    %323 = vector.load %arg8[%c17_354, %c0_355, %c0_356] : memref<27x4x2xf32, #tpu.memory_space<vmem>>, vector<1x4x2xf32>
    %324 = vector.shape_cast %323 : vector<1x4x2xf32> to vector<4x2xf32>
    %cst_357 = arith.constant dense<0.000000e+00> : vector<4x252xf32>
    %325 = tpu.matmul %324, %322, %cst_357 {dimension_numbers = #tpu.dot_dimension_numbers<[1], [0], [0], [1], [0, 0, 1, 1], [], []>} : vector<4x2xf32>, vector<2x252xf32>, vector<4x252xf32> -> vector<4x252xf32>
    %326 = arith.addf %320, %325 : vector<4x252xf32>
    %c0_358 = arith.constant 0 : index
    %c0_359 = arith.constant 0 : index
    %c0_360 = arith.constant 0 : index
    %c18_361 = arith.constant 18 : index
    %327 = vector.load %arg5[%c0_358, %c0_359, %c0_360, %c18_361] : memref<1x1x2x324xf32, #tpu.memory_space<vmem>>, vector<1x1x2x252xf32>
    %328 = vector.shape_cast %327 : vector<1x1x2x252xf32> to vector<2x252xf32>
    %c18_362 = arith.constant 18 : index
    %c0_363 = arith.constant 0 : index
    %c0_364 = arith.constant 0 : index
    %329 = vector.load %arg8[%c18_362, %c0_363, %c0_364] : memref<27x4x2xf32, #tpu.memory_space<vmem>>, vector<1x4x2xf32>
    %330 = vector.shape_cast %329 : vector<1x4x2xf32> to vector<4x2xf32>
    %cst_365 = arith.constant dense<0.000000e+00> : vector<4x252xf32>
    %331 = tpu.matmul %330, %328, %cst_365 {dimension_numbers = #tpu.dot_dimension_numbers<[1], [0], [0], [1], [0, 0, 1, 1], [], []>} : vector<4x2xf32>, vector<2x252xf32>, vector<4x252xf32> -> vector<4x252xf32>
    %332 = arith.addf %326, %331 : vector<4x252xf32>
    %c0_366 = arith.constant 0 : index
    %c0_367 = arith.constant 0 : index
    %c0_368 = arith.constant 0 : index
    %c19_369 = arith.constant 19 : index
    %333 = vector.load %arg5[%c0_366, %c0_367, %c0_368, %c19_369] : memref<1x1x2x324xf32, #tpu.memory_space<vmem>>, vector<1x1x2x252xf32>
    %334 = vector.shape_cast %333 : vector<1x1x2x252xf32> to vector<2x252xf32>
    %c19_370 = arith.constant 19 : index
    %c0_371 = arith.constant 0 : index
    %c0_372 = arith.constant 0 : index
    %335 = vector.load %arg8[%c19_370, %c0_371, %c0_372] : memref<27x4x2xf32, #tpu.memory_space<vmem>>, vector<1x4x2xf32>
    %336 = vector.shape_cast %335 : vector<1x4x2xf32> to vector<4x2xf32>
    %cst_373 = arith.constant dense<0.000000e+00> : vector<4x252xf32>
    %337 = tpu.matmul %336, %334, %cst_373 {dimension_numbers = #tpu.dot_dimension_numbers<[1], [0], [0], [1], [0, 0, 1, 1], [], []>} : vector<4x2xf32>, vector<2x252xf32>, vector<4x252xf32> -> vector<4x252xf32>
    %338 = arith.addf %332, %337 : vector<4x252xf32>
    %c0_374 = arith.constant 0 : index
    %c0_375 = arith.constant 0 : index
    %c0_376 = arith.constant 0 : index
    %c20_377 = arith.constant 20 : index
    %339 = vector.load %arg5[%c0_374, %c0_375, %c0_376, %c20_377] : memref<1x1x2x324xf32, #tpu.memory_space<vmem>>, vector<1x1x2x252xf32>
    %340 = vector.shape_cast %339 : vector<1x1x2x252xf32> to vector<2x252xf32>
    %c20_378 = arith.constant 20 : index
    %c0_379 = arith.constant 0 : index
    %c0_380 = arith.constant 0 : index
    %341 = vector.load %arg8[%c20_378, %c0_379, %c0_380] : memref<27x4x2xf32, #tpu.memory_space<vmem>>, vector<1x4x2xf32>
    %342 = vector.shape_cast %341 : vector<1x4x2xf32> to vector<4x2xf32>
    %cst_381 = arith.constant dense<0.000000e+00> : vector<4x252xf32>
    %343 = tpu.matmul %342, %340, %cst_381 {dimension_numbers = #tpu.dot_dimension_numbers<[1], [0], [0], [1], [0, 0, 1, 1], [], []>} : vector<4x2xf32>, vector<2x252xf32>, vector<4x252xf32> -> vector<4x252xf32>
    %344 = arith.addf %338, %343 : vector<4x252xf32>
    %c0_382 = arith.constant 0 : index
    %c0_383 = arith.constant 0 : index
    %c0_384 = arith.constant 0 : index
    %c36_385 = arith.constant 36 : index
    %345 = vector.load %arg5[%c0_382, %c0_383, %c0_384, %c36_385] : memref<1x1x2x324xf32, #tpu.memory_space<vmem>>, vector<1x1x2x252xf32>
    %346 = vector.shape_cast %345 : vector<1x1x2x252xf32> to vector<2x252xf32>
    %c21_386 = arith.constant 21 : index
    %c0_387 = arith.constant 0 : index
    %c0_388 = arith.constant 0 : index
    %347 = vector.load %arg8[%c21_386, %c0_387, %c0_388] : memref<27x4x2xf32, #tpu.memory_space<vmem>>, vector<1x4x2xf32>
    %348 = vector.shape_cast %347 : vector<1x4x2xf32> to vector<4x2xf32>
    %cst_389 = arith.constant dense<0.000000e+00> : vector<4x252xf32>
    %349 = tpu.matmul %348, %346, %cst_389 {dimension_numbers = #tpu.dot_dimension_numbers<[1], [0], [0], [1], [0, 0, 1, 1], [], []>} : vector<4x2xf32>, vector<2x252xf32>, vector<4x252xf32> -> vector<4x252xf32>
    %350 = arith.addf %344, %349 : vector<4x252xf32>
    %c0_390 = arith.constant 0 : index
    %c0_391 = arith.constant 0 : index
    %c0_392 = arith.constant 0 : index
    %c37_393 = arith.constant 37 : index
    %351 = vector.load %arg5[%c0_390, %c0_391, %c0_392, %c37_393] : memref<1x1x2x324xf32, #tpu.memory_space<vmem>>, vector<1x1x2x252xf32>
    %352 = vector.shape_cast %351 : vector<1x1x2x252xf32> to vector<2x252xf32>
    %c22_394 = arith.constant 22 : index
    %c0_395 = arith.constant 0 : index
    %c0_396 = arith.constant 0 : index
    %353 = vector.load %arg8[%c22_394, %c0_395, %c0_396] : memref<27x4x2xf32, #tpu.memory_space<vmem>>, vector<1x4x2xf32>
    %354 = vector.shape_cast %353 : vector<1x4x2xf32> to vector<4x2xf32>
    %cst_397 = arith.constant dense<0.000000e+00> : vector<4x252xf32>
    %355 = tpu.matmul %354, %352, %cst_397 {dimension_numbers = #tpu.dot_dimension_numbers<[1], [0], [0], [1], [0, 0, 1, 1], [], []>} : vector<4x2xf32>, vector<2x252xf32>, vector<4x252xf32> -> vector<4x252xf32>
    %356 = arith.addf %350, %355 : vector<4x252xf32>
    %c0_398 = arith.constant 0 : index
    %c0_399 = arith.constant 0 : index
    %c0_400 = arith.constant 0 : index
    %c38_401 = arith.constant 38 : index
    %357 = vector.load %arg5[%c0_398, %c0_399, %c0_400, %c38_401] : memref<1x1x2x324xf32, #tpu.memory_space<vmem>>, vector<1x1x2x252xf32>
    %358 = vector.shape_cast %357 : vector<1x1x2x252xf32> to vector<2x252xf32>
    %c23_402 = arith.constant 23 : index
    %c0_403 = arith.constant 0 : index
    %c0_404 = arith.constant 0 : index
    %359 = vector.load %arg8[%c23_402, %c0_403, %c0_404] : memref<27x4x2xf32, #tpu.memory_space<vmem>>, vector<1x4x2xf32>
    %360 = vector.shape_cast %359 : vector<1x4x2xf32> to vector<4x2xf32>
    %cst_405 = arith.constant dense<0.000000e+00> : vector<4x252xf32>
    %361 = tpu.matmul %360, %358, %cst_405 {dimension_numbers = #tpu.dot_dimension_numbers<[1], [0], [0], [1], [0, 0, 1, 1], [], []>} : vector<4x2xf32>, vector<2x252xf32>, vector<4x252xf32> -> vector<4x252xf32>
    %362 = arith.addf %356, %361 : vector<4x252xf32>
    %c0_406 = arith.constant 0 : index
    %c0_407 = arith.constant 0 : index
    %c0_408 = arith.constant 0 : index
    %c54_409 = arith.constant 54 : index
    %363 = vector.load %arg5[%c0_406, %c0_407, %c0_408, %c54_409] : memref<1x1x2x324xf32, #tpu.memory_space<vmem>>, vector<1x1x2x252xf32>
    %364 = vector.shape_cast %363 : vector<1x1x2x252xf32> to vector<2x252xf32>
    %c24_410 = arith.constant 24 : index
    %c0_411 = arith.constant 0 : index
    %c0_412 = arith.constant 0 : index
    %365 = vector.load %arg8[%c24_410, %c0_411, %c0_412] : memref<27x4x2xf32, #tpu.memory_space<vmem>>, vector<1x4x2xf32>
    %366 = vector.shape_cast %365 : vector<1x4x2xf32> to vector<4x2xf32>
    %cst_413 = arith.constant dense<0.000000e+00> : vector<4x252xf32>
    %367 = tpu.matmul %366, %364, %cst_413 {dimension_numbers = #tpu.dot_dimension_numbers<[1], [0], [0], [1], [0, 0, 1, 1], [], []>} : vector<4x2xf32>, vector<2x252xf32>, vector<4x252xf32> -> vector<4x252xf32>
    %368 = arith.addf %362, %367 : vector<4x252xf32>
    %c0_414 = arith.constant 0 : index
    %c0_415 = arith.constant 0 : index
    %c0_416 = arith.constant 0 : index
    %c55_417 = arith.constant 55 : index
    %369 = vector.load %arg5[%c0_414, %c0_415, %c0_416, %c55_417] : memref<1x1x2x324xf32, #tpu.memory_space<vmem>>, vector<1x1x2x252xf32>
    %370 = vector.shape_cast %369 : vector<1x1x2x252xf32> to vector<2x252xf32>
    %c25_418 = arith.constant 25 : index
    %c0_419 = arith.constant 0 : index
    %c0_420 = arith.constant 0 : index
    %371 = vector.load %arg8[%c25_418, %c0_419, %c0_420] : memref<27x4x2xf32, #tpu.memory_space<vmem>>, vector<1x4x2xf32>
    %372 = vector.shape_cast %371 : vector<1x4x2xf32> to vector<4x2xf32>
    %cst_421 = arith.constant dense<0.000000e+00> : vector<4x252xf32>
    %373 = tpu.matmul %372, %370, %cst_421 {dimension_numbers = #tpu.dot_dimension_numbers<[1], [0], [0], [1], [0, 0, 1, 1], [], []>} : vector<4x2xf32>, vector<2x252xf32>, vector<4x252xf32> -> vector<4x252xf32>
    %374 = arith.addf %368, %373 : vector<4x252xf32>
    %c0_422 = arith.constant 0 : index
    %c0_423 = arith.constant 0 : index
    %c0_424 = arith.constant 0 : index
    %c56_425 = arith.constant 56 : index
    %375 = vector.load %arg5[%c0_422, %c0_423, %c0_424, %c56_425] : memref<1x1x2x324xf32, #tpu.memory_space<vmem>>, vector<1x1x2x252xf32>
    %376 = vector.shape_cast %375 : vector<1x1x2x252xf32> to vector<2x252xf32>
    %c26_426 = arith.constant 26 : index
    %c0_427 = arith.constant 0 : index
    %c0_428 = arith.constant 0 : index
    %377 = vector.load %arg8[%c26_426, %c0_427, %c0_428] : memref<27x4x2xf32, #tpu.memory_space<vmem>>, vector<1x4x2xf32>
    %378 = vector.shape_cast %377 : vector<1x4x2xf32> to vector<4x2xf32>
    %cst_429 = arith.constant dense<0.000000e+00> : vector<4x252xf32>
    %379 = tpu.matmul %378, %376, %cst_429 {dimension_numbers = #tpu.dot_dimension_numbers<[1], [0], [0], [1], [0, 0, 1, 1], [], []>} : vector<4x2xf32>, vector<2x252xf32>, vector<4x252xf32> -> vector<4x252xf32>
    %380 = arith.addf %374, %379 : vector<4x252xf32>
    %c0_430 = arith.constant 0 : index
    %c0_431 = arith.constant 0 : index
    %381 = vector.load %arg9[%c0_430, %c0_431] : memref<4x1xf32, #tpu.memory_space<vmem>>, vector<4x1xf32>
    %382 = vector.broadcast %381 : vector<4x1xf32> to vector<4x252xf32>
    %383 = arith.addf %380, %382 : vector<4x252xf32>
    %384 = vector.extract_strided_slice %383 {offsets = [0, 0], sizes = [4, 16], strides = [1, 1]} : vector<4x252xf32> to vector<4x16xf32>
    %c0_432 = arith.constant 0 : index
    %c0_433 = arith.constant 0 : index
    %c224 = arith.constant 224 : index
    %385 = vector.load %arg10[%c0_432, %c0_433, %c224] : memref<1x4x896xf32, #tpu.memory_space<vmem>>, vector<1x4x16xf32>
    %386 = vector.shape_cast %385 : vector<1x4x16xf32> to vector<4x16xf32>
    %387 = vector.shape_cast %384 : vector<4x16xf32> to vector<1x4x16xf32>
    tpu.vector_store %arg10[%c0_432, %c0_433, %c224], %387 {strides = array<i32>} : memref<1x4x896xf32, #tpu.memory_space<vmem>>, vector<1x4x16xf32>,
    %388 = vector.extract_strided_slice %383 {offsets = [0, 18], sizes = [4, 16], strides = [1, 1]} : vector<4x252xf32> to vector<4x16xf32>
    %c0_434 = arith.constant 0 : index
    %c0_435 = arith.constant 0 : index
    %c240 = arith.constant 240 : index
    %389 = vector.load %arg10[%c0_434, %c0_435, %c240] : memref<1x4x896xf32, #tpu.memory_space<vmem>>, vector<1x4x16xf32>
    %390 = vector.shape_cast %389 : vector<1x4x16xf32> to vector<4x16xf32>
    %391 = vector.shape_cast %388 : vector<4x16xf32> to vector<1x4x16xf32>
    tpu.vector_store %arg10[%c0_434, %c0_435, %c240], %391 {strides = array<i32>} : memref<1x4x896xf32, #tpu.memory_space<vmem>>, vector<1x4x16xf32>,
    %392 = vector.extract_strided_slice %383 {offsets = [0, 36], sizes = [4, 16], strides = [1, 1]} : vector<4x252xf32> to vector<4x16xf32>
    %c0_436 = arith.constant 0 : index
    %c0_437 = arith.constant 0 : index
    %c256 = arith.constant 256 : index
    %393 = vector.load %arg10[%c0_436, %c0_437, %c256] : memref<1x4x896xf32, #tpu.memory_space<vmem>>, vector<1x4x16xf32>
    %394 = vector.shape_cast %393 : vector<1x4x16xf32> to vector<4x16xf32>
    %395 = vector.shape_cast %392 : vector<4x16xf32> to vector<1x4x16xf32>
    tpu.vector_store %arg10[%c0_436, %c0_437, %c256], %395 {strides = array<i32>} : memref<1x4x896xf32, #tpu.memory_space<vmem>>, vector<1x4x16xf32>,
    %396 = vector.extract_strided_slice %383 {offsets = [0, 54], sizes = [4, 16], strides = [1, 1]} : vector<4x252xf32> to vector<4x16xf32>
    %c0_438 = arith.constant 0 : index
    %c0_439 = arith.constant 0 : index
    %c272 = arith.constant 272 : index
    %397 = vector.load %arg10[%c0_438, %c0_439, %c272] : memref<1x4x896xf32, #tpu.memory_space<vmem>>, vector<1x4x16xf32>
    %398 = vector.shape_cast %397 : vector<1x4x16xf32> to vector<4x16xf32>
    %399 = vector.shape_cast %396 : vector<4x16xf32> to vector<1x4x16xf32>
    tpu.vector_store %arg10[%c0_438, %c0_439, %c272], %399 {strides = array<i32>} : memref<1x4x896xf32, #tpu.memory_space<vmem>>, vector<1x4x16xf32>,
    %400 = vector.extract_strided_slice %383 {offsets = [0, 72], sizes = [4, 16], strides = [1, 1]} : vector<4x252xf32> to vector<4x16xf32>
    %c0_440 = arith.constant 0 : index
    %c0_441 = arith.constant 0 : index
    %c288 = arith.constant 288 : index
    %401 = vector.load %arg10[%c0_440, %c0_441, %c288] : memref<1x4x896xf32, #tpu.memory_space<vmem>>, vector<1x4x16xf32>
    %402 = vector.shape_cast %401 : vector<1x4x16xf32> to vector<4x16xf32>
    %403 = vector.shape_cast %400 : vector<4x16xf32> to vector<1x4x16xf32>
    tpu.vector_store %arg10[%c0_440, %c0_441, %c288], %403 {strides = array<i32>} : memref<1x4x896xf32, #tpu.memory_space<vmem>>, vector<1x4x16xf32>,
    %404 = vector.extract_strided_slice %383 {offsets = [0, 90], sizes = [4, 16], strides = [1, 1]} : vector<4x252xf32> to vector<4x16xf32>
    %c0_442 = arith.constant 0 : index
    %c0_443 = arith.constant 0 : index
    %c304 = arith.constant 304 : index
    %405 = vector.load %arg10[%c0_442, %c0_443, %c304] : memref<1x4x896xf32, #tpu.memory_space<vmem>>, vector<1x4x16xf32>
    %406 = vector.shape_cast %405 : vector<1x4x16xf32> to vector<4x16xf32>
    %407 = vector.shape_cast %404 : vector<4x16xf32> to vector<1x4x16xf32>
    tpu.vector_store %arg10[%c0_442, %c0_443, %c304], %407 {strides = array<i32>} : memref<1x4x896xf32, #tpu.memory_space<vmem>>, vector<1x4x16xf32>,
    %408 = vector.extract_strided_slice %383 {offsets = [0, 108], sizes = [4, 16], strides = [1, 1]} : vector<4x252xf32> to vector<4x16xf32>
    %c0_444 = arith.constant 0 : index
    %c0_445 = arith.constant 0 : index
    %c320 = arith.constant 320 : index
    %409 = vector.load %arg10[%c0_444, %c0_445, %c320] : memref<1x4x896xf32, #tpu.memory_space<vmem>>, vector<1x4x16xf32>
    %410 = vector.shape_cast %409 : vector<1x4x16xf32> to vector<4x16xf32>
    %411 = vector.shape_cast %408 : vector<4x16xf32> to vector<1x4x16xf32>
    tpu.vector_store %arg10[%c0_444, %c0_445, %c320], %411 {strides = array<i32>} : memref<1x4x896xf32, #tpu.memory_space<vmem>>, vector<1x4x16xf32>,
    %412 = vector.extract_strided_slice %383 {offsets = [0, 126], sizes = [4, 16], strides = [1, 1]} : vector<4x252xf32> to vector<4x16xf32>
    %c0_446 = arith.constant 0 : index
    %c0_447 = arith.constant 0 : index
    %c336 = arith.constant 336 : index
    %413 = vector.load %arg10[%c0_446, %c0_447, %c336] : memref<1x4x896xf32, #tpu.memory_space<vmem>>, vector<1x4x16xf32>
    %414 = vector.shape_cast %413 : vector<1x4x16xf32> to vector<4x16xf32>
    %415 = vector.shape_cast %412 : vector<4x16xf32> to vector<1x4x16xf32>
    tpu.vector_store %arg10[%c0_446, %c0_447, %c336], %415 {strides = array<i32>} : memref<1x4x896xf32, #tpu.memory_space<vmem>>, vector<1x4x16xf32>,
    %416 = vector.extract_strided_slice %383 {offsets = [0, 144], sizes = [4, 16], strides = [1, 1]} : vector<4x252xf32> to vector<4x16xf32>
    %c0_448 = arith.constant 0 : index
    %c0_449 = arith.constant 0 : index
    %c352 = arith.constant 352 : index
    %417 = vector.load %arg10[%c0_448, %c0_449, %c352] : memref<1x4x896xf32, #tpu.memory_space<vmem>>, vector<1x4x16xf32>
    %418 = vector.shape_cast %417 : vector<1x4x16xf32> to vector<4x16xf32>
    %419 = vector.shape_cast %416 : vector<4x16xf32> to vector<1x4x16xf32>
    tpu.vector_store %arg10[%c0_448, %c0_449, %c352], %419 {strides = array<i32>} : memref<1x4x896xf32, #tpu.memory_space<vmem>>, vector<1x4x16xf32>,
    %420 = vector.extract_strided_slice %383 {offsets = [0, 162], sizes = [4, 16], strides = [1, 1]} : vector<4x252xf32> to vector<4x16xf32>
    %c0_450 = arith.constant 0 : index
    %c0_451 = arith.constant 0 : index
    %c368 = arith.constant 368 : index
    %421 = vector.load %arg10[%c0_450, %c0_451, %c368] : memref<1x4x896xf32, #tpu.memory_space<vmem>>, vector<1x4x16xf32>
    %422 = vector.shape_cast %421 : vector<1x4x16xf32> to vector<4x16xf32>
    %423 = vector.shape_cast %420 : vector<4x16xf32> to vector<1x4x16xf32>
    tpu.vector_store %arg10[%c0_450, %c0_451, %c368], %423 {strides = array<i32>} : memref<1x4x896xf32, #tpu.memory_space<vmem>>, vector<1x4x16xf32>,
    %424 = vector.extract_strided_slice %383 {offsets = [0, 180], sizes = [4, 16], strides = [1, 1]} : vector<4x252xf32> to vector<4x16xf32>
    %c0_452 = arith.constant 0 : index
    %c0_453 = arith.constant 0 : index
    %c384 = arith.constant 384 : index
    %425 = vector.load %arg10[%c0_452, %c0_453, %c384] : memref<1x4x896xf32, #tpu.memory_space<vmem>>, vector<1x4x16xf32>
    %426 = vector.shape_cast %425 : vector<1x4x16xf32> to vector<4x16xf32>
    %427 = vector.shape_cast %424 : vector<4x16xf32> to vector<1x4x16xf32>
    tpu.vector_store %arg10[%c0_452, %c0_453, %c384], %427 {strides = array<i32>} : memref<1x4x896xf32, #tpu.memory_space<vmem>>, vector<1x4x16xf32>,
    %428 = vector.extract_strided_slice %383 {offsets = [0, 198], sizes = [4, 16], strides = [1, 1]} : vector<4x252xf32> to vector<4x16xf32>
    %c0_454 = arith.constant 0 : index
    %c0_455 = arith.constant 0 : index
    %c400 = arith.constant 400 : index
    %429 = vector.load %arg10[%c0_454, %c0_455, %c400] : memref<1x4x896xf32, #tpu.memory_space<vmem>>, vector<1x4x16xf32>
    %430 = vector.shape_cast %429 : vector<1x4x16xf32> to vector<4x16xf32>
    %431 = vector.shape_cast %428 : vector<4x16xf32> to vector<1x4x16xf32>
    tpu.vector_store %arg10[%c0_454, %c0_455, %c400], %431 {strides = array<i32>} : memref<1x4x896xf32, #tpu.memory_space<vmem>>, vector<1x4x16xf32>,
    %432 = vector.extract_strided_slice %383 {offsets = [0, 216], sizes = [4, 16], strides = [1, 1]} : vector<4x252xf32> to vector<4x16xf32>
    %c0_456 = arith.constant 0 : index
    %c0_457 = arith.constant 0 : index
    %c416 = arith.constant 416 : index
    %433 = vector.load %arg10[%c0_456, %c0_457, %c416] : memref<1x4x896xf32, #tpu.memory_space<vmem>>, vector<1x4x16xf32>
    %434 = vector.shape_cast %433 : vector<1x4x16xf32> to vector<4x16xf32>
    %435 = vector.shape_cast %432 : vector<4x16xf32> to vector<1x4x16xf32>
    tpu.vector_store %arg10[%c0_456, %c0_457, %c416], %435 {strides = array<i32>} : memref<1x4x896xf32, #tpu.memory_space<vmem>>, vector<1x4x16xf32>,
    %436 = vector.extract_strided_slice %383 {offsets = [0, 234], sizes = [4, 16], strides = [1, 1]} : vector<4x252xf32> to vector<4x16xf32>
    %c0_458 = arith.constant 0 : index
    %c0_459 = arith.constant 0 : index
    %c432 = arith.constant 432 : index
    %437 = vector.load %arg10[%c0_458, %c0_459, %c432] : memref<1x4x896xf32, #tpu.memory_space<vmem>>, vector<1x4x16xf32>
    %438 = vector.shape_cast %437 : vector<1x4x16xf32> to vector<4x16xf32>
    %439 = vector.shape_cast %436 : vector<4x16xf32> to vector<1x4x16xf32>
    tpu.vector_store %arg10[%c0_458, %c0_459, %c432], %439 {strides = array<i32>} : memref<1x4x896xf32, #tpu.memory_space<vmem>>, vector<1x4x16xf32>,
    %c0_460 = arith.constant 0 : index
    %c0_461 = arith.constant 0 : index
    %c0_462 = arith.constant 0 : index
    %c18_463 = arith.constant 18 : index
    %440 = vector.load %arg4[%c0_460, %c0_461, %c0_462, %c18_463] : memref<1x1x2x324xf32, #tpu.memory_space<vmem>>, vector<1x1x2x252xf32>
    %441 = vector.shape_cast %440 : vector<1x1x2x252xf32> to vector<2x252xf32>
    %c0_464 = arith.constant 0 : index
    %c0_465 = arith.constant 0 : index
    %c0_466 = arith.constant 0 : index
    %442 = vector.load %arg8[%c0_464, %c0_465, %c0_466] : memref<27x4x2xf32, #tpu.memory_space<vmem>>, vector<1x4x2xf32>
    %443 = vector.shape_cast %442 : vector<1x4x2xf32> to vector<4x2xf32>
    %cst_467 = arith.constant dense<0.000000e+00> : vector<4x252xf32>
    %444 = tpu.matmul %443, %441, %cst_467 {dimension_numbers = #tpu.dot_dimension_numbers<[1], [0], [0], [1], [0, 0, 1, 1], [], []>} : vector<4x2xf32>, vector<2x252xf32>, vector<4x252xf32> -> vector<4x252xf32>
    %c0_468 = arith.constant 0 : index
    %c0_469 = arith.constant 0 : index
    %c0_470 = arith.constant 0 : index
    %c19_471 = arith.constant 19 : index
    %445 = vector.load %arg4[%c0_468, %c0_469, %c0_470, %c19_471] : memref<1x1x2x324xf32, #tpu.memory_space<vmem>>, vector<1x1x2x252xf32>
    %446 = vector.shape_cast %445 : vector<1x1x2x252xf32> to vector<2x252xf32>
    %c1_472 = arith.constant 1 : index
    %c0_473 = arith.constant 0 : index
    %c0_474 = arith.constant 0 : index
    %447 = vector.load %arg8[%c1_472, %c0_473, %c0_474] : memref<27x4x2xf32, #tpu.memory_space<vmem>>, vector<1x4x2xf32>
    %448 = vector.shape_cast %447 : vector<1x4x2xf32> to vector<4x2xf32>
    %cst_475 = arith.constant dense<0.000000e+00> : vector<4x252xf32>
    %449 = tpu.matmul %448, %446, %cst_475 {dimension_numbers = #tpu.dot_dimension_numbers<[1], [0], [0], [1], [0, 0, 1, 1], [], []>} : vector<4x2xf32>, vector<2x252xf32>, vector<4x252xf32> -> vector<4x252xf32>
    %450 = arith.addf %444, %449 : vector<4x252xf32>
    %c0_476 = arith.constant 0 : index
    %c0_477 = arith.constant 0 : index
    %c0_478 = arith.constant 0 : index
    %c20_479 = arith.constant 20 : index
    %451 = vector.load %arg4[%c0_476, %c0_477, %c0_478, %c20_479] : memref<1x1x2x324xf32, #tpu.memory_space<vmem>>, vector<1x1x2x252xf32>
    %452 = vector.shape_cast %451 : vector<1x1x2x252xf32> to vector<2x252xf32>
    %c2_480 = arith.constant 2 : index
    %c0_481 = arith.constant 0 : index
    %c0_482 = arith.constant 0 : index
    %453 = vector.load %arg8[%c2_480, %c0_481, %c0_482] : memref<27x4x2xf32, #tpu.memory_space<vmem>>, vector<1x4x2xf32>
    %454 = vector.shape_cast %453 : vector<1x4x2xf32> to vector<4x2xf32>
    %cst_483 = arith.constant dense<0.000000e+00> : vector<4x252xf32>
    %455 = tpu.matmul %454, %452, %cst_483 {dimension_numbers = #tpu.dot_dimension_numbers<[1], [0], [0], [1], [0, 0, 1, 1], [], []>} : vector<4x2xf32>, vector<2x252xf32>, vector<4x252xf32> -> vector<4x252xf32>
    %456 = arith.addf %450, %455 : vector<4x252xf32>
    %c0_484 = arith.constant 0 : index
    %c0_485 = arith.constant 0 : index
    %c0_486 = arith.constant 0 : index
    %c36_487 = arith.constant 36 : index
    %457 = vector.load %arg4[%c0_484, %c0_485, %c0_486, %c36_487] : memref<1x1x2x324xf32, #tpu.memory_space<vmem>>, vector<1x1x2x252xf32>
    %458 = vector.shape_cast %457 : vector<1x1x2x252xf32> to vector<2x252xf32>
    %c3_488 = arith.constant 3 : index
    %c0_489 = arith.constant 0 : index
    %c0_490 = arith.constant 0 : index
    %459 = vector.load %arg8[%c3_488, %c0_489, %c0_490] : memref<27x4x2xf32, #tpu.memory_space<vmem>>, vector<1x4x2xf32>
    %460 = vector.shape_cast %459 : vector<1x4x2xf32> to vector<4x2xf32>
    %cst_491 = arith.constant dense<0.000000e+00> : vector<4x252xf32>
    %461 = tpu.matmul %460, %458, %cst_491 {dimension_numbers = #tpu.dot_dimension_numbers<[1], [0], [0], [1], [0, 0, 1, 1], [], []>} : vector<4x2xf32>, vector<2x252xf32>, vector<4x252xf32> -> vector<4x252xf32>
    %462 = arith.addf %456, %461 : vector<4x252xf32>
    %c0_492 = arith.constant 0 : index
    %c0_493 = arith.constant 0 : index
    %c0_494 = arith.constant 0 : index
    %c37_495 = arith.constant 37 : index
    %463 = vector.load %arg4[%c0_492, %c0_493, %c0_494, %c37_495] : memref<1x1x2x324xf32, #tpu.memory_space<vmem>>, vector<1x1x2x252xf32>
    %464 = vector.shape_cast %463 : vector<1x1x2x252xf32> to vector<2x252xf32>
    %c4_496 = arith.constant 4 : index
    %c0_497 = arith.constant 0 : index
    %c0_498 = arith.constant 0 : index
    %465 = vector.load %arg8[%c4_496, %c0_497, %c0_498] : memref<27x4x2xf32, #tpu.memory_space<vmem>>, vector<1x4x2xf32>
    %466 = vector.shape_cast %465 : vector<1x4x2xf32> to vector<4x2xf32>
    %cst_499 = arith.constant dense<0.000000e+00> : vector<4x252xf32>
    %467 = tpu.matmul %466, %464, %cst_499 {dimension_numbers = #tpu.dot_dimension_numbers<[1], [0], [0], [1], [0, 0, 1, 1], [], []>} : vector<4x2xf32>, vector<2x252xf32>, vector<4x252xf32> -> vector<4x252xf32>
    %468 = arith.addf %462, %467 : vector<4x252xf32>
    %c0_500 = arith.constant 0 : index
    %c0_501 = arith.constant 0 : index
    %c0_502 = arith.constant 0 : index
    %c38_503 = arith.constant 38 : index
    %469 = vector.load %arg4[%c0_500, %c0_501, %c0_502, %c38_503] : memref<1x1x2x324xf32, #tpu.memory_space<vmem>>, vector<1x1x2x252xf32>
    %470 = vector.shape_cast %469 : vector<1x1x2x252xf32> to vector<2x252xf32>
    %c5_504 = arith.constant 5 : index
    %c0_505 = arith.constant 0 : index
    %c0_506 = arith.constant 0 : index
    %471 = vector.load %arg8[%c5_504, %c0_505, %c0_506] : memref<27x4x2xf32, #tpu.memory_space<vmem>>, vector<1x4x2xf32>
    %472 = vector.shape_cast %471 : vector<1x4x2xf32> to vector<4x2xf32>
    %cst_507 = arith.constant dense<0.000000e+00> : vector<4x252xf32>
    %473 = tpu.matmul %472, %470, %cst_507 {dimension_numbers = #tpu.dot_dimension_numbers<[1], [0], [0], [1], [0, 0, 1, 1], [], []>} : vector<4x2xf32>, vector<2x252xf32>, vector<4x252xf32> -> vector<4x252xf32>
    %474 = arith.addf %468, %473 : vector<4x252xf32>
    %c0_508 = arith.constant 0 : index
    %c0_509 = arith.constant 0 : index
    %c0_510 = arith.constant 0 : index
    %c54_511 = arith.constant 54 : index
    %475 = vector.load %arg4[%c0_508, %c0_509, %c0_510, %c54_511] : memref<1x1x2x324xf32, #tpu.memory_space<vmem>>, vector<1x1x2x252xf32>
    %476 = vector.shape_cast %475 : vector<1x1x2x252xf32> to vector<2x252xf32>
    %c6_512 = arith.constant 6 : index
    %c0_513 = arith.constant 0 : index
    %c0_514 = arith.constant 0 : index
    %477 = vector.load %arg8[%c6_512, %c0_513, %c0_514] : memref<27x4x2xf32, #tpu.memory_space<vmem>>, vector<1x4x2xf32>
    %478 = vector.shape_cast %477 : vector<1x4x2xf32> to vector<4x2xf32>
    %cst_515 = arith.constant dense<0.000000e+00> : vector<4x252xf32>
    %479 = tpu.matmul %478, %476, %cst_515 {dimension_numbers = #tpu.dot_dimension_numbers<[1], [0], [0], [1], [0, 0, 1, 1], [], []>} : vector<4x2xf32>, vector<2x252xf32>, vector<4x252xf32> -> vector<4x252xf32>
    %480 = arith.addf %474, %479 : vector<4x252xf32>
    %c0_516 = arith.constant 0 : index
    %c0_517 = arith.constant 0 : index
    %c0_518 = arith.constant 0 : index
    %c55_519 = arith.constant 55 : index
    %481 = vector.load %arg4[%c0_516, %c0_517, %c0_518, %c55_519] : memref<1x1x2x324xf32, #tpu.memory_space<vmem>>, vector<1x1x2x252xf32>
    %482 = vector.shape_cast %481 : vector<1x1x2x252xf32> to vector<2x252xf32>
    %c7_520 = arith.constant 7 : index
    %c0_521 = arith.constant 0 : index
    %c0_522 = arith.constant 0 : index
    %483 = vector.load %arg8[%c7_520, %c0_521, %c0_522] : memref<27x4x2xf32, #tpu.memory_space<vmem>>, vector<1x4x2xf32>
    %484 = vector.shape_cast %483 : vector<1x4x2xf32> to vector<4x2xf32>
    %cst_523 = arith.constant dense<0.000000e+00> : vector<4x252xf32>
    %485 = tpu.matmul %484, %482, %cst_523 {dimension_numbers = #tpu.dot_dimension_numbers<[1], [0], [0], [1], [0, 0, 1, 1], [], []>} : vector<4x2xf32>, vector<2x252xf32>, vector<4x252xf32> -> vector<4x252xf32>
    %486 = arith.addf %480, %485 : vector<4x252xf32>
    %c0_524 = arith.constant 0 : index
    %c0_525 = arith.constant 0 : index
    %c0_526 = arith.constant 0 : index
    %c56_527 = arith.constant 56 : index
    %487 = vector.load %arg4[%c0_524, %c0_525, %c0_526, %c56_527] : memref<1x1x2x324xf32, #tpu.memory_space<vmem>>, vector<1x1x2x252xf32>
    %488 = vector.shape_cast %487 : vector<1x1x2x252xf32> to vector<2x252xf32>
    %c8_528 = arith.constant 8 : index
    %c0_529 = arith.constant 0 : index
    %c0_530 = arith.constant 0 : index
    %489 = vector.load %arg8[%c8_528, %c0_529, %c0_530] : memref<27x4x2xf32, #tpu.memory_space<vmem>>, vector<1x4x2xf32>
    %490 = vector.shape_cast %489 : vector<1x4x2xf32> to vector<4x2xf32>
    %cst_531 = arith.constant dense<0.000000e+00> : vector<4x252xf32>
    %491 = tpu.matmul %490, %488, %cst_531 {dimension_numbers = #tpu.dot_dimension_numbers<[1], [0], [0], [1], [0, 0, 1, 1], [], []>} : vector<4x2xf32>, vector<2x252xf32>, vector<4x252xf32> -> vector<4x252xf32>
    %492 = arith.addf %486, %491 : vector<4x252xf32>
    %c0_532 = arith.constant 0 : index
    %c0_533 = arith.constant 0 : index
    %c0_534 = arith.constant 0 : index
    %c18_535 = arith.constant 18 : index
    %493 = vector.load %arg5[%c0_532, %c0_533, %c0_534, %c18_535] : memref<1x1x2x324xf32, #tpu.memory_space<vmem>>, vector<1x1x2x252xf32>
    %494 = vector.shape_cast %493 : vector<1x1x2x252xf32> to vector<2x252xf32>
    %c9_536 = arith.constant 9 : index
    %c0_537 = arith.constant 0 : index
    %c0_538 = arith.constant 0 : index
    %495 = vector.load %arg8[%c9_536, %c0_537, %c0_538] : memref<27x4x2xf32, #tpu.memory_space<vmem>>, vector<1x4x2xf32>
    %496 = vector.shape_cast %495 : vector<1x4x2xf32> to vector<4x2xf32>
    %cst_539 = arith.constant dense<0.000000e+00> : vector<4x252xf32>
    %497 = tpu.matmul %496, %494, %cst_539 {dimension_numbers = #tpu.dot_dimension_numbers<[1], [0], [0], [1], [0, 0, 1, 1], [], []>} : vector<4x2xf32>, vector<2x252xf32>, vector<4x252xf32> -> vector<4x252xf32>
    %498 = arith.addf %492, %497 : vector<4x252xf32>
    %c0_540 = arith.constant 0 : index
    %c0_541 = arith.constant 0 : index
    %c0_542 = arith.constant 0 : index
    %c19_543 = arith.constant 19 : index
    %499 = vector.load %arg5[%c0_540, %c0_541, %c0_542, %c19_543] : memref<1x1x2x324xf32, #tpu.memory_space<vmem>>, vector<1x1x2x252xf32>
    %500 = vector.shape_cast %499 : vector<1x1x2x252xf32> to vector<2x252xf32>
    %c10_544 = arith.constant 10 : index
    %c0_545 = arith.constant 0 : index
    %c0_546 = arith.constant 0 : index
    %501 = vector.load %arg8[%c10_544, %c0_545, %c0_546] : memref<27x4x2xf32, #tpu.memory_space<vmem>>, vector<1x4x2xf32>
    %502 = vector.shape_cast %501 : vector<1x4x2xf32> to vector<4x2xf32>
    %cst_547 = arith.constant dense<0.000000e+00> : vector<4x252xf32>
    %503 = tpu.matmul %502, %500, %cst_547 {dimension_numbers = #tpu.dot_dimension_numbers<[1], [0], [0], [1], [0, 0, 1, 1], [], []>} : vector<4x2xf32>, vector<2x252xf32>, vector<4x252xf32> -> vector<4x252xf32>
    %504 = arith.addf %498, %503 : vector<4x252xf32>
    %c0_548 = arith.constant 0 : index
    %c0_549 = arith.constant 0 : index
    %c0_550 = arith.constant 0 : index
    %c20_551 = arith.constant 20 : index
    %505 = vector.load %arg5[%c0_548, %c0_549, %c0_550, %c20_551] : memref<1x1x2x324xf32, #tpu.memory_space<vmem>>, vector<1x1x2x252xf32>
    %506 = vector.shape_cast %505 : vector<1x1x2x252xf32> to vector<2x252xf32>
    %c11_552 = arith.constant 11 : index
    %c0_553 = arith.constant 0 : index
    %c0_554 = arith.constant 0 : index
    %507 = vector.load %arg8[%c11_552, %c0_553, %c0_554] : memref<27x4x2xf32, #tpu.memory_space<vmem>>, vector<1x4x2xf32>
    %508 = vector.shape_cast %507 : vector<1x4x2xf32> to vector<4x2xf32>
    %cst_555 = arith.constant dense<0.000000e+00> : vector<4x252xf32>
    %509 = tpu.matmul %508, %506, %cst_555 {dimension_numbers = #tpu.dot_dimension_numbers<[1], [0], [0], [1], [0, 0, 1, 1], [], []>} : vector<4x2xf32>, vector<2x252xf32>, vector<4x252xf32> -> vector<4x252xf32>
    %510 = arith.addf %504, %509 : vector<4x252xf32>
    %c0_556 = arith.constant 0 : index
    %c0_557 = arith.constant 0 : index
    %c0_558 = arith.constant 0 : index
    %c36_559 = arith.constant 36 : index
    %511 = vector.load %arg5[%c0_556, %c0_557, %c0_558, %c36_559] : memref<1x1x2x324xf32, #tpu.memory_space<vmem>>, vector<1x1x2x252xf32>
    %512 = vector.shape_cast %511 : vector<1x1x2x252xf32> to vector<2x252xf32>
    %c12_560 = arith.constant 12 : index
    %c0_561 = arith.constant 0 : index
    %c0_562 = arith.constant 0 : index
    %513 = vector.load %arg8[%c12_560, %c0_561, %c0_562] : memref<27x4x2xf32, #tpu.memory_space<vmem>>, vector<1x4x2xf32>
    %514 = vector.shape_cast %513 : vector<1x4x2xf32> to vector<4x2xf32>
    %cst_563 = arith.constant dense<0.000000e+00> : vector<4x252xf32>
    %515 = tpu.matmul %514, %512, %cst_563 {dimension_numbers = #tpu.dot_dimension_numbers<[1], [0], [0], [1], [0, 0, 1, 1], [], []>} : vector<4x2xf32>, vector<2x252xf32>, vector<4x252xf32> -> vector<4x252xf32>
    %516 = arith.addf %510, %515 : vector<4x252xf32>
    %c0_564 = arith.constant 0 : index
    %c0_565 = arith.constant 0 : index
    %c0_566 = arith.constant 0 : index
    %c37_567 = arith.constant 37 : index
    %517 = vector.load %arg5[%c0_564, %c0_565, %c0_566, %c37_567] : memref<1x1x2x324xf32, #tpu.memory_space<vmem>>, vector<1x1x2x252xf32>
    %518 = vector.shape_cast %517 : vector<1x1x2x252xf32> to vector<2x252xf32>
    %c13_568 = arith.constant 13 : index
    %c0_569 = arith.constant 0 : index
    %c0_570 = arith.constant 0 : index
    %519 = vector.load %arg8[%c13_568, %c0_569, %c0_570] : memref<27x4x2xf32, #tpu.memory_space<vmem>>, vector<1x4x2xf32>
    %520 = vector.shape_cast %519 : vector<1x4x2xf32> to vector<4x2xf32>
    %cst_571 = arith.constant dense<0.000000e+00> : vector<4x252xf32>
    %521 = tpu.matmul %520, %518, %cst_571 {dimension_numbers = #tpu.dot_dimension_numbers<[1], [0], [0], [1], [0, 0, 1, 1], [], []>} : vector<4x2xf32>, vector<2x252xf32>, vector<4x252xf32> -> vector<4x252xf32>
    %522 = arith.addf %516, %521 : vector<4x252xf32>
    %c0_572 = arith.constant 0 : index
    %c0_573 = arith.constant 0 : index
    %c0_574 = arith.constant 0 : index
    %c38_575 = arith.constant 38 : index
    %523 = vector.load %arg5[%c0_572, %c0_573, %c0_574, %c38_575] : memref<1x1x2x324xf32, #tpu.memory_space<vmem>>, vector<1x1x2x252xf32>
    %524 = vector.shape_cast %523 : vector<1x1x2x252xf32> to vector<2x252xf32>
    %c14_576 = arith.constant 14 : index
    %c0_577 = arith.constant 0 : index
    %c0_578 = arith.constant 0 : index
    %525 = vector.load %arg8[%c14_576, %c0_577, %c0_578] : memref<27x4x2xf32, #tpu.memory_space<vmem>>, vector<1x4x2xf32>
    %526 = vector.shape_cast %525 : vector<1x4x2xf32> to vector<4x2xf32>
    %cst_579 = arith.constant dense<0.000000e+00> : vector<4x252xf32>
    %527 = tpu.matmul %526, %524, %cst_579 {dimension_numbers = #tpu.dot_dimension_numbers<[1], [0], [0], [1], [0, 0, 1, 1], [], []>} : vector<4x2xf32>, vector<2x252xf32>, vector<4x252xf32> -> vector<4x252xf32>
    %528 = arith.addf %522, %527 : vector<4x252xf32>
    %c0_580 = arith.constant 0 : index
    %c0_581 = arith.constant 0 : index
    %c0_582 = arith.constant 0 : index
    %c54_583 = arith.constant 54 : index
    %529 = vector.load %arg5[%c0_580, %c0_581, %c0_582, %c54_583] : memref<1x1x2x324xf32, #tpu.memory_space<vmem>>, vector<1x1x2x252xf32>
    %530 = vector.shape_cast %529 : vector<1x1x2x252xf32> to vector<2x252xf32>
    %c15_584 = arith.constant 15 : index
    %c0_585 = arith.constant 0 : index
    %c0_586 = arith.constant 0 : index
    %531 = vector.load %arg8[%c15_584, %c0_585, %c0_586] : memref<27x4x2xf32, #tpu.memory_space<vmem>>, vector<1x4x2xf32>
    %532 = vector.shape_cast %531 : vector<1x4x2xf32> to vector<4x2xf32>
    %cst_587 = arith.constant dense<0.000000e+00> : vector<4x252xf32>
    %533 = tpu.matmul %532, %530, %cst_587 {dimension_numbers = #tpu.dot_dimension_numbers<[1], [0], [0], [1], [0, 0, 1, 1], [], []>} : vector<4x2xf32>, vector<2x252xf32>, vector<4x252xf32> -> vector<4x252xf32>
    %534 = arith.addf %528, %533 : vector<4x252xf32>
    %c0_588 = arith.constant 0 : index
    %c0_589 = arith.constant 0 : index
    %c0_590 = arith.constant 0 : index
    %c55_591 = arith.constant 55 : index
    %535 = vector.load %arg5[%c0_588, %c0_589, %c0_590, %c55_591] : memref<1x1x2x324xf32, #tpu.memory_space<vmem>>, vector<1x1x2x252xf32>
    %536 = vector.shape_cast %535 : vector<1x1x2x252xf32> to vector<2x252xf32>
    %c16_592 = arith.constant 16 : index
    %c0_593 = arith.constant 0 : index
    %c0_594 = arith.constant 0 : index
    %537 = vector.load %arg8[%c16_592, %c0_593, %c0_594] : memref<27x4x2xf32, #tpu.memory_space<vmem>>, vector<1x4x2xf32>
    %538 = vector.shape_cast %537 : vector<1x4x2xf32> to vector<4x2xf32>
    %cst_595 = arith.constant dense<0.000000e+00> : vector<4x252xf32>
    %539 = tpu.matmul %538, %536, %cst_595 {dimension_numbers = #tpu.dot_dimension_numbers<[1], [0], [0], [1], [0, 0, 1, 1], [], []>} : vector<4x2xf32>, vector<2x252xf32>, vector<4x252xf32> -> vector<4x252xf32>
    %540 = arith.addf %534, %539 : vector<4x252xf32>
    %c0_596 = arith.constant 0 : index
    %c0_597 = arith.constant 0 : index
    %c0_598 = arith.constant 0 : index
    %c56_599 = arith.constant 56 : index
    %541 = vector.load %arg5[%c0_596, %c0_597, %c0_598, %c56_599] : memref<1x1x2x324xf32, #tpu.memory_space<vmem>>, vector<1x1x2x252xf32>
    %542 = vector.shape_cast %541 : vector<1x1x2x252xf32> to vector<2x252xf32>
    %c17_600 = arith.constant 17 : index
    %c0_601 = arith.constant 0 : index
    %c0_602 = arith.constant 0 : index
    %543 = vector.load %arg8[%c17_600, %c0_601, %c0_602] : memref<27x4x2xf32, #tpu.memory_space<vmem>>, vector<1x4x2xf32>
    %544 = vector.shape_cast %543 : vector<1x4x2xf32> to vector<4x2xf32>
    %cst_603 = arith.constant dense<0.000000e+00> : vector<4x252xf32>
    %545 = tpu.matmul %544, %542, %cst_603 {dimension_numbers = #tpu.dot_dimension_numbers<[1], [0], [0], [1], [0, 0, 1, 1], [], []>} : vector<4x2xf32>, vector<2x252xf32>, vector<4x252xf32> -> vector<4x252xf32>
    %546 = arith.addf %540, %545 : vector<4x252xf32>
    %c0_604 = arith.constant 0 : index
    %c0_605 = arith.constant 0 : index
    %c0_606 = arith.constant 0 : index
    %c18_607 = arith.constant 18 : index
    %547 = vector.load %arg6[%c0_604, %c0_605, %c0_606, %c18_607] : memref<1x1x2x324xf32, #tpu.memory_space<vmem>>, vector<1x1x2x252xf32>
    %548 = vector.shape_cast %547 : vector<1x1x2x252xf32> to vector<2x252xf32>
    %c18_608 = arith.constant 18 : index
    %c0_609 = arith.constant 0 : index
    %c0_610 = arith.constant 0 : index
    %549 = vector.load %arg8[%c18_608, %c0_609, %c0_610] : memref<27x4x2xf32, #tpu.memory_space<vmem>>, vector<1x4x2xf32>
    %550 = vector.shape_cast %549 : vector<1x4x2xf32> to vector<4x2xf32>
    %cst_611 = arith.constant dense<0.000000e+00> : vector<4x252xf32>
    %551 = tpu.matmul %550, %548, %cst_611 {dimension_numbers = #tpu.dot_dimension_numbers<[1], [0], [0], [1], [0, 0, 1, 1], [], []>} : vector<4x2xf32>, vector<2x252xf32>, vector<4x252xf32> -> vector<4x252xf32>
    %552 = arith.addf %546, %551 : vector<4x252xf32>
    %c0_612 = arith.constant 0 : index
    %c0_613 = arith.constant 0 : index
    %c0_614 = arith.constant 0 : index
    %c19_615 = arith.constant 19 : index
    %553 = vector.load %arg6[%c0_612, %c0_613, %c0_614, %c19_615] : memref<1x1x2x324xf32, #tpu.memory_space<vmem>>, vector<1x1x2x252xf32>
    %554 = vector.shape_cast %553 : vector<1x1x2x252xf32> to vector<2x252xf32>
    %c19_616 = arith.constant 19 : index
    %c0_617 = arith.constant 0 : index
    %c0_618 = arith.constant 0 : index
    %555 = vector.load %arg8[%c19_616, %c0_617, %c0_618] : memref<27x4x2xf32, #tpu.memory_space<vmem>>, vector<1x4x2xf32>
    %556 = vector.shape_cast %555 : vector<1x4x2xf32> to vector<4x2xf32>
    %cst_619 = arith.constant dense<0.000000e+00> : vector<4x252xf32>
    %557 = tpu.matmul %556, %554, %cst_619 {dimension_numbers = #tpu.dot_dimension_numbers<[1], [0], [0], [1], [0, 0, 1, 1], [], []>} : vector<4x2xf32>, vector<2x252xf32>, vector<4x252xf32> -> vector<4x252xf32>
    %558 = arith.addf %552, %557 : vector<4x252xf32>
    %c0_620 = arith.constant 0 : index
    %c0_621 = arith.constant 0 : index
    %c0_622 = arith.constant 0 : index
    %c20_623 = arith.constant 20 : index
    %559 = vector.load %arg6[%c0_620, %c0_621, %c0_622, %c20_623] : memref<1x1x2x324xf32, #tpu.memory_space<vmem>>, vector<1x1x2x252xf32>
    %560 = vector.shape_cast %559 : vector<1x1x2x252xf32> to vector<2x252xf32>
    %c20_624 = arith.constant 20 : index
    %c0_625 = arith.constant 0 : index
    %c0_626 = arith.constant 0 : index
    %561 = vector.load %arg8[%c20_624, %c0_625, %c0_626] : memref<27x4x2xf32, #tpu.memory_space<vmem>>, vector<1x4x2xf32>
    %562 = vector.shape_cast %561 : vector<1x4x2xf32> to vector<4x2xf32>
    %cst_627 = arith.constant dense<0.000000e+00> : vector<4x252xf32>
    %563 = tpu.matmul %562, %560, %cst_627 {dimension_numbers = #tpu.dot_dimension_numbers<[1], [0], [0], [1], [0, 0, 1, 1], [], []>} : vector<4x2xf32>, vector<2x252xf32>, vector<4x252xf32> -> vector<4x252xf32>
    %564 = arith.addf %558, %563 : vector<4x252xf32>
    %c0_628 = arith.constant 0 : index
    %c0_629 = arith.constant 0 : index
    %c0_630 = arith.constant 0 : index
    %c36_631 = arith.constant 36 : index
    %565 = vector.load %arg6[%c0_628, %c0_629, %c0_630, %c36_631] : memref<1x1x2x324xf32, #tpu.memory_space<vmem>>, vector<1x1x2x252xf32>
    %566 = vector.shape_cast %565 : vector<1x1x2x252xf32> to vector<2x252xf32>
    %c21_632 = arith.constant 21 : index
    %c0_633 = arith.constant 0 : index
    %c0_634 = arith.constant 0 : index
    %567 = vector.load %arg8[%c21_632, %c0_633, %c0_634] : memref<27x4x2xf32, #tpu.memory_space<vmem>>, vector<1x4x2xf32>
    %568 = vector.shape_cast %567 : vector<1x4x2xf32> to vector<4x2xf32>
    %cst_635 = arith.constant dense<0.000000e+00> : vector<4x252xf32>
    %569 = tpu.matmul %568, %566, %cst_635 {dimension_numbers = #tpu.dot_dimension_numbers<[1], [0], [0], [1], [0, 0, 1, 1], [], []>} : vector<4x2xf32>, vector<2x252xf32>, vector<4x252xf32> -> vector<4x252xf32>
    %570 = arith.addf %564, %569 : vector<4x252xf32>
    %c0_636 = arith.constant 0 : index
    %c0_637 = arith.constant 0 : index
    %c0_638 = arith.constant 0 : index
    %c37_639 = arith.constant 37 : index
    %571 = vector.load %arg6[%c0_636, %c0_637, %c0_638, %c37_639] : memref<1x1x2x324xf32, #tpu.memory_space<vmem>>, vector<1x1x2x252xf32>
    %572 = vector.shape_cast %571 : vector<1x1x2x252xf32> to vector<2x252xf32>
    %c22_640 = arith.constant 22 : index
    %c0_641 = arith.constant 0 : index
    %c0_642 = arith.constant 0 : index
    %573 = vector.load %arg8[%c22_640, %c0_641, %c0_642] : memref<27x4x2xf32, #tpu.memory_space<vmem>>, vector<1x4x2xf32>
    %574 = vector.shape_cast %573 : vector<1x4x2xf32> to vector<4x2xf32>
    %cst_643 = arith.constant dense<0.000000e+00> : vector<4x252xf32>
    %575 = tpu.matmul %574, %572, %cst_643 {dimension_numbers = #tpu.dot_dimension_numbers<[1], [0], [0], [1], [0, 0, 1, 1], [], []>} : vector<4x2xf32>, vector<2x252xf32>, vector<4x252xf32> -> vector<4x252xf32>
    %576 = arith.addf %570, %575 : vector<4x252xf32>
    %c0_644 = arith.constant 0 : index
    %c0_645 = arith.constant 0 : index
    %c0_646 = arith.constant 0 : index
    %c38_647 = arith.constant 38 : index
    %577 = vector.load %arg6[%c0_644, %c0_645, %c0_646, %c38_647] : memref<1x1x2x324xf32, #tpu.memory_space<vmem>>, vector<1x1x2x252xf32>
    %578 = vector.shape_cast %577 : vector<1x1x2x252xf32> to vector<2x252xf32>
    %c23_648 = arith.constant 23 : index
    %c0_649 = arith.constant 0 : index
    %c0_650 = arith.constant 0 : index
    %579 = vector.load %arg8[%c23_648, %c0_649, %c0_650] : memref<27x4x2xf32, #tpu.memory_space<vmem>>, vector<1x4x2xf32>
    %580 = vector.shape_cast %579 : vector<1x4x2xf32> to vector<4x2xf32>
    %cst_651 = arith.constant dense<0.000000e+00> : vector<4x252xf32>
    %581 = tpu.matmul %580, %578, %cst_651 {dimension_numbers = #tpu.dot_dimension_numbers<[1], [0], [0], [1], [0, 0, 1, 1], [], []>} : vector<4x2xf32>, vector<2x252xf32>, vector<4x252xf32> -> vector<4x252xf32>
    %582 = arith.addf %576, %581 : vector<4x252xf32>
    %c0_652 = arith.constant 0 : index
    %c0_653 = arith.constant 0 : index
    %c0_654 = arith.constant 0 : index
    %c54_655 = arith.constant 54 : index
    %583 = vector.load %arg6[%c0_652, %c0_653, %c0_654, %c54_655] : memref<1x1x2x324xf32, #tpu.memory_space<vmem>>, vector<1x1x2x252xf32>
    %584 = vector.shape_cast %583 : vector<1x1x2x252xf32> to vector<2x252xf32>
    %c24_656 = arith.constant 24 : index
    %c0_657 = arith.constant 0 : index
    %c0_658 = arith.constant 0 : index
    %585 = vector.load %arg8[%c24_656, %c0_657, %c0_658] : memref<27x4x2xf32, #tpu.memory_space<vmem>>, vector<1x4x2xf32>
    %586 = vector.shape_cast %585 : vector<1x4x2xf32> to vector<4x2xf32>
    %cst_659 = arith.constant dense<0.000000e+00> : vector<4x252xf32>
    %587 = tpu.matmul %586, %584, %cst_659 {dimension_numbers = #tpu.dot_dimension_numbers<[1], [0], [0], [1], [0, 0, 1, 1], [], []>} : vector<4x2xf32>, vector<2x252xf32>, vector<4x252xf32> -> vector<4x252xf32>
    %588 = arith.addf %582, %587 : vector<4x252xf32>
    %c0_660 = arith.constant 0 : index
    %c0_661 = arith.constant 0 : index
    %c0_662 = arith.constant 0 : index
    %c55_663 = arith.constant 55 : index
    %589 = vector.load %arg6[%c0_660, %c0_661, %c0_662, %c55_663] : memref<1x1x2x324xf32, #tpu.memory_space<vmem>>, vector<1x1x2x252xf32>
    %590 = vector.shape_cast %589 : vector<1x1x2x252xf32> to vector<2x252xf32>
    %c25_664 = arith.constant 25 : index
    %c0_665 = arith.constant 0 : index
    %c0_666 = arith.constant 0 : index
    %591 = vector.load %arg8[%c25_664, %c0_665, %c0_666] : memref<27x4x2xf32, #tpu.memory_space<vmem>>, vector<1x4x2xf32>
    %592 = vector.shape_cast %591 : vector<1x4x2xf32> to vector<4x2xf32>
    %cst_667 = arith.constant dense<0.000000e+00> : vector<4x252xf32>
    %593 = tpu.matmul %592, %590, %cst_667 {dimension_numbers = #tpu.dot_dimension_numbers<[1], [0], [0], [1], [0, 0, 1, 1], [], []>} : vector<4x2xf32>, vector<2x252xf32>, vector<4x252xf32> -> vector<4x252xf32>
    %594 = arith.addf %588, %593 : vector<4x252xf32>
    %c0_668 = arith.constant 0 : index
    %c0_669 = arith.constant 0 : index
    %c0_670 = arith.constant 0 : index
    %c56_671 = arith.constant 56 : index
    %595 = vector.load %arg6[%c0_668, %c0_669, %c0_670, %c56_671] : memref<1x1x2x324xf32, #tpu.memory_space<vmem>>, vector<1x1x2x252xf32>
    %596 = vector.shape_cast %595 : vector<1x1x2x252xf32> to vector<2x252xf32>
    %c26_672 = arith.constant 26 : index
    %c0_673 = arith.constant 0 : index
    %c0_674 = arith.constant 0 : index
    %597 = vector.load %arg8[%c26_672, %c0_673, %c0_674] : memref<27x4x2xf32, #tpu.memory_space<vmem>>, vector<1x4x2xf32>
    %598 = vector.shape_cast %597 : vector<1x4x2xf32> to vector<4x2xf32>
    %cst_675 = arith.constant dense<0.000000e+00> : vector<4x252xf32>
    %599 = tpu.matmul %598, %596, %cst_675 {dimension_numbers = #tpu.dot_dimension_numbers<[1], [0], [0], [1], [0, 0, 1, 1], [], []>} : vector<4x2xf32>, vector<2x252xf32>, vector<4x252xf32> -> vector<4x252xf32>
    %600 = arith.addf %594, %599 : vector<4x252xf32>
    %c0_676 = arith.constant 0 : index
    %c0_677 = arith.constant 0 : index
    %601 = vector.load %arg9[%c0_676, %c0_677] : memref<4x1xf32, #tpu.memory_space<vmem>>, vector<4x1xf32>
    %602 = vector.broadcast %601 : vector<4x1xf32> to vector<4x252xf32>
    %603 = arith.addf %600, %602 : vector<4x252xf32>
    %604 = vector.extract_strided_slice %603 {offsets = [0, 0], sizes = [4, 16], strides = [1, 1]} : vector<4x252xf32> to vector<4x16xf32>
    %c0_678 = arith.constant 0 : index
    %c0_679 = arith.constant 0 : index
    %c448 = arith.constant 448 : index
    %605 = vector.load %arg10[%c0_678, %c0_679, %c448] : memref<1x4x896xf32, #tpu.memory_space<vmem>>, vector<1x4x16xf32>
    %606 = vector.shape_cast %605 : vector<1x4x16xf32> to vector<4x16xf32>
    %607 = vector.shape_cast %604 : vector<4x16xf32> to vector<1x4x16xf32>
    tpu.vector_store %arg10[%c0_678, %c0_679, %c448], %607 {strides = array<i32>} : memref<1x4x896xf32, #tpu.memory_space<vmem>>, vector<1x4x16xf32>,
    %608 = vector.extract_strided_slice %603 {offsets = [0, 18], sizes = [4, 16], strides = [1, 1]} : vector<4x252xf32> to vector<4x16xf32>
    %c0_680 = arith.constant 0 : index
    %c0_681 = arith.constant 0 : index
    %c464 = arith.constant 464 : index
    %609 = vector.load %arg10[%c0_680, %c0_681, %c464] : memref<1x4x896xf32, #tpu.memory_space<vmem>>, vector<1x4x16xf32>
    %610 = vector.shape_cast %609 : vector<1x4x16xf32> to vector<4x16xf32>
    %611 = vector.shape_cast %608 : vector<4x16xf32> to vector<1x4x16xf32>
    tpu.vector_store %arg10[%c0_680, %c0_681, %c464], %611 {strides = array<i32>} : memref<1x4x896xf32, #tpu.memory_space<vmem>>, vector<1x4x16xf32>,
    %612 = vector.extract_strided_slice %603 {offsets = [0, 36], sizes = [4, 16], strides = [1, 1]} : vector<4x252xf32> to vector<4x16xf32>
    %c0_682 = arith.constant 0 : index
    %c0_683 = arith.constant 0 : index
    %c480 = arith.constant 480 : index
    %613 = vector.load %arg10[%c0_682, %c0_683, %c480] : memref<1x4x896xf32, #tpu.memory_space<vmem>>, vector<1x4x16xf32>
    %614 = vector.shape_cast %613 : vector<1x4x16xf32> to vector<4x16xf32>
    %615 = vector.shape_cast %612 : vector<4x16xf32> to vector<1x4x16xf32>
    tpu.vector_store %arg10[%c0_682, %c0_683, %c480], %615 {strides = array<i32>} : memref<1x4x896xf32, #tpu.memory_space<vmem>>, vector<1x4x16xf32>,
    %616 = vector.extract_strided_slice %603 {offsets = [0, 54], sizes = [4, 16], strides = [1, 1]} : vector<4x252xf32> to vector<4x16xf32>
    %c0_684 = arith.constant 0 : index
    %c0_685 = arith.constant 0 : index
    %c496 = arith.constant 496 : index
    %617 = vector.load %arg10[%c0_684, %c0_685, %c496] : memref<1x4x896xf32, #tpu.memory_space<vmem>>, vector<1x4x16xf32>
    %618 = vector.shape_cast %617 : vector<1x4x16xf32> to vector<4x16xf32>
    %619 = vector.shape_cast %616 : vector<4x16xf32> to vector<1x4x16xf32>
    tpu.vector_store %arg10[%c0_684, %c0_685, %c496], %619 {strides = array<i32>} : memref<1x4x896xf32, #tpu.memory_space<vmem>>, vector<1x4x16xf32>,
    %620 = vector.extract_strided_slice %603 {offsets = [0, 72], sizes = [4, 16], strides = [1, 1]} : vector<4x252xf32> to vector<4x16xf32>
    %c0_686 = arith.constant 0 : index
    %c0_687 = arith.constant 0 : index
    %c512 = arith.constant 512 : index
    %621 = vector.load %arg10[%c0_686, %c0_687, %c512] : memref<1x4x896xf32, #tpu.memory_space<vmem>>, vector<1x4x16xf32>
    %622 = vector.shape_cast %621 : vector<1x4x16xf32> to vector<4x16xf32>
    %623 = vector.shape_cast %620 : vector<4x16xf32> to vector<1x4x16xf32>
    tpu.vector_store %arg10[%c0_686, %c0_687, %c512], %623 {strides = array<i32>} : memref<1x4x896xf32, #tpu.memory_space<vmem>>, vector<1x4x16xf32>,
    %624 = vector.extract_strided_slice %603 {offsets = [0, 90], sizes = [4, 16], strides = [1, 1]} : vector<4x252xf32> to vector<4x16xf32>
    %c0_688 = arith.constant 0 : index
    %c0_689 = arith.constant 0 : index
    %c528 = arith.constant 528 : index
    %625 = vector.load %arg10[%c0_688, %c0_689, %c528] : memref<1x4x896xf32, #tpu.memory_space<vmem>>, vector<1x4x16xf32>
    %626 = vector.shape_cast %625 : vector<1x4x16xf32> to vector<4x16xf32>
    %627 = vector.shape_cast %624 : vector<4x16xf32> to vector<1x4x16xf32>
    tpu.vector_store %arg10[%c0_688, %c0_689, %c528], %627 {strides = array<i32>} : memref<1x4x896xf32, #tpu.memory_space<vmem>>, vector<1x4x16xf32>,
    %628 = vector.extract_strided_slice %603 {offsets = [0, 108], sizes = [4, 16], strides = [1, 1]} : vector<4x252xf32> to vector<4x16xf32>
    %c0_690 = arith.constant 0 : index
    %c0_691 = arith.constant 0 : index
    %c544 = arith.constant 544 : index
    %629 = vector.load %arg10[%c0_690, %c0_691, %c544] : memref<1x4x896xf32, #tpu.memory_space<vmem>>, vector<1x4x16xf32>
    %630 = vector.shape_cast %629 : vector<1x4x16xf32> to vector<4x16xf32>
    %631 = vector.shape_cast %628 : vector<4x16xf32> to vector<1x4x16xf32>
    tpu.vector_store %arg10[%c0_690, %c0_691, %c544], %631 {strides = array<i32>} : memref<1x4x896xf32, #tpu.memory_space<vmem>>, vector<1x4x16xf32>,
    %632 = vector.extract_strided_slice %603 {offsets = [0, 126], sizes = [4, 16], strides = [1, 1]} : vector<4x252xf32> to vector<4x16xf32>
    %c0_692 = arith.constant 0 : index
    %c0_693 = arith.constant 0 : index
    %c560 = arith.constant 560 : index
    %633 = vector.load %arg10[%c0_692, %c0_693, %c560] : memref<1x4x896xf32, #tpu.memory_space<vmem>>, vector<1x4x16xf32>
    %634 = vector.shape_cast %633 : vector<1x4x16xf32> to vector<4x16xf32>
    %635 = vector.shape_cast %632 : vector<4x16xf32> to vector<1x4x16xf32>
    tpu.vector_store %arg10[%c0_692, %c0_693, %c560], %635 {strides = array<i32>} : memref<1x4x896xf32, #tpu.memory_space<vmem>>, vector<1x4x16xf32>,
    %636 = vector.extract_strided_slice %603 {offsets = [0, 144], sizes = [4, 16], strides = [1, 1]} : vector<4x252xf32> to vector<4x16xf32>
    %c0_694 = arith.constant 0 : index
    %c0_695 = arith.constant 0 : index
    %c576 = arith.constant 576 : index
    %637 = vector.load %arg10[%c0_694, %c0_695, %c576] : memref<1x4x896xf32, #tpu.memory_space<vmem>>, vector<1x4x16xf32>
    %638 = vector.shape_cast %637 : vector<1x4x16xf32> to vector<4x16xf32>
    %639 = vector.shape_cast %636 : vector<4x16xf32> to vector<1x4x16xf32>
    tpu.vector_store %arg10[%c0_694, %c0_695, %c576], %639 {strides = array<i32>} : memref<1x4x896xf32, #tpu.memory_space<vmem>>, vector<1x4x16xf32>,
    %640 = vector.extract_strided_slice %603 {offsets = [0, 162], sizes = [4, 16], strides = [1, 1]} : vector<4x252xf32> to vector<4x16xf32>
    %c0_696 = arith.constant 0 : index
    %c0_697 = arith.constant 0 : index
    %c592 = arith.constant 592 : index
    %641 = vector.load %arg10[%c0_696, %c0_697, %c592] : memref<1x4x896xf32, #tpu.memory_space<vmem>>, vector<1x4x16xf32>
    %642 = vector.shape_cast %641 : vector<1x4x16xf32> to vector<4x16xf32>
    %643 = vector.shape_cast %640 : vector<4x16xf32> to vector<1x4x16xf32>
    tpu.vector_store %arg10[%c0_696, %c0_697, %c592], %643 {strides = array<i32>} : memref<1x4x896xf32, #tpu.memory_space<vmem>>, vector<1x4x16xf32>,
    %644 = vector.extract_strided_slice %603 {offsets = [0, 180], sizes = [4, 16], strides = [1, 1]} : vector<4x252xf32> to vector<4x16xf32>
    %c0_698 = arith.constant 0 : index
    %c0_699 = arith.constant 0 : index
    %c608 = arith.constant 608 : index
    %645 = vector.load %arg10[%c0_698, %c0_699, %c608] : memref<1x4x896xf32, #tpu.memory_space<vmem>>, vector<1x4x16xf32>
    %646 = vector.shape_cast %645 : vector<1x4x16xf32> to vector<4x16xf32>
    %647 = vector.shape_cast %644 : vector<4x16xf32> to vector<1x4x16xf32>
    tpu.vector_store %arg10[%c0_698, %c0_699, %c608], %647 {strides = array<i32>} : memref<1x4x896xf32, #tpu.memory_space<vmem>>, vector<1x4x16xf32>,
    %648 = vector.extract_strided_slice %603 {offsets = [0, 198], sizes = [4, 16], strides = [1, 1]} : vector<4x252xf32> to vector<4x16xf32>
    %c0_700 = arith.constant 0 : index
    %c0_701 = arith.constant 0 : index
    %c624 = arith.constant 624 : index
    %649 = vector.load %arg10[%c0_700, %c0_701, %c624] : memref<1x4x896xf32, #tpu.memory_space<vmem>>, vector<1x4x16xf32>
    %650 = vector.shape_cast %649 : vector<1x4x16xf32> to vector<4x16xf32>
    %651 = vector.shape_cast %648 : vector<4x16xf32> to vector<1x4x16xf32>
    tpu.vector_store %arg10[%c0_700, %c0_701, %c624], %651 {strides = array<i32>} : memref<1x4x896xf32, #tpu.memory_space<vmem>>, vector<1x4x16xf32>,
    %652 = vector.extract_strided_slice %603 {offsets = [0, 216], sizes = [4, 16], strides = [1, 1]} : vector<4x252xf32> to vector<4x16xf32>
    %c0_702 = arith.constant 0 : index
    %c0_703 = arith.constant 0 : index
    %c640 = arith.constant 640 : index
    %653 = vector.load %arg10[%c0_702, %c0_703, %c640] : memref<1x4x896xf32, #tpu.memory_space<vmem>>, vector<1x4x16xf32>
    %654 = vector.shape_cast %653 : vector<1x4x16xf32> to vector<4x16xf32>
    %655 = vector.shape_cast %652 : vector<4x16xf32> to vector<1x4x16xf32>
    tpu.vector_store %arg10[%c0_702, %c0_703, %c640], %655 {strides = array<i32>} : memref<1x4x896xf32, #tpu.memory_space<vmem>>, vector<1x4x16xf32>,
    %656 = vector.extract_strided_slice %603 {offsets = [0, 234], sizes = [4, 16], strides = [1, 1]} : vector<4x252xf32> to vector<4x16xf32>
    %c0_704 = arith.constant 0 : index
    %c0_705 = arith.constant 0 : index
    %c656 = arith.constant 656 : index
    %657 = vector.load %arg10[%c0_704, %c0_705, %c656] : memref<1x4x896xf32, #tpu.memory_space<vmem>>, vector<1x4x16xf32>
    %658 = vector.shape_cast %657 : vector<1x4x16xf32> to vector<4x16xf32>
    %659 = vector.shape_cast %656 : vector<4x16xf32> to vector<1x4x16xf32>
    tpu.vector_store %arg10[%c0_704, %c0_705, %c656], %659 {strides = array<i32>} : memref<1x4x896xf32, #tpu.memory_space<vmem>>, vector<1x4x16xf32>,
    %c0_706 = arith.constant 0 : index
    %c0_707 = arith.constant 0 : index
    %c0_708 = arith.constant 0 : index
    %c18_709 = arith.constant 18 : index
    %660 = vector.load %arg5[%c0_706, %c0_707, %c0_708, %c18_709] : memref<1x1x2x324xf32, #tpu.memory_space<vmem>>, vector<1x1x2x252xf32>
    %661 = vector.shape_cast %660 : vector<1x1x2x252xf32> to vector<2x252xf32>
    %c0_710 = arith.constant 0 : index
    %c0_711 = arith.constant 0 : index
    %c0_712 = arith.constant 0 : index
    %662 = vector.load %arg8[%c0_710, %c0_711, %c0_712] : memref<27x4x2xf32, #tpu.memory_space<vmem>>, vector<1x4x2xf32>
    %663 = vector.shape_cast %662 : vector<1x4x2xf32> to vector<4x2xf32>
    %cst_713 = arith.constant dense<0.000000e+00> : vector<4x252xf32>
    %664 = tpu.matmul %663, %661, %cst_713 {dimension_numbers = #tpu.dot_dimension_numbers<[1], [0], [0], [1], [0, 0, 1, 1], [], []>} : vector<4x2xf32>, vector<2x252xf32>, vector<4x252xf32> -> vector<4x252xf32>
    %c0_714 = arith.constant 0 : index
    %c0_715 = arith.constant 0 : index
    %c0_716 = arith.constant 0 : index
    %c19_717 = arith.constant 19 : index
    %665 = vector.load %arg5[%c0_714, %c0_715, %c0_716, %c19_717] : memref<1x1x2x324xf32, #tpu.memory_space<vmem>>, vector<1x1x2x252xf32>
    %666 = vector.shape_cast %665 : vector<1x1x2x252xf32> to vector<2x252xf32>
    %c1_718 = arith.constant 1 : index
    %c0_719 = arith.constant 0 : index
    %c0_720 = arith.constant 0 : index
    %667 = vector.load %arg8[%c1_718, %c0_719, %c0_720] : memref<27x4x2xf32, #tpu.memory_space<vmem>>, vector<1x4x2xf32>
    %668 = vector.shape_cast %667 : vector<1x4x2xf32> to vector<4x2xf32>
    %cst_721 = arith.constant dense<0.000000e+00> : vector<4x252xf32>
    %669 = tpu.matmul %668, %666, %cst_721 {dimension_numbers = #tpu.dot_dimension_numbers<[1], [0], [0], [1], [0, 0, 1, 1], [], []>} : vector<4x2xf32>, vector<2x252xf32>, vector<4x252xf32> -> vector<4x252xf32>
    %670 = arith.addf %664, %669 : vector<4x252xf32>
    %c0_722 = arith.constant 0 : index
    %c0_723 = arith.constant 0 : index
    %c0_724 = arith.constant 0 : index
    %c20_725 = arith.constant 20 : index
    %671 = vector.load %arg5[%c0_722, %c0_723, %c0_724, %c20_725] : memref<1x1x2x324xf32, #tpu.memory_space<vmem>>, vector<1x1x2x252xf32>
    %672 = vector.shape_cast %671 : vector<1x1x2x252xf32> to vector<2x252xf32>
    %c2_726 = arith.constant 2 : index
    %c0_727 = arith.constant 0 : index
    %c0_728 = arith.constant 0 : index
    %673 = vector.load %arg8[%c2_726, %c0_727, %c0_728] : memref<27x4x2xf32, #tpu.memory_space<vmem>>, vector<1x4x2xf32>
    %674 = vector.shape_cast %673 : vector<1x4x2xf32> to vector<4x2xf32>
    %cst_729 = arith.constant dense<0.000000e+00> : vector<4x252xf32>
    %675 = tpu.matmul %674, %672, %cst_729 {dimension_numbers = #tpu.dot_dimension_numbers<[1], [0], [0], [1], [0, 0, 1, 1], [], []>} : vector<4x2xf32>, vector<2x252xf32>, vector<4x252xf32> -> vector<4x252xf32>
    %676 = arith.addf %670, %675 : vector<4x252xf32>
    %c0_730 = arith.constant 0 : index
    %c0_731 = arith.constant 0 : index
    %c0_732 = arith.constant 0 : index
    %c36_733 = arith.constant 36 : index
    %677 = vector.load %arg5[%c0_730, %c0_731, %c0_732, %c36_733] : memref<1x1x2x324xf32, #tpu.memory_space<vmem>>, vector<1x1x2x252xf32>
    %678 = vector.shape_cast %677 : vector<1x1x2x252xf32> to vector<2x252xf32>
    %c3_734 = arith.constant 3 : index
    %c0_735 = arith.constant 0 : index
    %c0_736 = arith.constant 0 : index
    %679 = vector.load %arg8[%c3_734, %c0_735, %c0_736] : memref<27x4x2xf32, #tpu.memory_space<vmem>>, vector<1x4x2xf32>
    %680 = vector.shape_cast %679 : vector<1x4x2xf32> to vector<4x2xf32>
    %cst_737 = arith.constant dense<0.000000e+00> : vector<4x252xf32>
    %681 = tpu.matmul %680, %678, %cst_737 {dimension_numbers = #tpu.dot_dimension_numbers<[1], [0], [0], [1], [0, 0, 1, 1], [], []>} : vector<4x2xf32>, vector<2x252xf32>, vector<4x252xf32> -> vector<4x252xf32>
    %682 = arith.addf %676, %681 : vector<4x252xf32>
    %c0_738 = arith.constant 0 : index
    %c0_739 = arith.constant 0 : index
    %c0_740 = arith.constant 0 : index
    %c37_741 = arith.constant 37 : index
    %683 = vector.load %arg5[%c0_738, %c0_739, %c0_740, %c37_741] : memref<1x1x2x324xf32, #tpu.memory_space<vmem>>, vector<1x1x2x252xf32>
    %684 = vector.shape_cast %683 : vector<1x1x2x252xf32> to vector<2x252xf32>
    %c4_742 = arith.constant 4 : index
    %c0_743 = arith.constant 0 : index
    %c0_744 = arith.constant 0 : index
    %685 = vector.load %arg8[%c4_742, %c0_743, %c0_744] : memref<27x4x2xf32, #tpu.memory_space<vmem>>, vector<1x4x2xf32>
    %686 = vector.shape_cast %685 : vector<1x4x2xf32> to vector<4x2xf32>
    %cst_745 = arith.constant dense<0.000000e+00> : vector<4x252xf32>
    %687 = tpu.matmul %686, %684, %cst_745 {dimension_numbers = #tpu.dot_dimension_numbers<[1], [0], [0], [1], [0, 0, 1, 1], [], []>} : vector<4x2xf32>, vector<2x252xf32>, vector<4x252xf32> -> vector<4x252xf32>
    %688 = arith.addf %682, %687 : vector<4x252xf32>
    %c0_746 = arith.constant 0 : index
    %c0_747 = arith.constant 0 : index
    %c0_748 = arith.constant 0 : index
    %c38_749 = arith.constant 38 : index
    %689 = vector.load %arg5[%c0_746, %c0_747, %c0_748, %c38_749] : memref<1x1x2x324xf32, #tpu.memory_space<vmem>>, vector<1x1x2x252xf32>
    %690 = vector.shape_cast %689 : vector<1x1x2x252xf32> to vector<2x252xf32>
    %c5_750 = arith.constant 5 : index
    %c0_751 = arith.constant 0 : index
    %c0_752 = arith.constant 0 : index
    %691 = vector.load %arg8[%c5_750, %c0_751, %c0_752] : memref<27x4x2xf32, #tpu.memory_space<vmem>>, vector<1x4x2xf32>
    %692 = vector.shape_cast %691 : vector<1x4x2xf32> to vector<4x2xf32>
    %cst_753 = arith.constant dense<0.000000e+00> : vector<4x252xf32>
    %693 = tpu.matmul %692, %690, %cst_753 {dimension_numbers = #tpu.dot_dimension_numbers<[1], [0], [0], [1], [0, 0, 1, 1], [], []>} : vector<4x2xf32>, vector<2x252xf32>, vector<4x252xf32> -> vector<4x252xf32>
    %694 = arith.addf %688, %693 : vector<4x252xf32>
    %c0_754 = arith.constant 0 : index
    %c0_755 = arith.constant 0 : index
    %c0_756 = arith.constant 0 : index
    %c54_757 = arith.constant 54 : index
    %695 = vector.load %arg5[%c0_754, %c0_755, %c0_756, %c54_757] : memref<1x1x2x324xf32, #tpu.memory_space<vmem>>, vector<1x1x2x252xf32>
    %696 = vector.shape_cast %695 : vector<1x1x2x252xf32> to vector<2x252xf32>
    %c6_758 = arith.constant 6 : index
    %c0_759 = arith.constant 0 : index
    %c0_760 = arith.constant 0 : index
    %697 = vector.load %arg8[%c6_758, %c0_759, %c0_760] : memref<27x4x2xf32, #tpu.memory_space<vmem>>, vector<1x4x2xf32>
    %698 = vector.shape_cast %697 : vector<1x4x2xf32> to vector<4x2xf32>
    %cst_761 = arith.constant dense<0.000000e+00> : vector<4x252xf32>
    %699 = tpu.matmul %698, %696, %cst_761 {dimension_numbers = #tpu.dot_dimension_numbers<[1], [0], [0], [1], [0, 0, 1, 1], [], []>} : vector<4x2xf32>, vector<2x252xf32>, vector<4x252xf32> -> vector<4x252xf32>
    %700 = arith.addf %694, %699 : vector<4x252xf32>
    %c0_762 = arith.constant 0 : index
    %c0_763 = arith.constant 0 : index
    %c0_764 = arith.constant 0 : index
    %c55_765 = arith.constant 55 : index
    %701 = vector.load %arg5[%c0_762, %c0_763, %c0_764, %c55_765] : memref<1x1x2x324xf32, #tpu.memory_space<vmem>>, vector<1x1x2x252xf32>
    %702 = vector.shape_cast %701 : vector<1x1x2x252xf32> to vector<2x252xf32>
    %c7_766 = arith.constant 7 : index
    %c0_767 = arith.constant 0 : index
    %c0_768 = arith.constant 0 : index
    %703 = vector.load %arg8[%c7_766, %c0_767, %c0_768] : memref<27x4x2xf32, #tpu.memory_space<vmem>>, vector<1x4x2xf32>
    %704 = vector.shape_cast %703 : vector<1x4x2xf32> to vector<4x2xf32>
    %cst_769 = arith.constant dense<0.000000e+00> : vector<4x252xf32>
    %705 = tpu.matmul %704, %702, %cst_769 {dimension_numbers = #tpu.dot_dimension_numbers<[1], [0], [0], [1], [0, 0, 1, 1], [], []>} : vector<4x2xf32>, vector<2x252xf32>, vector<4x252xf32> -> vector<4x252xf32>
    %706 = arith.addf %700, %705 : vector<4x252xf32>
    %c0_770 = arith.constant 0 : index
    %c0_771 = arith.constant 0 : index
    %c0_772 = arith.constant 0 : index
    %c56_773 = arith.constant 56 : index
    %707 = vector.load %arg5[%c0_770, %c0_771, %c0_772, %c56_773] : memref<1x1x2x324xf32, #tpu.memory_space<vmem>>, vector<1x1x2x252xf32>
    %708 = vector.shape_cast %707 : vector<1x1x2x252xf32> to vector<2x252xf32>
    %c8_774 = arith.constant 8 : index
    %c0_775 = arith.constant 0 : index
    %c0_776 = arith.constant 0 : index
    %709 = vector.load %arg8[%c8_774, %c0_775, %c0_776] : memref<27x4x2xf32, #tpu.memory_space<vmem>>, vector<1x4x2xf32>
    %710 = vector.shape_cast %709 : vector<1x4x2xf32> to vector<4x2xf32>
    %cst_777 = arith.constant dense<0.000000e+00> : vector<4x252xf32>
    %711 = tpu.matmul %710, %708, %cst_777 {dimension_numbers = #tpu.dot_dimension_numbers<[1], [0], [0], [1], [0, 0, 1, 1], [], []>} : vector<4x2xf32>, vector<2x252xf32>, vector<4x252xf32> -> vector<4x252xf32>
    %712 = arith.addf %706, %711 : vector<4x252xf32>
    %c0_778 = arith.constant 0 : index
    %c0_779 = arith.constant 0 : index
    %c0_780 = arith.constant 0 : index
    %c18_781 = arith.constant 18 : index
    %713 = vector.load %arg6[%c0_778, %c0_779, %c0_780, %c18_781] : memref<1x1x2x324xf32, #tpu.memory_space<vmem>>, vector<1x1x2x252xf32>
    %714 = vector.shape_cast %713 : vector<1x1x2x252xf32> to vector<2x252xf32>
    %c9_782 = arith.constant 9 : index
    %c0_783 = arith.constant 0 : index
    %c0_784 = arith.constant 0 : index
    %715 = vector.load %arg8[%c9_782, %c0_783, %c0_784] : memref<27x4x2xf32, #tpu.memory_space<vmem>>, vector<1x4x2xf32>
    %716 = vector.shape_cast %715 : vector<1x4x2xf32> to vector<4x2xf32>
    %cst_785 = arith.constant dense<0.000000e+00> : vector<4x252xf32>
    %717 = tpu.matmul %716, %714, %cst_785 {dimension_numbers = #tpu.dot_dimension_numbers<[1], [0], [0], [1], [0, 0, 1, 1], [], []>} : vector<4x2xf32>, vector<2x252xf32>, vector<4x252xf32> -> vector<4x252xf32>
    %718 = arith.addf %712, %717 : vector<4x252xf32>
    %c0_786 = arith.constant 0 : index
    %c0_787 = arith.constant 0 : index
    %c0_788 = arith.constant 0 : index
    %c19_789 = arith.constant 19 : index
    %719 = vector.load %arg6[%c0_786, %c0_787, %c0_788, %c19_789] : memref<1x1x2x324xf32, #tpu.memory_space<vmem>>, vector<1x1x2x252xf32>
    %720 = vector.shape_cast %719 : vector<1x1x2x252xf32> to vector<2x252xf32>
    %c10_790 = arith.constant 10 : index
    %c0_791 = arith.constant 0 : index
    %c0_792 = arith.constant 0 : index
    %721 = vector.load %arg8[%c10_790, %c0_791, %c0_792] : memref<27x4x2xf32, #tpu.memory_space<vmem>>, vector<1x4x2xf32>
    %722 = vector.shape_cast %721 : vector<1x4x2xf32> to vector<4x2xf32>
    %cst_793 = arith.constant dense<0.000000e+00> : vector<4x252xf32>
    %723 = tpu.matmul %722, %720, %cst_793 {dimension_numbers = #tpu.dot_dimension_numbers<[1], [0], [0], [1], [0, 0, 1, 1], [], []>} : vector<4x2xf32>, vector<2x252xf32>, vector<4x252xf32> -> vector<4x252xf32>
    %724 = arith.addf %718, %723 : vector<4x252xf32>
    %c0_794 = arith.constant 0 : index
    %c0_795 = arith.constant 0 : index
    %c0_796 = arith.constant 0 : index
    %c20_797 = arith.constant 20 : index
    %725 = vector.load %arg6[%c0_794, %c0_795, %c0_796, %c20_797] : memref<1x1x2x324xf32, #tpu.memory_space<vmem>>, vector<1x1x2x252xf32>
    %726 = vector.shape_cast %725 : vector<1x1x2x252xf32> to vector<2x252xf32>
    %c11_798 = arith.constant 11 : index
    %c0_799 = arith.constant 0 : index
    %c0_800 = arith.constant 0 : index
    %727 = vector.load %arg8[%c11_798, %c0_799, %c0_800] : memref<27x4x2xf32, #tpu.memory_space<vmem>>, vector<1x4x2xf32>
    %728 = vector.shape_cast %727 : vector<1x4x2xf32> to vector<4x2xf32>
    %cst_801 = arith.constant dense<0.000000e+00> : vector<4x252xf32>
    %729 = tpu.matmul %728, %726, %cst_801 {dimension_numbers = #tpu.dot_dimension_numbers<[1], [0], [0], [1], [0, 0, 1, 1], [], []>} : vector<4x2xf32>, vector<2x252xf32>, vector<4x252xf32> -> vector<4x252xf32>
    %730 = arith.addf %724, %729 : vector<4x252xf32>
    %c0_802 = arith.constant 0 : index
    %c0_803 = arith.constant 0 : index
    %c0_804 = arith.constant 0 : index
    %c36_805 = arith.constant 36 : index
    %731 = vector.load %arg6[%c0_802, %c0_803, %c0_804, %c36_805] : memref<1x1x2x324xf32, #tpu.memory_space<vmem>>, vector<1x1x2x252xf32>
    %732 = vector.shape_cast %731 : vector<1x1x2x252xf32> to vector<2x252xf32>
    %c12_806 = arith.constant 12 : index
    %c0_807 = arith.constant 0 : index
    %c0_808 = arith.constant 0 : index
    %733 = vector.load %arg8[%c12_806, %c0_807, %c0_808] : memref<27x4x2xf32, #tpu.memory_space<vmem>>, vector<1x4x2xf32>
    %734 = vector.shape_cast %733 : vector<1x4x2xf32> to vector<4x2xf32>
    %cst_809 = arith.constant dense<0.000000e+00> : vector<4x252xf32>
    %735 = tpu.matmul %734, %732, %cst_809 {dimension_numbers = #tpu.dot_dimension_numbers<[1], [0], [0], [1], [0, 0, 1, 1], [], []>} : vector<4x2xf32>, vector<2x252xf32>, vector<4x252xf32> -> vector<4x252xf32>
    %736 = arith.addf %730, %735 : vector<4x252xf32>
    %c0_810 = arith.constant 0 : index
    %c0_811 = arith.constant 0 : index
    %c0_812 = arith.constant 0 : index
    %c37_813 = arith.constant 37 : index
    %737 = vector.load %arg6[%c0_810, %c0_811, %c0_812, %c37_813] : memref<1x1x2x324xf32, #tpu.memory_space<vmem>>, vector<1x1x2x252xf32>
    %738 = vector.shape_cast %737 : vector<1x1x2x252xf32> to vector<2x252xf32>
    %c13_814 = arith.constant 13 : index
    %c0_815 = arith.constant 0 : index
    %c0_816 = arith.constant 0 : index
    %739 = vector.load %arg8[%c13_814, %c0_815, %c0_816] : memref<27x4x2xf32, #tpu.memory_space<vmem>>, vector<1x4x2xf32>
    %740 = vector.shape_cast %739 : vector<1x4x2xf32> to vector<4x2xf32>
    %cst_817 = arith.constant dense<0.000000e+00> : vector<4x252xf32>
    %741 = tpu.matmul %740, %738, %cst_817 {dimension_numbers = #tpu.dot_dimension_numbers<[1], [0], [0], [1], [0, 0, 1, 1], [], []>} : vector<4x2xf32>, vector<2x252xf32>, vector<4x252xf32> -> vector<4x252xf32>
    %742 = arith.addf %736, %741 : vector<4x252xf32>
    %c0_818 = arith.constant 0 : index
    %c0_819 = arith.constant 0 : index
    %c0_820 = arith.constant 0 : index
    %c38_821 = arith.constant 38 : index
    %743 = vector.load %arg6[%c0_818, %c0_819, %c0_820, %c38_821] : memref<1x1x2x324xf32, #tpu.memory_space<vmem>>, vector<1x1x2x252xf32>
    %744 = vector.shape_cast %743 : vector<1x1x2x252xf32> to vector<2x252xf32>
    %c14_822 = arith.constant 14 : index
    %c0_823 = arith.constant 0 : index
    %c0_824 = arith.constant 0 : index
    %745 = vector.load %arg8[%c14_822, %c0_823, %c0_824] : memref<27x4x2xf32, #tpu.memory_space<vmem>>, vector<1x4x2xf32>
    %746 = vector.shape_cast %745 : vector<1x4x2xf32> to vector<4x2xf32>
    %cst_825 = arith.constant dense<0.000000e+00> : vector<4x252xf32>
    %747 = tpu.matmul %746, %744, %cst_825 {dimension_numbers = #tpu.dot_dimension_numbers<[1], [0], [0], [1], [0, 0, 1, 1], [], []>} : vector<4x2xf32>, vector<2x252xf32>, vector<4x252xf32> -> vector<4x252xf32>
    %748 = arith.addf %742, %747 : vector<4x252xf32>
    %c0_826 = arith.constant 0 : index
    %c0_827 = arith.constant 0 : index
    %c0_828 = arith.constant 0 : index
    %c54_829 = arith.constant 54 : index
    %749 = vector.load %arg6[%c0_826, %c0_827, %c0_828, %c54_829] : memref<1x1x2x324xf32, #tpu.memory_space<vmem>>, vector<1x1x2x252xf32>
    %750 = vector.shape_cast %749 : vector<1x1x2x252xf32> to vector<2x252xf32>
    %c15_830 = arith.constant 15 : index
    %c0_831 = arith.constant 0 : index
    %c0_832 = arith.constant 0 : index
    %751 = vector.load %arg8[%c15_830, %c0_831, %c0_832] : memref<27x4x2xf32, #tpu.memory_space<vmem>>, vector<1x4x2xf32>
    %752 = vector.shape_cast %751 : vector<1x4x2xf32> to vector<4x2xf32>
    %cst_833 = arith.constant dense<0.000000e+00> : vector<4x252xf32>
    %753 = tpu.matmul %752, %750, %cst_833 {dimension_numbers = #tpu.dot_dimension_numbers<[1], [0], [0], [1], [0, 0, 1, 1], [], []>} : vector<4x2xf32>, vector<2x252xf32>, vector<4x252xf32> -> vector<4x252xf32>
    %754 = arith.addf %748, %753 : vector<4x252xf32>
    %c0_834 = arith.constant 0 : index
    %c0_835 = arith.constant 0 : index
    %c0_836 = arith.constant 0 : index
    %c55_837 = arith.constant 55 : index
    %755 = vector.load %arg6[%c0_834, %c0_835, %c0_836, %c55_837] : memref<1x1x2x324xf32, #tpu.memory_space<vmem>>, vector<1x1x2x252xf32>
    %756 = vector.shape_cast %755 : vector<1x1x2x252xf32> to vector<2x252xf32>
    %c16_838 = arith.constant 16 : index
    %c0_839 = arith.constant 0 : index
    %c0_840 = arith.constant 0 : index
    %757 = vector.load %arg8[%c16_838, %c0_839, %c0_840] : memref<27x4x2xf32, #tpu.memory_space<vmem>>, vector<1x4x2xf32>
    %758 = vector.shape_cast %757 : vector<1x4x2xf32> to vector<4x2xf32>
    %cst_841 = arith.constant dense<0.000000e+00> : vector<4x252xf32>
    %759 = tpu.matmul %758, %756, %cst_841 {dimension_numbers = #tpu.dot_dimension_numbers<[1], [0], [0], [1], [0, 0, 1, 1], [], []>} : vector<4x2xf32>, vector<2x252xf32>, vector<4x252xf32> -> vector<4x252xf32>
    %760 = arith.addf %754, %759 : vector<4x252xf32>
    %c0_842 = arith.constant 0 : index
    %c0_843 = arith.constant 0 : index
    %c0_844 = arith.constant 0 : index
    %c56_845 = arith.constant 56 : index
    %761 = vector.load %arg6[%c0_842, %c0_843, %c0_844, %c56_845] : memref<1x1x2x324xf32, #tpu.memory_space<vmem>>, vector<1x1x2x252xf32>
    %762 = vector.shape_cast %761 : vector<1x1x2x252xf32> to vector<2x252xf32>
    %c17_846 = arith.constant 17 : index
    %c0_847 = arith.constant 0 : index
    %c0_848 = arith.constant 0 : index
    %763 = vector.load %arg8[%c17_846, %c0_847, %c0_848] : memref<27x4x2xf32, #tpu.memory_space<vmem>>, vector<1x4x2xf32>
    %764 = vector.shape_cast %763 : vector<1x4x2xf32> to vector<4x2xf32>
    %cst_849 = arith.constant dense<0.000000e+00> : vector<4x252xf32>
    %765 = tpu.matmul %764, %762, %cst_849 {dimension_numbers = #tpu.dot_dimension_numbers<[1], [0], [0], [1], [0, 0, 1, 1], [], []>} : vector<4x2xf32>, vector<2x252xf32>, vector<4x252xf32> -> vector<4x252xf32>
    %766 = arith.addf %760, %765 : vector<4x252xf32>
    %c0_850 = arith.constant 0 : index
    %c0_851 = arith.constant 0 : index
    %c0_852 = arith.constant 0 : index
    %c18_853 = arith.constant 18 : index
    %767 = vector.load %arg7[%c0_850, %c0_851, %c0_852, %c18_853] : memref<1x1x2x324xf32, #tpu.memory_space<vmem>>, vector<1x1x2x252xf32>
    %768 = vector.shape_cast %767 : vector<1x1x2x252xf32> to vector<2x252xf32>
    %c18_854 = arith.constant 18 : index
    %c0_855 = arith.constant 0 : index
    %c0_856 = arith.constant 0 : index
    %769 = vector.load %arg8[%c18_854, %c0_855, %c0_856] : memref<27x4x2xf32, #tpu.memory_space<vmem>>, vector<1x4x2xf32>
    %770 = vector.shape_cast %769 : vector<1x4x2xf32> to vector<4x2xf32>
    %cst_857 = arith.constant dense<0.000000e+00> : vector<4x252xf32>
    %771 = tpu.matmul %770, %768, %cst_857 {dimension_numbers = #tpu.dot_dimension_numbers<[1], [0], [0], [1], [0, 0, 1, 1], [], []>} : vector<4x2xf32>, vector<2x252xf32>, vector<4x252xf32> -> vector<4x252xf32>
    %772 = arith.addf %766, %771 : vector<4x252xf32>
    %c0_858 = arith.constant 0 : index
    %c0_859 = arith.constant 0 : index
    %c0_860 = arith.constant 0 : index
    %c19_861 = arith.constant 19 : index
    %773 = vector.load %arg7[%c0_858, %c0_859, %c0_860, %c19_861] : memref<1x1x2x324xf32, #tpu.memory_space<vmem>>, vector<1x1x2x252xf32>
    %774 = vector.shape_cast %773 : vector<1x1x2x252xf32> to vector<2x252xf32>
    %c19_862 = arith.constant 19 : index
    %c0_863 = arith.constant 0 : index
    %c0_864 = arith.constant 0 : index
    %775 = vector.load %arg8[%c19_862, %c0_863, %c0_864] : memref<27x4x2xf32, #tpu.memory_space<vmem>>, vector<1x4x2xf32>
    %776 = vector.shape_cast %775 : vector<1x4x2xf32> to vector<4x2xf32>
    %cst_865 = arith.constant dense<0.000000e+00> : vector<4x252xf32>
    %777 = tpu.matmul %776, %774, %cst_865 {dimension_numbers = #tpu.dot_dimension_numbers<[1], [0], [0], [1], [0, 0, 1, 1], [], []>} : vector<4x2xf32>, vector<2x252xf32>, vector<4x252xf32> -> vector<4x252xf32>
    %778 = arith.addf %772, %777 : vector<4x252xf32>
    %c0_866 = arith.constant 0 : index
    %c0_867 = arith.constant 0 : index
    %c0_868 = arith.constant 0 : index
    %c20_869 = arith.constant 20 : index
    %779 = vector.load %arg7[%c0_866, %c0_867, %c0_868, %c20_869] : memref<1x1x2x324xf32, #tpu.memory_space<vmem>>, vector<1x1x2x252xf32>
    %780 = vector.shape_cast %779 : vector<1x1x2x252xf32> to vector<2x252xf32>
    %c20_870 = arith.constant 20 : index
    %c0_871 = arith.constant 0 : index
    %c0_872 = arith.constant 0 : index
    %781 = vector.load %arg8[%c20_870, %c0_871, %c0_872] : memref<27x4x2xf32, #tpu.memory_space<vmem>>, vector<1x4x2xf32>
    %782 = vector.shape_cast %781 : vector<1x4x2xf32> to vector<4x2xf32>
    %cst_873 = arith.constant dense<0.000000e+00> : vector<4x252xf32>
    %783 = tpu.matmul %782, %780, %cst_873 {dimension_numbers = #tpu.dot_dimension_numbers<[1], [0], [0], [1], [0, 0, 1, 1], [], []>} : vector<4x2xf32>, vector<2x252xf32>, vector<4x252xf32> -> vector<4x252xf32>
    %784 = arith.addf %778, %783 : vector<4x252xf32>
    %c0_874 = arith.constant 0 : index
    %c0_875 = arith.constant 0 : index
    %c0_876 = arith.constant 0 : index
    %c36_877 = arith.constant 36 : index
    %785 = vector.load %arg7[%c0_874, %c0_875, %c0_876, %c36_877] : memref<1x1x2x324xf32, #tpu.memory_space<vmem>>, vector<1x1x2x252xf32>
    %786 = vector.shape_cast %785 : vector<1x1x2x252xf32> to vector<2x252xf32>
    %c21_878 = arith.constant 21 : index
    %c0_879 = arith.constant 0 : index
    %c0_880 = arith.constant 0 : index
    %787 = vector.load %arg8[%c21_878, %c0_879, %c0_880] : memref<27x4x2xf32, #tpu.memory_space<vmem>>, vector<1x4x2xf32>
    %788 = vector.shape_cast %787 : vector<1x4x2xf32> to vector<4x2xf32>
    %cst_881 = arith.constant dense<0.000000e+00> : vector<4x252xf32>
    %789 = tpu.matmul %788, %786, %cst_881 {dimension_numbers = #tpu.dot_dimension_numbers<[1], [0], [0], [1], [0, 0, 1, 1], [], []>} : vector<4x2xf32>, vector<2x252xf32>, vector<4x252xf32> -> vector<4x252xf32>
    %790 = arith.addf %784, %789 : vector<4x252xf32>
    %c0_882 = arith.constant 0 : index
    %c0_883 = arith.constant 0 : index
    %c0_884 = arith.constant 0 : index
    %c37_885 = arith.constant 37 : index
    %791 = vector.load %arg7[%c0_882, %c0_883, %c0_884, %c37_885] : memref<1x1x2x324xf32, #tpu.memory_space<vmem>>, vector<1x1x2x252xf32>
    %792 = vector.shape_cast %791 : vector<1x1x2x252xf32> to vector<2x252xf32>
    %c22_886 = arith.constant 22 : index
    %c0_887 = arith.constant 0 : index
    %c0_888 = arith.constant 0 : index
    %793 = vector.load %arg8[%c22_886, %c0_887, %c0_888] : memref<27x4x2xf32, #tpu.memory_space<vmem>>, vector<1x4x2xf32>
    %794 = vector.shape_cast %793 : vector<1x4x2xf32> to vector<4x2xf32>
    %cst_889 = arith.constant dense<0.000000e+00> : vector<4x252xf32>
    %795 = tpu.matmul %794, %792, %cst_889 {dimension_numbers = #tpu.dot_dimension_numbers<[1], [0], [0], [1], [0, 0, 1, 1], [], []>} : vector<4x2xf32>, vector<2x252xf32>, vector<4x252xf32> -> vector<4x252xf32>
    %796 = arith.addf %790, %795 : vector<4x252xf32>
    %c0_890 = arith.constant 0 : index
    %c0_891 = arith.constant 0 : index
    %c0_892 = arith.constant 0 : index
    %c38_893 = arith.constant 38 : index
    %797 = vector.load %arg7[%c0_890, %c0_891, %c0_892, %c38_893] : memref<1x1x2x324xf32, #tpu.memory_space<vmem>>, vector<1x1x2x252xf32>
    %798 = vector.shape_cast %797 : vector<1x1x2x252xf32> to vector<2x252xf32>
    %c23_894 = arith.constant 23 : index
    %c0_895 = arith.constant 0 : index
    %c0_896 = arith.constant 0 : index
    %799 = vector.load %arg8[%c23_894, %c0_895, %c0_896] : memref<27x4x2xf32, #tpu.memory_space<vmem>>, vector<1x4x2xf32>
    %800 = vector.shape_cast %799 : vector<1x4x2xf32> to vector<4x2xf32>
    %cst_897 = arith.constant dense<0.000000e+00> : vector<4x252xf32>
    %801 = tpu.matmul %800, %798, %cst_897 {dimension_numbers = #tpu.dot_dimension_numbers<[1], [0], [0], [1], [0, 0, 1, 1], [], []>} : vector<4x2xf32>, vector<2x252xf32>, vector<4x252xf32> -> vector<4x252xf32>
    %802 = arith.addf %796, %801 : vector<4x252xf32>
    %c0_898 = arith.constant 0 : index
    %c0_899 = arith.constant 0 : index
    %c0_900 = arith.constant 0 : index
    %c54_901 = arith.constant 54 : index
    %803 = vector.load %arg7[%c0_898, %c0_899, %c0_900, %c54_901] : memref<1x1x2x324xf32, #tpu.memory_space<vmem>>, vector<1x1x2x252xf32>
    %804 = vector.shape_cast %803 : vector<1x1x2x252xf32> to vector<2x252xf32>
    %c24_902 = arith.constant 24 : index
    %c0_903 = arith.constant 0 : index
    %c0_904 = arith.constant 0 : index
    %805 = vector.load %arg8[%c24_902, %c0_903, %c0_904] : memref<27x4x2xf32, #tpu.memory_space<vmem>>, vector<1x4x2xf32>
    %806 = vector.shape_cast %805 : vector<1x4x2xf32> to vector<4x2xf32>
    %cst_905 = arith.constant dense<0.000000e+00> : vector<4x252xf32>
    %807 = tpu.matmul %806, %804, %cst_905 {dimension_numbers = #tpu.dot_dimension_numbers<[1], [0], [0], [1], [0, 0, 1, 1], [], []>} : vector<4x2xf32>, vector<2x252xf32>, vector<4x252xf32> -> vector<4x252xf32>
    %808 = arith.addf %802, %807 : vector<4x252xf32>
    %c0_906 = arith.constant 0 : index
    %c0_907 = arith.constant 0 : index
    %c0_908 = arith.constant 0 : index
    %c55_909 = arith.constant 55 : index
    %809 = vector.load %arg7[%c0_906, %c0_907, %c0_908, %c55_909] : memref<1x1x2x324xf32, #tpu.memory_space<vmem>>, vector<1x1x2x252xf32>
    %810 = vector.shape_cast %809 : vector<1x1x2x252xf32> to vector<2x252xf32>
    %c25_910 = arith.constant 25 : index
    %c0_911 = arith.constant 0 : index
    %c0_912 = arith.constant 0 : index
    %811 = vector.load %arg8[%c25_910, %c0_911, %c0_912] : memref<27x4x2xf32, #tpu.memory_space<vmem>>, vector<1x4x2xf32>
    %812 = vector.shape_cast %811 : vector<1x4x2xf32> to vector<4x2xf32>
    %cst_913 = arith.constant dense<0.000000e+00> : vector<4x252xf32>
    %813 = tpu.matmul %812, %810, %cst_913 {dimension_numbers = #tpu.dot_dimension_numbers<[1], [0], [0], [1], [0, 0, 1, 1], [], []>} : vector<4x2xf32>, vector<2x252xf32>, vector<4x252xf32> -> vector<4x252xf32>
    %814 = arith.addf %808, %813 : vector<4x252xf32>
    %c0_914 = arith.constant 0 : index
    %c0_915 = arith.constant 0 : index
    %c0_916 = arith.constant 0 : index
    %c56_917 = arith.constant 56 : index
    %815 = vector.load %arg7[%c0_914, %c0_915, %c0_916, %c56_917] : memref<1x1x2x324xf32, #tpu.memory_space<vmem>>, vector<1x1x2x252xf32>
    %816 = vector.shape_cast %815 : vector<1x1x2x252xf32> to vector<2x252xf32>
    %c26_918 = arith.constant 26 : index
    %c0_919 = arith.constant 0 : index
    %c0_920 = arith.constant 0 : index
    %817 = vector.load %arg8[%c26_918, %c0_919, %c0_920] : memref<27x4x2xf32, #tpu.memory_space<vmem>>, vector<1x4x2xf32>
    %818 = vector.shape_cast %817 : vector<1x4x2xf32> to vector<4x2xf32>
    %cst_921 = arith.constant dense<0.000000e+00> : vector<4x252xf32>
    %819 = tpu.matmul %818, %816, %cst_921 {dimension_numbers = #tpu.dot_dimension_numbers<[1], [0], [0], [1], [0, 0, 1, 1], [], []>} : vector<4x2xf32>, vector<2x252xf32>, vector<4x252xf32> -> vector<4x252xf32>
    %820 = arith.addf %814, %819 : vector<4x252xf32>
    %c0_922 = arith.constant 0 : index
    %c0_923 = arith.constant 0 : index
    %821 = vector.load %arg9[%c0_922, %c0_923] : memref<4x1xf32, #tpu.memory_space<vmem>>, vector<4x1xf32>
    %822 = vector.broadcast %821 : vector<4x1xf32> to vector<4x252xf32>
    %823 = arith.addf %820, %822 : vector<4x252xf32>
    %824 = vector.extract_strided_slice %823 {offsets = [0, 0], sizes = [4, 16], strides = [1, 1]} : vector<4x252xf32> to vector<4x16xf32>
    %c0_924 = arith.constant 0 : index
    %c0_925 = arith.constant 0 : index
    %c672 = arith.constant 672 : index
    %825 = vector.load %arg10[%c0_924, %c0_925, %c672] : memref<1x4x896xf32, #tpu.memory_space<vmem>>, vector<1x4x16xf32>
    %826 = vector.shape_cast %825 : vector<1x4x16xf32> to vector<4x16xf32>
    %827 = vector.shape_cast %824 : vector<4x16xf32> to vector<1x4x16xf32>
    tpu.vector_store %arg10[%c0_924, %c0_925, %c672], %827 {strides = array<i32>} : memref<1x4x896xf32, #tpu.memory_space<vmem>>, vector<1x4x16xf32>,
    %828 = vector.extract_strided_slice %823 {offsets = [0, 18], sizes = [4, 16], strides = [1, 1]} : vector<4x252xf32> to vector<4x16xf32>
    %c0_926 = arith.constant 0 : index
    %c0_927 = arith.constant 0 : index
    %c688 = arith.constant 688 : index
    %829 = vector.load %arg10[%c0_926, %c0_927, %c688] : memref<1x4x896xf32, #tpu.memory_space<vmem>>, vector<1x4x16xf32>
    %830 = vector.shape_cast %829 : vector<1x4x16xf32> to vector<4x16xf32>
    %831 = vector.shape_cast %828 : vector<4x16xf32> to vector<1x4x16xf32>
    tpu.vector_store %arg10[%c0_926, %c0_927, %c688], %831 {strides = array<i32>} : memref<1x4x896xf32, #tpu.memory_space<vmem>>, vector<1x4x16xf32>,
    %832 = vector.extract_strided_slice %823 {offsets = [0, 36], sizes = [4, 16], strides = [1, 1]} : vector<4x252xf32> to vector<4x16xf32>
    %c0_928 = arith.constant 0 : index
    %c0_929 = arith.constant 0 : index
    %c704 = arith.constant 704 : index
    %833 = vector.load %arg10[%c0_928, %c0_929, %c704] : memref<1x4x896xf32, #tpu.memory_space<vmem>>, vector<1x4x16xf32>
    %834 = vector.shape_cast %833 : vector<1x4x16xf32> to vector<4x16xf32>
    %835 = vector.shape_cast %832 : vector<4x16xf32> to vector<1x4x16xf32>
    tpu.vector_store %arg10[%c0_928, %c0_929, %c704], %835 {strides = array<i32>} : memref<1x4x896xf32, #tpu.memory_space<vmem>>, vector<1x4x16xf32>,
    %836 = vector.extract_strided_slice %823 {offsets = [0, 54], sizes = [4, 16], strides = [1, 1]} : vector<4x252xf32> to vector<4x16xf32>
    %c0_930 = arith.constant 0 : index
    %c0_931 = arith.constant 0 : index
    %c720 = arith.constant 720 : index
    %837 = vector.load %arg10[%c0_930, %c0_931, %c720] : memref<1x4x896xf32, #tpu.memory_space<vmem>>, vector<1x4x16xf32>
    %838 = vector.shape_cast %837 : vector<1x4x16xf32> to vector<4x16xf32>
    %839 = vector.shape_cast %836 : vector<4x16xf32> to vector<1x4x16xf32>
    tpu.vector_store %arg10[%c0_930, %c0_931, %c720], %839 {strides = array<i32>} : memref<1x4x896xf32, #tpu.memory_space<vmem>>, vector<1x4x16xf32>,
    %840 = vector.extract_strided_slice %823 {offsets = [0, 72], sizes = [4, 16], strides = [1, 1]} : vector<4x252xf32> to vector<4x16xf32>
    %c0_932 = arith.constant 0 : index
    %c0_933 = arith.constant 0 : index
    %c736 = arith.constant 736 : index
    %841 = vector.load %arg10[%c0_932, %c0_933, %c736] : memref<1x4x896xf32, #tpu.memory_space<vmem>>, vector<1x4x16xf32>
    %842 = vector.shape_cast %841 : vector<1x4x16xf32> to vector<4x16xf32>
    %843 = vector.shape_cast %840 : vector<4x16xf32> to vector<1x4x16xf32>
    tpu.vector_store %arg10[%c0_932, %c0_933, %c736], %843 {strides = array<i32>} : memref<1x4x896xf32, #tpu.memory_space<vmem>>, vector<1x4x16xf32>,
    %844 = vector.extract_strided_slice %823 {offsets = [0, 90], sizes = [4, 16], strides = [1, 1]} : vector<4x252xf32> to vector<4x16xf32>
    %c0_934 = arith.constant 0 : index
    %c0_935 = arith.constant 0 : index
    %c752 = arith.constant 752 : index
    %845 = vector.load %arg10[%c0_934, %c0_935, %c752] : memref<1x4x896xf32, #tpu.memory_space<vmem>>, vector<1x4x16xf32>
    %846 = vector.shape_cast %845 : vector<1x4x16xf32> to vector<4x16xf32>
    %847 = vector.shape_cast %844 : vector<4x16xf32> to vector<1x4x16xf32>
    tpu.vector_store %arg10[%c0_934, %c0_935, %c752], %847 {strides = array<i32>} : memref<1x4x896xf32, #tpu.memory_space<vmem>>, vector<1x4x16xf32>,
    %848 = vector.extract_strided_slice %823 {offsets = [0, 108], sizes = [4, 16], strides = [1, 1]} : vector<4x252xf32> to vector<4x16xf32>
    %c0_936 = arith.constant 0 : index
    %c0_937 = arith.constant 0 : index
    %c768 = arith.constant 768 : index
    %849 = vector.load %arg10[%c0_936, %c0_937, %c768] : memref<1x4x896xf32, #tpu.memory_space<vmem>>, vector<1x4x16xf32>
    %850 = vector.shape_cast %849 : vector<1x4x16xf32> to vector<4x16xf32>
    %851 = vector.shape_cast %848 : vector<4x16xf32> to vector<1x4x16xf32>
    tpu.vector_store %arg10[%c0_936, %c0_937, %c768], %851 {strides = array<i32>} : memref<1x4x896xf32, #tpu.memory_space<vmem>>, vector<1x4x16xf32>,
    %852 = vector.extract_strided_slice %823 {offsets = [0, 126], sizes = [4, 16], strides = [1, 1]} : vector<4x252xf32> to vector<4x16xf32>
    %c0_938 = arith.constant 0 : index
    %c0_939 = arith.constant 0 : index
    %c784 = arith.constant 784 : index
    %853 = vector.load %arg10[%c0_938, %c0_939, %c784] : memref<1x4x896xf32, #tpu.memory_space<vmem>>, vector<1x4x16xf32>
    %854 = vector.shape_cast %853 : vector<1x4x16xf32> to vector<4x16xf32>
    %855 = vector.shape_cast %852 : vector<4x16xf32> to vector<1x4x16xf32>
    tpu.vector_store %arg10[%c0_938, %c0_939, %c784], %855 {strides = array<i32>} : memref<1x4x896xf32, #tpu.memory_space<vmem>>, vector<1x4x16xf32>,
    %856 = vector.extract_strided_slice %823 {offsets = [0, 144], sizes = [4, 16], strides = [1, 1]} : vector<4x252xf32> to vector<4x16xf32>
    %c0_940 = arith.constant 0 : index
    %c0_941 = arith.constant 0 : index
    %c800 = arith.constant 800 : index
    %857 = vector.load %arg10[%c0_940, %c0_941, %c800] : memref<1x4x896xf32, #tpu.memory_space<vmem>>, vector<1x4x16xf32>
    %858 = vector.shape_cast %857 : vector<1x4x16xf32> to vector<4x16xf32>
    %859 = vector.shape_cast %856 : vector<4x16xf32> to vector<1x4x16xf32>
    tpu.vector_store %arg10[%c0_940, %c0_941, %c800], %859 {strides = array<i32>} : memref<1x4x896xf32, #tpu.memory_space<vmem>>, vector<1x4x16xf32>,
    %860 = vector.extract_strided_slice %823 {offsets = [0, 162], sizes = [4, 16], strides = [1, 1]} : vector<4x252xf32> to vector<4x16xf32>
    %c0_942 = arith.constant 0 : index
    %c0_943 = arith.constant 0 : index
    %c816 = arith.constant 816 : index
    %861 = vector.load %arg10[%c0_942, %c0_943, %c816] : memref<1x4x896xf32, #tpu.memory_space<vmem>>, vector<1x4x16xf32>
    %862 = vector.shape_cast %861 : vector<1x4x16xf32> to vector<4x16xf32>
    %863 = vector.shape_cast %860 : vector<4x16xf32> to vector<1x4x16xf32>
    tpu.vector_store %arg10[%c0_942, %c0_943, %c816], %863 {strides = array<i32>} : memref<1x4x896xf32, #tpu.memory_space<vmem>>, vector<1x4x16xf32>,
    %864 = vector.extract_strided_slice %823 {offsets = [0, 180], sizes = [4, 16], strides = [1, 1]} : vector<4x252xf32> to vector<4x16xf32>
    %c0_944 = arith.constant 0 : index
    %c0_945 = arith.constant 0 : index
    %c832 = arith.constant 832 : index
    %865 = vector.load %arg10[%c0_944, %c0_945, %c832] : memref<1x4x896xf32, #tpu.memory_space<vmem>>, vector<1x4x16xf32>
    %866 = vector.shape_cast %865 : vector<1x4x16xf32> to vector<4x16xf32>
    %867 = vector.shape_cast %864 : vector<4x16xf32> to vector<1x4x16xf32>
    tpu.vector_store %arg10[%c0_944, %c0_945, %c832], %867 {strides = array<i32>} : memref<1x4x896xf32, #tpu.memory_space<vmem>>, vector<1x4x16xf32>,
    %868 = vector.extract_strided_slice %823 {offsets = [0, 198], sizes = [4, 16], strides = [1, 1]} : vector<4x252xf32> to vector<4x16xf32>
    %c0_946 = arith.constant 0 : index
    %c0_947 = arith.constant 0 : index
    %c848 = arith.constant 848 : index
    %869 = vector.load %arg10[%c0_946, %c0_947, %c848] : memref<1x4x896xf32, #tpu.memory_space<vmem>>, vector<1x4x16xf32>
    %870 = vector.shape_cast %869 : vector<1x4x16xf32> to vector<4x16xf32>
    %871 = vector.shape_cast %868 : vector<4x16xf32> to vector<1x4x16xf32>
    tpu.vector_store %arg10[%c0_946, %c0_947, %c848], %871 {strides = array<i32>} : memref<1x4x896xf32, #tpu.memory_space<vmem>>, vector<1x4x16xf32>,
    %872 = vector.extract_strided_slice %823 {offsets = [0, 216], sizes = [4, 16], strides = [1, 1]} : vector<4x252xf32> to vector<4x16xf32>
    %c0_948 = arith.constant 0 : index
    %c0_949 = arith.constant 0 : index
    %c864 = arith.constant 864 : index
    %873 = vector.load %arg10[%c0_948, %c0_949, %c864] : memref<1x4x896xf32, #tpu.memory_space<vmem>>, vector<1x4x16xf32>
    %874 = vector.shape_cast %873 : vector<1x4x16xf32> to vector<4x16xf32>
    %875 = vector.shape_cast %872 : vector<4x16xf32> to vector<1x4x16xf32>
    tpu.vector_store %arg10[%c0_948, %c0_949, %c864], %875 {strides = array<i32>} : memref<1x4x896xf32, #tpu.memory_space<vmem>>, vector<1x4x16xf32>,
    %876 = vector.extract_strided_slice %823 {offsets = [0, 234], sizes = [4, 16], strides = [1, 1]} : vector<4x252xf32> to vector<4x16xf32>
    %c0_950 = arith.constant 0 : index
    %c0_951 = arith.constant 0 : index
    %c880 = arith.constant 880 : index
    %877 = vector.load %arg10[%c0_950, %c0_951, %c880] : memref<1x4x896xf32, #tpu.memory_space<vmem>>, vector<1x4x16xf32>
    %878 = vector.shape_cast %877 : vector<1x4x16xf32> to vector<4x16xf32>
    %879 = vector.shape_cast %876 : vector<4x16xf32> to vector<1x4x16xf32>
    tpu.vector_store %arg10[%c0_950, %c0_951, %c880], %879 {strides = array<i32>} : memref<1x4x896xf32, #tpu.memory_space<vmem>>, vector<1x4x16xf32>,
    return
  }
  func.func @transform_0(%arg0: i32, %arg1: i32) -> (i32, i32, i32, i32) {
    %c4_i32 = arith.constant 4 : i32
    %0 = arith.muli %arg1, %c4_i32 : i32
    %c0_i32 = arith.constant 0 : i32
    %1 = arith.addi %0, %c0_i32 : i32
    %c0_i32_0 = arith.constant 0 : i32
    %c0_i32_1 = arith.constant 0 : i32
    %c0_i32_2 = arith.constant 0 : i32
    return %arg0, %1, %c0_i32_0, %c0_i32_1 : i32, i32, i32, i32
  }
  func.func @transform_1(%arg0: i32, %arg1: i32) -> (i32, i32, i32, i32) {
    %c4_i32 = arith.constant 4 : i32
    %0 = arith.muli %arg1, %c4_i32 : i32
    %c1_i32 = arith.constant 1 : i32
    %1 = arith.addi %0, %c1_i32 : i32
    %c0_i32 = arith.constant 0 : i32
    %c0_i32_0 = arith.constant 0 : i32
    %c0_i32_1 = arith.constant 0 : i32
    return %arg0, %1, %c0_i32, %c0_i32_0 : i32, i32, i32, i32
  }
  func.func @transform_2(%arg0: i32, %arg1: i32) -> (i32, i32, i32, i32) {
    %c4_i32 = arith.constant 4 : i32
    %0 = arith.muli %arg1, %c4_i32 : i32
    %c2_i32 = arith.constant 2 : i32
    %1 = arith.addi %0, %c2_i32 : i32
    %c0_i32 = arith.constant 0 : i32
    %c0_i32_0 = arith.constant 0 : i32
    %c0_i32_1 = arith.constant 0 : i32
    return %arg0, %1, %c0_i32, %c0_i32_0 : i32, i32, i32, i32
  }
  func.func @transform_3(%arg0: i32, %arg1: i32) -> (i32, i32, i32, i32) {
    %c4_i32 = arith.constant 4 : i32
    %0 = arith.muli %arg1, %c4_i32 : i32
    %c3_i32 = arith.constant 3 : i32
    %1 = arith.addi %0, %c3_i32 : i32
    %c0_i32 = arith.constant 0 : i32
    %c0_i32_0 = arith.constant 0 : i32
    %c0_i32_1 = arith.constant 0 : i32
    return %arg0, %1, %c0_i32, %c0_i32_0 : i32, i32, i32, i32
  }
  func.func @transform_4(%arg0: i32, %arg1: i32) -> (i32, i32, i32, i32) {
    %c4_i32 = arith.constant 4 : i32
    %0 = arith.muli %arg1, %c4_i32 : i32
    %c4_i32_0 = arith.constant 4 : i32
    %1 = arith.addi %0, %c4_i32_0 : i32
    %c0_i32 = arith.constant 0 : i32
    %c0_i32_1 = arith.constant 0 : i32
    %c0_i32_2 = arith.constant 0 : i32
    return %arg0, %1, %c0_i32, %c0_i32_1 : i32, i32, i32, i32
  }
  func.func @transform_5(%arg0: i32, %arg1: i32) -> (i32, i32, i32, i32) {
    %c4_i32 = arith.constant 4 : i32
    %0 = arith.muli %arg1, %c4_i32 : i32
    %c5_i32 = arith.constant 5 : i32
    %1 = arith.addi %0, %c5_i32 : i32
    %c0_i32 = arith.constant 0 : i32
    %c0_i32_0 = arith.constant 0 : i32
    %c0_i32_1 = arith.constant 0 : i32
    return %arg0, %1, %c0_i32, %c0_i32_0 : i32, i32, i32, i32
  }
  func.func @transform_6(%arg0: i32, %arg1: i32) -> (i32, i32, i32) {
    %c0_i32 = arith.constant 0 : i32
    %c0_i32_0 = arith.constant 0 : i32
    %c0_i32_1 = arith.constant 0 : i32
    %c0_i32_2 = arith.constant 0 : i32
    return %c0_i32, %c0_i32_0, %c0_i32_1 : i32, i32, i32
  }
  func.func @transform_7(%arg0: i32, %arg1: i32) -> (i32, i32) {
    %c0_i32 = arith.constant 0 : i32
    %c0_i32_0 = arith.constant 0 : i32
    %c0_i32_1 = arith.constant 0 : i32
    return %c0_i32, %c0_i32_0 : i32, i32
  }
  func.func @transform_8(%arg0: i32, %arg1: i32) -> (i32, i32, i32) {
    %c0_i32 = arith.constant 0 : i32
    %c0_i32_0 = arith.constant 0 : i32
    return %arg0, %c0_i32, %arg1 : i32, i32, i32
  }
}

</mosaic_0001>

<bundles_post_ra>
// kernel: tpu_custom_call.1
= control target key start
LH: loop header
LB: loop body
LE: loop exit
PB: predicated region body
PF: predicated region fallthrough
CT: control target
= control target key end

     0   :  { %s11853_s0 = inlined_call_operand.hbm [shape: f32[2,14,2,324], index: 0, kind: input, shape index: {}]   ;;  %s11854_s1 = inlined_call_operand.hbm [shape: f32[2,14,2,324], index: 1, kind: input, shape index: {}]   ;;  %s11855_s2 = inlined_call_operand.hbm [shape: f32[2,14,2,324], index: 2, kind: input, shape index: {}]   ;;  %s11856_s3 = inlined_call_operand.hbm [shape: f32[2,14,2,324], index: 3, kind: input, shape index: {}]   ;;  %s11857_s4 = inlined_call_operand.hbm [shape: f32[2,14,2,324], index: 4, kind: input, shape index: {}]   ;;  %s11858_s5 = inlined_call_operand.hbm [shape: f32[2,14,2,324], index: 5, kind: input, shape index: {}]   ;;  %s11859_s6 = inlined_call_operand.vmem [shape: f32[27,4,2], index: 6, kind: input, shape index: {}]   ;;  %s11860_s7 = inlined_call_operand.vmem [shape: f32[4,1], index: 7, kind: input, shape index: {}]   ;;  %s11861_s8 = inlined_call_operand.hbm [shape: f32[2,4,2688], index: 8, kind: output, shape index: {}]  }
   0x1   :  { %11897 = sst [smem:[#allocation49_spill]] %s11853_s0 }
   0x2   :  { %11898 = sst [smem:[#allocation50_spill]] %s11854_s1 }
   0x3   :  { %11899 = sst [smem:[#allocation51_spill]] %s11855_s2 }
   0x4   :  { %11900 = sst [smem:[#allocation52_spill]] %s11856_s3 }
   0x5   :  { %11901 = sst [smem:[#allocation53_spill]] %s11857_s4 }
   0x6   :  { %11902 = sst [smem:[#allocation54_spill]] %s11858_s5 }
   0x7   :  { %11903 = sst [smem:[#allocation55_spill]] %s11859_s6 }
   0x8   :  { %11904 = sst [smem:[#allocation56_spill]] %s11860_s7 }
   0x9   :  { %11905 = sst [smem:[#allocation57_spill]] %s11861_s8 }
   0xa   :  { %13 = vsyncpa [#allocation3], 0 }
   0xb   :  { %15 = vsyncpa [#allocation3 + $0x1], 0 }
   0xc   :  { %16 = vsyncpa [#allocation6], 0 }
   0xd   :  { %18 = vsyncpa [#allocation6 + $0x1], 0 }
   0xe   :  { %19 = vsyncpa [#allocation9], 0 }
   0xf   :  { %21 = vsyncpa [#allocation9 + $0x1], 0 }
  0x10   :  { %22 = vsyncpa [#allocation12], 0 }
  0x11   :  { %24 = vsyncpa [#allocation12 + $0x1], 0 }
  0x12   :  { %25 = vsyncpa [#allocation4], 0 }
  0x13   :  { %27 = vsyncpa [#allocation4 + $0x1], 0  ;;  %s9502_s27 = smov 0   ;;  %s9504_s28 = smov 0  }
  0x14   :  { %s9506_s29 = smov 0   ;;  %s9508_s30 = smov 0  }
  0x15   :  { %s9510_s9 = smov 0   ;;  %s9512_s10 = smov 0  }
  0x16   :  { %s9514_s11 = smov 0   ;;  %s9516_s12 = smov 0  }
  0x17   :  { %s9518_s13 = smov 0   ;;  %s9520_s14 = smov 0  }
  0x18   :  { %s9522_s15 = smov 0   ;;  %s9524_s16 = smov 0  }
  0x19   :  { %s9526_s17 = smov 0   ;;  %s9528_s18 = smov 0  }
  0x1a   :  { %11906 = sst [smem:[#allocation21_spill]] %s9526_s17  ;;  %s9530_s19 = smov 0  }
  0x1b   :  { %s9532_s20 = smov 0   ;;  %s9534_s21 = smov 0  }
  0x1c   :  { %s9536_s22 = smov 0   ;;  %s9538_s23 = smov 0  }
  0x1d   :  { %s9540_s24 = smov 0   ;;  %s9542_s25 = smov 0  }
  0x1e   :  { %s9544_s26 = smov 0   ;;  %s9546_s8 = smov 0  }
  0x1f   :  { %s9548_s6 = smov 0   ;;  %s9550_s7 = smov 0  }
  0x20   :  { %s9552_s5 = smov 0  }
  0x21 LB: > { %s11908_s17 = sld [smem:[#allocation21_spill]]  ;;  %s45_s4 = sadd.s32 1, %s9392_s7  ;;  %s9396_s5 = sphi %s9552_s5, %s33_s5   ;;  %s9392_s7 = sphi %s9550_s7, %s12081_s7   ;;  %s9388_s6 = sphi %s9548_s6, %s12080_s6   ;;  %s9384_s8 = sphi %s9546_s8, %s12079_s8   ;;  %s9380_s26 = sphi %s9544_s26, %s12062_s26   ;;  %s9376_s25 = sphi %s9542_s25, %s12078_s25   ;;  %s9372_s24 = sphi %s9540_s24, %s12077_s24   ;;  %s9368_s23 = sphi %s9538_s23, %s12076_s23   ;;  %s9364_s22 = sphi %s9536_s22, %s12075_s22   ;;  %s9360_s21 = sphi %s9534_s21, %s12074_s21   ;;  %s9356_s20 = sphi %s9532_s20, %s12073_s20   ;;  %s9352_s19 = sphi %s9530_s19, %s12072_s19   ;;  %s9348_s18 = sphi %s9528_s18, %s12071_s18   ;;  %s9340_s16 = sphi %s9524_s16, %s12069_s16   ;;  %s9336_s15 = sphi %s9522_s15, %s12067_s15   ;;  %s9332_s14 = sphi %s9520_s14, %s12066_s14   ;;  %s9328_s13 = sphi %s9518_s13, %s12049_s13   ;;  %s9324_s12 = sphi %s9516_s12, %s12048_s12   ;;  %s9320_s11 = sphi %s9514_s11, %s12047_s11   ;;  %s9316_s10 = sphi %s9512_s10, %s12061_s10   ;;  %s9312_s9 = sphi %s9510_s9, %s12046_s9   ;;  %s9308_s30 = sphi %s9508_s30, %s12045_s30   ;;  %s9304_s29 = sphi %s9506_s29, %s12044_s29   ;;  %s9300_s28 = sphi %s9504_s28, %s12057_s28   ;;  %s9296_s27 = sphi %s9502_s27, %s12055_s27  }
  0x22   : > { %11909 = sst [smem:[#allocation21_spill]] %s9296_s27  ;;  %p64_p1 = scmp.eq.s32.totalorder %s9396_s5, 0 }
  0x23   : > { %11910 = sst [smem:[#allocation22_spill]] %s9304_s29  ;;  %p95_p4 = scmp.ne.s32.totalorder %s9364_s22, %s9360_s21 }
  0x24   : > { %11911 = sst [smem:[#allocation23_spill]] %s9308_s30  ;;  %s9633_s30 = sadd.s32 4294967295, %s9396_s5  }
  0x25   : > { %11912 = sst [smem:[#allocation24_spill]] %s9312_s9  ;;  %s9639_s9 = sshll.u32 %s9388_s6, 2 }
  0x26   : > { %11913 = sst [smem:[#allocation25_spill]] %s9316_s10  ;;  %p11884_p2 = scmp.eq.s32.totalorder %s9633_s30, 0 }
  0x27   : > { %11914 = sst [smem:[#allocation26_spill]] %s9320_s11  ;;  %s80_s10 = sadd.s32 1, %s9639_s9 }
  0x28   : > { %11915 = sst [smem:[#allocation27_spill]] %s9324_s12  ;;  %s88_s12 = sadd.s32 1, %s9364_s22 }
  0x29   : > { %11916 = sst [smem:[#allocation28_spill]] %s9328_s13  ;;  %p101_p5 = scmp.ne.s32.totalorder %s9360_s21, %s9356_s20 }
  0x2a   : > { %11917 = sst [smem:[#allocation29_spill]] %s9340_s16  ;;  %p9667_p6 = por %p95_p4, %p64_p1 }
  0x2b   : > { %11918 = sst [smem:[#allocation30_spill]] %s11908_s17  ;;  %p9673_p8 = por %p101_p5, %p11884_p2 }
  0x2c   : > { %11919 = sst [smem:[#allocation31_spill]] %s9352_s19  ;;  %p296_p10 = scmp.ne.s32.totalorder %s9304_s29, %s9300_s28 }
  0x2d   : > { %11920 = sst [smem:[#allocation32_spill]] %s9360_s21  ;;  %p297_p11 = scmp.eq.s32.totalorder %s9633_s30, 5 }
  0x2e   : > { %11921 = sst [smem:[#allocation33_spill]] %s9364_s22  ;;  %p302_p12 = scmp.ne.s32.totalorder %s9300_s28, %s9296_s27 }
  0x2f   : > { %11922 = sst [smem:[#allocation34_spill]] %s9376_s25  ;;  %p9690_p13 = por %p297_p11, %p296_p10 }
  0x30   : > { %11923 = sst [smem:[#allocation35_spill]] %s9380_s26  ;;  %s354_s27 = sand.u32 1, %s9364_s22  }
  0x31   : > { %11924 = sst [smem:[#allocation36_spill]] %s9384_s8  ;;  %s42_s8 = sadd.s32 1, %s9388_s6 }
  0x32   : > { %11925 = sst [smem:[#allocation37_spill]] %s9388_s6  ;;  %p43_p0 = scmp.ge.s32.totalorder %s42_s8, 3 }
  0x33   : > { %11926 = sst [smem:[#allocation38_spill]] %s9392_s7  ;;  %p159_p10 = scmp.ne.s32.totalorder %s9340_s16, %s9336_s15 }
  0x34   : > { %s12083_s8 = smov (%p43_p0, %s42_s8), 0  ;;  %s12085_s4 = smov (!%p43_p0, %s45_s4), %s9392_s7 }
  0x35   : > { %11927 = sst [smem:[#allocation39_spill]] %s12083_s8  ;;  %s9647_s26 = sshll.u32 %s12083_s8, 2 }
  0x36   : > { %p47_p3 = scmp.ge.s32.totalorder %s12085_s4, 2  ;;  %s82_s11 = sadd.s32 1, %s9647_s26 }
  0x37   : > { %s84_s2 = ssub.s32 %s80_s10, %s82_s11  ;;  %s282_s17 = ssub.s32 %s9388_s6, %s12083_s8 }
  0x38   : > { %s12087_s4 = smov (%p47_p3, %s12085_s4), 0  ;;  %s11935_s8 = sadd.s32 4294967294, %s9396_s5  }
  0x39   : > { %11928 = sst [smem:[#allocation40_spill]] %s12087_s4  ;;  %s9660_s13 = ssub.s32 %s9392_s7, %s12087_s4 }
  0x3a   : > { %s85_s0 = sor.u32 %s84_s2, %s9660_s13  ;;  %s283_s20 = sor.u32 %s282_s17, %s9660_s13 }
  0x3b   : > { %p86_p7 = scmp.eq.s32.totalorder %s85_s0, 0  ;;  %s286_s4 = sadd.s32 1, %s9304_s29 }
  0x3c   : > { %p284_p9 = scmp.eq.s32.totalorder %s283_s20, 0  ;;  %p303_p0 = scmp.eq.s32.totalorder %s11935_s8, 5 }
  0x3d   : > { %s9680_s21 = scalar_select %p86_p7, %s9364_s22, %s88_s12  }
  0x3e   : > { %s9688_s2 = scalar_select %p284_p9, %s9304_s29, %s286_s4  }
  0x3f   : > { %11931 = sst [smem:[#allocation41_spill]] %s9680_s21  ;;  %p11883_p3 = scmp.lt.s32.totalorder %s9396_s5, 6 }
  0x40   : > { %11932 = sst [smem:[#allocation42_spill]] %s9688_s2  ;;  %p9697_p4 = por %p303_p0, %p302_p12 }
  0x41   : > { %s11933_s0 = scalar_select %p9690_p13, 1, 0 }
  0x42   : > { %s11936_s17 = scalar_select %p9697_p4, 1, 0 }
  0x43   : > { %11934 = sst [smem:[#allocation43_spill]] %s11933_s0  ;;  %s8631_s12 = smul.u32 12, %s9388_s6 }
  0x44   : > { %11937 = sst [smem:[#allocation44_spill]] %s11936_s17  ;;  %s8632_s20 = smul.u32 42, %s9392_s7 }
  0x45   : > { %s8633_s2 = smul.u32 6, %s354_s27  ;;  %p8664_p5 = pnand %p11883_p3, %p9667_p6 }
  0x46   : > { %s339_s4 = sadd.s32 %s8632_s20, %s8631_s12  ;;  %s11938_s1 = sld [smem:[#allocation50_spill]] }
  0x47   : > { %s9705_s29 = sshll.u32 %s339_s4, 1  ;;  %s356_s7 = scalar_lea.vmem [#allocation5], %s8633_s2 }
  0x48   : > { %s369_s27 = sshll.u32 %s356_s7, 4  ;;  %s11939_s10 = sand.u32 1, %s9396_s5   ;;  %s370_s27 = int_to_ptr.vmem [resolvable:$true] %s369_s27 }
  0x49   : > { %s9717_s20 = scalar_lea.sflag [#allocation6], %s11939_s10  ;;  %p8090_p6 = scmp.ge.s32.totalorder %s9396_s5, 1 }
  0x4a   : > { %p470_p7 = scmp.lt.s32.totalorder %s9396_s5, 7  ;;  %s144_s7 = sadd.s32 3, %s9639_s9 }
  0x4b   : > { %s152_s2 = sadd.s32 1, %s9340_s16  ;;  %p165_p11 = scmp.ne.s32.totalorder %s9336_s15, %s9332_s14 }
  0x4c   : > { %s7884_s6 = scalar_lea.hbm %s11938_s1, %s9705_s29  ;;  %p9722_p9 = pnand %p8090_p6, %p470_p7 }
  0x4d   : > { %s7885_s21 = scalar_lea.hbm %s7884_s6, 6  ;;  %p161_p0 = por %p159_p10, %p64_p1 }
  0x4e   : > { %s367_s12 = sshll.u32 %s7885_s21, 4  ;;  %s146_s21 = sadd.s32 3, %s9647_s26  ;;  %s368_s12 = int_to_ptr.hbm [resolvable:$true] %s367_s12 }
  0x4f   : > { %8666 = dma.hbm_to_vmem [thread:$0]  (!%p8664_p5), %s368_s12, 96, %s370_s27, %s9717_s20  }
  0x50   : > { %s148_s17 = ssub.s32 %s144_s7, %s146_s21  ;;  %p9738_p5 = por %p165_p11, %p11884_p2 }
  0x51   : > { %s149_s4 = sor.u32 %s148_s17, %s9660_s13  ;;  %s402_s12 = sand.u32 1, %s9340_s16  }
  0x52   : > { %p150_p12 = scmp.eq.s32.totalorder %s149_s4, 0  ;;  %s11943_s3 = sld [smem:[#allocation52_spill]] }
  0x53   : > { %s8635_s21 = smul.u32 6, %s402_s12  ;;  %p8670_p6 = pnand %p11883_p3, %p161_p0 }
  0x54   : > { %s9743_s27 = scalar_select %p150_p12, %s9340_s16, %s152_s2  }
  0x55   : > { %s404_s2 = scalar_lea.vmem [#allocation8], %s8635_s21  ;;  %s11944_s10 = sand.u32 1, %s9396_s5  }
  0x56   : > { %11942 = sst [smem:[#allocation45_spill]] %s9743_s27  ;;  %s417_s1 = sshll.u32 %s404_s2, 4  ;;  %s418_s1 = int_to_ptr.vmem [resolvable:$true] %s417_s1 }
  0x57   : > { %s9754_s7 = scalar_lea.sflag [#allocation9], %s11944_s10  ;;  %s52_s12 = ssub.s32 %s9639_s9, %s9647_s26 }
  0x58   : > { %s7904_s14 = scalar_lea.hbm %s11943_s3, %s9705_s29  ;;  %s53_s3 = sor.u32 %s52_s12, %s9660_s13 }
  0x59   : > { %s7905_s17 = scalar_lea.hbm %s7904_s14, 18  ;;  %s56_s14 = sadd.s32 1, %s9376_s25 }
  0x5a   : > { %s415_s4 = sshll.u32 %s7905_s17, 4  ;;  %p54_p7 = scmp.eq.s32.totalorder %s53_s3, 0  ;;  %s416_s4 = int_to_ptr.hbm [resolvable:$true] %s415_s4 }
  0x5b   : > { %8672 = dma.hbm_to_vmem [thread:$0]  (!%p8670_p6), %s416_s4, 96, %s418_s1, %s9754_s7  }
  0x5c   : > { %p63_p10 = scmp.ne.s32.totalorder %s9376_s25, %s9372_s24  ;;  %p69_p11 = scmp.ne.s32.totalorder %s9372_s24, %s9368_s23 }
  0x5d   : > { %s329_s17 = sand.u32 1, %s9376_s25   ;;  %s11947_s2 = sld [smem:[#allocation49_spill]] }
  0x5e   : > { %s9767_s22 = scalar_select %p54_p7, %s9376_s25, %s56_s14  }
  0x5f   : > { %p65_p12 = por %p64_p1, %p63_p10  ;;  %p9773_p0 = por %p11884_p2, %p69_p11 }
  0x60   : > { %11945 = sst [smem:[#allocation46_spill]] %s9767_s22  ;;  %s8630_s1 = smul.u32 6, %s329_s17 }
  0x61   : > { %s11948_s10 = sld [smem:[#allocation30_spill]]  ;;  %p8661_p6 = pnand %p11883_p3, %p65_p12 }
  0x62   : > { %s333_s14 = scalar_lea.vmem [#allocation2], %s8630_s1  ;;  %s330_s25 = scalar_lea.sflag [#allocation3], %s329_s17 }
  0x63   : > { %s341_s23 = scalar_lea.hbm %s11947_s2, %s9705_s29  ;;  %s345_s22 = sshll.u32 %s333_s14, 4  ;;  %s346_s22 = int_to_ptr.vmem [resolvable:$true] %s345_s22 }
  0x64   : > { %s343_s12 = sshll.u32 %s341_s23, 4  ;;  %s112_s27 = sadd.s32 2, %s9639_s9  ;;  %s344_s12 = int_to_ptr.hbm [resolvable:$true] %s343_s12 }
  0x65   : > { %8663 = dma.hbm_to_vmem [thread:$0]  (!%p8661_p6), %s344_s12, 96, %s346_s22, %s330_s25  }
  0x66   : > { %s114_s3 = sadd.s32 2, %s9647_s26  ;;  %s120_s2 = sadd.s32 1, %s9352_s19 }
  0x67   : > { %s116_s4 = ssub.s32 %s112_s27, %s114_s3  ;;  %p127_p7 = scmp.ne.s32.totalorder %s9352_s19, %s9348_s18 }
  0x68   : > { %s117_s16 = sor.u32 %s116_s4, %s9660_s13  ;;  %p133_p11 = scmp.ne.s32.totalorder %s9348_s18, %s11948_s10 }
  0x69   : > { %p118_p10 = scmp.eq.s32.totalorder %s117_s16, 0  ;;  %p129_p12 = por %p127_p7, %p64_p1 }
  0x6a   : > { %s11949_s1 = sld [smem:[#allocation28_spill]]  ;;  %s378_s23 = sand.u32 1, %s9352_s19  }
  0x6b   : > { %s9795_s14 = scalar_select %p118_p10, %s9352_s19, %s120_s2  }
  0x6c   : > { %s11951_s17 = sld [smem:[#allocation27_spill]]  ;;  %p9799_p6 = por %p133_p11, %p11884_p2 }
  0x6d   : > { %11950 = sst [smem:[#allocation47_spill]] %s9795_s14  ;;  %s8634_s25 = smul.u32 6, %s378_s23 }
  0x6e   : > { %s11953_s12 = sld [smem:[#allocation51_spill]]  ;;  %p8667_p7 = pnand %p11883_p3, %p129_p12 }
  0x6f   : > { %s11954_s10 = sld [smem:[#allocation26_spill]]  ;;  %s380_s14 = scalar_lea.vmem [#allocation7], %s8634_s25 }
  0x70   : > { %s393_s19 = sshll.u32 %s380_s14, 4  ;;  %s176_s23 = sadd.s32 4, %s9639_s9  ;;  %s394_s19 = int_to_ptr.vmem [resolvable:$true] %s393_s19 }
  0x71   : > { %s178_s27 = sadd.s32 4, %s9647_s26  ;;  %s184_s16 = sadd.s32 1, %s11949_s1 }
  0x72   : > { %s180_s0 = ssub.s32 %s176_s23, %s178_s27  ;;  %p191_p10 = scmp.ne.s32.totalorder %s11949_s1, %s11951_s17 }
  0x73   : > { %s11958_s25 = sld [smem:[#allocation24_spill]] }
  0x74   : > { %s7894_s3 = scalar_lea.hbm %s11953_s12, %s9705_s29  ;;  %s181_s12 = sor.u32 %s180_s0, %s9660_s13 }
  0x75   : > { %s7895_s4 = scalar_lea.hbm %s7894_s3, 12  ;;  %p197_p11 = scmp.ne.s32.totalorder %s11951_s17, %s11954_s10 }
  0x76   : > { %s391_s2 = sshll.u32 %s7895_s4, 4  ;;  %p182_p12 = scmp.eq.s32.totalorder %s181_s12, 0  ;;  %s392_s2 = int_to_ptr.hbm [resolvable:$true] %s391_s2 }
  0x77   : > { %8669 = dma.hbm_to_vmem [thread:$0]  (!%p8667_p7), %s392_s2, 96, %s394_s19, %s9717_s20  }
  0x78   : > { %p193_p3 = por %p191_p10, %p64_p1  ;;  %p9822_p4 = por %p197_p11, %p11884_p2 }
  0x79   : > { %s11956_s19 = sld [smem:[#allocation25_spill]]  ;;  %s426_s20 = sand.u32 1, %s11949_s1  }
  0x7a   : > { %s11955_s14 = scalar_select %p9822_p4, 1, 0 }
  0x7b   : > { %s12089_s1 = smov (!%p182_p12, %s11949_s1), %s184_s16  ;;  %s8636_s0 = smul.u32 6, %s426_s20 }
  0x7c   : > { %11957 = sst [smem:[#allocation48_spill]] %s12089_s1  ;;  %p11961_p7 = scmp.lt.s32.totalorder %s9396_s5, 6 }
  0x7d   : > { %s11959_s10 = sld [smem:[#allocation53_spill]]  ;;  %s428_s16 = scalar_lea.vmem [#allocation10], %s8636_s0 }
  0x7e   : > { %s11960_s2 = sld [smem:[#allocation23_spill]]  ;;  %p8673_p10 = pnand %p11961_p7, %p193_p3 }
  0x7f   : > { %s441_s12 = sshll.u32 %s428_s16, 4  ;;  %s208_s20 = sadd.s32 5, %s9639_s9  ;;  %s442_s12 = int_to_ptr.vmem [resolvable:$true] %s441_s12 }
  0x80   : > { %s210_s3 = sadd.s32 5, %s9647_s26  ;;  %p223_p11 = scmp.ne.s32.totalorder %s11956_s19, %s11958_s25 }
  0x81   : > { %s212_s17 = ssub.s32 %s208_s20, %s210_s3  ;;  %p11962_p7 = scmp.eq.s32.totalorder %s9633_s30, 0 }
  0x82   : > { %s213_s1 = sor.u32 %s212_s17, %s9660_s13  ;;  %p225_p3 = por %p223_p11, %p64_p1 }
  0x83   : > { %s7914_s4 = scalar_lea.hbm %s11959_s10, %s9705_s29  ;;  %s216_s10 = sadd.s32 1, %s11956_s19 }
  0x84   : > { %s7915_s23 = scalar_lea.hbm %s7914_s4, 24  ;;  %p214_p12 = scmp.eq.s32.totalorder %s213_s1, 0 }
  0x85   : > { %s439_s27 = sshll.u32 %s7915_s23, 4  ;;  %p229_p2 = scmp.ne.s32.totalorder %s11958_s25, %s11960_s2  ;;  %s440_s27 = int_to_ptr.hbm [resolvable:$true] %s439_s27 }
  0x86   : > { %8675 = dma.hbm_to_vmem [thread:$0]  (!%p8673_p10), %s440_s27, 96, %s442_s12, %s9754_s7  }
  0x87   : > { %s448_s4 = sand.u32 1, %s11956_s19   ;;  %s12091_s19 = smov (!%p214_p12, %s11956_s19), %s216_s10 }
  0x88   : > { %p9853_p13 = por %p229_p2, %p11962_p7  ;;  %s8637_s7 = smul.u32 6, %s448_s4 }
  0x89   : > { %s11964_s26 = sld [smem:[#allocation54_spill]]  ;;  %p11965_p10 = scmp.lt.s32.totalorder %s9396_s5, 6 }
  0x8a   : > { %s452_s1 = scalar_lea.vmem [#allocation11], %s8637_s7  ;;  %s449_s2 = scalar_lea.sflag [#allocation12], %s448_s4 }
  0x8b   : > { %p8676_p4 = pnand %p11965_p10, %p225_p3  ;;  %s465_s25 = sshll.u32 %s452_s1, 4  ;;  %s466_s25 = int_to_ptr.vmem [resolvable:$true] %s465_s25 }
  0x8c   : > { %s476_s12 = sand.u32 (!%p9722_p9), 1, %s9372_s24  }
  0x8d   : > { %s8638_s20 = smul.u32 (!%p9722_p9), 6, %s476_s12  ;;  %s477_s3 = scalar_lea.sflag (!%p9722_p9), [#allocation3], %s476_s12 }
  0x8e   : > { %474 = sbr.rel (%p9722_p9) target bundleno = 1611 (0x64b), region = 52 }
  0x8f   : > { %s7924_s27 = scalar_lea.hbm %s11964_s26, %s9705_s29  ;;  %s9866_s17 = scalar_lea.vmem (!%p9722_p9), [#allocation2], %s8638_s20 }
  0x90   : > { %s7925_s16 = scalar_lea.hbm %s7924_s27, 30 }
  0x91   : > { %s463_s13 = sshll.u32 %s7925_s16, 4  ;;  %s464_s13 = int_to_ptr.hbm [resolvable:$true] %s463_s13 }
  0x92   : > { %8678 = dma.hbm_to_vmem [thread:$0]  (!%p8676_p4), %s464_s13, 96, %s466_s25, %s449_s2  }
  0x93   : > { %9267 = dma.done.wait (%p9773_p0), %s477_s3, 96  }
  0x94   : > { %9269 = vsyncadd (%p9773_p0), %s477_s3, 4294967200  ;;  %s11966_s29 = sld [smem:[#allocation32_spill]]  ;;  %s486_s10 = sand.u32 1, %s9633_s30  }
  0x95   : > { %s487_s6 = scalar_lea.sflag [#allocation6], %s486_s10 }
  0x9a   : > { %s488_s4 = sand.u32 1, %s11966_s29  }
  0x9b   : > { %s8639_s7 = smul.u32 6, %s488_s4 }
  0x9d   : > { %s9874_s23 = scalar_lea.vmem [#allocation5], %s8639_s7 }
  0x9e   : > { %9271 = dma.done.wait (%p9673_p8), %s487_s6, 96  }
  0x9f   : > { %9273 = vsyncadd (%p9673_p8), %s487_s6, 4294967200  ;;  %s498_s9 = sand.u32 1, %s9348_s18  }
  0xa0   : > { %s8640_s26 = smul.u32 6, %s498_s9 }
  0xa2   : > { %s9881_s21 = scalar_lea.vmem [#allocation7], %s8640_s26 }
  0xa3   : > { %9275 = dma.done.wait (%p9799_p6), %s487_s6, 96  }
  0xa4   : > { %9277 = vsyncadd (%p9799_p6), %s487_s6, 4294967200  ;;  %s508_s30 = sand.u32 1, %s9336_s15   ;;  %s507_s16 = scalar_lea.sflag [#allocation9], %s486_s10 }
  0xa5   : > { %s8641_s27 = smul.u32 6, %s508_s30 }
  0xa7   : > { %s9888_s13 = scalar_lea.vmem [#allocation8], %s8641_s27 }
  0xa8   : > { %9279 = dma.done.wait (%p9738_p5), %s507_s16, 96  }
  0xa9   : > { %9281 = vsyncadd (%p9738_p5), %s507_s16, 4294967200  ;;  %s11967_s11 = sld [smem:[#allocation27_spill]]  ;;  %p11968_p1 = scmp.ne.s32.totalorder %s11955_s14, 0 }
  0xaf   : > { %s518_s1 = sand.u32 1, %s11967_s11  }
  0xb0   : > { %s8642_s25 = smul.u32 6, %s518_s1 }
  0xb2   : > { %s9895_s2 = scalar_lea.vmem [#allocation10], %s8642_s25 }
  0xb3   : > { %9283 = dma.done.wait (%p11968_p1), %s507_s16, 96  }
  0xb4   : > { %9285 = vsyncadd (%p11968_p1), %s507_s16, 4294967200  ;;  %s11969_s22 = sld [smem:[#allocation24_spill]] }
  0xba   : > { %s526_s12 = sand.u32 1, %s11969_s22  }
  0xbb   : > { %s8643_s20 = smul.u32 6, %s526_s12  ;;  %s527_s3 = scalar_lea.sflag [#allocation12], %s526_s12 }
  0xbd   : > { %s9902_s29 = scalar_lea.vmem [#allocation11], %s8643_s20 }
  0xbe   : > { %9287 = dma.done.wait (%p9853_p13), %s527_s3, 96  }
  0xbf   : > { %9289 = vsyncadd (%p9853_p13), %s527_s3, 4294967200  ;;  %v9398_v0 = vmov 0   ;;  %v601_v1 = vld [vmem:[%s9866_s17] sm:$0x3f]  ;;  %s9399_s8 = smov 109   ;;  %s9400_s14 = smov 110  }
  0xc0   : > { %8952 = vset.pattern.permute.xlu0 %v9398_v0  ;;  %8953 = vset.pattern.permute.xlu1 %v9398_v0  ;;  %606 = vst [vmem:[#allocation1] ss:$4 sm:$0xff] %v601_v1  ;;  %v728_v5 = vld [vmem:[%s9866_s17] sm:$0x3f]  ;;  %s11970_s4 = sld [smem:[#allocation56_spill]]  ;;  %s9401_s7 = smov 108  }
  0xc1   : > { %v794_v10 = vld [vmem:[%s9866_s17] sm:$0x3f]  ;;  %s9402_s6 = smov 92   ;;  %s9403_s9 = smov 91   ;;  %v1190_v34 = vld [vmem:[%s9874_s23] sm:$0x3f] }
  0xc2   : > { %v860_v14 = vld [vmem:[%s9866_s17] sm:$0x3f]  ;;  %s9404_s26 = smov 90   ;;  %s9405_s30 = smov 74   ;;  %v1255_v38 = vld [vmem:[%s9874_s23] sm:$0x3f] }
  0xc3   : > { %v926_v18 = vld [vmem:[%s9866_s17] sm:$0x3f]  ;;  %s9406_s27 = smov 73   ;;  %s9407_s16 = smov 72   ;;  %v1320_v42 = vld [vmem:[%s9874_s23] sm:$0x3f] }
  0xc4   : > { %v992_v22 = vld [vmem:[%s9866_s17] sm:$0x3f]  ;;  %v1385_v46 = vld [vmem:[%s9874_s23] sm:$0x3f]  ;;  %vm616_vm0 = vcmask 891904   ;;  %vm678_vm1 = vcmask 900096  }
  0xc5   : > { %v1058_v26 = vld [vmem:[%s9866_s17] sm:$0x3f]  ;;  %v1450_v51 = vld [vmem:[%s9874_s23] sm:$0x3f]  ;;  %vm623_vm2 = vcmask 1041408   ;;  %vm742_vm3 = vcmask 883712  }
  0xc6   : > { %v2360_v9 = vld [vmem:[%s11970_s4] sm:$0xf]  ;;  %v1124_v30 = vld [vmem:[%s9866_s17] sm:$0x3f]  ;;  %v1515_v58 = vld [vmem:[%s9874_s23] sm:$0x3f] }
  0xc7   : > { %v609_v2 = vld.sshfl [vmem:[#allocation1 + $0x10] sm:$0xff pattern:$0x73625140]  ;;  %v607_v3 = vld.sshfl [vmem:[#allocation1] sm:$0xff pattern:$0x73625140] }
  0xc8   : > { %614 = vrot.lane.b32.xlu1 %v609_v2, %s9399_s8  ;;  %610 = vrot.lane.b32.xlu0 %v607_v3, %s9399_s8  ;;  %v608_v4 = vld.sshfl [vmem:[#allocation1 + $0x8] sm:$0xff pattern:$0x73625140]  ;;  %vm808_vm4 = vcmask 752640   ;;  %s11971_s1 = sld [smem:[#allocation55_spill]]  ;;  %vm619_vm5 = vcmask 15360  }
  0xc9   : > { %668 = vst [vmem:[#allocation1] ss:$4 sm:$0xff] %v601_v1  ;;  %vm874_vm6 = vcmask 744448   ;;  %vm11891_vm7 = vcmask 736256   ;;  %vm11890_vm8 = vcmask 605184   ;;  %vm11889_vm9 = vcmask 596992  }
  0xca   : > { %vm11888_vm10 = vcmask 588800   ;;  %s586_s12 = sand.u32 1, %s9300_s28   ;;  %vm2368_vm11 = vcmask 125952   ;;  %s9408_s11 = smov 126   ;;  %vm11887_vm12 = vcmask 1043456   ;;  %vm2374_vm13 = vcmask 257152  }
  0xcb   : > { %s8644_s20 = smul.u32 28, %s586_s12  ;;  %s9409_s25 = smov 124   ;;  %vm2379_vm14 = vcmask 388352   ;;  %vm2384_vm15 = vcmask 519552  }
  0xcc   : > { %s9410_s22 = smov 118   ;;  %s9413_s10 = smov 112  }
  0xcd   : > { %s10553_s17 = scalar_lea.vmem [#allocation13], %s8644_s20  ;;  %s9411_s20 = smov 122  }
  0xce   : > { %s9418_s3 = smov 114   ;;  %s9420_s0 = smov 96  }
  0xd0   : > { %612 = vrot.lane.b32.xlu0 %v608_v4, %s9399_s8  ;;  %v669_v6 = vld.sshfl [vmem:[#allocation1] sm:$0xff pattern:$0x73625140]  ;;  %v670_v7 = vld.sshfl [vmem:[#allocation1 + $0x8] sm:$0xff pattern:$0x73625140] }
  0xd1   : > { %v671_v8 = vld.sshfl [vmem:[#allocation1 + $0x10] sm:$0xff pattern:$0x73625140]  ;;  %672 = vrot.lane.b32.xlu1 %v669_v6, %s9400_s14  ;;  %674 = vrot.lane.b32.xlu2 %v670_v7, %s9400_s14 }
  0xd2   : > { %732 = vst [vmem:[#allocation1] ss:$4 sm:$0xff] %v728_v5  ;;  %v1580_v5 = vld [vmem:[%s9874_s23] sm:$0x3f] }
  0xd8   : > { %2363 = vperm.xlu0 %8952, %v2360_v9  }
  0xd9   : > { %v734_v11 = vld.sshfl [vmem:[#allocation1 + $0x8] sm:$0xff pattern:$0x73625140]  ;;  %v735_v12 = vld.sshfl [vmem:[#allocation1 + $0x10] sm:$0xff pattern:$0x73625140]  ;;  %676 = vrot.lane.b32.xlu2 %v671_v8, %s9400_s14 }
  0xda   : > { %738 = vrot.lane.b32.xlu1 %v734_v11, %s9401_s7  ;;  %v733_v13 = vld.sshfl [vmem:[#allocation1] sm:$0xff pattern:$0x73625140] }
  0xdb   : > { %798 = vst [vmem:[#allocation1] ss:$4 sm:$0xff] %v794_v10 }
  0xe0   : > { %736 = vrot.lane.b32.xlu0 %v733_v13, %s9401_s7  ;;  %v1645_v13 = vld [vmem:[%s9874_s23] sm:$0x3f] }
  0xe1   : > { %740 = vrot.lane.b32.xlu2 %v735_v12, %s9401_s7 }
  0xe2   : > { %v800_v15 = vld.sshfl [vmem:[#allocation1 + $0x8] sm:$0xff pattern:$0x73625140]  ;;  %v801_v16 = vld.sshfl [vmem:[#allocation1 + $0x10] sm:$0xff pattern:$0x73625140] }
  0xe3   : > { %804 = vrot.lane.b32.xlu1 %v800_v15, %s9402_s6  ;;  %v799_v17 = vld.sshfl [vmem:[#allocation1] sm:$0xff pattern:$0x73625140] }
  0xe4   : > { %864 = vst [vmem:[#allocation1] ss:$4 sm:$0xff] %v860_v14 }
  0xe8   : > { %802 = vrot.lane.b32.xlu0 %v799_v17, %s9402_s6 }
  0xe9   : > { %806 = vrot.lane.b32.xlu2 %v801_v16, %s9402_s6 }
  0xeb   : > { %v866_v19 = vld.sshfl [vmem:[#allocation1 + $0x8] sm:$0xff pattern:$0x73625140]  ;;  %v867_v20 = vld.sshfl [vmem:[#allocation1 + $0x10] sm:$0xff pattern:$0x73625140] }
  0xec   : > { %870 = vrot.lane.b32.xlu1 %v866_v19, %s9403_s9  ;;  %v865_v21 = vld.sshfl [vmem:[#allocation1] sm:$0xff pattern:$0x73625140] }
  0xed   : > { %930 = vst [vmem:[#allocation1] ss:$4 sm:$0xff] %v926_v18 }
  0xf0   : > { %868 = vrot.lane.b32.xlu0 %v865_v21, %s9403_s9  ;;  %v8091_v21 = vld [vmem:[%s11971_s1 + $0x4] sm:$0xf] }
  0xf1   : > { %872 = vrot.lane.b32.xlu2 %v867_v20, %s9403_s9 }
  0xf4   : > { %v932_v23 = vld.sshfl [vmem:[#allocation1 + $0x8] sm:$0xff pattern:$0x73625140]  ;;  %v933_v24 = vld.sshfl [vmem:[#allocation1 + $0x10] sm:$0xff pattern:$0x73625140] }
  0xf5   : > { %936 = vrot.lane.b32.xlu1 %v932_v23, %s9404_s26  ;;  %v931_v25 = vld.sshfl [vmem:[#allocation1] sm:$0xff pattern:$0x73625140]  ;;  %v1710_v23 = vld [vmem:[%s9874_s23] sm:$0x3f] }
  0xf6   : > { %996 = vst [vmem:[#allocation1] ss:$4 sm:$0xff] %v992_v22 }
  0xf8   : > { %934 = vrot.lane.b32.xlu0 %v931_v25, %s9404_s26 }
  0xf9   : > { %938 = vrot.lane.b32.xlu2 %v933_v24, %s9404_s26 }
  0xfd   : > { %v998_v27 = vld.sshfl [vmem:[#allocation1 + $0x8] sm:$0xff pattern:$0x73625140]  ;;  %v999_v28 = vld.sshfl [vmem:[#allocation1 + $0x10] sm:$0xff pattern:$0x73625140] }
  0xfe   : > { %1002 = vrot.lane.b32.xlu1 %v998_v27, %s9405_s30  ;;  %v997_v29 = vld.sshfl [vmem:[#allocation1] sm:$0xff pattern:$0x73625140] }
  0xff   : > { %1062 = vst [vmem:[#allocation1] ss:$4 sm:$0xff] %v1058_v26 }
 0x100   : > { %1000 = vrot.lane.b32.xlu0 %v997_v29, %s9405_s30 }
 0x101   : > { %1004 = vrot.lane.b32.xlu2 %v999_v28, %s9405_s30 }
 0x106   : > { %v1064_v31 = vld.sshfl [vmem:[#allocation1 + $0x8] sm:$0xff pattern:$0x73625140]  ;;  %v1065_v32 = vld.sshfl [vmem:[#allocation1 + $0x10] sm:$0xff pattern:$0x73625140] }
 0x107   : > { %1068 = vrot.lane.b32.xlu1 %v1064_v31, %s9406_s27  ;;  %v1063_v33 = vld.sshfl [vmem:[#allocation1] sm:$0xff pattern:$0x73625140] }
 0x108   : > { %1066 = vrot.lane.b32.xlu0 %v1063_v33, %s9406_s27  ;;  %1128 = vst [vmem:[#allocation1] ss:$4 sm:$0xff] %v1124_v30  ;;  %v602_v31 = vld [vmem:[%s11971_s1] sm:$0xf] }
 0x109   : > { %1070 = vrot.lane.b32.xlu2 %v1065_v32, %s9406_s27  ;;  %v1775_v33 = vld [vmem:[%s9881_s21] sm:$0x3f] }
 0x10f   : > { %v1130_v35 = vld.sshfl [vmem:[#allocation1 + $0x8] sm:$0xff pattern:$0x73625140]  ;;  %v1131_v36 = vld.sshfl [vmem:[#allocation1 + $0x10] sm:$0xff pattern:$0x73625140] }
 0x110   : > { %1134 = vrot.lane.b32.xlu1 %v1130_v35, %s9407_s16  ;;  %v1129_v37 = vld.sshfl [vmem:[#allocation1] sm:$0xff pattern:$0x73625140] }
 0x111   : > { %1132 = vrot.lane.b32.xlu0 %v1129_v37, %s9407_s16  ;;  %1194 = vst [vmem:[#allocation1] ss:$4 sm:$0xff] %v1190_v34  ;;  %1136 = vrot.lane.b32.xlu2 %v1131_v36, %s9407_s16 }
 0x118   : > { %v1196_v39 = vld.sshfl [vmem:[#allocation1 + $0x8] sm:$0xff pattern:$0x73625140]  ;;  %v1197_v40 = vld.sshfl [vmem:[#allocation1 + $0x10] sm:$0xff pattern:$0x73625140] }
 0x119   : > { %1200 = vrot.lane.b32.xlu1 %v1196_v39, %s9400_s14  ;;  %v1195_v41 = vld.sshfl [vmem:[#allocation1] sm:$0xff pattern:$0x73625140]  ;;  %1202 = vrot.lane.b32.xlu2 %v1197_v40, %s9400_s14 }
 0x11a   : > { %1198 = vrot.lane.b32.xlu0 %v1195_v41, %s9400_s14  ;;  %1259 = vst [vmem:[#allocation1] ss:$4 sm:$0xff] %v1255_v38  ;;  %v8100_v41 = vld [vmem:[%s11971_s1 + $0x8] sm:$0xf] }
 0x121   : > { %v1261_v43 = vld.sshfl [vmem:[#allocation1 + $0x8] sm:$0xff pattern:$0x73625140]  ;;  %v1262_v44 = vld.sshfl [vmem:[#allocation1 + $0x10] sm:$0xff pattern:$0x73625140] }
 0x122   : > { %1265 = vrot.lane.b32.xlu1 %v1261_v43, %s9399_s8  ;;  %v1260_v45 = vld.sshfl [vmem:[#allocation1] sm:$0xff pattern:$0x73625140]  ;;  %1267 = vrot.lane.b32.xlu2 %v1262_v44, %s9399_s8 }
 0x123   : > { %1263 = vrot.lane.b32.xlu0 %v1260_v45, %s9399_s8  ;;  %1324 = vst [vmem:[#allocation1] ss:$4 sm:$0xff] %v1320_v42  ;;  %v1840_v43 = vld [vmem:[%s9881_s21] sm:$0x3f] }
 0x12a   : > { %v1326_v47 = vld.sshfl [vmem:[#allocation1 + $0x8] sm:$0xff pattern:$0x73625140]  ;;  %v1327_v48 = vld.sshfl [vmem:[#allocation1 + $0x10] sm:$0xff pattern:$0x73625140] }
 0x12b   : > { %1330 = vrot.lane.b32.xlu1 %v1326_v47, %s9401_s7  ;;  %v1325_v49 = vld.sshfl [vmem:[#allocation1] sm:$0xff pattern:$0x73625140]  ;;  %1332 = vrot.lane.b32.xlu2 %v1327_v48, %s9401_s7  ;;  %v675_v50 = vpop.permute.xlu2 %674 }
 0x12c   : > { %1328 = vrot.lane.b32.xlu0 %v1325_v49, %s9401_s7  ;;  %1389 = vst [vmem:[#allocation1] ss:$4 sm:$0xff] %v1385_v46 }
 0x133   : > { %v1391_v52 = vld.sshfl [vmem:[#allocation1 + $0x8] sm:$0xff pattern:$0x73625140]  ;;  %v1392_v53 = vld.sshfl [vmem:[#allocation1 + $0x10] sm:$0xff pattern:$0x73625140]  ;;  %v677_v54 = vpop.permute.xlu2 %676 }
 0x134   : > { %1395 = vrot.lane.b32.xlu1 %v1391_v52, %s9402_s6  ;;  %v1390_v55 = vld.sshfl [vmem:[#allocation1] sm:$0xff pattern:$0x73625140]  ;;  %1397 = vrot.lane.b32.xlu2 %v1392_v53, %s9402_s6  ;;  %v680_v63 = vsel %vm678_vm1, %v675_v50, %v677_v54 }
 0x135   : > { %1393 = vrot.lane.b32.xlu0 %v1390_v55, %s9402_s6  ;;  %1454 = vst [vmem:[#allocation1] ss:$4 sm:$0xff] %v1450_v51  ;;  %8098 = vmatpush.msk.msra.mxu3 %vm623_vm2, %v680_v63  ;;  %v8105_v51 = vld [vmem:[%s11971_s1 + $0xc] sm:$0xf]  ;;  %v1905_v53 = vld [vmem:[%s9881_s21] sm:$0x3f] }
 0x136   : > { %8099 = vmatmul.msk.f32.vlgmr.msra.gmra.mxu3 %vm619_vm5, %v602_v31  ;;  %v1970_v63 = vld [vmem:[%s9881_s21] sm:$0x3f] }
 0x13a   : > { %v615_v56 = vpop.permute.xlu1 %614  ;;  %v611_v57 = vpop.permute.xlu0 %610 }
 0x13b   : > { %v741_v59 = vpop.permute.xlu2 %740 }
 0x13c   : > { %v1456_v60 = vld.sshfl [vmem:[#allocation1 + $0x8] sm:$0xff pattern:$0x73625140]  ;;  %v1457_v61 = vld.sshfl [vmem:[#allocation1 + $0x10] sm:$0xff pattern:$0x73625140] }
 0x13d   : > { %1460 = vrot.lane.b32.xlu1 %v1456_v60, %s9403_s9  ;;  %v1455_v62 = vld.sshfl [vmem:[#allocation1] sm:$0xff pattern:$0x73625140]  ;;  %1462 = vrot.lane.b32.xlu2 %v1457_v61, %s9403_s9  ;;  %v8110_v61 = vld [vmem:[%s11971_s1 + $0x10] sm:$0xf] }
 0x13e   : > { %1458 = vrot.lane.b32.xlu0 %v1455_v62, %s9403_s9  ;;  %1519 = vst [vmem:[#allocation1] ss:$4 sm:$0xff] %v1515_v58 }
 0x142   : > { %v613_v0 = vpop.permute.xlu0 %612 }
 0x143   : > { %v673_v1 = vpop.permute.xlu1 %672  ;;  %v617_v2 = vsel %vm616_vm0, %v611_v57, %v613_v0  ;;  %v618_v3 = vsel %vm616_vm0, %v613_v0, %v615_v56  ;;  %v807_v4 = vpop.permute.xlu2 %806 }
 0x144   : > { %8092 = vmatpush.msk.msra.mxu0 %vm623_vm2, %v617_v2  ;;  %8094 = vmatpush.msk.msra.mxu1 %vm623_vm2, %v618_v3  ;;  %v679_v6 = vsel %vm678_vm1, %v673_v1, %v675_v50 }
 0x145   : > { %v1521_v7 = vld.sshfl [vmem:[#allocation1 + $0x8] sm:$0xff pattern:$0x73625140]  ;;  %v1522_v8 = vld.sshfl [vmem:[#allocation1 + $0x10] sm:$0xff pattern:$0x73625140]  ;;  %8096 = vmatpush.msk.msra.mxu2 %vm623_vm2, %v679_v6  ;;  %8095 = vmatmul.msk.f32.vlgmr.msra.gmra.mxu1 %vm619_vm5, %v8091_v21 }
 0x146   : > { %1525 = vrot.lane.b32.xlu1 %v1521_v7, %s9404_s26  ;;  %v1520_v9 = vld.sshfl [vmem:[#allocation1] sm:$0xff pattern:$0x73625140]  ;;  %1527 = vrot.lane.b32.xlu2 %v1522_v8, %s9404_s26  ;;  %v8115_v7 = vld [vmem:[%s11971_s1 + $0x14] sm:$0xf] }
 0x147   : > { %1523 = vrot.lane.b32.xlu0 %v1520_v9, %s9404_s26  ;;  %1584 = vst [vmem:[#allocation1] ss:$4 sm:$0xff] %v1580_v5  ;;  %8093 = vmatmul.msk.f32.vlgmr.msra.gmra.mxu0 %vm619_vm5, %v8091_v21  ;;  %v2035_v9 = vld [vmem:[%s9881_s21] sm:$0x3f] }
 0x148   : > { %8097 = vmatmul.msk.f32.vlgmr.msra.gmra.mxu2 %vm619_vm5, %v602_v31 }
 0x14a   : > { %v9979_v10 = vpop.permute.xlu0 %2363 }
 0x14b   : > { %v873_v11 = vpop.permute.xlu2 %872 }
 0x14c   : > { %v739_v12 = vpop.permute.xlu1 %738 }
 0x14d   : > { %v744_v14 = vsel %vm742_vm3, %v739_v12, %v741_v59 }
 0x14e   : > { %v1586_v15 = vld.sshfl [vmem:[#allocation1 + $0x8] sm:$0xff pattern:$0x73625140]  ;;  %v1587_v16 = vld.sshfl [vmem:[#allocation1 + $0x10] sm:$0xff pattern:$0x73625140]  ;;  %8103 = vmatpush.msk.msrb.mxu1 %vm623_vm2, %v744_v14 }
 0x14f   : > { %1590 = vrot.lane.b32.xlu1 %v1586_v15, %s9405_s30  ;;  %v1585_v17 = vld.sshfl [vmem:[#allocation1] sm:$0xff pattern:$0x73625140]  ;;  %1592 = vrot.lane.b32.xlu2 %v1587_v16, %s9405_s30 }
 0x150   : > { %1588 = vrot.lane.b32.xlu0 %v1585_v17, %s9405_s30  ;;  %1649 = vst [vmem:[#allocation1] ss:$4 sm:$0xff] %v1645_v13  ;;  %8104 = vmatmul.msk.f32.vlgmr.msrb.gmra.mxu1 %vm619_vm5, %v8100_v41 }
 0x152   : > { %v737_v18 = vpop.permute.xlu0 %736 }
 0x153   : > { %v743_v19 = vsel %vm742_vm3, %v737_v18, %v739_v12  ;;  %v939_v20 = vpop.permute.xlu2 %938  ;;  %v8120_v18 = vld [vmem:[%s11971_s1 + $0x18] sm:$0xf] }
 0x154   : > { %8101 = vmatpush.msk.msrb.mxu0 %vm623_vm2, %v743_v19 }
 0x155   : > { %v805_v22 = vpop.permute.xlu1 %804  ;;  %8102 = vmatmul.msk.f32.vlgmr.msrb.gmra.mxu0 %vm619_vm5, %v8100_v41 }
 0x156   : > { %v810_v24 = vsel %vm808_vm4, %v805_v22, %v807_v4 }
 0x157   : > { %v1651_v25 = vld.sshfl [vmem:[#allocation1 + $0x8] sm:$0xff pattern:$0x73625140]  ;;  %v1652_v26 = vld.sshfl [vmem:[#allocation1 + $0x10] sm:$0xff pattern:$0x73625140]  ;;  %8108 = vmatpush.msk.msrb.mxu3 %vm623_vm2, %v810_v24 }
 0x158   : > { %1655 = vrot.lane.b32.xlu1 %v1651_v25, %s9406_s27  ;;  %v1650_v27 = vld.sshfl [vmem:[#allocation1] sm:$0xff pattern:$0x73625140]  ;;  %1657 = vrot.lane.b32.xlu2 %v1652_v26, %s9406_s27 }
 0x159   : > { %1653 = vrot.lane.b32.xlu0 %v1650_v27, %s9406_s27  ;;  %1714 = vst [vmem:[#allocation1] ss:$4 sm:$0xff] %v1710_v23  ;;  %8109 = vmatmul.msk.f32.vlgmr.msrb.gmra.mxu3 %vm619_vm5, %v8105_v51 }
 0x15a   : > { %v803_v28 = vpop.permute.xlu0 %802 }
 0x15b   : > { %v809_v29 = vsel %vm808_vm4, %v803_v28, %v805_v22  ;;  %v1005_v30 = vpop.permute.xlu2 %1004  ;;  %v8125_v28 = vld [vmem:[%s11971_s1 + $0x1c] sm:$0xf] }
 0x15c   : > { %8106 = vmatpush.msk.msrb.mxu2 %vm623_vm2, %v809_v29 }
 0x15d   : > { %8107 = vmatmul.msk.f32.vlgmr.msrb.gmra.mxu2 %vm619_vm5, %v8105_v51 }
 0x15e   : > { %v871_v32 = vpop.permute.xlu1 %870 }
 0x15f   : > { %v876_v34 = vsel %vm874_vm6, %v871_v32, %v873_v11 }
 0x160   : > { %v1716_v35 = vld.sshfl [vmem:[#allocation1 + $0x8] sm:$0xff pattern:$0x73625140]  ;;  %v1717_v36 = vld.sshfl [vmem:[#allocation1 + $0x10] sm:$0xff pattern:$0x73625140]  ;;  %8113 = vmatpush.msk.msra.mxu1 %vm623_vm2, %v876_v34 }
 0x161   : > { %1720 = vrot.lane.b32.xlu1 %v1716_v35, %s9407_s16  ;;  %v1715_v37 = vld.sshfl [vmem:[#allocation1] sm:$0xff pattern:$0x73625140]  ;;  %1722 = vrot.lane.b32.xlu2 %v1717_v36, %s9407_s16 }
 0x162   : > { %1718 = vrot.lane.b32.xlu0 %v1715_v37, %s9407_s16  ;;  %1779 = vst [vmem:[#allocation1] ss:$4 sm:$0xff] %v1775_v33  ;;  %v869_v38 = vpop.permute.xlu0 %868  ;;  %8114 = vmatmul.msk.f32.vlgmr.msra.gmra.mxu1 %vm619_vm5, %v8110_v61 }
 0x163   : > { %v875_v39 = vsel %vm874_vm6, %v869_v38, %v871_v32  ;;  %v1071_v40 = vpop.permute.xlu2 %1070  ;;  %v8130_v38 = vld [vmem:[%s11971_s1 + $0x20] sm:$0xf] }
 0x164   : > { %8111 = vmatpush.msk.msra.mxu0 %vm623_vm2, %v875_v39 }
 0x165   : > { %8112 = vmatmul.msk.f32.vlgmr.msra.gmra.mxu0 %vm619_vm5, %v8110_v61  ;;  %v2437_v61 = vld [vmem:[%s9874_s23] sm:$0x3f] }
 0x167   : > { %v937_v42 = vpop.permute.xlu1 %936 }
 0x168   : > { %v942_v44 = vsel %vm11891_vm7, %v937_v42, %v939_v20  ;;  %v2100_v20 = vld [vmem:[%s9881_s21] sm:$0x3f] }
 0x169   : > { %v1781_v45 = vld.sshfl [vmem:[#allocation1 + $0x8] sm:$0xff pattern:$0x73625140]  ;;  %v1782_v46 = vld.sshfl [vmem:[#allocation1 + $0x10] sm:$0xff pattern:$0x73625140]  ;;  %8118 = vmatpush.msk.msra.mxu3 %vm623_vm2, %v942_v44 }
 0x16a   : > { %1785 = vrot.lane.b32.xlu1 %v1781_v45, %s9400_s14  ;;  %v1780_v47 = vld.sshfl [vmem:[#allocation1] sm:$0xff pattern:$0x73625140]  ;;  %v935_v48 = vpop.permute.xlu0 %934  ;;  %1787 = vrot.lane.b32.xlu2 %v1782_v46, %s9400_s14 }
 0x16b   : > { %1783 = vrot.lane.b32.xlu0 %v1780_v47, %s9400_s14  ;;  %1844 = vst [vmem:[#allocation1] ss:$4 sm:$0xff] %v1840_v43  ;;  %v941_v49 = vsel %vm11891_vm7, %v935_v48, %v937_v42  ;;  %v1137_v50 = vpop.permute.xlu2 %1136  ;;  %8119 = vmatmul.msk.f32.vlgmr.msra.gmra.mxu3 %vm619_vm5, %v8115_v7  ;;  %v8135_v48 = vld [vmem:[%s11971_s1 + $0x24] sm:$0xf] }
 0x16c   : > { %8116 = vmatpush.msk.msra.mxu2 %vm623_vm2, %v941_v49 }
 0x16d   : > { %8117 = vmatmul.msk.f32.vlgmr.msra.gmra.mxu2 %vm619_vm5, %v8115_v7 }
 0x170   : > { %v1003_v52 = vpop.permute.xlu1 %1002 }
 0x171   : > { %v1008_v54 = vsel %vm11890_vm8, %v1003_v52, %v1005_v30  ;;  %v2165_v30 = vld [vmem:[%s9881_s21] sm:$0x3f] }
 0x172   : > { %v1846_v55 = vld.sshfl [vmem:[#allocation1 + $0x8] sm:$0xff pattern:$0x73625140]  ;;  %v1847_v56 = vld.sshfl [vmem:[#allocation1 + $0x10] sm:$0xff pattern:$0x73625140]  ;;  %v1001_v57 = vpop.permute.xlu0 %1000  ;;  %8123 = vmatpush.msk.msrb.mxu1 %vm623_vm2, %v1008_v54 }
 0x173   : > { %1850 = vrot.lane.b32.xlu1 %v1846_v55, %s9399_s8  ;;  %v1845_v58 = vld.sshfl [vmem:[#allocation1] sm:$0xff pattern:$0x73625140]  ;;  %v1007_v59 = vsel %vm11890_vm8, %v1001_v57, %v1003_v52  ;;  %1852 = vrot.lane.b32.xlu2 %v1847_v56, %s9399_s8  ;;  %v1203_v60 = vpop.permute.xlu2 %1202 }
 0x174   : > { %1848 = vrot.lane.b32.xlu0 %v1845_v58, %s9399_s8  ;;  %1909 = vst [vmem:[#allocation1] ss:$4 sm:$0xff] %v1905_v53  ;;  %8121 = vmatpush.msk.msrb.mxu0 %vm623_vm2, %v1007_v59  ;;  %v8140_v58 = vld [vmem:[%s11971_s1 + $0x28] sm:$0xf]  ;;  %v8145_v59 = vld [vmem:[%s11971_s1 + $0x2c] sm:$0xf] }
 0x175   : > { %8122 = vmatmul.msk.f32.vlgmr.msrb.gmra.mxu0 %vm619_vm5, %v8120_v18  ;;  %8124 = vmatmul.msk.f32.vlgmr.msrb.gmra.mxu1 %vm619_vm5, %v8120_v18  ;;  %v2559_v18 = vld [vmem:[%s9874_s23] sm:$0x3f] }
 0x179   : > { %v1069_v62 = vpop.permute.xlu1 %1068 }
 0x17a   : > { %v1074_v0 = vsel %vm11889_vm9, %v1069_v62, %v1071_v40  ;;  %v1067_v1 = vpop.permute.xlu0 %1066  ;;  %v2230_v40 = vld [vmem:[%s9881_s21] sm:$0x3f] }
 0x17b   : > { %v1911_v2 = vld.sshfl [vmem:[#allocation1 + $0x8] sm:$0xff pattern:$0x73625140]  ;;  %v1912_v3 = vld.sshfl [vmem:[#allocation1 + $0x10] sm:$0xff pattern:$0x73625140]  ;;  %v1073_v4 = vsel %vm11889_vm9, %v1067_v1, %v1069_v62  ;;  %8128 = vmatpush.msk.msrb.mxu3 %vm623_vm2, %v1074_v0 }
 0x17c   : > { %1915 = vrot.lane.b32.xlu1 %v1911_v2, %s9401_s7  ;;  %v1910_v5 = vld.sshfl [vmem:[#allocation1] sm:$0xff pattern:$0x73625140]  ;;  %8126 = vmatpush.msk.msrb.mxu2 %vm623_vm2, %v1073_v4  ;;  %v1268_v6 = vpop.permute.xlu2 %1267 }
 0x17d   : > { %1913 = vrot.lane.b32.xlu0 %v1910_v5, %s9401_s7  ;;  %1974 = vst [vmem:[#allocation1] ss:$4 sm:$0xff] %v1970_v63  ;;  %1917 = vrot.lane.b32.xlu2 %v1912_v3, %s9401_s7  ;;  %v8150_v5 = vld [vmem:[%s11971_s1 + $0x30] sm:$0xf] }
 0x17e   : > { %8127 = vmatmul.msk.f32.vlgmr.msrb.gmra.mxu2 %vm619_vm5, %v8125_v28  ;;  %8129 = vmatmul.msk.f32.vlgmr.msrb.gmra.mxu3 %vm619_vm5, %v8125_v28  ;;  %v2623_v28 = vld [vmem:[%s9874_s23] sm:$0x3f] }
 0x182   : > { %v1135_v8 = vpop.permute.xlu1 %1134 }
 0x183   : > { %v1140_v11 = vsel %vm11888_vm10, %v1135_v8, %v1137_v50  ;;  %v1133_v12 = vpop.permute.xlu0 %1132  ;;  %v2295_v50 = vld [vmem:[%s9881_s21] sm:$0x3f] }
 0x184   : > { %v1976_v13 = vld.sshfl [vmem:[#allocation1 + $0x8] sm:$0xff pattern:$0x73625140]  ;;  %v1977_v14 = vld.sshfl [vmem:[#allocation1 + $0x10] sm:$0xff pattern:$0x73625140]  ;;  %v1139_v15 = vsel %vm11888_vm10, %v1133_v12, %v1135_v8  ;;  %8133 = vmatpush.msk.msra.mxu1 %vm623_vm2, %v1140_v11 }
 0x185   : > { %1980 = vrot.lane.b32.xlu1 %v1976_v13, %s9402_s6  ;;  %v1975_v16 = vld.sshfl [vmem:[#allocation1] sm:$0xff pattern:$0x73625140]  ;;  %8131 = vmatpush.msk.msra.mxu0 %vm623_vm2, %v1139_v15  ;;  %v1333_v17 = vpop.permute.xlu2 %1332 }
 0x186   : > { %1978 = vrot.lane.b32.xlu0 %v1975_v16, %s9402_s6  ;;  %2039 = vst [vmem:[#allocation1] ss:$4 sm:$0xff] %v2035_v9  ;;  %1982 = vrot.lane.b32.xlu2 %v1977_v14, %s9402_s6  ;;  %v8160_v16 = vld [vmem:[%s11971_s1 + $0x38] sm:$0xf] }
 0x187   : > { %8132 = vmatmul.msk.f32.vlgmr.msra.gmra.mxu0 %vm619_vm5, %v8130_v38  ;;  %8134 = vmatmul.msk.f32.vlgmr.msra.gmra.mxu1 %vm619_vm5, %v8130_v38  ;;  %v2687_v38 = vld [vmem:[%s9874_s23] sm:$0x3f] }
 0x18b   : > { %v1201_v19 = vpop.permute.xlu1 %1200 }
 0x18c   : > { %v1205_v21 = vsel %vm678_vm1, %v1201_v19, %v1203_v60  ;;  %v1199_v22 = vpop.permute.xlu0 %1198 }
 0x18d   : > { %v2041_v23 = vld.sshfl [vmem:[#allocation1 + $0x8] sm:$0xff pattern:$0x73625140]  ;;  %v2042_v24 = vld.sshfl [vmem:[#allocation1 + $0x10] sm:$0xff pattern:$0x73625140]  ;;  %v1204_v25 = vsel %vm678_vm1, %v1199_v22, %v1201_v19  ;;  %8138 = vmatpush.msk.msra.mxu3 %vm623_vm2, %v1205_v21 }
 0x18e   : > { %2045 = vrot.lane.b32.xlu1 %v2041_v23, %s9403_s9  ;;  %v2040_v26 = vld.sshfl [vmem:[#allocation1] sm:$0xff pattern:$0x73625140]  ;;  %8136 = vmatpush.msk.msra.mxu2 %vm623_vm2, %v1204_v25  ;;  %v1398_v27 = vpop.permute.xlu2 %1397  ;;  %v8165_v21 = vld [vmem:[%s11971_s1 + $0x3c] sm:$0xf] }
 0x18f   : > { %2043 = vrot.lane.b32.xlu0 %v2040_v26, %s9403_s9  ;;  %2104 = vst [vmem:[#allocation1] ss:$4 sm:$0xff] %v2100_v20  ;;  %2047 = vrot.lane.b32.xlu2 %v2042_v24, %s9403_s9 }
 0x190   : > { %8137 = vmatmul.msk.f32.vlgmr.msra.gmra.mxu2 %vm619_vm5, %v8135_v48  ;;  %8139 = vmatmul.msk.f32.vlgmr.msra.gmra.mxu3 %vm619_vm5, %v8135_v48  ;;  %v2751_v48 = vld [vmem:[%s9874_s23] sm:$0x3f] }
 0x194   : > { %v1266_v29 = vpop.permute.xlu1 %1265 }
 0x195   : > { %v1270_v31 = vsel %vm616_vm0, %v1266_v29, %v1268_v6  ;;  %v1264_v32 = vpop.permute.xlu0 %1263  ;;  %v8155_v6 = vld [vmem:[%s11971_s1 + $0x34] sm:$0xf] }
 0x196   : > { %v2106_v33 = vld.sshfl [vmem:[#allocation1 + $0x8] sm:$0xff pattern:$0x73625140]  ;;  %v2107_v34 = vld.sshfl [vmem:[#allocation1 + $0x10] sm:$0xff pattern:$0x73625140]  ;;  %v1269_v35 = vsel %vm616_vm0, %v1264_v32, %v1266_v29  ;;  %8143 = vmatpush.msk.msrb.mxu1 %vm623_vm2, %v1270_v31 }
 0x197   : > { %2110 = vrot.lane.b32.xlu1 %v2106_v33, %s9404_s26  ;;  %v2105_v36 = vld.sshfl [vmem:[#allocation1] sm:$0xff pattern:$0x73625140]  ;;  %8141 = vmatpush.msk.msrb.mxu0 %vm623_vm2, %v1269_v35  ;;  %v1463_v37 = vpop.permute.xlu2 %1462 }
 0x198   : > { %2108 = vrot.lane.b32.xlu0 %v2105_v36, %s9404_s26  ;;  %2169 = vst [vmem:[#allocation1] ss:$4 sm:$0xff] %v2165_v30  ;;  %2112 = vrot.lane.b32.xlu2 %v2107_v34, %s9404_s26  ;;  %v8170_v31 = vld [vmem:[%s11971_s1 + $0x40] sm:$0xf] }
 0x199   : > { %8142 = vmatmul.msk.f32.vlgmr.msrb.gmra.mxu0 %vm619_vm5, %v8140_v58  ;;  %8144 = vmatmul.msk.f32.vlgmr.msrb.gmra.mxu1 %vm619_vm5, %v8140_v58  ;;  %v8185_v58 = vld [vmem:[%s11971_s1 + $0x4c] sm:$0xf] }
 0x19d   : > { %v1331_v39 = vpop.permute.xlu1 %1330 }
 0x19e   : > { %v1335_v41 = vsel %vm742_vm3, %v1331_v39, %v1333_v17  ;;  %v1329_v42 = vpop.permute.xlu0 %1328 }
 0x19f   : > { %v2171_v43 = vld.sshfl [vmem:[#allocation1 + $0x8] sm:$0xff pattern:$0x73625140]  ;;  %v2172_v44 = vld.sshfl [vmem:[#allocation1 + $0x10] sm:$0xff pattern:$0x73625140]  ;;  %v1334_v45 = vsel %vm742_vm3, %v1329_v42, %v1331_v39  ;;  %8148 = vmatpush.msk.msrb.mxu3 %vm623_vm2, %v1335_v41 }
 0x1a0   : > { %2175 = vrot.lane.b32.xlu1 %v2171_v43, %s9405_s30  ;;  %v2170_v46 = vld.sshfl [vmem:[#allocation1] sm:$0xff pattern:$0x73625140]  ;;  %8146 = vmatpush.msk.msrb.mxu2 %vm623_vm2, %v1334_v45  ;;  %v1528_v47 = vpop.permute.xlu2 %1527 }
 0x1a1   : > { %2173 = vrot.lane.b32.xlu0 %v2170_v46, %s9405_s30  ;;  %2234 = vst [vmem:[#allocation1] ss:$4 sm:$0xff] %v2230_v40  ;;  %2177 = vrot.lane.b32.xlu2 %v2172_v44, %s9405_s30  ;;  %v8175_v41 = vld [vmem:[%s11971_s1 + $0x44] sm:$0xf] }
 0x1a2   : > { %8147 = vmatmul.msk.f32.vlgmr.msrb.gmra.mxu2 %vm619_vm5, %v8145_v59  ;;  %8149 = vmatmul.msk.f32.vlgmr.msrb.gmra.mxu3 %vm619_vm5, %v8145_v59  ;;  %v2815_v59 = vld [vmem:[%s9874_s23] sm:$0x3f] }
 0x1a6   : > { %v1396_v49 = vpop.permute.xlu1 %1395 }
 0x1a7   : > { %v1400_v51 = vsel %vm808_vm4, %v1396_v49, %v1398_v27  ;;  %v1394_v52 = vpop.permute.xlu0 %1393 }
 0x1a8   : > { %v2236_v53 = vld.sshfl [vmem:[#allocation1 + $0x8] sm:$0xff pattern:$0x73625140]  ;;  %v2237_v54 = vld.sshfl [vmem:[#allocation1 + $0x10] sm:$0xff pattern:$0x73625140]  ;;  %v1399_v55 = vsel %vm808_vm4, %v1394_v52, %v1396_v49  ;;  %8153 = vmatpush.msk.msra.mxu1 %vm623_vm2, %v1400_v51 }
 0x1a9   : > { %2240 = vrot.lane.b32.xlu1 %v2236_v53, %s9406_s27  ;;  %v2235_v56 = vld.sshfl [vmem:[#allocation1] sm:$0xff pattern:$0x73625140]  ;;  %8151 = vmatpush.msk.msra.mxu0 %vm623_vm2, %v1399_v55  ;;  %v1593_v57 = vpop.permute.xlu2 %1592  ;;  %v8180_v51 = vld [vmem:[%s11971_s1 + $0x48] sm:$0xf] }
 0x1aa   : > { %2238 = vrot.lane.b32.xlu0 %v2235_v56, %s9406_s27  ;;  %2299 = vst [vmem:[#allocation1] ss:$4 sm:$0xff] %v2295_v50  ;;  %2242 = vrot.lane.b32.xlu2 %v2237_v54, %s9406_s27 }
 0x1ab   : > { %8152 = vmatmul.msk.f32.vlgmr.msra.gmra.mxu0 %vm619_vm5, %v8150_v5  ;;  %8154 = vmatmul.msk.f32.vlgmr.msra.gmra.mxu1 %vm619_vm5, %v8150_v5  ;;  %v2879_v5 = vld [vmem:[%s9874_s23] sm:$0x3f] }
 0x1af   : > { %v1461_v60 = vpop.permute.xlu1 %1460 }
 0x1b0   : > { %v1465_v62 = vsel %vm874_vm6, %v1461_v60, %v1463_v37  ;;  %v1459_v63 = vpop.permute.xlu0 %1458 }
 0x1b1   : > { %v2301_v0 = vld.sshfl [vmem:[#allocation1 + $0x8] sm:$0xff pattern:$0x73625140]  ;;  %v2302_v1 = vld.sshfl [vmem:[#allocation1 + $0x10] sm:$0xff pattern:$0x73625140]  ;;  %v1464_v2 = vsel %vm874_vm6, %v1459_v63, %v1461_v60  ;;  %8158 = vmatpush.msk.msra.mxu3 %vm623_vm2, %v1465_v62 }
 0x1b2   : > { %2305 = vrot.lane.b32.xlu1 %v2301_v0, %s9407_s16  ;;  %v2300_v3 = vld.sshfl [vmem:[#allocation1] sm:$0xff pattern:$0x73625140]  ;;  %8156 = vmatpush.msk.msra.mxu2 %vm623_vm2, %v1464_v2  ;;  %v1658_v4 = vpop.permute.xlu2 %1657 }
 0x1b3   : > { %2303 = vrot.lane.b32.xlu0 %v2300_v3, %s9407_s16  ;;  %2441 = vst [vmem:[#allocation1] ss:$4 sm:$0xff] %v2437_v61  ;;  %2307 = vrot.lane.b32.xlu2 %v2302_v1, %s9407_s16 }
 0x1b4   : > { %8157 = vmatmul.msk.f32.vlgmr.msra.gmra.mxu2 %vm619_vm5, %v8155_v6  ;;  %8159 = vmatmul.msk.f32.vlgmr.msra.gmra.mxu3 %vm619_vm5, %v8155_v6 }
 0x1b8   : > { %v1526_v7 = vpop.permute.xlu1 %1525 }
 0x1b9   : > { %v1530_v8 = vsel %vm11891_vm7, %v1526_v7, %v1528_v47  ;;  %v1524_v9 = vpop.permute.xlu0 %1523 }
 0x1ba   : > { %v2443_v11 = vld.sshfl [vmem:[#allocation1 + $0x8] sm:$0xff pattern:$0x73625140]  ;;  %v2444_v12 = vld.sshfl [vmem:[#allocation1 + $0x10] sm:$0xff pattern:$0x73625140]  ;;  %v1529_v13 = vsel %vm11891_vm7, %v1524_v9, %v1526_v7  ;;  %8163 = vmatpush.msk.msrb.mxu1 %vm623_vm2, %v1530_v8 }
 0x1bb   : > { %2447 = vrot.lane.b32.xlu1 %v2443_v11, %s9399_s8  ;;  %v2442_v14 = vld.sshfl [vmem:[#allocation1] sm:$0xff pattern:$0x73625140]  ;;  %8161 = vmatpush.msk.msrb.mxu0 %vm623_vm2, %v1529_v13  ;;  %v1723_v15 = vpop.permute.xlu2 %1722 }
 0x1bc   : > { %2445 = vrot.lane.b32.xlu0 %v2442_v14, %s9399_s8  ;;  %2500 = vst [vmem:[#allocation1] ss:$4 sm:$0xff] %v2437_v61  ;;  %2449 = vrot.lane.b32.xlu2 %v2444_v12, %s9399_s8 }
 0x1bd   : > { %8162 = vmatmul.msk.f32.vlgmr.msrb.gmra.mxu0 %vm619_vm5, %v8160_v16  ;;  %8164 = vmatmul.msk.f32.vlgmr.msrb.gmra.mxu1 %vm619_vm5, %v8160_v16  ;;  %v2943_v16 = vld [vmem:[%s9874_s23] sm:$0x3f]  ;;  %s9412_s23 = smov 120  }
 0x1c1   : > { %v1591_v17 = vpop.permute.xlu1 %1590 }
 0x1c2   : > { %v1595_v19 = vsel %vm11890_vm8, %v1591_v17, %v1593_v57  ;;  %v1589_v20 = vpop.permute.xlu0 %1588 }
 0x1c3   : > { %v2502_v22 = vld.sshfl [vmem:[#allocation1 + $0x8] sm:$0xff pattern:$0x73625140]  ;;  %v2503_v23 = vld.sshfl [vmem:[#allocation1 + $0x10] sm:$0xff pattern:$0x73625140]  ;;  %v1594_v24 = vsel %vm11890_vm8, %v1589_v20, %v1591_v17  ;;  %8168 = vmatpush.msk.msrb.mxu3 %vm623_vm2, %v1595_v19 }
 0x1c4   : > { %2506 = vrot.lane.b32.xlu1 %v2502_v22, %s9400_s14  ;;  %v2501_v25 = vld.sshfl [vmem:[#allocation1] sm:$0xff pattern:$0x73625140]  ;;  %8166 = vmatpush.msk.msrb.mxu2 %vm623_vm2, %v1594_v24  ;;  %v1788_v26 = vpop.permute.xlu2 %1787 }
 0x1c5   : > { %2504 = vrot.lane.b32.xlu0 %v2501_v25, %s9400_s14  ;;  %2562 = vst [vmem:[#allocation1] ss:$4 sm:$0xff] %v2559_v18  ;;  %2508 = vrot.lane.b32.xlu2 %v2503_v23, %s9400_s14  ;;  %v8200_v25 = vld [vmem:[%s11971_s1 + $0x58] sm:$0xf] }
 0x1c6   : > { %8167 = vmatmul.msk.f32.vlgmr.msrb.gmra.mxu2 %vm619_vm5, %v8165_v21  ;;  %8169 = vmatmul.msk.f32.vlgmr.msrb.gmra.mxu3 %vm619_vm5, %v8165_v21 }
 0x1ca   : > { %v1656_v27 = vpop.permute.xlu1 %1655 }
 0x1cb   : > { %v1660_v29 = vsel %vm11889_vm9, %v1656_v27, %v1658_v4  ;;  %v1654_v30 = vpop.permute.xlu0 %1653  ;;  %v8190_v4 = vld [vmem:[%s11971_s1 + $0x50] sm:$0xf] }
 0x1cc   : > { %v2564_v32 = vld.sshfl [vmem:[#allocation1 + $0x8] sm:$0xff pattern:$0x73625140]  ;;  %v2565_v33 = vld.sshfl [vmem:[#allocation1 + $0x10] sm:$0xff pattern:$0x73625140]  ;;  %v1659_v34 = vsel %vm11889_vm9, %v1654_v30, %v1656_v27  ;;  %8173 = vmatpush.msk.msra.mxu1 %vm623_vm2, %v1660_v29 }
 0x1cd   : > { %2568 = vrot.lane.b32.xlu1 %v2564_v32, %s9401_s7  ;;  %v2563_v35 = vld.sshfl [vmem:[#allocation1] sm:$0xff pattern:$0x73625140]  ;;  %8171 = vmatpush.msk.msra.mxu0 %vm623_vm2, %v1659_v34  ;;  %v1853_v36 = vpop.permute.xlu2 %1852 }
 0x1ce   : > { %2566 = vrot.lane.b32.xlu0 %v2563_v35, %s9401_s7  ;;  %2626 = vst [vmem:[#allocation1] ss:$4 sm:$0xff] %v2623_v28  ;;  %2570 = vrot.lane.b32.xlu2 %v2565_v33, %s9401_s7  ;;  %v8205_v35 = vld [vmem:[%s11971_s1 + $0x5c] sm:$0xf] }
 0x1cf   : > { %8172 = vmatmul.msk.f32.vlgmr.msra.gmra.mxu0 %vm619_vm5, %v8170_v31  ;;  %8174 = vmatmul.msk.f32.vlgmr.msra.gmra.mxu1 %vm619_vm5, %v8170_v31 }
 0x1d3   : > { %v1721_v37 = vpop.permute.xlu1 %1720 }
 0x1d4   : > { %v1725_v39 = vsel %vm11888_vm10, %v1721_v37, %v1723_v15  ;;  %v1719_v40 = vpop.permute.xlu0 %1718  ;;  %v8195_v15 = vld [vmem:[%s11971_s1 + $0x54] sm:$0xf] }
 0x1d5   : > { %v2628_v42 = vld.sshfl [vmem:[#allocation1 + $0x8] sm:$0xff pattern:$0x73625140]  ;;  %v2629_v43 = vld.sshfl [vmem:[#allocation1 + $0x10] sm:$0xff pattern:$0x73625140]  ;;  %v1724_v44 = vsel %vm11888_vm10, %v1719_v40, %v1721_v37  ;;  %8178 = vmatpush.msk.msra.mxu3 %vm623_vm2, %v1725_v39 }
 0x1d6   : > { %2632 = vrot.lane.b32.xlu1 %v2628_v42, %s9402_s6  ;;  %v2627_v45 = vld.sshfl [vmem:[#allocation1] sm:$0xff pattern:$0x73625140]  ;;  %8176 = vmatpush.msk.msra.mxu2 %vm623_vm2, %v1724_v44 }
 0x1d7   : > { %2630 = vrot.lane.b32.xlu0 %v2627_v45, %s9402_s6  ;;  %2690 = vst [vmem:[#allocation1] ss:$4 sm:$0xff] %v2687_v38  ;;  %8177 = vmatmul.msk.f32.vlgmr.msra.gmra.mxu2 %vm619_vm5, %v8175_v41  ;;  %v1918_v46 = vpop.permute.xlu2 %1917  ;;  %v8210_v45 = vld [vmem:[%s11971_s1 + $0x60] sm:$0xf] }
 0x1d8   : > { %2634 = vrot.lane.b32.xlu2 %v2629_v43, %s9402_s6  ;;  %8179 = vmatmul.msk.f32.vlgmr.msra.gmra.mxu3 %vm619_vm5, %v8175_v41 }
 0x1dc   : > { %v1786_v47 = vpop.permute.xlu1 %1785 }
 0x1dd   : > { %v1790_v49 = vsel %vm678_vm1, %v1786_v47, %v1788_v26  ;;  %v1784_v50 = vpop.permute.xlu0 %1783  ;;  %v3007_v26 = vld [vmem:[%s9881_s21] sm:$0x3f] }
 0x1de   : > { %v2692_v52 = vld.sshfl [vmem:[#allocation1 + $0x8] sm:$0xff pattern:$0x73625140]  ;;  %v2693_v53 = vld.sshfl [vmem:[#allocation1 + $0x10] sm:$0xff pattern:$0x73625140]  ;;  %v1789_v54 = vsel %vm678_vm1, %v1784_v50, %v1786_v47  ;;  %8183 = vmatpush.msk.msrb.mxu1 %vm623_vm2, %v1790_v49 }
 0x1df   : > { %2696 = vrot.lane.b32.xlu1 %v2692_v52, %s9403_s9  ;;  %v2691_v55 = vld.sshfl [vmem:[#allocation1] sm:$0xff pattern:$0x73625140]  ;;  %8181 = vmatpush.msk.msrb.mxu0 %vm623_vm2, %v1789_v54 }
 0x1e0   : > { %2694 = vrot.lane.b32.xlu0 %v2691_v55, %s9403_s9  ;;  %2754 = vst [vmem:[#allocation1] ss:$4 sm:$0xff] %v2751_v48  ;;  %8182 = vmatmul.msk.f32.vlgmr.msrb.gmra.mxu0 %vm619_vm5, %v8180_v51  ;;  %v1983_v56 = vpop.permute.xlu2 %1982  ;;  %v8215_v55 = vld [vmem:[%s11971_s1 + $0x64] sm:$0xf] }
 0x1e1   : > { %2698 = vrot.lane.b32.xlu2 %v2693_v53, %s9403_s9  ;;  %8184 = vmatmul.msk.f32.vlgmr.msrb.gmra.mxu1 %vm619_vm5, %v8180_v51 }
 0x1e5   : > { %v1851_v57 = vpop.permute.xlu1 %1850 }
 0x1e6   : > { %v1855_v60 = vsel %vm616_vm0, %v1851_v57, %v1853_v36  ;;  %v1849_v61 = vpop.permute.xlu0 %1848  ;;  %v3071_v36 = vld [vmem:[%s9881_s21] sm:$0x3f] }
 0x1e7   : > { %v2756_v62 = vld.sshfl [vmem:[#allocation1 + $0x8] sm:$0xff pattern:$0x73625140]  ;;  %v2757_v63 = vld.sshfl [vmem:[#allocation1 + $0x10] sm:$0xff pattern:$0x73625140]  ;;  %8188 = vmatpush.msk.msrb.mxu3 %vm623_vm2, %v1855_v60  ;;  %v1854_v0 = vsel %vm616_vm0, %v1849_v61, %v1851_v57 }
 0x1e8   : > { %2760 = vrot.lane.b32.xlu1 %v2756_v62, %s9404_s26  ;;  %v2755_v1 = vld.sshfl [vmem:[#allocation1] sm:$0xff pattern:$0x73625140]  ;;  %8189 = vmatmul.msk.f32.vlgmr.msrb.gmra.mxu3 %vm619_vm5, %v8185_v58 }
 0x1e9   : > { %2758 = vrot.lane.b32.xlu0 %v2755_v1, %s9404_s26  ;;  %2818 = vst [vmem:[#allocation1] ss:$4 sm:$0xff] %v2815_v59  ;;  %8186 = vmatpush.msk.msrb.mxu2 %vm623_vm2, %v1854_v0  ;;  %v2048_v2 = vpop.permute.xlu2 %2047  ;;  %v8220_v1 = vld [vmem:[%s11971_s1 + $0x68] sm:$0xf] }
 0x1ea   : > { %8187 = vmatmul.msk.f32.vlgmr.msrb.gmra.mxu2 %vm619_vm5, %v8185_v58  ;;  %2762 = vrot.lane.b32.xlu2 %v2757_v63, %s9404_s26 }
 0x1ee   : > { %v1916_v3 = vpop.permute.xlu1 %1915 }
 0x1ef   : > { %v1920_v6 = vsel %vm742_vm3, %v1916_v3, %v1918_v46  ;;  %v1914_v7 = vpop.permute.xlu0 %1913  ;;  %v3135_v46 = vld [vmem:[%s9881_s21] sm:$0x3f] }
 0x1f0   : > { %v2820_v8 = vld.sshfl [vmem:[#allocation1 + $0x8] sm:$0xff pattern:$0x73625140]  ;;  %v2821_v9 = vld.sshfl [vmem:[#allocation1 + $0x10] sm:$0xff pattern:$0x73625140]  ;;  %8193 = vmatpush.msk.msra.mxu1 %vm623_vm2, %v1920_v6  ;;  %v1919_v11 = vsel %vm742_vm3, %v1914_v7, %v1916_v3 }
 0x1f1   : > { %2824 = vrot.lane.b32.xlu1 %v2820_v8, %s9405_s30  ;;  %v2819_v12 = vld.sshfl [vmem:[#allocation1] sm:$0xff pattern:$0x73625140]  ;;  %8194 = vmatmul.msk.f32.vlgmr.msra.gmra.mxu1 %vm619_vm5, %v8190_v4 }
 0x1f2   : > { %2822 = vrot.lane.b32.xlu0 %v2819_v12, %s9405_s30  ;;  %2882 = vst [vmem:[#allocation1] ss:$4 sm:$0xff] %v2879_v5  ;;  %8191 = vmatpush.msk.msra.mxu0 %vm623_vm2, %v1919_v11  ;;  %v2113_v13 = vpop.permute.xlu2 %2112  ;;  %v10315_v11 = vpop.f32.mrf.mxu0 }
 0x1f3   : > { %8192 = vmatmul.msk.f32.vlgmr.msra.gmra.mxu0 %vm619_vm5, %v8190_v4  ;;  %2826 = vrot.lane.b32.xlu2 %v2821_v9, %s9405_s30 }
 0x1f7   : > { %v1981_v14 = vpop.permute.xlu1 %1980 }
 0x1f8   : > { %v1985_v17 = vsel %vm808_vm4, %v1981_v14, %v1983_v56  ;;  %v1979_v18 = vpop.permute.xlu0 %1978  ;;  %v3199_v56 = vld [vmem:[%s9881_s21] sm:$0x3f] }
 0x1f9   : > { %v2884_v19 = vld.sshfl [vmem:[#allocation1 + $0x8] sm:$0xff pattern:$0x73625140]  ;;  %v2885_v20 = vld.sshfl [vmem:[#allocation1 + $0x10] sm:$0xff pattern:$0x73625140]  ;;  %8198 = vmatpush.msk.msra.mxu3 %vm623_vm2, %v1985_v17  ;;  %v1984_v21 = vsel %vm808_vm4, %v1979_v18, %v1981_v14 }
 0x1fa   : > { %2888 = vrot.lane.b32.xlu1 %v2884_v19, %s9406_s27  ;;  %v2883_v22 = vld.sshfl [vmem:[#allocation1] sm:$0xff pattern:$0x73625140]  ;;  %8199 = vmatmul.msk.f32.vlgmr.msra.gmra.mxu3 %vm619_vm5, %v8195_v15 }
 0x1fb   : > { %2886 = vrot.lane.b32.xlu0 %v2883_v22, %s9406_s27  ;;  %2946 = vst [vmem:[#allocation1] ss:$4 sm:$0xff] %v2943_v16  ;;  %8196 = vmatpush.msk.msra.mxu2 %vm623_vm2, %v1984_v21  ;;  %v2178_v23 = vpop.permute.xlu2 %2177  ;;  %v705_v22 = vpop.f32.mrf.mxu2 }
 0x1fc   : > { %8197 = vmatmul.msk.f32.vlgmr.msra.gmra.mxu2 %vm619_vm5, %v8195_v15  ;;  %2890 = vrot.lane.b32.xlu2 %v2885_v20, %s9406_s27  ;;  %v10323_v20 = vpop.f32.mrf.mxu1 }
 0x200   : > { %v2046_v24 = vpop.permute.xlu1 %2045 }
 0x201   : > { %v2050_v27 = vsel %vm874_vm6, %v2046_v24, %v2048_v2  ;;  %v2044_v28 = vpop.permute.xlu0 %2043  ;;  %v3263_v2 = vld [vmem:[%s9881_s21] sm:$0x3f] }
 0x202   : > { %v2948_v29 = vld.sshfl [vmem:[#allocation1 + $0x8] sm:$0xff pattern:$0x73625140]  ;;  %v2949_v30 = vld.sshfl [vmem:[#allocation1 + $0x10] sm:$0xff pattern:$0x73625140]  ;;  %8203 = vmatpush.msk.msrb.mxu1 %vm623_vm2, %v2050_v27  ;;  %v2049_v31 = vsel %vm874_vm6, %v2044_v28, %v2046_v24  ;;  %v10327_v24 = vpop.f32.mrf.mxu0 }
 0x203   : > { %2952 = vrot.lane.b32.xlu1 %v2948_v29, %s9407_s16  ;;  %v2947_v32 = vld.sshfl [vmem:[#allocation1] sm:$0xff pattern:$0x73625140]  ;;  %8204 = vmatmul.msk.f32.vlgmr.msrb.gmra.mxu1 %vm619_vm5, %v8200_v25 }
 0x204   : > { %2950 = vrot.lane.b32.xlu0 %v2947_v32, %s9407_s16  ;;  %3010 = vst [vmem:[#allocation1] ss:$4 sm:$0xff] %v3007_v26  ;;  %8201 = vmatpush.msk.msrb.mxu0 %vm623_vm2, %v2049_v31  ;;  %v2243_v33 = vpop.permute.xlu2 %2242 }
 0x205   : > { %8202 = vmatmul.msk.f32.vlgmr.msrb.gmra.mxu0 %vm619_vm5, %v8200_v25  ;;  %2954 = vrot.lane.b32.xlu2 %v2949_v30, %s9407_s16  ;;  %v3391_v25 = vld [vmem:[%s9881_s21] sm:$0x3f]  ;;  %v725_v30 = vpop.f32.mrf.mxu3 }
 0x209   : > { %v2111_v34 = vpop.permute.xlu1 %2110 }
 0x20a   : > { %v2115_v37 = vsel %vm11891_vm7, %v2111_v34, %v2113_v13  ;;  %v2109_v38 = vpop.permute.xlu0 %2108  ;;  %v3327_v13 = vld [vmem:[%s9881_s21] sm:$0x3f] }
 0x20b   : > { %v3012_v39 = vld.sshfl [vmem:[#allocation1 + $0x8] sm:$0xff pattern:$0x73625140]  ;;  %v3013_v40 = vld.sshfl [vmem:[#allocation1 + $0x10] sm:$0xff pattern:$0x73625140]  ;;  %8208 = vmatpush.msk.msrb.mxu3 %vm623_vm2, %v2115_v37  ;;  %v2114_v41 = vsel %vm11891_vm7, %v2109_v38, %v2111_v34 }
 0x20c   : > { %3016 = vrot.lane.b32.xlu1 %v3012_v39, %s9400_s14  ;;  %v3011_v42 = vld.sshfl [vmem:[#allocation1] sm:$0xff pattern:$0x73625140]  ;;  %8209 = vmatmul.msk.f32.vlgmr.msrb.gmra.mxu3 %vm619_vm5, %v8205_v35 }
 0x20d   : > { %3014 = vrot.lane.b32.xlu0 %v3011_v42, %s9400_s14  ;;  %3074 = vst [vmem:[#allocation1] ss:$4 sm:$0xff] %v3071_v36  ;;  %8206 = vmatpush.msk.msrb.mxu2 %vm623_vm2, %v2114_v41  ;;  %v2308_v43 = vpop.permute.xlu2 %2307  ;;  %v3455_v37 = vld [vmem:[%s9881_s21] sm:$0x3f] }
 0x20e   : > { %8207 = vmatmul.msk.f32.vlgmr.msrb.gmra.mxu2 %vm619_vm5, %v8205_v35  ;;  %3018 = vrot.lane.b32.xlu2 %v3013_v40, %s9400_s14  ;;  %v10339_v35 = vpop.f32.mrf.mxu2  ;;  %v10343_v40 = vpop.f32.mrf.mxu0 }
 0x212   : > { %v2176_v44 = vpop.permute.xlu1 %2175 }
 0x213   : > { %v2180_v47 = vsel %vm11890_vm8, %v2176_v44, %v2178_v23  ;;  %v2174_v48 = vpop.permute.xlu0 %2173 }
 0x214   : > { %v3076_v49 = vld.sshfl [vmem:[#allocation1 + $0x8] sm:$0xff pattern:$0x73625140]  ;;  %v3077_v50 = vld.sshfl [vmem:[#allocation1 + $0x10] sm:$0xff pattern:$0x73625140]  ;;  %8213 = vmatpush.msk.msra.mxu1 %vm623_vm2, %v2180_v47  ;;  %v2179_v51 = vsel %vm11890_vm8, %v2174_v48, %v2176_v44  ;;  %v855_v44 = vpop.f32.mrf.mxu3 }
 0x215   : > { %3080 = vrot.lane.b32.xlu1 %v3076_v49, %s9399_s8  ;;  %v3075_v52 = vld.sshfl [vmem:[#allocation1] sm:$0xff pattern:$0x73625140]  ;;  %8214 = vmatmul.msk.f32.vlgmr.msra.gmra.mxu1 %vm619_vm5, %v8210_v45 }
 0x216   : > { %3078 = vrot.lane.b32.xlu0 %v3075_v52, %s9399_s8  ;;  %3138 = vst [vmem:[#allocation1] ss:$4 sm:$0xff] %v3135_v46  ;;  %8211 = vmatpush.msk.msra.mxu0 %vm623_vm2, %v2179_v51  ;;  %v2450_v53 = vpop.permute.xlu2 %2449  ;;  %v8225_v48 = vld [vmem:[%s11971_s1 + $0x4] sm:$0xf] }
 0x217   : > { %8212 = vmatmul.msk.f32.vlgmr.msra.gmra.mxu0 %vm619_vm5, %v8210_v45  ;;  %3082 = vrot.lane.b32.xlu2 %v3077_v50, %s9399_s8  ;;  %v967_v50 = vpop.f32.mrf.mxu2  ;;  %v3519_v51 = vld [vmem:[%s9881_s21] sm:$0x3f] }
 0x21b   : > { %v2241_v54 = vpop.permute.xlu1 %2240 }
 0x21c   : > { %v2245_v57 = vsel %vm11889_vm9, %v2241_v54, %v2243_v33  ;;  %v2239_v58 = vpop.permute.xlu0 %2238  ;;  %v10337_v33 = vpop.f32.mrf.mxu1 }
 0x21d   : > { %v3140_v59 = vld.sshfl [vmem:[#allocation1 + $0x8] sm:$0xff pattern:$0x73625140]  ;;  %v3141_v60 = vld.sshfl [vmem:[#allocation1 + $0x10] sm:$0xff pattern:$0x73625140]  ;;  %8218 = vmatpush.msk.msra.mxu3 %vm623_vm2, %v2245_v57  ;;  %v2244_v61 = vsel %vm11889_vm9, %v2239_v58, %v2241_v54  ;;  %v10362_v57 = vpop.f32.mrf.mxu0 }
 0x21e   : > { %3144 = vrot.lane.b32.xlu1 %v3140_v59, %s9401_s7  ;;  %v3139_v62 = vld.sshfl [vmem:[#allocation1] sm:$0xff pattern:$0x73625140]  ;;  %8219 = vmatmul.msk.f32.vlgmr.msra.gmra.mxu3 %vm619_vm5, %v8215_v55  ;;  %v987_v59 = vpop.f32.mrf.mxu3 }
 0x21f   : > { %3142 = vrot.lane.b32.xlu0 %v3139_v62, %s9401_s7  ;;  %3202 = vst [vmem:[#allocation1] ss:$4 sm:$0xff] %v3199_v56  ;;  %8216 = vmatpush.msk.msra.mxu2 %vm623_vm2, %v2244_v61  ;;  %v2509_v63 = vpop.permute.xlu2 %2508 }
 0x220   : > { %8217 = vmatmul.msk.f32.vlgmr.msra.gmra.mxu2 %vm619_vm5, %v8215_v55  ;;  %3146 = vrot.lane.b32.xlu2 %v3141_v60, %s9401_s7  ;;  %v706_v60 = vadd.f32 %v705_v22, %v10315_v11  ;;  %v3647_v22 = vld [vmem:[%s9888_s13] sm:$0x3f] }
 0x224   : > { %v2306_v0 = vpop.permute.xlu1 %2305  ;;  %v10351_v46 = vpop.f32.mrf.mxu1 }
 0x225   : > { %v2310_v3 = vsel %vm11888_vm10, %v2306_v0, %v2308_v43  ;;  %v2304_v4 = vpop.permute.xlu0 %2303 }
 0x226   : > { %v3204_v5 = vld.sshfl [vmem:[#allocation1 + $0x8] sm:$0xff pattern:$0x73625140]  ;;  %v3205_v6 = vld.sshfl [vmem:[#allocation1 + $0x10] sm:$0xff pattern:$0x73625140]  ;;  %8223 = vmatpush.msk.msrb.mxu1 %vm623_vm2, %v2310_v3  ;;  %v2309_v7 = vsel %vm11888_vm10, %v2304_v4, %v2306_v0 }
 0x227   : > { %3208 = vrot.lane.b32.xlu1 %v3204_v5, %s9402_s6  ;;  %v3203_v8 = vld.sshfl [vmem:[#allocation1] sm:$0xff pattern:$0x73625140]  ;;  %8224 = vmatmul.msk.f32.vlgmr.msrb.gmra.mxu1 %vm619_vm5, %v8220_v1  ;;  %v726_v5 = vadd.f32 %v725_v30, %v10323_v20 }
 0x228   : > { %3206 = vrot.lane.b32.xlu0 %v3203_v8, %s9402_s6  ;;  %3266 = vst [vmem:[#allocation1] ss:$4 sm:$0xff] %v3263_v2  ;;  %8221 = vmatpush.msk.msrb.mxu0 %vm623_vm2, %v2309_v7  ;;  %v2571_v9 = vpop.permute.xlu2 %2570  ;;  %v3583_v2 = vld [vmem:[%s9888_s13] sm:$0x3f] }
 0x229   : > { %8222 = vmatmul.msk.f32.vlgmr.msrb.gmra.mxu0 %vm619_vm5, %v8220_v1  ;;  %3210 = vrot.lane.b32.xlu2 %v3205_v6, %s9402_s6  ;;  %v792_v1 = vadd.f32 %v10327_v24, %v706_v60  ;;  %v1099_v6 = vpop.f32.mrf.mxu2 }
 0x22c   : > { %v10369_v61 = vpop.f32.mrf.mxu1 }
 0x22d   : > { %v2448_v12 = vpop.permute.xlu1 %2447 }
 0x22e   : > { %v2452_v14 = vsel %vm616_vm0, %v2448_v12, %v2450_v53  ;;  %v2446_v15 = vpop.permute.xlu0 %2445 }
 0x22f   : > { %v3268_v16 = vld.sshfl [vmem:[#allocation1 + $0x8] sm:$0xff pattern:$0x73625140]  ;;  %v3269_v17 = vld.sshfl [vmem:[#allocation1 + $0x10] sm:$0xff pattern:$0x73625140]  ;;  %v2451_v18 = vsel %vm616_vm0, %v2446_v15, %v2448_v12  ;;  %8228 = vmatpush.msk.msrb.mxu3 %vm623_vm2, %v2452_v14  ;;  %v1165_v12 = vpop.f32.mrf.mxu0  ;;  %v1119_v14 = vpop.f32.mrf.mxu3  ;;  %v793_v15 = vadd.f32 %v10337_v33, %v726_v5 }
 0x230   : > { %3272 = vrot.lane.b32.xlu1 %v3268_v16, %s9403_s9  ;;  %v3267_v19 = vld.sshfl [vmem:[#allocation1] sm:$0xff pattern:$0x73625140]  ;;  %8226 = vmatpush.msk.msrb.mxu2 %vm623_vm2, %v2451_v18 }
 0x231   : > { %3270 = vrot.lane.b32.xlu0 %v3267_v19, %s9403_s9  ;;  %3330 = vst [vmem:[#allocation1] ss:$4 sm:$0xff] %v3327_v13  ;;  %3274 = vrot.lane.b32.xlu2 %v3269_v17, %s9403_s9  ;;  %v858_v13 = vadd.f32 %v10339_v35, %v792_v1  ;;  %v8234_v17 = vld [vmem:[%s11971_s1 + $0x8] sm:$0xf]  ;;  %v8239_v35 = vld [vmem:[%s11971_s1 + $0xc] sm:$0xf] }
 0x232   : > { %v2635_v21 = vpop.permute.xlu2 %2634  ;;  %8227 = vmatmul.msk.f32.vlgmr.msrb.gmra.mxu2 %vm619_vm5, %v8225_v48  ;;  %8229 = vmatmul.msk.f32.vlgmr.msrb.gmra.mxu3 %vm619_vm5, %v8225_v48 }
 0x233   : > { %v924_v19 = vadd.f32 %v10343_v40, %v858_v13  ;;  %v3711_v40 = vld [vmem:[%s9888_s13] sm:$0x3f] }
 0x234   : > { %v10391_v18 = vpop.f32.mrf.mxu1  ;;  %v3839_v13 = vld [vmem:[%s9888_s13] sm:$0x3f] }
 0x235   : > { %v990_v30 = vadd.f32 %v967_v50, %v924_v19 }
 0x236   : > { %v2507_v23 = vpop.permute.xlu1 %2506 }
 0x237   : > { %v2511_v26 = vsel %vm678_vm1, %v2507_v23, %v2509_v63  ;;  %v2505_v27 = vpop.permute.xlu0 %2504  ;;  %v2438_v63 = vld [vmem:[%s11971_s1] sm:$0xf]  ;;  %v1250_v33 = vpop.f32.mrf.mxu3 }
 0x238   : > { %v3332_v28 = vld.sshfl [vmem:[#allocation1 + $0x8] sm:$0xff pattern:$0x73625140]  ;;  %v3333_v29 = vld.sshfl [vmem:[#allocation1 + $0x10] sm:$0xff pattern:$0x73625140]  ;;  %v2510_v31 = vsel %vm678_vm1, %v2505_v27, %v2507_v23  ;;  %8232 = vmatpush.msk.msra.mxu1 %vm623_vm2, %v2511_v26 }
 0x239   : > { %3336 = vrot.lane.b32.xlu1 %v3332_v28, %s9404_s26  ;;  %v3331_v32 = vld.sshfl [vmem:[#allocation1] sm:$0xff pattern:$0x73625140]  ;;  %8230 = vmatpush.msk.msra.mxu0 %vm623_vm2, %v2510_v31  ;;  %v1230_v28 = vpop.f32.mrf.mxu2 }
 0x23a   : > { %3334 = vrot.lane.b32.xlu0 %v3331_v32, %s9404_s26  ;;  %3394 = vst [vmem:[#allocation1] ss:$4 sm:$0xff] %v3391_v25  ;;  %3338 = vrot.lane.b32.xlu2 %v3333_v29, %s9404_s26  ;;  %v1295_v32 = vpop.f32.mrf.mxu0 }
 0x23b   : > { %v2699_v34 = vpop.permute.xlu2 %2698  ;;  %8231 = vmatmul.msk.f32.vlgmr.msra.gmra.mxu0 %vm619_vm5, %v2438_v63  ;;  %8233 = vmatmul.msk.f32.vlgmr.msra.gmra.mxu1 %vm619_vm5, %v2438_v63 }
 0x23f   : > { %v2569_v36 = vpop.permute.xlu1 %2568 }
 0x240   : > { %v2573_v38 = vsel %vm742_vm3, %v2569_v36, %v2571_v9  ;;  %v2567_v39 = vpop.permute.xlu0 %2566 }
 0x241   : > { %v3396_v41 = vld.sshfl [vmem:[#allocation1 + $0x8] sm:$0xff pattern:$0x73625140]  ;;  %v3397_v42 = vld.sshfl [vmem:[#allocation1 + $0x10] sm:$0xff pattern:$0x73625140]  ;;  %v2572_v43 = vsel %vm742_vm3, %v2567_v39, %v2569_v36  ;;  %8237 = vmatpush.msk.msra.mxu3 %vm623_vm2, %v2573_v38  ;;  %v1056_v36 = vadd.f32 %v10362_v57, %v990_v30  ;;  %v1315_v38 = vpop.f32.mrf.mxu1 }
 0x242   : > { %3400 = vrot.lane.b32.xlu1 %v3396_v41, %s9405_s30  ;;  %v3395_v45 = vld.sshfl [vmem:[#allocation1] sm:$0xff pattern:$0x73625140]  ;;  %8235 = vmatpush.msk.msra.mxu2 %vm623_vm2, %v2572_v43  ;;  %v1425_v50 = vpop.f32.mrf.mxu0 }
 0x243   : > { %3398 = vrot.lane.b32.xlu0 %v3395_v45, %s9405_s30  ;;  %3458 = vst [vmem:[#allocation1] ss:$4 sm:$0xff] %v3455_v37  ;;  %3402 = vrot.lane.b32.xlu2 %v3397_v42, %s9405_s30 }
 0x244   : > { %v2763_v47 = vpop.permute.xlu2 %2762  ;;  %8236 = vmatmul.msk.f32.vlgmr.msra.gmra.mxu2 %vm619_vm5, %v8234_v17  ;;  %8238 = vmatmul.msk.f32.vlgmr.msra.gmra.mxu3 %vm619_vm5, %v8234_v17 }
 0x248   : > { %v2633_v49 = vpop.permute.xlu1 %2632 }
 0x249   : > { %v2637_v52 = vsel %vm808_vm4, %v2633_v49, %v2635_v21  ;;  %v2631_v53 = vpop.permute.xlu0 %2630  ;;  %v859_v21 = vadd.f32 %v855_v44, %v793_v15  ;;  %v1445_v57 = vpop.f32.mrf.mxu1 }
 0x24a   : > { %v3460_v54 = vld.sshfl [vmem:[#allocation1 + $0x8] sm:$0xff pattern:$0x73625140]  ;;  %v3461_v55 = vld.sshfl [vmem:[#allocation1 + $0x10] sm:$0xff pattern:$0x73625140]  ;;  %v2636_v56 = vsel %vm808_vm4, %v2631_v53, %v2633_v49  ;;  %8242 = vmatpush.msk.msrb.mxu1 %vm623_vm2, %v2637_v52  ;;  %v1360_v49 = vpop.f32.mrf.mxu2  ;;  %v1380_v52 = vpop.f32.mrf.mxu3 }
 0x24b   : > { %3464 = vrot.lane.b32.xlu1 %v3460_v54, %s9406_s27  ;;  %v3459_v58 = vld.sshfl [vmem:[#allocation1] sm:$0xff pattern:$0x73625140]  ;;  %8240 = vmatpush.msk.msrb.mxu0 %vm623_vm2, %v2636_v56  ;;  %v925_v31 = vadd.f32 %v10351_v46, %v859_v21  ;;  %v1122_v46 = vadd.f32 %v1099_v6, %v1056_v36  ;;  %v8244_v54 = vld [vmem:[%s11971_s1 + $0x10] sm:$0xf]  ;;  %v1555_v6 = vpop.f32.mrf.mxu0 }
 0x24c   : > { %3462 = vrot.lane.b32.xlu0 %v3459_v58, %s9406_s27  ;;  %3522 = vst [vmem:[#allocation1] ss:$4 sm:$0xff] %v3519_v51  ;;  %3466 = vrot.lane.b32.xlu2 %v3461_v55, %s9406_s27  ;;  %v3775_v58 = vld [vmem:[%s9888_s13] sm:$0x3f] }
 0x24d   : > { %v2827_v62 = vpop.permute.xlu2 %2826  ;;  %8241 = vmatmul.msk.f32.vlgmr.msrb.gmra.mxu0 %vm619_vm5, %v8239_v35  ;;  %8243 = vmatmul.msk.f32.vlgmr.msrb.gmra.mxu1 %vm619_vm5, %v8239_v35  ;;  %v991_v37 = vadd.f32 %v987_v59, %v925_v31  ;;  %v1188_v51 = vadd.f32 %v1165_v12, %v1122_v46 }
 0x24f   : > { %v1057_v48 = vadd.f32 %v10369_v61, %v991_v37  ;;  %v1253_v61 = vadd.f32 %v1230_v28, %v1188_v51  ;;  %v3967_v51 = vld [vmem:[%s9888_s13] sm:$0x3f] }
 0x251   : > { %v2697_v0 = vpop.permute.xlu1 %2696  ;;  %v1123_v55 = vadd.f32 %v1119_v14, %v1057_v48  ;;  %v1575_v17 = vpop.f32.mrf.mxu1 }
 0x252   : > { %v2701_v3 = vsel %vm874_vm6, %v2697_v0, %v2699_v34  ;;  %v2695_v4 = vpop.permute.xlu0 %2694 }
 0x253   : > { %v3524_v7 = vld.sshfl [vmem:[#allocation1 + $0x8] sm:$0xff pattern:$0x73625140]  ;;  %v3525_v8 = vld.sshfl [vmem:[#allocation1 + $0x10] sm:$0xff pattern:$0x73625140]  ;;  %v2700_v9 = vsel %vm874_vm6, %v2695_v4, %v2697_v0  ;;  %8247 = vmatpush.msk.msrb.mxu3 %vm623_vm2, %v2701_v3  ;;  %v1189_v1 = vadd.f32 %v10391_v18, %v1123_v55  ;;  %v1490_v3 = vpop.f32.mrf.mxu2  ;;  %v1318_v4 = vadd.f32 %v1295_v32, %v1253_v61 }
 0x254   : > { %3528 = vrot.lane.b32.xlu1 %v3524_v7, %s9407_s16  ;;  %v3523_v11 = vld.sshfl [vmem:[#allocation1] sm:$0xff pattern:$0x73625140]  ;;  %8245 = vmatpush.msk.msrb.mxu2 %vm623_vm2, %v2700_v9  ;;  %v1510_v9 = vpop.f32.mrf.mxu3  ;;  %v3903_v32 = vld [vmem:[%s9888_s13] sm:$0x3f] }
 0x255   : > { %3526 = vrot.lane.b32.xlu0 %v3523_v11, %s9407_s16  ;;  %3586 = vst [vmem:[#allocation1] ss:$4 sm:$0xff] %v3583_v2  ;;  %3530 = vrot.lane.b32.xlu2 %v3525_v8, %s9407_s16  ;;  %v1254_v5 = vadd.f32 %v1250_v33, %v1189_v1  ;;  %v8249_v8 = vld [vmem:[%s11971_s1 + $0x14] sm:$0xf]  ;;  %v1383_v12 = vadd.f32 %v1360_v49, %v1318_v4 }
 0x256   : > { %v2891_v16 = vpop.permute.xlu2 %2890  ;;  %8246 = vmatmul.msk.f32.vlgmr.msrb.gmra.mxu2 %vm619_vm5, %v8244_v54  ;;  %8248 = vmatmul.msk.f32.vlgmr.msrb.gmra.mxu3 %vm619_vm5, %v8244_v54 }
 0x25a   : > { %v2761_v20 = vpop.permute.xlu1 %2760 }
 0x25b   : > { %v2765_v23 = vsel %vm11891_vm7, %v2761_v20, %v2763_v47  ;;  %v2759_v24 = vpop.permute.xlu0 %2758 }
 0x25c   : > { %v3588_v25 = vld.sshfl [vmem:[#allocation1 + $0x8] sm:$0xff pattern:$0x73625140]  ;;  %v3589_v26 = vld.sshfl [vmem:[#allocation1 + $0x10] sm:$0xff pattern:$0x73625140]  ;;  %v2764_v27 = vsel %vm11891_vm7, %v2759_v24, %v2761_v20  ;;  %8252 = vmatpush.msk.msra.mxu1 %vm623_vm2, %v2765_v23  ;;  %v1620_v24 = vpop.f32.mrf.mxu2 }
 0x25d   : > { %3592 = vrot.lane.b32.xlu1 %v3588_v25, %s9400_s14  ;;  %v3587_v29 = vld.sshfl [vmem:[#allocation1] sm:$0xff pattern:$0x73625140]  ;;  %8250 = vmatpush.msk.msra.mxu0 %vm623_vm2, %v2764_v27  ;;  %v1685_v27 = vpop.f32.mrf.mxu0 }
 0x25e   : > { %3590 = vrot.lane.b32.xlu0 %v3587_v29, %s9400_s14  ;;  %3650 = vst [vmem:[#allocation1] ss:$4 sm:$0xff] %v3647_v22  ;;  %3594 = vrot.lane.b32.xlu2 %v3589_v26, %s9400_s14  ;;  %v1448_v22 = vadd.f32 %v1425_v50, %v1383_v12  ;;  %v8254_v26 = vld [vmem:[%s11971_s1 + $0x18] sm:$0xf]  ;;  %v1640_v29 = vpop.f32.mrf.mxu3 }
 0x25f   : > { %v2955_v34 = vpop.permute.xlu2 %2954  ;;  %8251 = vmatmul.msk.f32.vlgmr.msra.gmra.mxu0 %vm619_vm5, %v8249_v8  ;;  %8253 = vmatmul.msk.f32.vlgmr.msra.gmra.mxu1 %vm619_vm5, %v8249_v8 }
 0x260   : > { %v1513_v28 = vadd.f32 %v1490_v3, %v1448_v22 }
 0x263   : > { %v2825_v39 = vpop.permute.xlu1 %2824 }
 0x264   : > { %v2829_v41 = vsel %vm11890_vm8, %v2825_v39, %v2827_v62  ;;  %v2823_v42 = vpop.permute.xlu0 %2822 }
 0x265   : > { %v3652_v43 = vld.sshfl [vmem:[#allocation1 + $0x8] sm:$0xff pattern:$0x73625140]  ;;  %v3653_v44 = vld.sshfl [vmem:[#allocation1 + $0x10] sm:$0xff pattern:$0x73625140]  ;;  %v2828_v45 = vsel %vm11890_vm8, %v2823_v42, %v2825_v39  ;;  %8257 = vmatpush.msk.msra.mxu3 %vm623_vm2, %v2829_v41  ;;  %v1750_v42 = vpop.f32.mrf.mxu2 }
 0x266   : > { %3656 = vrot.lane.b32.xlu1 %v3652_v43, %s9399_s8  ;;  %v3651_v47 = vld.sshfl [vmem:[#allocation1] sm:$0xff pattern:$0x73625140]  ;;  %8255 = vmatpush.msk.msra.mxu2 %vm623_vm2, %v2828_v45  ;;  %v1770_v50 = vpop.f32.mrf.mxu3 }
 0x267   : > { %3654 = vrot.lane.b32.xlu0 %v3651_v47, %s9399_s8  ;;  %3714 = vst [vmem:[#allocation1] ss:$4 sm:$0xff] %v3711_v40  ;;  %3658 = vrot.lane.b32.xlu2 %v3653_v44, %s9399_s8  ;;  %v1578_v40 = vadd.f32 %v1555_v6, %v1513_v28  ;;  %v8259_v44 = vld [vmem:[%s11971_s1 + $0x1c] sm:$0xf]  ;;  %v8264_v45 = vld [vmem:[%s11971_s1 + $0x20] sm:$0xf]  ;;  %v1815_v47 = vpop.f32.mrf.mxu0 }
 0x268   : > { %v3019_v53 = vpop.permute.xlu2 %3018  ;;  %8256 = vmatmul.msk.f32.vlgmr.msra.gmra.mxu2 %vm619_vm5, %v8254_v26  ;;  %8258 = vmatmul.msk.f32.vlgmr.msra.gmra.mxu3 %vm619_vm5, %v8254_v26  ;;  %v4095_v26 = vld [vmem:[%s9888_s13] sm:$0x3f] }
 0x269   : > { %v1643_v46 = vadd.f32 %v1620_v24, %v1578_v40  ;;  %v8279_v40 = vld [vmem:[%s11971_s1 + $0x2c] sm:$0xf] }
 0x26c   : > { %v2889_v56 = vpop.permute.xlu1 %2888 }
 0x26d   : > { %v2893_v59 = vsel %vm11889_vm9, %v2889_v56, %v2891_v16  ;;  %v2887_v60 = vpop.permute.xlu0 %2886  ;;  %v1319_v16 = vadd.f32 %v1315_v38, %v1254_v5  ;;  %v1705_v38 = vpop.f32.mrf.mxu1  ;;  %v4031_v5 = vld [vmem:[%s9888_s13] sm:$0x3f] }
 0x26e   : > { %v3716_v62 = vld.sshfl [vmem:[#allocation1 + $0x8] sm:$0xff pattern:$0x73625140]  ;;  %v3717_v63 = vld.sshfl [vmem:[#allocation1 + $0x10] sm:$0xff pattern:$0x73625140]  ;;  %v2892_v0 = vsel %vm11889_vm9, %v2887_v60, %v2889_v56  ;;  %8262 = vmatpush.msk.msrb.mxu1 %vm623_vm2, %v2893_v59  ;;  %v1880_v61 = vpop.f32.mrf.mxu2  ;;  %v1900_v8 = vpop.f32.mrf.mxu3 }
 0x26f   : > { %3720 = vrot.lane.b32.xlu1 %v3716_v62, %s9401_s7  ;;  %v3715_v2 = vld.sshfl [vmem:[#allocation1] sm:$0xff pattern:$0x73625140]  ;;  %8260 = vmatpush.msk.msrb.mxu0 %vm623_vm2, %v2892_v0  ;;  %v1384_v23 = vadd.f32 %v1380_v52, %v1319_v16 }
 0x270   : > { %3718 = vrot.lane.b32.xlu0 %v3715_v2, %s9401_s7  ;;  %3778 = vst [vmem:[#allocation1] ss:$4 sm:$0xff] %v3775_v58  ;;  %3722 = vrot.lane.b32.xlu2 %v3717_v63, %s9401_s7  ;;  %v8269_v63 = vld [vmem:[%s11971_s1 + $0x24] sm:$0xf]  ;;  %v1945_v1 = vpop.f32.mrf.mxu0 }
 0x271   : > { %v10434_v7 = vpop.permute.xlu2 %3082  ;;  %v1449_v31 = vadd.f32 %v1445_v57, %v1384_v23  ;;  %8261 = vmatmul.msk.f32.vlgmr.msrb.gmra.mxu0 %vm619_vm5, %v8259_v44  ;;  %8263 = vmatmul.msk.f32.vlgmr.msrb.gmra.mxu1 %vm619_vm5, %v8259_v44  ;;  %v1708_v57 = vadd.f32 %v1685_v27, %v1643_v46 }
 0x273   : > { %v1514_v41 = vadd.f32 %v1510_v9, %v1449_v31  ;;  %v1773_v62 = vadd.f32 %v1750_v42, %v1708_v57 }
 0x275   : > { %v2953_v11 = vpop.permute.xlu1 %2952  ;;  %v1579_v48 = vadd.f32 %v1575_v17, %v1514_v41  ;;  %v1835_v60 = vpop.f32.mrf.mxu1  ;;  %v1838_v3 = vadd.f32 %v1815_v47, %v1773_v62  ;;  %v8284_v41 = vld [vmem:[%s11971_s1 + $0x30] sm:$0xf] }
 0x276   : > { %v2957_v14 = vsel %vm11888_vm10, %v2953_v11, %v2955_v34  ;;  %v2951_v15 = vpop.permute.xlu0 %2950 }
 0x277   : > { %v3780_v18 = vld.sshfl [vmem:[#allocation1 + $0x8] sm:$0xff pattern:$0x73625140]  ;;  %v3781_v19 = vld.sshfl [vmem:[#allocation1 + $0x10] sm:$0xff pattern:$0x73625140]  ;;  %v2956_v20 = vsel %vm11888_vm10, %v2951_v15, %v2953_v11  ;;  %8267 = vmatpush.msk.msrb.mxu3 %vm623_vm2, %v2957_v14  ;;  %v1644_v59 = vadd.f32 %v1640_v29, %v1579_v48  ;;  %v1903_v9 = vadd.f32 %v1880_v61, %v1838_v3 }
 0x278   : > { %3784 = vrot.lane.b32.xlu1 %v3780_v18, %s9402_s6  ;;  %v3779_v21 = vld.sshfl [vmem:[#allocation1] sm:$0xff pattern:$0x73625140]  ;;  %8265 = vmatpush.msk.msrb.mxu2 %vm623_vm2, %v2956_v20  ;;  %v8289_v61 = vld [vmem:[%s11971_s1 + $0x34] sm:$0xf] }
 0x279   : > { %3782 = vrot.lane.b32.xlu0 %v3779_v21, %s9402_s6  ;;  %3842 = vst [vmem:[#allocation1] ss:$4 sm:$0xff] %v3839_v13  ;;  %3786 = vrot.lane.b32.xlu2 %v3781_v19, %s9402_s6  ;;  %v1709_v2 = vadd.f32 %v1705_v38, %v1644_v59  ;;  %v8274_v19 = vld [vmem:[%s11971_s1 + $0x28] sm:$0xf]  ;;  %v1968_v20 = vadd.f32 %v1945_v1, %v1903_v9 }
 0x27a   : > { %v10449_v25 = vpop.permute.xlu2 %3146  ;;  %8266 = vmatmul.msk.f32.vlgmr.msrb.gmra.mxu2 %vm619_vm5, %v8264_v45  ;;  %8268 = vmatmul.msk.f32.vlgmr.msrb.gmra.mxu3 %vm619_vm5, %v8264_v45 }
 0x27b   : > { %v1774_v14 = vadd.f32 %v1770_v50, %v1709_v2 }
 0x27d   : > { %v1965_v17 = vpop.f32.mrf.mxu1  ;;  %v1839_v22 = vadd.f32 %v1835_v60, %v1774_v14 }
 0x27e   : > { %v3017_v30 = vpop.permute.xlu1 %3016 }
 0x27f   : > { %v3021_v33 = vsel %vm678_vm1, %v3017_v30, %v3019_v53  ;;  %v3015_v34 = vpop.permute.xlu0 %3014  ;;  %v2010_v16 = vpop.f32.mrf.mxu2  ;;  %v1904_v29 = vadd.f32 %v1900_v8, %v1839_v22 }
 0x280   : > { %v3844_v35 = vld.sshfl [vmem:[#allocation1 + $0x8] sm:$0xff pattern:$0x73625140]  ;;  %v3845_v36 = vld.sshfl [vmem:[#allocation1 + $0x10] sm:$0xff pattern:$0x73625140]  ;;  %v3020_v37 = vsel %vm678_vm1, %v3015_v34, %v3017_v30  ;;  %8272 = vmatpush.msk.msra.mxu1 %vm623_vm2, %v3021_v33  ;;  %v2033_v23 = vadd.f32 %v2010_v16, %v1968_v20 }
 0x281   : > { %3848 = vrot.lane.b32.xlu1 %v3844_v35, %s9403_s9  ;;  %v3843_v39 = vld.sshfl [vmem:[#allocation1] sm:$0xff pattern:$0x73625140]  ;;  %8270 = vmatpush.msk.msra.mxu0 %vm623_vm2, %v3020_v37  ;;  %v1969_v42 = vadd.f32 %v1965_v17, %v1904_v29 }
 0x282   : > { %3846 = vrot.lane.b32.xlu0 %v3843_v39, %s9403_s9  ;;  %3906 = vst [vmem:[#allocation1] ss:$4 sm:$0xff] %v3903_v32  ;;  %3850 = vrot.lane.b32.xlu2 %v3845_v36, %s9403_s9  ;;  %v2075_v21 = vpop.f32.mrf.mxu0  ;;  %v4230_v17 = vld [vmem:[%s9881_s21] sm:$0x3f] }
 0x283   : > { %v10464_v43 = vpop.permute.xlu2 %3210  ;;  %8271 = vmatmul.msk.f32.vlgmr.msra.gmra.mxu0 %vm619_vm5, %v8269_v63  ;;  %8273 = vmatmul.msk.f32.vlgmr.msra.gmra.mxu1 %vm619_vm5, %v8269_v63  ;;  %v2098_v35 = vadd.f32 %v2075_v21, %v2033_v23  ;;  %v8304_v21 = vld [vmem:[%s11971_s1 + $0x40] sm:$0xf]  ;;  %v8309_v29 = vld [vmem:[%s11971_s1 + $0x44] sm:$0xf] }
 0x285   : > { %v2095_v36 = vpop.f32.mrf.mxu1 }
 0x287   : > { %v3081_v49 = vpop.permute.xlu1 %3080 }
 0x288   : > { %v3085_v52 = vsel %vm616_vm0, %v3081_v49, %v10434_v7  ;;  %v3079_v53 = vpop.permute.xlu0 %3078 }
 0x289   : > { %v3908_v54 = vld.sshfl [vmem:[#allocation1 + $0x8] sm:$0xff pattern:$0x73625140]  ;;  %v3909_v55 = vld.sshfl [vmem:[#allocation1 + $0x10] sm:$0xff pattern:$0x73625140]  ;;  %v3084_v56 = vsel %vm616_vm0, %v3079_v53, %v3081_v49  ;;  %8277 = vmatpush.msk.msra.mxu3 %vm623_vm2, %v3085_v52 }
 0x28a   : > { %3912 = vrot.lane.b32.xlu1 %v3908_v54, %s9404_s26  ;;  %v3907_v58 = vld.sshfl [vmem:[#allocation1] sm:$0xff pattern:$0x73625140]  ;;  %8275 = vmatpush.msk.msra.mxu2 %vm623_vm2, %v3084_v56 }
 0x28b   : > { %3910 = vrot.lane.b32.xlu0 %v3907_v58, %s9404_s26  ;;  %3970 = vst [vmem:[#allocation1] ss:$4 sm:$0xff] %v3967_v51  ;;  %3914 = vrot.lane.b32.xlu2 %v3909_v55, %s9404_s26  ;;  %v10488_v0 = vpop.permute.xlu2 %3274 }
 0x28c   : > { %8276 = vmatmul.msk.f32.vlgmr.msra.gmra.mxu2 %vm619_vm5, %v8274_v19  ;;  %8278 = vmatmul.msk.f32.vlgmr.msra.gmra.mxu3 %vm619_vm5, %v8274_v19 }
 0x290   : > { %v3145_v4 = vpop.permute.xlu1 %3144 }
 0x291   : > { %v3149_v6 = vsel %vm742_vm3, %v3145_v4, %v10449_v25  ;;  %v3143_v7 = vpop.permute.xlu0 %3142  ;;  %v2030_v25 = vpop.f32.mrf.mxu3 }
 0x292   : > { %v3972_v11 = vld.sshfl [vmem:[#allocation1 + $0x8] sm:$0xff pattern:$0x73625140]  ;;  %v3973_v12 = vld.sshfl [vmem:[#allocation1 + $0x10] sm:$0xff pattern:$0x73625140]  ;;  %v3148_v13 = vsel %vm742_vm3, %v3143_v7, %v3145_v4  ;;  %8282 = vmatpush.msk.msrb.mxu1 %vm623_vm2, %v3149_v6  ;;  %v2140_v33 = vpop.f32.mrf.mxu2  ;;  %v2225_v55 = vpop.f32.mrf.mxu1 }
 0x293   : > { %3976 = vrot.lane.b32.xlu1 %v3972_v11, %s9405_s30  ;;  %v3971_v15 = vld.sshfl [vmem:[#allocation1] sm:$0xff pattern:$0x73625140]  ;;  %8280 = vmatpush.msk.msrb.mxu0 %vm623_vm2, %v3148_v13  ;;  %v2163_v38 = vadd.f32 %v2140_v33, %v2098_v35  ;;  %v8294_v4 = vld [vmem:[%s11971_s1 + $0x38] sm:$0xf] }
 0x294   : > { %3974 = vrot.lane.b32.xlu0 %v3971_v15, %s9405_s30  ;;  %4034 = vst [vmem:[#allocation1] ss:$4 sm:$0xff] %v4031_v5  ;;  %3978 = vrot.lane.b32.xlu2 %v3973_v12, %s9405_s30  ;;  %v10501_v18 = vpop.permute.xlu2 %3338  ;;  %v2205_v39 = vpop.f32.mrf.mxu0  ;;  %v8299_v15 = vld [vmem:[%s11971_s1 + $0x3c] sm:$0xf] }
 0x295   : > { %8281 = vmatmul.msk.f32.vlgmr.msrb.gmra.mxu0 %vm619_vm5, %v8279_v40  ;;  %8283 = vmatmul.msk.f32.vlgmr.msrb.gmra.mxu1 %vm619_vm5, %v8279_v40  ;;  %v2228_v46 = vadd.f32 %v2205_v39, %v2163_v38 }
 0x299   : > { %v3209_v24 = vpop.permute.xlu1 %3208  ;;  %v2160_v44 = vpop.f32.mrf.mxu3 }
 0x29a   : > { %v3213_v27 = vsel %vm808_vm4, %v3209_v24, %v10464_v43  ;;  %v3207_v28 = vpop.permute.xlu0 %3206  ;;  %v2034_v43 = vadd.f32 %v2030_v25, %v1969_v42  ;;  %v4159_v25 = vld [vmem:[%s11970_s4] sm:$0xf] }
 0x29b   : > { %v4036_v30 = vld.sshfl [vmem:[#allocation1 + $0x8] sm:$0xff pattern:$0x73625140]  ;;  %v4037_v31 = vld.sshfl [vmem:[#allocation1 + $0x10] sm:$0xff pattern:$0x73625140]  ;;  %v3212_v32 = vsel %vm808_vm4, %v3207_v28, %v3209_v24  ;;  %8287 = vmatpush.msk.msrb.mxu3 %vm623_vm2, %v3213_v27 }
 0x29c   : > { %4040 = vrot.lane.b32.xlu1 %v4036_v30, %s9406_s27  ;;  %v4035_v34 = vld.sshfl [vmem:[#allocation1] sm:$0xff pattern:$0x73625140]  ;;  %8285 = vmatpush.msk.msrb.mxu2 %vm623_vm2, %v3212_v32  ;;  %v2099_v54 = vadd.f32 %v2095_v36, %v2034_v43 }
 0x29d   : > { %4038 = vrot.lane.b32.xlu0 %v4035_v34, %s9406_s27  ;;  %4098 = vst [vmem:[#allocation1] ss:$4 sm:$0xff] %v4095_v26  ;;  %4042 = vrot.lane.b32.xlu2 %v4037_v31, %s9406_s27  ;;  %v10517_v37 = vpop.permute.xlu2 %3402 }
 0x29e   : > { %8286 = vmatmul.msk.f32.vlgmr.msrb.gmra.mxu2 %vm619_vm5, %v8284_v41  ;;  %8288 = vmatmul.msk.f32.vlgmr.msrb.gmra.mxu3 %vm619_vm5, %v8284_v41  ;;  %v2164_v59 = vadd.f32 %v2160_v44, %v2099_v54 }
 0x2a1   : > { %v2290_v63 = vpop.f32.mrf.mxu3 }
 0x2a2   : > { %v3273_v45 = vpop.permute.xlu1 %3272 }
 0x2a3   : > { %v3277_v47 = vsel %vm874_vm6, %v3273_v45, %v10488_v0  ;;  %v3271_v48 = vpop.permute.xlu0 %3270  ;;  %v2270_v49 = vpop.f32.mrf.mxu2  ;;  %v2229_v0 = vadd.f32 %v2225_v55, %v2164_v59  ;;  %v4416_v59 = vld [vmem:[%s9881_s21] sm:$0x3f] }
 0x2a4   : > { %v4100_v50 = vld.sshfl [vmem:[#allocation1 + $0x8] sm:$0xff pattern:$0x73625140]  ;;  %v4099_v51 = vld.sshfl [vmem:[#allocation1] sm:$0xff pattern:$0x73625140]  ;;  %v3276_v52 = vsel %vm874_vm6, %v3271_v48, %v3273_v45  ;;  %8292 = vmatpush.msk.msra.mxu1 %vm623_vm2, %v3277_v47  ;;  %v2293_v53 = vadd.f32 %v2270_v49, %v2228_v46  ;;  %v2355_v7 = vpop.f32.mrf.mxu1 }
 0x2a5   : > { %4104 = vrot.lane.b32.xlu1 %v4100_v50, %s9407_s16  ;;  %4102 = vrot.lane.b32.xlu0 %v4099_v51, %s9407_s16  ;;  %v4101_v56 = vld.sshfl [vmem:[#allocation1 + $0x10] sm:$0xff pattern:$0x73625140]  ;;  %v2294_v5 = vadd.f32 %v2290_v63, %v2229_v0  ;;  %v8319_v48 = vld [vmem:[%s11971_s1 + $0x4c] sm:$0xf] }
 0x2a6   : > { %8290 = vmatpush.msk.msra.mxu0 %vm623_vm2, %v3276_v52  ;;  %4106 = vrot.lane.b32.xlu2 %v4101_v56, %s9407_s16  ;;  %v2335_v57 = vpop.f32.mrf.mxu0  ;;  %v3467_v58 = vpop.permute.xlu2 %3466  ;;  %4234 = vst [vmem:[#allocation1] ss:$4 sm:$0xff] %v4230_v17  ;;  %v4352_v49 = vld [vmem:[%s9881_s21] sm:$0x3f]  ;;  %v8324_v52 = vld [vmem:[%s11971_s1 + $0x50] sm:$0xf] }
 0x2a7   : > { %v2358_v60 = vadd.f32 %v2335_v57, %v2293_v53  ;;  %8291 = vmatmul.msk.f32.vlgmr.msra.gmra.mxu0 %vm619_vm5, %v8289_v61  ;;  %8293 = vmatmul.msk.f32.vlgmr.msra.gmra.mxu1 %vm619_vm5, %v8289_v61  ;;  %v2359_v9 = vadd.f32 %v2355_v7, %v2294_v5  ;;  %v4480_v63 = vld [vmem:[%s9881_s21] sm:$0x3f] }
 0x2a9   : > { %v10546_v62 = vadd.f32 %v9979_v10, %v2358_v60  ;;  %v10567_v12 = vadd.f32 %v9979_v10, %v2359_v9  ;;  %v4544_v9 = vld [vmem:[%s9881_s21] sm:$0x3f] }
 0x2ab   : > { %v3337_v1 = vpop.permute.xlu1 %3336  ;;  %2369 = vst.msk [vmem:[%s10553_s17] sm:$0xf] %vm2368_vm11, %v10546_v62  ;;  %v2402_v40 = vrot.slane %v10567_v12, 4 }
 0x2ac   : > { %v3341_v2 = vsel %vm11891_vm7, %v3337_v1, %v10501_v18  ;;  %v3335_v3 = vpop.permute.xlu0 %3334 }
 0x2ad   : > { %v3340_v6 = vsel %vm11891_vm7, %v3335_v3, %v3337_v1  ;;  %8297 = vmatpush.msk.msra.mxu3 %vm623_vm2, %v3341_v2  ;;  %2371 = vrot.lane.b32.xlu1 %v10546_v62, %s9408_s11  ;;  %s9414_s11 = smov 116   ;;  %v4237_v24 = vld.sshfl [vmem:[#allocation1 + $0x10] sm:$0xff pattern:$0x73625140]  ;;  %v2404_v41 = vsel %vm11887_vm12, %v10546_v62, %v2402_v40  ;;  %vm11893_vm12 = vcmask 650752  }
 0x2ae   : > { %8295 = vmatpush.msk.msra.mxu2 %vm623_vm2, %v3340_v6  ;;  %2376 = vrot.lane.b32.xlu2 %v10546_v62, %s9409_s25  ;;  %v4235_v32 = vld.sshfl [vmem:[#allocation1] sm:$0xff pattern:$0x73625140]  ;;  %v4236_v33 = vld.sshfl [vmem:[#allocation1 + $0x8] sm:$0xff pattern:$0x73625140] }
 0x2af   : > { %2391 = vrot.lane.b32.xlu0 %v10546_v62, %s9410_s22  ;;  %v3531_v8 = vpop.permute.xlu2 %3530  ;;  %8296 = vmatmul.msk.f32.vlgmr.msra.gmra.mxu2 %vm619_vm5, %v8294_v4  ;;  %4293 = vst [vmem:[#allocation1] ss:$4 sm:$0xff] %v4230_v17  ;;  %s9417_s25 = smov 102  }
 0x2b0   : > { %8298 = vmatmul.msk.f32.vlgmr.msra.gmra.mxu3 %vm619_vm5, %v8294_v4 }
 0x2b4   : > { %v3401_v11 = vpop.permute.xlu1 %3400 }
 0x2b5   : > { %v3405_v13 = vsel %vm11890_vm8, %v3401_v11, %v10517_v37  ;;  %v3399_v14 = vpop.permute.xlu0 %3398  ;;  %2381 = vrot.lane.b32.xlu1 %v10546_v62, %s9411_s20  ;;  %s9415_s20 = smov 106   ;;  %v8314_v37 = vld [vmem:[%s11971_s1 + $0x48] sm:$0xf] }
 0x2b6   : > { %v3404_v16 = vsel %vm11890_vm8, %v3399_v14, %v3401_v11  ;;  %8302 = vmatpush.msk.msrb.mxu1 %vm623_vm2, %v3405_v13  ;;  %2386 = vrot.lane.b32.xlu2 %v10546_v62, %s9412_s23  ;;  %v4294_v42 = vld.sshfl [vmem:[#allocation1] sm:$0xff pattern:$0x73625140]  ;;  %v4296_v43 = vld.sshfl [vmem:[#allocation1 + $0x10] sm:$0xff pattern:$0x73625140] }
 0x2b7   : > { %8300 = vmatpush.msk.msrb.mxu0 %vm623_vm2, %v3404_v16  ;;  %2413 = vrot.lane.b32.xlu0 %v10567_v12, %s9413_s10  ;;  %v4295_v44 = vld.sshfl [vmem:[#allocation1 + $0x8] sm:$0xff pattern:$0x73625140]  ;;  %s9431_s23 = smov 62   ;;  %s9433_s10 = smov 54  }
 0x2b8   : > { %v3595_v10 = vpop.permute.xlu2 %3594  ;;  %8301 = vmatmul.msk.f32.vlgmr.msrb.gmra.mxu0 %vm619_vm5, %v8299_v15  ;;  %8303 = vmatmul.msk.f32.vlgmr.msrb.gmra.mxu1 %vm619_vm5, %v8299_v15  ;;  %4355 = vst [vmem:[#allocation1] ss:$4 sm:$0xff] %v4352_v49  ;;  %v4800_v49 = vld [vmem:[%s9888_s13] sm:$0x3f] }
 0x2bd   : > { %v3465_v18 = vpop.permute.xlu1 %3464  ;;  %2396 = vrot.lane.b32.xlu1 %v10546_v62, %s9414_s11  ;;  %s9416_s11 = smov 104   ;;  %v8329_v62 = vld [vmem:[%s11971_s1 + $0x54] sm:$0xf] }
 0x2be   : > { %v3469_v19 = vsel %vm11889_vm9, %v3465_v18, %v3467_v58  ;;  %v3463_v20 = vpop.permute.xlu0 %3462  ;;  %2421 = vrot.lane.b32.xlu2 %v10567_v12, %s9401_s7 }
 0x2bf   : > { %v3468_v22 = vsel %vm11889_vm9, %v3463_v20, %v3465_v18  ;;  %8307 = vmatpush.msk.msrb.mxu3 %vm623_vm2, %v3469_v19  ;;  %2425 = vrot.lane.b32.xlu0 %v10567_v12, %s9415_s20  ;;  %v4356_v54 = vld.sshfl [vmem:[#allocation1] sm:$0xff pattern:$0x73625140]  ;;  %v4358_v55 = vld.sshfl [vmem:[#allocation1 + $0x10] sm:$0xff pattern:$0x73625140] }
 0x2c0   : > { %8305 = vmatpush.msk.msrb.mxu2 %vm623_vm2, %v3468_v22  ;;  %8308 = vmatmul.msk.f32.vlgmr.msrb.gmra.mxu3 %vm619_vm5, %v8304_v21  ;;  %v4357_v58 = vld.sshfl [vmem:[#allocation1 + $0x8] sm:$0xff pattern:$0x73625140]  ;;  %v8339_v18 = vld [vmem:[%s11971_s1 + $0x5c] sm:$0xf]  ;;  %s9423_s20 = smov 80  }
 0x2c1   : > { %8306 = vmatmul.msk.f32.vlgmr.msrb.gmra.mxu2 %vm619_vm5, %v8304_v21  ;;  %v3659_v23 = vpop.permute.xlu2 %3658  ;;  %4419 = vst [vmem:[#allocation1] ss:$4 sm:$0xff] %v4416_v59  ;;  %v4608_v19 = vld [vmem:[%s9881_s21] sm:$0x3f]  ;;  %v4864_v59 = vld [vmem:[%s9888_s13] sm:$0x3f] }
 0x2c5   : > { %2417 = vrot.lane.b32.xlu1 %v10567_v12, %s9400_s14 }
 0x2c6   : > { %v3529_v26 = vpop.permute.xlu1 %3528  ;;  %4242 = vrot.lane.b32.xlu2 %v4237_v24, %s9399_s8 }
 0x2c7   : > { %v3533_v27 = vsel %vm11888_vm10, %v3529_v26, %v3531_v8  ;;  %v3527_v28 = vpop.permute.xlu0 %3526  ;;  %4162 = vperm.xlu0 %8952, %v4159_v25   ;;  %v8334_v8 = vld [vmem:[%s11971_s1 + $0x58] sm:$0xf] }
 0x2c8   : > { %v3532_v30 = vsel %vm11888_vm10, %v3527_v28, %v3529_v26  ;;  %8312 = vmatpush.msk.msra.mxu1 %vm623_vm2, %v3533_v27  ;;  %v4420_v1 = vld.sshfl [vmem:[#allocation1] sm:$0xff pattern:$0x73625140]  ;;  %v4422_v2 = vld.sshfl [vmem:[#allocation1 + $0x10] sm:$0xff pattern:$0x73625140] }
 0x2c9   : > { %8310 = vmatpush.msk.msra.mxu0 %vm623_vm2, %v3532_v30  ;;  %8313 = vmatmul.msk.f32.vlgmr.msra.gmra.mxu1 %vm619_vm5, %v8309_v29  ;;  %v4421_v5 = vld.sshfl [vmem:[#allocation1 + $0x8] sm:$0xff pattern:$0x73625140]  ;;  %v8344_v28 = vld [vmem:[%s11971_s1 + $0x60] sm:$0xf] }
 0x2ca   : > { %8311 = vmatmul.msk.f32.vlgmr.msra.gmra.mxu0 %vm619_vm5, %v8309_v29  ;;  %v3723_v31 = vpop.permute.xlu2 %3722  ;;  %4483 = vst [vmem:[#allocation1] ss:$4 sm:$0xff] %v4480_v63  ;;  %v4672_v29 = vld [vmem:[%s9881_s21] sm:$0x3f] }
 0x2cd   : > { %2429 = vrot.lane.b32.xlu1 %v10567_v12, %s9416_s11  ;;  %s9421_s11 = smov 86  }
 0x2ce   : > { %2433 = vrot.lane.b32.xlu2 %v10567_v12, %s9417_s25  ;;  %s9422_s25 = smov 88  }
 0x2cf   : > { %v3593_v34 = vpop.permute.xlu1 %3592  ;;  %4238 = vrot.lane.b32.xlu0 %v4235_v32, %s9399_s8 }
 0x2d0   : > { %v3597_v35 = vsel %vm678_vm1, %v3593_v34, %v3595_v10  ;;  %v3591_v36 = vpop.permute.xlu0 %3590 }
 0x2d1   : > { %v3596_v38 = vsel %vm678_vm1, %v3591_v36, %v3593_v34  ;;  %8317 = vmatpush.msk.msra.mxu3 %vm623_vm2, %v3597_v35  ;;  %v4484_v12 = vld.sshfl [vmem:[#allocation1] sm:$0xff pattern:$0x73625140]  ;;  %v4486_v13 = vld.sshfl [vmem:[#allocation1 + $0x10] sm:$0xff pattern:$0x73625140] }
 0x2d2   : > { %8315 = vmatpush.msk.msra.mxu2 %vm623_vm2, %v3596_v38  ;;  %8318 = vmatmul.msk.f32.vlgmr.msra.gmra.mxu3 %vm619_vm5, %v8314_v37  ;;  %v4485_v16 = vld.sshfl [vmem:[#allocation1 + $0x8] sm:$0xff pattern:$0x73625140]  ;;  %v8349_v38 = vld [vmem:[%s11971_s1 + $0x64] sm:$0xf] }
 0x2d3   : > { %8316 = vmatmul.msk.f32.vlgmr.msra.gmra.mxu2 %vm619_vm5, %v8314_v37  ;;  %v3787_v39 = vpop.permute.xlu2 %3786  ;;  %4547 = vst [vmem:[#allocation1] ss:$4 sm:$0xff] %v4544_v9  ;;  %v10750_v9 = vpop.f32.mrf.mxu3 }
 0x2d5   : > { %4240 = vrot.lane.b32.xlu1 %v4236_v33, %s9399_s8 }
 0x2d6   : > { %2405 = vrot.lane.b32.xlu2 %v2404_v41, %s9418_s3  ;;  %s9419_s3 = smov 94  }
 0x2d7   : > { %4297 = vrot.lane.b32.xlu0 %v4294_v42, %s9400_s14 }
 0x2d8   : > { %v3657_v45 = vpop.permute.xlu1 %3656 }
 0x2d9   : > { %v3661_v46 = vsel %vm616_vm0, %v3657_v45, %v3659_v23  ;;  %v3655_v47 = vpop.permute.xlu0 %3654 }
 0x2da   : > { %v3660_v50 = vsel %vm616_vm0, %v3655_v47, %v3657_v45  ;;  %8322 = vmatpush.msk.msrb.mxu1 %vm623_vm2, %v3661_v46  ;;  %v4548_v21 = vld.sshfl [vmem:[#allocation1] sm:$0xff pattern:$0x73625140]  ;;  %v4550_v22 = vld.sshfl [vmem:[#allocation1 + $0x10] sm:$0xff pattern:$0x73625140] }
 0x2db   : > { %8320 = vmatpush.msk.msrb.mxu0 %vm623_vm2, %v3660_v50  ;;  %8323 = vmatmul.msk.f32.vlgmr.msrb.gmra.mxu1 %vm619_vm5, %v8319_v48  ;;  %v4549_v25 = vld.sshfl [vmem:[#allocation1 + $0x8] sm:$0xff pattern:$0x73625140] }
 0x2dc   : > { %8321 = vmatmul.msk.f32.vlgmr.msrb.gmra.mxu0 %vm619_vm5, %v8319_v48  ;;  %v3851_v51 = vpop.permute.xlu2 %3850  ;;  %4611 = vst [vmem:[#allocation1] ss:$4 sm:$0xff] %v4608_v19  ;;  %v8354_v48 = vld [vmem:[%s11971_s1 + $0x68] sm:$0xf] }
 0x2dd   : > { %4299 = vrot.lane.b32.xlu1 %v4295_v44, %s9400_s14 }
 0x2de   : > { %4301 = vrot.lane.b32.xlu2 %v4296_v43, %s9400_s14 }
 0x2df   : > { %4359 = vrot.lane.b32.xlu0 %v4356_v54, %s9401_s7 }
 0x2e1   : > { %v3721_v53 = vpop.permute.xlu1 %3720 }
 0x2e2   : > { %v3725_v56 = vsel %vm742_vm3, %v3721_v53, %v3723_v31  ;;  %v3719_v57 = vpop.permute.xlu0 %3718 }
 0x2e3   : > { %v3724_v60 = vsel %vm742_vm3, %v3719_v57, %v3721_v53  ;;  %8327 = vmatpush.msk.msrb.mxu3 %vm623_vm2, %v3725_v56  ;;  %v4612_v31 = vld.sshfl [vmem:[#allocation1] sm:$0xff pattern:$0x73625140]  ;;  %v4614_v32 = vld.sshfl [vmem:[#allocation1 + $0x10] sm:$0xff pattern:$0x73625140] }
 0x2e4   : > { %8325 = vmatpush.msk.msrb.mxu2 %vm623_vm2, %v3724_v60  ;;  %8328 = vmatmul.msk.f32.vlgmr.msrb.gmra.mxu3 %vm619_vm5, %v8324_v52  ;;  %v4613_v35 = vld.sshfl [vmem:[#allocation1 + $0x8] sm:$0xff pattern:$0x73625140] }
 0x2e5   : > { %8326 = vmatmul.msk.f32.vlgmr.msrb.gmra.mxu2 %vm619_vm5, %v8324_v52  ;;  %v3915_v61 = vpop.permute.xlu2 %3914  ;;  %4361 = vrot.lane.b32.xlu1 %v4357_v58, %s9401_s7  ;;  %4675 = vst [vmem:[#allocation1] ss:$4 sm:$0xff] %v4672_v29 }
 0x2e6   : > { %4363 = vrot.lane.b32.xlu2 %v4358_v55, %s9401_s7 }
 0x2e7   : > { %4423 = vrot.lane.b32.xlu0 %v4420_v1, %s9402_s6  ;;  %v10739_v1 = vpop.f32.mrf.mxu2 }
 0x2ea   : > { %v3785_v0 = vpop.permute.xlu1 %3784 }
 0x2eb   : > { %v3789_v3 = vsel %vm808_vm4, %v3785_v0, %v3787_v39  ;;  %v3783_v4 = vpop.permute.xlu0 %3782  ;;  %v4736_v39 = vld [vmem:[%s9881_s21] sm:$0x3f]  ;;  %s9427_s21 = smov 70  }
 0x2ec   : > { %v3788_v6 = vsel %vm808_vm4, %v3783_v4, %v3785_v0  ;;  %8332 = vmatpush.msk.msra.mxu1 %vm623_vm2, %v3789_v3  ;;  %v4676_v41 = vld.sshfl [vmem:[#allocation1] sm:$0xff pattern:$0x73625140]  ;;  %v4678_v42 = vld.sshfl [vmem:[#allocation1 + $0x10] sm:$0xff pattern:$0x73625140] }
 0x2ed   : > { %8330 = vmatpush.msk.msra.mxu0 %vm623_vm2, %v3788_v6  ;;  %8333 = vmatmul.msk.f32.vlgmr.msra.gmra.mxu1 %vm619_vm5, %v8329_v62  ;;  %v4677_v45 = vld.sshfl [vmem:[#allocation1 + $0x8] sm:$0xff pattern:$0x73625140] }
 0x2ee   : > { %8331 = vmatmul.msk.f32.vlgmr.msra.gmra.mxu0 %vm619_vm5, %v8329_v62  ;;  %v3979_v7 = vpop.permute.xlu2 %3978  ;;  %4427 = vrot.lane.b32.xlu2 %v4422_v2, %s9402_s6  ;;  %4739 = vst [vmem:[#allocation1] ss:$4 sm:$0xff] %v4736_v39  ;;  %v10745_v2 = vpop.f32.mrf.mxu0 }
 0x2ef   : > { %4425 = vrot.lane.b32.xlu1 %v4421_v5, %s9402_s6  ;;  %4487 = vrot.lane.b32.xlu0 %v4484_v12, %s9403_s9  ;;  %v4928_v5 = vld [vmem:[%s9888_s13] sm:$0x3f]  ;;  %v2598_v12 = vpop.f32.mrf.mxu2  ;;  %v2537_v39 = vadd.f32 %v10745_v2, %v10739_v1 }
 0x2f3   : > { %v3849_v11 = vpop.permute.xlu1 %3848 }
 0x2f4   : > { %v3853_v14 = vsel %vm874_vm6, %v3849_v11, %v3851_v51  ;;  %v3847_v15 = vpop.permute.xlu0 %3846 }
 0x2f5   : > { %8337 = vmatpush.msk.msra.mxu3 %vm623_vm2, %v3853_v14  ;;  %v3852_v10 = vsel %vm874_vm6, %v3847_v15, %v3849_v11  ;;  %v4740_v52 = vld.sshfl [vmem:[#allocation1] sm:$0xff pattern:$0x73625140]  ;;  %v4742_v53 = vld.sshfl [vmem:[#allocation1 + $0x10] sm:$0xff pattern:$0x73625140]  ;;  %v10761_v14 = vpop.f32.mrf.mxu1 }
 0x2f6   : > { %8338 = vmatmul.msk.f32.vlgmr.msra.gmra.mxu3 %vm619_vm5, %v8334_v8  ;;  %8335 = vmatpush.msk.msra.mxu2 %vm623_vm2, %v3852_v10  ;;  %v4741_v56 = vld.sshfl [vmem:[#allocation1 + $0x8] sm:$0xff pattern:$0x73625140] }
 0x2f7   : > { %8336 = vmatmul.msk.f32.vlgmr.msra.gmra.mxu2 %vm619_vm5, %v8334_v8  ;;  %v4043_v17 = vpop.permute.xlu2 %4042  ;;  %4491 = vrot.lane.b32.xlu2 %v4486_v13, %s9403_s9  ;;  %4803 = vst [vmem:[#allocation1] ss:$4 sm:$0xff] %v4800_v49 }
 0x2f8   : > { %4489 = vrot.lane.b32.xlu1 %v4485_v16, %s9403_s9  ;;  %4551 = vrot.lane.b32.xlu0 %v4548_v21, %s9404_s26  ;;  %v2662_v16 = vpop.f32.mrf.mxu0 }
 0x2fc   : > { %v3913_v20 = vpop.permute.xlu1 %3912 }
 0x2fd   : > { %v3917_v23 = vsel %vm11891_vm7, %v3913_v20, %v3915_v61  ;;  %v3911_v24 = vpop.permute.xlu0 %3910 }
 0x2fe   : > { %8342 = vmatpush.msk.msrb.mxu1 %vm623_vm2, %v3917_v23  ;;  %v3916_v26 = vsel %vm11891_vm7, %v3911_v24, %v3913_v20  ;;  %v4804_v60 = vld.sshfl [vmem:[#allocation1] sm:$0xff pattern:$0x73625140]  ;;  %v4806_v61 = vld.sshfl [vmem:[#allocation1 + $0x10] sm:$0xff pattern:$0x73625140]  ;;  %v2726_v24 = vpop.f32.mrf.mxu2 }
 0x2ff   : > { %8343 = vmatmul.msk.f32.vlgmr.msrb.gmra.mxu1 %vm619_vm5, %v8339_v18  ;;  %8340 = vmatpush.msk.msrb.mxu0 %vm623_vm2, %v3916_v26  ;;  %v4805_v63 = vld.sshfl [vmem:[#allocation1 + $0x8] sm:$0xff pattern:$0x73625140]  ;;  %vm2411_vm7 = vcmask 1044352  }
 0x300   : > { %8341 = vmatmul.msk.f32.vlgmr.msrb.gmra.mxu0 %vm619_vm5, %v8339_v18  ;;  %v4107_v27 = vpop.permute.xlu2 %4106  ;;  %4555 = vrot.lane.b32.xlu2 %v4550_v22, %s9404_s26  ;;  %4867 = vst [vmem:[#allocation1] ss:$4 sm:$0xff] %v4864_v59  ;;  %v4992_v18 = vld [vmem:[%s9888_s13] sm:$0x3f]  ;;  %v10766_v22 = vpop.f32.mrf.mxu3 }
 0x301   : > { %4553 = vrot.lane.b32.xlu1 %v4549_v25, %s9404_s26  ;;  %4615 = vrot.lane.b32.xlu0 %v4612_v31, %s9405_s30  ;;  %v2790_v29 = vpop.f32.mrf.mxu0 }
 0x305   : > { %v3977_v30 = vpop.permute.xlu1 %3976 }
 0x306   : > { %v3981_v33 = vsel %vm11890_vm8, %v3977_v30, %v3979_v7  ;;  %v3975_v34 = vpop.permute.xlu0 %3974 }
 0x307   : > { %8347 = vmatpush.msk.msrb.mxu3 %vm623_vm2, %v3981_v33  ;;  %v3980_v36 = vsel %vm11890_vm8, %v3975_v34, %v3977_v30  ;;  %v4868_v6 = vld.sshfl [vmem:[#allocation1] sm:$0xff pattern:$0x73625140]  ;;  %v4870_v7 = vld.sshfl [vmem:[#allocation1 + $0x10] sm:$0xff pattern:$0x73625140] }
 0x308   : > { %8348 = vmatmul.msk.f32.vlgmr.msrb.gmra.mxu3 %vm619_vm5, %v8344_v28  ;;  %8345 = vmatpush.msk.msrb.mxu2 %vm623_vm2, %v3980_v36  ;;  %v2377_v37 = vpop.permute.xlu2 %2376  ;;  %v4869_v11 = vld.sshfl [vmem:[#allocation1 + $0x8] sm:$0xff pattern:$0x73625140]  ;;  %vm2408_vm8 = vcmask 932864   ;;  %v10787_v34 = vpop.f32.mrf.mxu3 }
 0x309   : > { %8346 = vmatmul.msk.f32.vlgmr.msrb.gmra.mxu2 %vm619_vm5, %v8344_v28  ;;  %4619 = vrot.lane.b32.xlu2 %v4614_v32, %s9405_s30  ;;  %4931 = vst [vmem:[#allocation1] ss:$4 sm:$0xff] %v4928_v5  ;;  %v10780_v28 = vpop.f32.mrf.mxu1  ;;  %v5056_v30 = vld [vmem:[%s9888_s13] sm:$0x3f]  ;;  %v2854_v36 = vpop.f32.mrf.mxu2 }
 0x30a   : > { %4617 = vrot.lane.b32.xlu1 %v4613_v35, %s9405_s30  ;;  %4679 = vrot.lane.b32.xlu0 %v4676_v41, %s9406_s27  ;;  %v5120_v41 = vld [vmem:[%s9888_s13] sm:$0x3f] }
 0x30e   : > { %v4041_v40 = vpop.permute.xlu1 %4040 }
 0x30f   : > { %v4045_v43 = vsel %vm11889_vm9, %v4041_v40, %v4043_v17  ;;  %v4039_v44 = vpop.permute.xlu0 %4038 }
 0x310   : > { %8352 = vmatpush.msk.msra.mxu1 %vm623_vm2, %v4045_v43  ;;  %v4044_v46 = vsel %vm11889_vm9, %v4039_v44, %v4041_v40  ;;  %v2387_v47 = vpop.permute.xlu2 %2386  ;;  %vm2399_vm9 = vcmask 913152   ;;  %v4932_v19 = vld.sshfl [vmem:[#allocation1] sm:$0xff pattern:$0x73625140] }
 0x311   : > { %8353 = vmatmul.msk.f32.vlgmr.msra.gmra.mxu1 %vm619_vm5, %v8349_v38  ;;  %8350 = vmatpush.msk.msra.mxu0 %vm623_vm2, %v4044_v46  ;;  %v4934_v20 = vld.sshfl [vmem:[#allocation1 + $0x10] sm:$0xff pattern:$0x73625140]  ;;  %v4933_v23 = vld.sshfl [vmem:[#allocation1 + $0x8] sm:$0xff pattern:$0x73625140]  ;;  %v10796_v40 = vpop.f32.mrf.mxu1 }
 0x312   : > { %8351 = vmatmul.msk.f32.vlgmr.msra.gmra.mxu0 %vm619_vm5, %v8349_v38  ;;  %4683 = vrot.lane.b32.xlu2 %v4678_v42, %s9406_s27  ;;  %4995 = vst [vmem:[#allocation1] ss:$4 sm:$0xff] %v4992_v18  ;;  %v2918_v42 = vpop.f32.mrf.mxu0 }
 0x313   : > { %4681 = vrot.lane.b32.xlu1 %v4677_v45, %s9406_s27  ;;  %4743 = vrot.lane.b32.xlu0 %v4740_v52, %s9407_s16  ;;  %v2982_v52 = vpop.f32.mrf.mxu2 }
 0x317   : > { %v4105_v50 = vpop.permute.xlu1 %4104  ;;  %v4103_v51 = vpop.permute.xlu0 %4102 }
 0x318   : > { %v4109_v54 = vsel %vm11888_vm10, %v4105_v50, %v4107_v27  ;;  %v4108_v55 = vsel %vm11888_vm10, %v4103_v51, %v4105_v50  ;;  %v10725_v57 = vpop.permute.xlu2 %2421  ;;  %vm11892_vm10 = vcmask 781952  }
 0x319   : > { %8357 = vmatpush.msk.msra.mxu3 %vm623_vm2, %v4109_v54  ;;  %8355 = vmatpush.msk.msra.mxu2 %vm623_vm2, %v4108_v55  ;;  %v4996_v31 = vld.sshfl [vmem:[#allocation1] sm:$0xff pattern:$0x73625140]  ;;  %v4998_v32 = vld.sshfl [vmem:[#allocation1 + $0x10] sm:$0xff pattern:$0x73625140]  ;;  %v2557_v55 = vadd.f32 %v10761_v14, %v10750_v9 }
 0x31a   : > { %8358 = vmatmul.msk.f32.vlgmr.msra.gmra.mxu3 %vm619_vm5, %v8354_v48  ;;  %8356 = vmatmul.msk.f32.vlgmr.msra.gmra.mxu2 %vm619_vm5, %v8354_v48  ;;  %v4997_v33 = vld.sshfl [vmem:[#allocation1 + $0x8] sm:$0xff pattern:$0x73625140]  ;;  %v10802_v48 = vpop.f32.mrf.mxu3 }
 0x31b   : > { %4747 = vrot.lane.b32.xlu2 %v4742_v53, %s9407_s16  ;;  %4745 = vrot.lane.b32.xlu1 %v4741_v56, %s9407_s16  ;;  %5059 = vst [vmem:[#allocation1] ss:$4 sm:$0xff] %v5056_v30  ;;  %v5184_v56 = vld [vmem:[%s9888_s13] sm:$0x3f]  ;;  %v2622_v2 = vadd.f32 %v10766_v22, %v2557_v55 }
 0x31c   : > { %4807 = vrot.lane.b32.xlu0 %v4804_v60, %s9400_s14  ;;  %v10816_v60 = vpop.f32.mrf.mxu0  ;;  %v5248_v9 = vld [vmem:[%s9888_s13] sm:$0x3f] }
 0x31f   : > { %v2372_v58 = vpop.permute.xlu1 %2371 }
 0x320   : > { %v10734_v62 = vpop.permute.xlu2 %4242  ;;  %2375 = vst.msk [vmem:[%s10553_s17] sm:$0xf] %vm2374_vm13, %v2372_v58 }
 0x321   : > { %v2392_v0 = vpop.permute.xlu0 %2391  ;;  %2380 = vst.msk [vmem:[%s10553_s17] sm:$0xf] %vm2379_vm14, %v2377_v37 }
 0x322   : > { %v5060_v43 = vld.sshfl [vmem:[#allocation1] sm:$0xff pattern:$0x73625140]  ;;  %v5062_v44 = vld.sshfl [vmem:[#allocation1 + $0x10] sm:$0xff pattern:$0x73625140] }
 0x323   : > { %4811 = vrot.lane.b32.xlu2 %v4806_v61, %s9400_s14  ;;  %4809 = vrot.lane.b32.xlu1 %v4805_v63, %s9400_s14  ;;  %v5061_v45 = vld.sshfl [vmem:[#allocation1 + $0x8] sm:$0xff pattern:$0x73625140] }
 0x324   : > { %4871 = vrot.lane.b32.xlu0 %v4868_v6, %s9399_s8  ;;  %5123 = vst [vmem:[#allocation1] ss:$4 sm:$0xff] %v5120_v41  ;;  %v3110_v6 = vpop.f32.mrf.mxu2 }
 0x327   : > { %v2382_v3 = vpop.permute.xlu1 %2381 }
 0x328   : > { %2385 = vst.msk [vmem:[%s10553_s17] sm:$0xf] %vm2384_vm15, %v2382_v3  ;;  %v2434_v4 = vpop.permute.xlu2 %2433 }
 0x329   : > { %v2414_v8 = vpop.permute.xlu0 %2413  ;;  %2390 = vst.msk [vmem:[%s10553_s17] sm:$0xf] %vm11893_vm12, %v2387_v47  ;;  %v2621_v47 = vadd.f32 %v2598_v12, %v2537_v39 }
 0x32a   : > { %2416 = vst.msk [vmem:[%s10553_s17 + $0x4] sm:$0xf] %vm2368_vm11, %v2414_v8  ;;  %v2686_v8 = vadd.f32 %v10780_v28, %v2622_v2  ;;  %v5312_v28 = vld [vmem:[%s9888_s13] sm:$0x3f] }
 0x32b   : > { %4875 = vrot.lane.b32.xlu2 %v4870_v7, %s9399_s8  ;;  %4873 = vrot.lane.b32.xlu1 %v4869_v11, %s9399_s8  ;;  %2395 = vst.msk [vmem:[%s10553_s17] sm:$0xf] %vm11892_vm10, %v2392_v0  ;;  %v2685_v54 = vadd.f32 %v2662_v16, %v2621_v47  ;;  %v5124_v58 = vld.sshfl [vmem:[#allocation1] sm:$0xff pattern:$0x73625140] }
 0x32c   : > { %4935 = vrot.lane.b32.xlu0 %v4932_v19, %s9401_s7  ;;  %v5126_v59 = vld.sshfl [vmem:[#allocation1 + $0x10] sm:$0xff pattern:$0x73625140]  ;;  %v5125_v61 = vld.sshfl [vmem:[#allocation1 + $0x8] sm:$0xff pattern:$0x73625140]  ;;  %v2750_v18 = vadd.f32 %v10787_v34, %v2686_v8  ;;  %v3174_v19 = vpop.f32.mrf.mxu0 }
 0x32d   : > { %v2749_v63 = vadd.f32 %v2726_v24, %v2685_v54  ;;  %5187 = vst [vmem:[#allocation1] ss:$4 sm:$0xff] %v5184_v56 }
 0x32f   : > { %v2397_v13 = vpop.permute.xlu1 %2396  ;;  %v2813_v5 = vadd.f32 %v2790_v29, %v2749_v63  ;;  %v8368_v63 = vld [vmem:[%s11971_s1 + $0x8] sm:$0xf] }
 0x330   : > { %2400 = vst.msk [vmem:[%s10553_s17] sm:$0xf] %vm2399_vm9, %v2397_v13  ;;  %v2406_v15 = vpop.permute.xlu2 %2405 }
 0x331   : > { %v2426_v10 = vpop.permute.xlu0 %2425  ;;  %v2407_v17 = vrot.slane %v2406_v15, 4  ;;  %v2877_v14 = vadd.f32 %v2854_v36, %v2813_v5 }
 0x333   : > { %v2409_v21 = vsel %vm2408_vm8, %v2406_v15, %v2407_v17  ;;  %4939 = vrot.lane.b32.xlu2 %v4934_v20, %s9401_s7  ;;  %4937 = vrot.lane.b32.xlu1 %v4933_v23, %s9401_s7  ;;  %v2814_v23 = vadd.f32 %v10796_v40, %v2750_v18  ;;  %vm11972_vm8 = vcmask 736256   ;;  %v5504_v18 = vld [vmem:[%s9895_s2] sm:$0x3f] }
 0x334   : > { %2412 = vst.msk [vmem:[%s10553_s17] sm:$0xf] %vm2411_vm7, %v2409_v21  ;;  %4999 = vrot.lane.b32.xlu0 %v4996_v31, %s9402_s6  ;;  %v5188_v11 = vld.sshfl [vmem:[#allocation1] sm:$0xff pattern:$0x73625140]  ;;  %v2941_v21 = vadd.f32 %v2918_v42, %v2877_v14 }
 0x335   : > { %v5190_v12 = vld.sshfl [vmem:[#allocation1 + $0x10] sm:$0xff pattern:$0x73625140]  ;;  %v5189_v16 = vld.sshfl [vmem:[#allocation1 + $0x8] sm:$0xff pattern:$0x73625140] }
 0x336   : > { %5251 = vst [vmem:[#allocation1] ss:$4 sm:$0xff] %v5248_v9  ;;  %v3005_v29 = vadd.f32 %v2982_v52, %v2941_v21 }
 0x337   : > { %v2418_v25 = vpop.permute.xlu1 %2417 }
 0x338   : > { %2420 = vst.msk [vmem:[%s10553_s17 + $0x4] sm:$0xf] %vm2374_vm13, %v2418_v25  ;;  %v4302_v26 = vpop.permute.xlu2 %4301  ;;  %v3238_v25 = vpop.f32.mrf.mxu2  ;;  %v3069_v40 = vadd.f32 %v10816_v60, %v3005_v29  ;;  %v4231_v60 = vld [vmem:[%s11971_s1] sm:$0xf] }
 0x339   : > { %2424 = vst.msk [vmem:[%s10553_s17 + $0x4] sm:$0xf] %vm2379_vm14, %v10725_v57  ;;  %v10778_v27 = vpop.permute.xlu0 %4162  ;;  %v10814_v57 = vpop.f32.mrf.mxu1 }
 0x33a   : > { %2428 = vst.msk [vmem:[%s10553_s17 + $0x4] sm:$0xf] %vm2384_vm15, %v2426_v10 }
 0x33b   : > { %5003 = vrot.lane.b32.xlu2 %v4998_v32, %s9402_s6  ;;  %5001 = vrot.lane.b32.xlu1 %v4997_v33, %s9402_s6  ;;  %v2878_v32 = vadd.f32 %v10802_v48, %v2814_v23 }
 0x33c   : > { %5063 = vrot.lane.b32.xlu0 %v5060_v43, %s9403_s9 }
 0x33d   : > { %v5252_v30 = vld.sshfl [vmem:[#allocation1] sm:$0xff pattern:$0x73625140]  ;;  %v5254_v31 = vld.sshfl [vmem:[#allocation1 + $0x10] sm:$0xff pattern:$0x73625140]  ;;  %v2942_v41 = vadd.f32 %v10814_v57, %v2878_v32 }
 0x33e   : > { %v5253_v33 = vld.sshfl [vmem:[#allocation1 + $0x8] sm:$0xff pattern:$0x73625140] }
 0x33f   : > { %v2430_v35 = vpop.permute.xlu1 %2429  ;;  %5315 = vst [vmem:[#allocation1] ss:$4 sm:$0xff] %v5312_v28 }
 0x340   : > { %2432 = vst.msk [vmem:[%s10553_s17 + $0x4] sm:$0xf] %vm11893_vm12, %v2430_v35  ;;  %v4364_v37 = vpop.permute.xlu2 %4363 }
 0x341   : > { %2436 = vst.msk [vmem:[%s10553_s17 + $0x4] sm:$0xf] %vm11892_vm10, %v2434_v4  ;;  %v4239_v38 = vpop.permute.xlu0 %4238  ;;  %v3002_v4 = vpop.f32.mrf.mxu3  ;;  %vm11973_vm10 = vmmov %vm11972_vm8 }
 0x342   : > { %v3066_v15 = vpop.f32.mrf.mxu1  ;;  %v3006_v47 = vadd.f32 %v3002_v4, %v2942_v41 }
 0x343   : > { %5067 = vrot.lane.b32.xlu2 %v5062_v44, %s9403_s9  ;;  %5065 = vrot.lane.b32.xlu1 %v5061_v45, %s9403_s9  ;;  %v3133_v44 = vadd.f32 %v3110_v6, %v3069_v40  ;;  %v3366_v45 = vpop.f32.mrf.mxu2 }
 0x344   : > { %5127 = vrot.lane.b32.xlu0 %v5124_v58, %s9404_s26  ;;  %v3070_v57 = vadd.f32 %v3066_v15, %v3006_v47  ;;  %v8383_v47 = vld [vmem:[%s11971_s1 + $0x14] sm:$0xf] }
 0x345   : > { %v3197_v54 = vadd.f32 %v3174_v19, %v3133_v44 }
 0x346   : > { %v5316_v48 = vld.sshfl [vmem:[#allocation1] sm:$0xff pattern:$0x73625140] }
 0x347   : > { %v4241_v46 = vpop.permute.xlu1 %4240 }
 0x348   : > { %v4244_v49 = vsel %vm616_vm0, %v4239_v38, %v4241_v46  ;;  %v4245_v50 = vsel %vm616_vm0, %v4241_v46, %v10734_v62  ;;  %v10807_v51 = vpop.permute.xlu2 %4427  ;;  %v3302_v38 = vpop.f32.mrf.mxu0  ;;  %v5376_v46 = vld [vmem:[%s9895_s2] sm:$0x3f] }
 0x349   : > { %8360 = vmatpush.msk.msrb.mxu0 %vm623_vm2, %v4244_v49  ;;  %8362 = vmatpush.msk.msrb.mxu1 %vm623_vm2, %v4245_v50  ;;  %v4298_v53 = vpop.permute.xlu0 %4297  ;;  %v3130_v22 = vpop.f32.mrf.mxu3  ;;  %v5318_v49 = vld.sshfl [vmem:[#allocation1 + $0x10] sm:$0xff pattern:$0x73625140]  ;;  %v5317_v50 = vld.sshfl [vmem:[#allocation1 + $0x8] sm:$0xff pattern:$0x73625140] }
 0x34a   : > { %v3194_v35 = vpop.f32.mrf.mxu1  ;;  %5379 = vst [vmem:[#allocation1] ss:$4 sm:$0xff] %v5376_v46 }
 0x34b   : > { %5131 = vrot.lane.b32.xlu2 %v5126_v59, %s9404_s26  ;;  %5129 = vrot.lane.b32.xlu1 %v5125_v61, %s9404_s26  ;;  %v3261_v61 = vadd.f32 %v3238_v25, %v3197_v54  ;;  %v3494_v2 = vpop.f32.mrf.mxu2 }
 0x34c   : > { %5191 = vrot.lane.b32.xlu0 %v5188_v11, %s9405_s30 }
 0x34f   : > { %v4300_v62 = vpop.permute.xlu1 %4299 }
 0x350   : > { %v4303_v0 = vsel %vm678_vm1, %v4298_v53, %v4300_v62  ;;  %v4304_v1 = vsel %vm678_vm1, %v4300_v62, %v4302_v26  ;;  %v8359_v26 = vld [vmem:[%s11971_s1 + $0x4] sm:$0xf]  ;;  %v3430_v58 = vpop.f32.mrf.mxu0 }
 0x351   : > { %v10824_v3 = vpop.permute.xlu2 %4491  ;;  %8364 = vmatpush.msk.msrb.mxu2 %vm623_vm2, %v4303_v0  ;;  %8366 = vmatpush.msk.msrb.mxu3 %vm623_vm2, %v4304_v1  ;;  %v4360_v7 = vpop.permute.xlu0 %4359  ;;  %v3134_v0 = vadd.f32 %v3130_v22, %v3070_v57  ;;  %v5440_v1 = vld [vmem:[%s9895_s2] sm:$0x3f]  ;;  %v5382_v4 = vld.sshfl [vmem:[#allocation1 + $0x10] sm:$0xff pattern:$0x73625140] }
 0x352   : > { %8361 = vmatmul.msk.f32.vlgmr.msrb.gmra.mxu0 %vm619_vm5, %v8359_v26  ;;  %8363 = vmatmul.msk.f32.vlgmr.msrb.gmra.mxu1 %vm619_vm5, %v8359_v26  ;;  %v3258_v42 = vpop.f32.mrf.mxu3  ;;  %v3322_v55 = vpop.f32.mrf.mxu1  ;;  %v5381_v5 = vld.sshfl [vmem:[#allocation1 + $0x8] sm:$0xff pattern:$0x73625140]  ;;  %v8388_v57 = vld [vmem:[%s11971_s1 + $0x18] sm:$0xf] }
 0x353   : > { %5195 = vrot.lane.b32.xlu2 %v5190_v12, %s9405_s30  ;;  %5193 = vrot.lane.b32.xlu1 %v5189_v16, %s9405_s30  ;;  %v3198_v11 = vadd.f32 %v3194_v35, %v3134_v0 }
 0x354   : > { %5255 = vrot.lane.b32.xlu0 %v5252_v30, %s9406_s27  ;;  %8365 = vmatmul.msk.f32.vlgmr.msrb.gmra.mxu2 %vm619_vm5, %v4231_v60  ;;  %v8373_v30 = vld [vmem:[%s11971_s1 + $0xc] sm:$0xf] }
 0x355   : > { %8367 = vmatmul.msk.f32.vlgmr.msrb.gmra.mxu3 %vm619_vm5, %v4231_v60 }
 0x356   : > { %v3622_v23 = vpop.f32.mrf.mxu2 }
 0x357   : > { %v4362_v13 = vpop.permute.xlu1 %4361 }
 0x358   : > { %v4365_v10 = vsel %vm742_vm3, %v4360_v7, %v4362_v13  ;;  %v4366_v17 = vsel %vm742_vm3, %v4362_v13, %v4364_v37  ;;  %v3325_v7 = vadd.f32 %v3302_v38, %v3261_v61  ;;  %v3558_v14 = vpop.f32.mrf.mxu0 }
 0x359   : > { %8369 = vmatpush.msk.msra.mxu0 %vm623_vm2, %v4365_v10  ;;  %8371 = vmatpush.msk.msra.mxu1 %vm623_vm2, %v4366_v17  ;;  %v4424_v24 = vpop.permute.xlu0 %4423  ;;  %v3262_v10 = vadd.f32 %v3258_v42, %v3198_v11  ;;  %v8393_v11 = vld [vmem:[%s11971_s1 + $0x1c] sm:$0xf] }
 0x35a   : > { %v10837_v20 = vpop.permute.xlu2 %4555  ;;  %v3386_v62 = vpop.f32.mrf.mxu3  ;;  %8370 = vmatmul.msk.f32.vlgmr.msra.gmra.mxu0 %vm619_vm5, %v8368_v63  ;;  %8372 = vmatmul.msk.f32.vlgmr.msra.gmra.mxu1 %vm619_vm5, %v8368_v63  ;;  %v3389_v15 = vadd.f32 %v3366_v45, %v3325_v7 }
 0x35b   : > { %5259 = vrot.lane.b32.xlu2 %v5254_v31, %s9406_s27  ;;  %5257 = vrot.lane.b32.xlu1 %v5253_v33, %s9406_s27  ;;  %v3450_v13 = vpop.f32.mrf.mxu1  ;;  %v3326_v25 = vadd.f32 %v3322_v55, %v3262_v10  ;;  %v8378_v33 = vld [vmem:[%s11971_s1 + $0x10] sm:$0xf] }
 0x35c   : > { %5319 = vrot.lane.b32.xlu0 %v5316_v48, %s9407_s16  ;;  %v3453_v22 = vadd.f32 %v3430_v58, %v3389_v15 }
 0x35e   : > { %v3517_v31 = vadd.f32 %v3494_v2, %v3453_v22 }
 0x360   : > { %v3686_v35 = vpop.f32.mrf.mxu0  ;;  %v3581_v38 = vadd.f32 %v3558_v14, %v3517_v31 }
 0x361   : > { %v4426_v34 = vpop.permute.xlu1 %4425  ;;  %v4488_v43 = vpop.permute.xlu0 %4487 }
 0x362   : > { %v4429_v36 = vsel %vm808_vm4, %v4424_v24, %v4426_v34  ;;  %v4430_v37 = vsel %vm808_vm4, %v4426_v34, %v10807_v51  ;;  %v3514_v17 = vpop.f32.mrf.mxu3  ;;  %v3390_v34 = vadd.f32 %v3386_v62, %v3326_v25  ;;  %v3645_v48 = vadd.f32 %v3622_v23, %v3581_v38 }
 0x363   : > { %v10854_v39 = vpop.permute.xlu2 %4619  ;;  %8374 = vmatpush.msk.msra.mxu2 %vm623_vm2, %v4429_v36  ;;  %8376 = vmatpush.msk.msra.mxu3 %vm623_vm2, %v4430_v37  ;;  %v3578_v32 = vpop.f32.mrf.mxu1  ;;  %v5568_v37 = vld [vmem:[%s9895_s2] sm:$0x3f] }
 0x364   : > { %5323 = vrot.lane.b32.xlu2 %v5318_v49, %s9407_s16  ;;  %5321 = vrot.lane.b32.xlu1 %v5317_v50, %s9407_s16 }
 0x365   : > { %8375 = vmatmul.msk.f32.vlgmr.msra.gmra.mxu2 %vm619_vm5, %v8373_v30  ;;  %8377 = vmatmul.msk.f32.vlgmr.msra.gmra.mxu3 %vm619_vm5, %v8373_v30 }
 0x368   : > { %v3750_v40 = vpop.f32.mrf.mxu2 }
 0x36a   : > { %v4490_v51 = vpop.permute.xlu1 %4489  ;;  %v4552_v59 = vpop.permute.xlu0 %4551 }
 0x36b   : > { %v4493_v52 = vsel %vm874_vm6, %v4488_v43, %v4490_v51  ;;  %v4494_v53 = vsel %vm874_vm6, %v4490_v51, %v10824_v3  ;;  %v5380_v3 = vld.sshfl [vmem:[#allocation1] sm:$0xff pattern:$0x73625140]  ;;  %v3454_v43 = vadd.f32 %v3450_v13, %v3390_v34  ;;  %v3814_v51 = vpop.f32.mrf.mxu0  ;;  %v3706_v54 = vpop.f32.mrf.mxu1 }
 0x36c   : > { %v10867_v56 = vpop.permute.xlu2 %4683  ;;  %8379 = vmatpush.msk.msrb.mxu0 %vm623_vm2, %v4493_v52  ;;  %8381 = vmatpush.msk.msrb.mxu1 %vm623_vm2, %v4494_v53  ;;  %5443 = vst [vmem:[#allocation1] ss:$4 sm:$0xff] %v5440_v1  ;;  %v3709_v53 = vadd.f32 %v3686_v35, %v3645_v48 }
 0x36d   : > { %5383 = vrot.lane.b32.xlu0 %v5380_v3, %s9400_s14  ;;  %5387 = vrot.lane.b32.xlu2 %v5382_v4, %s9400_s14  ;;  %v3518_v52 = vadd.f32 %v3514_v17, %v3454_v43 }
 0x36e   : > { %5385 = vrot.lane.b32.xlu1 %v5381_v5, %s9400_s14  ;;  %8380 = vmatmul.msk.f32.vlgmr.msrb.gmra.mxu0 %vm619_vm5, %v8378_v33  ;;  %v3773_v58 = vadd.f32 %v3750_v40, %v3709_v53 }
 0x36f   : > { %8382 = vmatmul.msk.f32.vlgmr.msrb.gmra.mxu1 %vm619_vm5, %v8378_v33  ;;  %v3582_v63 = vadd.f32 %v3578_v32, %v3518_v52 }
 0x370   : > { %v3837_v5 = vadd.f32 %v3814_v51, %v3773_v58  ;;  %v8408_v58 = vld [vmem:[%s11971_s1 + $0x28] sm:$0xf] }
 0x373   : > { %v4554_v6 = vpop.permute.xlu1 %4553  ;;  %v4616_v16 = vpop.permute.xlu0 %4615  ;;  %v5444_v19 = vld.sshfl [vmem:[#allocation1] sm:$0xff pattern:$0x73625140]  ;;  %v5446_v21 = vld.sshfl [vmem:[#allocation1 + $0x10] sm:$0xff pattern:$0x73625140] }
 0x374   : > { %v4557_v8 = vsel %vm11972_vm8, %v4552_v59, %v4554_v6  ;;  %v4558_v9 = vsel %vm11973_vm10, %v4554_v6, %v10837_v20  ;;  %v5445_v20 = vld.sshfl [vmem:[#allocation1 + $0x8] sm:$0xff pattern:$0x73625140]  ;;  %vm11974_vm10 = vcmask 605184   ;;  %v5632_v59 = vld [vmem:[%s9895_s2] sm:$0x3f] }
 0x375   : > { %v10888_v12 = vpop.permute.xlu2 %4747  ;;  %8384 = vmatpush.msk.msrb.mxu2 %vm623_vm2, %v4557_v8  ;;  %8386 = vmatpush.msk.msrb.mxu3 %vm623_vm2, %v4558_v9  ;;  %5507 = vst [vmem:[#allocation1] ss:$4 sm:$0xff] %v5504_v18  ;;  %vm11975_vm8 = vmmov %vm11974_vm10 }
 0x376   : > { %5447 = vrot.lane.b32.xlu0 %v5444_v19, %s9399_s8  ;;  %5451 = vrot.lane.b32.xlu2 %v5446_v21, %s9399_s8 }
 0x377   : > { %5449 = vrot.lane.b32.xlu1 %v5445_v20, %s9399_s8  ;;  %8385 = vmatmul.msk.f32.vlgmr.msrb.gmra.mxu2 %vm619_vm5, %v8383_v47 }
 0x378   : > { %8387 = vmatmul.msk.f32.vlgmr.msrb.gmra.mxu3 %vm619_vm5, %v8383_v47  ;;  %v5760_v47 = vld [vmem:[%s9895_s2] sm:$0x3f] }
 0x37c   : > { %v4618_v24 = vpop.permute.xlu1 %4617  ;;  %v4680_v36 = vpop.permute.xlu0 %4679  ;;  %v5508_v41 = vld.sshfl [vmem:[#allocation1] sm:$0xff pattern:$0x73625140]  ;;  %v5510_v42 = vld.sshfl [vmem:[#allocation1 + $0x10] sm:$0xff pattern:$0x73625140] }
 0x37d   : > { %v4621_v26 = vsel %vm11974_vm10, %v4616_v16, %v4618_v24  ;;  %v4622_v28 = vsel %vm11975_vm8, %v4618_v24, %v10854_v39  ;;  %v10899_v29 = vpop.permute.xlu2 %4811  ;;  %v3642_v39 = vpop.f32.mrf.mxu3  ;;  %v5509_v44 = vld.sshfl [vmem:[#allocation1 + $0x8] sm:$0xff pattern:$0x73625140]  ;;  %vm11976_vm10 = vcmask 596992  }
 0x37e   : > { %8389 = vmatpush.msk.msra.mxu0 %vm623_vm2, %v4621_v26  ;;  %8391 = vmatpush.msk.msra.mxu1 %vm623_vm2, %v4622_v28  ;;  %5571 = vst [vmem:[#allocation1] ss:$4 sm:$0xff] %v5568_v37  ;;  %vm11977_vm8 = vmmov %vm11976_vm10  ;;  %v3942_v6 = vpop.f32.mrf.mxu0  ;;  %v3646_v7 = vadd.f32 %v3642_v39, %v3582_v63  ;;  %v5696_v26 = vld [vmem:[%s9895_s2] sm:$0x3f] }
 0x37f   : > { %5511 = vrot.lane.b32.xlu0 %v5508_v41, %s9401_s7  ;;  %5515 = vrot.lane.b32.xlu2 %v5510_v42, %s9401_s7  ;;  %v8398_v28 = vld [vmem:[%s11971_s1 + $0x20] sm:$0xf] }
 0x380   : > { %5513 = vrot.lane.b32.xlu1 %v5509_v44, %s9401_s7  ;;  %8390 = vmatmul.msk.f32.vlgmr.msra.gmra.mxu0 %vm619_vm5, %v8388_v57  ;;  %v3710_v15 = vadd.f32 %v3706_v54, %v3646_v7 }
 0x381   : > { %8392 = vmatmul.msk.f32.vlgmr.msra.gmra.mxu1 %vm619_vm5, %v8388_v57 }
 0x385   : > { %v4682_v45 = vpop.permute.xlu1 %4681  ;;  %v10916_v46 = vpop.permute.xlu2 %4875  ;;  %v5572_v60 = vld.sshfl [vmem:[#allocation1] sm:$0xff pattern:$0x73625140]  ;;  %v5574_v61 = vld.sshfl [vmem:[#allocation1 + $0x10] sm:$0xff pattern:$0x73625140] }
 0x386   : > { %v4685_v49 = vsel %vm11976_vm10, %v4680_v36, %v4682_v45  ;;  %v4686_v50 = vsel %vm11977_vm8, %v4682_v45, %v10867_v56  ;;  %v4744_v55 = vpop.permute.xlu0 %4743  ;;  %v3878_v56 = vpop.f32.mrf.mxu2  ;;  %v5573_v0 = vld.sshfl [vmem:[#allocation1 + $0x8] sm:$0xff pattern:$0x73625140]  ;;  %vm11978_vm10 = vcmask 588800   ;;  %v8403_v45 = vld [vmem:[%s11971_s1 + $0x24] sm:$0xf] }
 0x387   : > { %8394 = vmatpush.msk.msra.mxu2 %vm623_vm2, %v4685_v49  ;;  %8396 = vmatpush.msk.msra.mxu3 %vm623_vm2, %v4686_v50  ;;  %vm11979_vm8 = vmmov %vm11978_vm10  ;;  %v3770_v4 = vpop.f32.mrf.mxu3  ;;  %5635 = vst [vmem:[#allocation1] ss:$4 sm:$0xff] %v5632_v59  ;;  %v3901_v8 = vadd.f32 %v3878_v56, %v3837_v5  ;;  %v5824_v56 = vld [vmem:[%s9895_s2] sm:$0x3f] }
 0x388   : > { %5575 = vrot.lane.b32.xlu0 %v5572_v60, %s9402_s6  ;;  %5579 = vrot.lane.b32.xlu2 %v5574_v61, %s9402_s6  ;;  %v3774_v25 = vadd.f32 %v3770_v4, %v3710_v15  ;;  %v5888_v5 = vld [vmem:[%s9895_s2] sm:$0x3f]  ;;  %v8418_v15 = vld [vmem:[%s11971_s1 + $0x30] sm:$0xf] }
 0x389   : > { %5577 = vrot.lane.b32.xlu1 %v5573_v0, %s9402_s6  ;;  %8395 = vmatmul.msk.f32.vlgmr.msra.gmra.mxu2 %vm619_vm5, %v8393_v11  ;;  %v3965_v16 = vadd.f32 %v3942_v6, %v3901_v8 }
 0x38a   : > { %8397 = vmatmul.msk.f32.vlgmr.msra.gmra.mxu3 %vm619_vm5, %v8393_v11 }
 0x38d   : > { %v4746_v62 = vpop.permute.xlu1 %4745  ;;  %v10940_v3 = vpop.permute.xlu2 %4939 }
 0x38e   : > { %v4749_v1 = vsel %vm11978_vm10, %v4744_v55, %v4746_v62  ;;  %v4750_v2 = vsel %vm11979_vm8, %v4746_v62, %v10888_v12  ;;  %v4808_v9 = vpop.permute.xlu0 %4807  ;;  %v3834_v12 = vpop.f32.mrf.mxu1  ;;  %v5636_v10 = vld.sshfl [vmem:[#allocation1] sm:$0xff pattern:$0x73625140]  ;;  %v5638_v17 = vld.sshfl [vmem:[#allocation1 + $0x10] sm:$0xff pattern:$0x73625140] }
 0x38f   : > { %8399 = vmatpush.msk.msrb.mxu0 %vm623_vm2, %v4749_v1  ;;  %8401 = vmatpush.msk.msrb.mxu1 %vm623_vm2, %v4750_v2  ;;  %v4006_v13 = vpop.f32.mrf.mxu2  ;;  %v5637_v21 = vld.sshfl [vmem:[#allocation1 + $0x8] sm:$0xff pattern:$0x73625140]  ;;  %v3898_v20 = vpop.f32.mrf.mxu3  ;;  %v3838_v32 = vadd.f32 %v3834_v12, %v3774_v25  ;;  %vm11980_vm10 = vcmask 736256  }
 0x390   : > { %5639 = vrot.lane.b32.xlu0 %v5636_v10, %s9403_s9  ;;  %5643 = vrot.lane.b32.xlu2 %v5638_v17, %s9403_s9  ;;  %v4029_v23 = vadd.f32 %v4006_v13, %v3965_v16  ;;  %v4070_v24 = vpop.f32.mrf.mxu0  ;;  %5699 = vst [vmem:[#allocation1] ss:$4 sm:$0xff] %v5696_v26  ;;  %vm11981_vm8 = vmmov %vm11980_vm10 }
 0x391   : > { %5641 = vrot.lane.b32.xlu1 %v5637_v21, %s9403_s9  ;;  %8400 = vmatmul.msk.f32.vlgmr.msrb.gmra.mxu0 %vm619_vm5, %v8398_v28  ;;  %v3902_v38 = vadd.f32 %v3898_v20, %v3838_v32  ;;  %v6023_v20 = vld [vmem:[%s9888_s13] sm:$0x3f] }
 0x392   : > { %8402 = vmatmul.msk.f32.vlgmr.msrb.gmra.mxu1 %vm619_vm5, %v8398_v28 }
 0x395   : > { %v4810_v14 = vpop.permute.xlu1 %4809  ;;  %v10955_v22 = vpop.permute.xlu2 %5003 }
 0x396   : > { %v4813_v18 = vsel %vm678_vm1, %v4808_v9, %v4810_v14  ;;  %v4814_v19 = vsel %vm678_vm1, %v4810_v14, %v10899_v29  ;;  %v4093_v29 = vadd.f32 %v4070_v24, %v4029_v23  ;;  %v4872_v30 = vpop.permute.xlu0 %4871  ;;  %v3962_v35 = vpop.f32.mrf.mxu1  ;;  %v8423_v23 = vld [vmem:[%s11971_s1 + $0x34] sm:$0xf] }
 0x397   : > { %8404 = vmatpush.msk.msrb.mxu2 %vm623_vm2, %v4813_v18  ;;  %8406 = vmatpush.msk.msrb.mxu3 %vm623_vm2, %v4814_v19  ;;  %v4026_v41 = vpop.f32.mrf.mxu3  ;;  %v10980_v42 = vld.sshfl [vmem:[#allocation1 + $0x8] sm:$0xff pattern:$0x73625140]  ;;  %v3966_v43 = vadd.f32 %v3962_v35, %v3902_v38  ;;  %v10982_v44 = vld.sshfl [vmem:[#allocation1] sm:$0xff pattern:$0x73625140] }
 0x398   : > { %8405 = vmatmul.msk.f32.vlgmr.msrb.gmra.mxu2 %vm619_vm5, %v8403_v45  ;;  %8407 = vmatmul.msk.f32.vlgmr.msrb.gmra.mxu3 %vm619_vm5, %v8403_v45  ;;  %v6145_v38 = vld [vmem:[%s9888_s13] sm:$0x3f] }
 0x399   : > { %v4030_v48 = vadd.f32 %v4026_v41, %v3966_v43 }
 0x39d   : > { %v4134_v31 = vpop.f32.mrf.mxu2  ;;  %v4874_v34 = vpop.permute.xlu1 %4873 }
 0x39e   : > { %v4157_v33 = vadd.f32 %v4134_v31, %v4093_v29  ;;  %v4877_v36 = vsel %vm616_vm0, %v4872_v30, %v4874_v34  ;;  %v4878_v37 = vsel %vm616_vm0, %v4874_v34, %v10916_v46  ;;  %v10972_v40 = vpop.permute.xlu2 %5067  ;;  %v5702_v46 = vld.sshfl [vmem:[#allocation1 + $0x10] sm:$0xff pattern:$0x73625140]  ;;  %v4936_v49 = vpop.permute.xlu0 %4935 }
 0x39f   : > { %8409 = vmatpush.msk.msra.mxu0 %vm623_vm2, %v4877_v36  ;;  %8411 = vmatpush.msk.msra.mxu1 %vm623_vm2, %v4878_v37  ;;  %5763 = vst [vmem:[#allocation1] ss:$4 sm:$0xff] %v5760_v47  ;;  %v4090_v50 = vpop.f32.mrf.mxu1  ;;  %v4154_v54 = vpop.f32.mrf.mxu3  ;;  %v8428_v36 = vld [vmem:[%s11971_s1 + $0x38] sm:$0xf] }
 0x3a0   : > { %v10970_v39 = vadd.f32 %v10778_v27, %v4157_v33  ;;  %v4094_v57 = vadd.f32 %v4090_v50, %v4030_v48  ;;  %8410 = vmatmul.msk.f32.vlgmr.msra.gmra.mxu0 %vm619_vm5, %v8408_v58  ;;  %8412 = vmatmul.msk.f32.vlgmr.msra.gmra.mxu1 %vm619_vm5, %v8408_v58  ;;  %v6209_v48 = vld [vmem:[%s9888_s13] sm:$0x3f] }
 0x3a2   : > { %4176 = vrot.lane.b32.xlu0 %v10970_v39, %s9402_s6  ;;  %4172 = vrot.lane.b32.xlu2 %v10970_v39, %s9419_s3  ;;  %v4158_v59 = vadd.f32 %v4154_v54, %v4094_v57  ;;  %s9424_s3 = smov 76   ;;  %v5952_v57 = vld [vmem:[%s11970_s4] sm:$0xf] }
 0x3a3   : > { %4168 = vrot.lane.b32.xlu1 %v10970_v39, %s9420_s0  ;;  %s9425_s0 = smov 84  }
 0x3a4   : > { %v4166_v0 = vadd.f32 %v10778_v27, %v4158_v59  ;;  %v8413_v27 = vld [vmem:[%s11971_s1 + $0x2c] sm:$0xf]  ;;  %v8443_v59 = vld [vmem:[%s11971_s1 + $0x44] sm:$0xf] }
 0x3a5   : > { %v4938_v51 = vpop.permute.xlu1 %4937 }
 0x3a6   : > { %v4941_v52 = vsel %vm742_vm3, %v4936_v49, %v4938_v51  ;;  %v4942_v53 = vsel %vm742_vm3, %v4938_v51, %v10940_v3  ;;  %v10993_v55 = vpop.permute.xlu2 %5131  ;;  %v5764_v60 = vld.sshfl [vmem:[#allocation1] sm:$0xff pattern:$0x73625140]  ;;  %v11007_v61 = vld.sshfl [vmem:[#allocation1 + $0x8] sm:$0xff pattern:$0x73625140]  ;;  %v5000_v63 = vpop.permute.xlu0 %4999 }
 0x3a7   : > { %8414 = vmatpush.msk.msra.mxu2 %vm623_vm2, %v4941_v52  ;;  %8416 = vmatpush.msk.msra.mxu3 %vm623_vm2, %v4942_v53  ;;  %v11009_v62 = vld.sshfl [vmem:[#allocation1 + $0x10] sm:$0xff pattern:$0x73625140]  ;;  %v4197_v25 = vrot.slane %v4166_v0, 4  ;;  %v8438_v49 = vld [vmem:[%s11971_s1 + $0x40] sm:$0xf] }
 0x3a8   : > { %5827 = vst [vmem:[#allocation1] ss:$4 sm:$0xff] %v5824_v56  ;;  %8415 = vmatmul.msk.f32.vlgmr.msra.gmra.mxu2 %vm619_vm5, %v8413_v27  ;;  %8417 = vmatmul.msk.f32.vlgmr.msra.gmra.mxu3 %vm619_vm5, %v8413_v27 }
 0x3aa   : > { %4188 = vrot.lane.b32.xlu0 %v10970_v39, %s9421_s11  ;;  %4184 = vrot.lane.b32.xlu2 %v10970_v39, %s9422_s25  ;;  %s9426_s11 = smov 78   ;;  %s9437_s25 = smov 50  }
 0x3ab   : > { %4180 = vrot.lane.b32.xlu1 %v10970_v39, %s9404_s26 }
 0x3ad   : > { %v5002_v1 = vpop.permute.xlu1 %5001 }
 0x3ae   : > { %v5005_v2 = vsel %vm808_vm4, %v5000_v63, %v5002_v1  ;;  %v5006_v3 = vsel %vm808_vm4, %v5002_v1, %v10955_v22  ;;  %v5196_v4 = vpop.permute.xlu2 %5195  ;;  %v5064_v9 = vpop.permute.xlu0 %5063 }
 0x3af   : > { %8419 = vmatpush.msk.msrb.mxu0 %vm623_vm2, %v5005_v2  ;;  %8421 = vmatpush.msk.msrb.mxu1 %vm623_vm2, %v5006_v3  ;;  %v5828_v6 = vld.sshfl [vmem:[#allocation1] sm:$0xff pattern:$0x73625140]  ;;  %v11024_v7 = vld.sshfl [vmem:[#allocation1 + $0x8] sm:$0xff pattern:$0x73625140] }
 0x3b0   : > { %v11026_v8 = vld.sshfl [vmem:[#allocation1 + $0x10] sm:$0xff pattern:$0x73625140]  ;;  %8420 = vmatmul.msk.f32.vlgmr.msrb.gmra.mxu0 %vm619_vm5, %v8418_v15  ;;  %8422 = vmatmul.msk.f32.vlgmr.msrb.gmra.mxu1 %vm619_vm5, %v8418_v15 }
 0x3b1   : > { %5891 = vst [vmem:[#allocation1] ss:$4 sm:$0xff] %v5888_v5  ;;  %v6337_v5 = vld [vmem:[%s9888_s13] sm:$0x3f] }
 0x3b2   : > { %4206 = vrot.lane.b32.xlu0 %v4166_v0, %s9423_s20  ;;  %4214 = vrot.lane.b32.xlu2 %v4166_v0, %s9424_s3  ;;  %v6401_v15 = vld [vmem:[%s9888_s13] sm:$0x3f]  ;;  %s9446_s20 = smov 12   ;;  %s9447_s3 = smov 14  }
 0x3b3   : > { %4192 = vrot.lane.b32.xlu1 %v10970_v39, %s9425_s0  ;;  %s9428_s0 = smov 82  }
 0x3b5   : > { %v5066_v11 = vpop.permute.xlu1 %5065 }
 0x3b6   : > { %v5069_v12 = vsel %vm874_vm6, %v5064_v9, %v5066_v11  ;;  %v5070_v13 = vsel %vm874_vm6, %v5066_v11, %v10972_v40  ;;  %v5260_v14 = vpop.permute.xlu2 %5259  ;;  %v5128_v16 = vpop.permute.xlu0 %5127 }
 0x3b7   : > { %8424 = vmatpush.msk.msrb.mxu2 %vm623_vm2, %v5069_v12  ;;  %8426 = vmatpush.msk.msrb.mxu3 %vm623_vm2, %v5070_v13 }
 0x3b8   : > { %v11040_v10 = vld.sshfl [vmem:[#allocation1 + $0x10] sm:$0xff pattern:$0x73625140]  ;;  %v5892_v18 = vld.sshfl [vmem:[#allocation1] sm:$0xff pattern:$0x73625140]  ;;  %8425 = vmatmul.msk.f32.vlgmr.msrb.gmra.mxu2 %vm619_vm5, %v8423_v23  ;;  %8427 = vmatmul.msk.f32.vlgmr.msrb.gmra.mxu3 %vm619_vm5, %v8423_v23 }
 0x3b9   : > { %v11044_v19 = vld.sshfl [vmem:[#allocation1 + $0x8] sm:$0xff pattern:$0x73625140] }
 0x3ba   : > { %4218 = vrot.lane.b32.xlu0 %v4166_v0, %s9405_s30  ;;  %5707 = vrot.lane.b32.xlu2 %v5702_v46, %s9404_s26  ;;  %6027 = vst [vmem:[#allocation1] ss:$4 sm:$0xff] %v6023_v20 }
 0x3bb   : > { %4210 = vrot.lane.b32.xlu1 %v4166_v0, %s9426_s11  ;;  %s9434_s11 = smov 56  }
 0x3bd   : > { %v5130_v17 = vpop.permute.xlu1 %5129 }
 0x3be   : > { %v5133_v21 = vsel %vm11980_vm10, %v5128_v16, %v5130_v17  ;;  %v5134_v22 = vsel %vm11981_vm8, %v5130_v17, %v10993_v55  ;;  %v5324_v24 = vpop.permute.xlu2 %5323  ;;  %vm11982_vm10 = vcmask 1043456   ;;  %v5192_v28 = vpop.permute.xlu0 %5191  ;;  %vm11983_vm8 = vcmask 605184  }
 0x3bf   : > { %8429 = vmatpush.msk.msra.mxu0 %vm623_vm2, %v5133_v21  ;;  %8431 = vmatpush.msk.msra.mxu1 %vm623_vm2, %v5134_v22  ;;  %v4198_v26 = vsel %vm11982_vm10, %v10970_v39, %v4197_v25  ;;  %vm11984_vm12 = vmmov %vm11983_vm8  ;;  %v8433_v39 = vld [vmem:[%s11971_s1 + $0x3c] sm:$0xf] }
 0x3c0   : > { %8430 = vmatmul.msk.f32.vlgmr.msra.gmra.mxu0 %vm619_vm5, %v8428_v36  ;;  %8432 = vmatmul.msk.f32.vlgmr.msra.gmra.mxu1 %vm619_vm5, %v8428_v36 }
 0x3c1   : > { %v11063_v30 = vld.sshfl [vmem:[#allocation1 + $0x8] sm:$0xff pattern:$0x73625140]  ;;  %v11065_v31 = vld.sshfl [vmem:[#allocation1 + $0x10] sm:$0xff pattern:$0x73625140] }
 0x3c2   : > { %5703 = vrot.lane.b32.xlu0 %v10982_v44, %s9404_s26  ;;  %4226 = vrot.lane.b32.xlu2 %v4166_v0, %s9427_s21  ;;  %v6028_v34 = vld.sshfl [vmem:[#allocation1] sm:$0xff pattern:$0x73625140]  ;;  %s9440_s21 = smov 44  }
 0x3c3   : > { %4222 = vrot.lane.b32.xlu1 %v4166_v0, %s9407_s16  ;;  %6086 = vst [vmem:[#allocation1] ss:$4 sm:$0xff] %v6023_v20  ;;  %v6465_v20 = vld [vmem:[%s9888_s13] sm:$0x3f] }
 0x3c5   : > { %v5194_v29 = vpop.permute.xlu1 %5193 }
 0x3c6   : > { %v5197_v32 = vsel %vm11983_vm8, %v5192_v28, %v5194_v29  ;;  %v5198_v33 = vsel %vm11984_vm12, %v5194_v29, %v5196_v4  ;;  %v5256_v37 = vpop.permute.xlu0 %5255  ;;  %vm11985_vm12 = vcmask 596992   ;;  %vm11987_vm8 = vcmask 588800   ;;  %v8448_v4 = vld [vmem:[%s11971_s1 + $0x48] sm:$0xf] }
 0x3c7   : > { %v5388_v35 = vpop.permute.xlu2 %5387  ;;  %8434 = vmatpush.msk.msra.mxu2 %vm623_vm2, %v5197_v32  ;;  %8436 = vmatpush.msk.msra.mxu3 %vm623_vm2, %v5198_v33  ;;  %vm11986_vm10 = vmmov %vm11985_vm12  ;;  %v6529_v32 = vld [vmem:[%s9888_s13] sm:$0x3f] }
 0x3c8   : > { %8435 = vmatmul.msk.f32.vlgmr.msra.gmra.mxu2 %vm619_vm5, %v8433_v39  ;;  %8437 = vmatmul.msk.f32.vlgmr.msra.gmra.mxu3 %vm619_vm5, %v8433_v39 }
 0x3ca   : > { %5767 = vrot.lane.b32.xlu0 %v5764_v60, %s9405_s30  ;;  %4199 = vrot.lane.b32.xlu2 %v4198_v26, %s9428_s0  ;;  %v11085_v41 = vld.sshfl [vmem:[#allocation1] sm:$0xff pattern:$0x73625140]  ;;  %v11093_v45 = vld.sshfl [vmem:[#allocation1 + $0x10] sm:$0xff pattern:$0x73625140] }
 0x3cb   : > { %5705 = vrot.lane.b32.xlu1 %v10980_v42, %s9404_s26  ;;  %v11087_v42 = vld.sshfl [vmem:[#allocation1 + $0x8] sm:$0xff pattern:$0x73625140]  ;;  %s9430_s0 = smov 60  }
 0x3cc   : > { %6148 = vst [vmem:[#allocation1] ss:$4 sm:$0xff] %v6145_v38  ;;  %v6273_v60 = vld [vmem:[%s9888_s13] sm:$0x3f]  ;;  %s12028_s13 = sld [smem:[#allocation35_spill]] }
 0x3cd   : > { %v5258_v40 = vpop.permute.xlu1 %5257 }
 0x3ce   : > { %v5261_v43 = vsel %vm11985_vm12, %v5256_v37, %v5258_v40  ;;  %v5262_v44 = vsel %vm11986_vm10, %v5258_v40, %v5260_v14  ;;  %v5320_v47 = vpop.permute.xlu0 %5319  ;;  %vm11988_vm12 = vmmov %vm11987_vm8  ;;  %vm4202_vm10 = vcmask 670720  }
 0x3cf   : > { %8439 = vmatpush.msk.msrb.mxu0 %vm623_vm2, %v5261_v43  ;;  %8441 = vmatpush.msk.msrb.mxu1 %vm623_vm2, %v5262_v44 }
 0x3d0   : > { %v5452_v46 = vpop.permute.xlu2 %5451  ;;  %8440 = vmatmul.msk.f32.vlgmr.msrb.gmra.mxu0 %vm619_vm5, %v8438_v49  ;;  %8442 = vmatmul.msk.f32.vlgmr.msrb.gmra.mxu1 %vm619_vm5, %v8438_v49 }
 0x3d2   : > { %5831 = vrot.lane.b32.xlu0 %v5828_v6, %s9406_s27  ;;  %5771 = vrot.lane.b32.xlu2 %v11009_v62, %s9405_s30 }
 0x3d3   : > { %5769 = vrot.lane.b32.xlu1 %v11007_v61, %s9405_s30  ;;  %v6151_v51 = vld.sshfl [vmem:[#allocation1 + $0x10] sm:$0xff pattern:$0x73625140]  ;;  %v6150_v52 = vld.sshfl [vmem:[#allocation1 + $0x8] sm:$0xff pattern:$0x73625140] }
 0x3d4   : > { %v6149_v55 = vld.sshfl [vmem:[#allocation1] sm:$0xff pattern:$0x73625140] }
 0x3d5   : > { %6212 = vst [vmem:[#allocation1] ss:$4 sm:$0xff] %v6209_v48  ;;  %v8453_v48 = vld [vmem:[%s11971_s1 + $0x4c] sm:$0xf] }
 0x3d6   : > { %v5322_v50 = vpop.permute.xlu1 %5321 }
 0x3d7   : > { %v5325_v53 = vsel %vm11987_vm8, %v5320_v47, %v5322_v50  ;;  %v5326_v54 = vsel %vm11988_vm12, %v5322_v50, %v5324_v24  ;;  %vm11989_vm8 = vcmask 650752   ;;  %vm11990_vm12 = vcmask 781952  }
 0x3d8   : > { %8444 = vmatpush.msk.msrb.mxu2 %vm623_vm2, %v5325_v53  ;;  %8446 = vmatpush.msk.msrb.mxu3 %vm623_vm2, %v5326_v54 }
 0x3d9   : > { %v5516_v58 = vpop.permute.xlu2 %5515  ;;  %8445 = vmatmul.msk.f32.vlgmr.msrb.gmra.mxu2 %vm619_vm5, %v8443_v59  ;;  %8447 = vmatmul.msk.f32.vlgmr.msrb.gmra.mxu3 %vm619_vm5, %v8443_v59 }
 0x3da   : > { %5895 = vrot.lane.b32.xlu0 %v5892_v18, %s9407_s16  ;;  %5835 = vrot.lane.b32.xlu2 %v11026_v8, %s9406_s27 }
 0x3db   : > { %5833 = vrot.lane.b32.xlu1 %v11024_v7, %s9406_s27 }
 0x3dc   : > { %v6213_v62 = vld.sshfl [vmem:[#allocation1] sm:$0xff pattern:$0x73625140]  ;;  %v11125_v63 = vld.sshfl [vmem:[#allocation1 + $0x8] sm:$0xff pattern:$0x73625140] }
 0x3dd   : > { %v11129_v2 = vld.sshfl [vmem:[#allocation1 + $0x10] sm:$0xff pattern:$0x73625140] }
 0x3de   : > { %6276 = vst [vmem:[#allocation1] ss:$4 sm:$0xff] %v6273_v60 }
 0x3df   : > { %v5384_v56 = vpop.permute.xlu0 %5383 }
 0x3e0   : > { %v5386_v61 = vpop.permute.xlu1 %5385 }
 0x3e1   : > { %v5389_v0 = vsel %vm678_vm1, %v5384_v56, %v5386_v61  ;;  %v5390_v1 = vsel %vm678_vm1, %v5386_v61, %v5388_v35 }
 0x3e2   : > { %5955 = vperm.xlu0 %8952, %v5952_v57   ;;  %5899 = vrot.lane.b32.xlu2 %v11040_v10, %s9407_s16  ;;  %v5580_v3 = vpop.permute.xlu2 %5579  ;;  %v8458_v57 = vld [vmem:[%s11971_s1 + $0x50] sm:$0xf] }
 0x3e3   : > { %5897 = vrot.lane.b32.xlu1 %v11044_v19, %s9407_s16  ;;  %8449 = vmatpush.msk.msra.mxu0 %vm623_vm2, %v5389_v0  ;;  %v6721_v0 = vld [vmem:[%s9895_s2] sm:$0x3f] }
 0x3e4   : > { %8451 = vmatpush.msk.msra.mxu1 %vm623_vm2, %v5390_v1  ;;  %8450 = vmatmul.msk.f32.vlgmr.msra.gmra.mxu0 %vm619_vm5, %v8448_v4 }
 0x3e5   : > { %8452 = vmatmul.msk.f32.vlgmr.msra.gmra.mxu1 %vm619_vm5, %v8448_v4  ;;  %v6279_v6 = vld.sshfl [vmem:[#allocation1 + $0x10] sm:$0xff pattern:$0x73625140]  ;;  %v6278_v8 = vld.sshfl [vmem:[#allocation1 + $0x8] sm:$0xff pattern:$0x73625140] }
 0x3e6   : > { %v6277_v12 = vld.sshfl [vmem:[#allocation1] sm:$0xff pattern:$0x73625140] }
 0x3e7   : > { %6340 = vst [vmem:[#allocation1] ss:$4 sm:$0xff] %v6337_v5 }
 0x3e8   : > { %v5448_v27 = vpop.permute.xlu0 %5447 }
 0x3e9   : > { %v5450_v7 = vpop.permute.xlu1 %5449 }
 0x3ea   : > { %6031 = vrot.lane.b32.xlu0 %v6028_v34, %s9399_s8  ;;  %6035 = vrot.lane.b32.xlu2 %v11065_v31, %s9399_s8  ;;  %v5453_v9 = vsel %vm616_vm0, %v5448_v27, %v5450_v7  ;;  %v5454_v11 = vsel %vm616_vm0, %v5450_v7, %v5452_v46  ;;  %v5644_v13 = vpop.permute.xlu2 %5643 }
 0x3eb   : > { %6033 = vrot.lane.b32.xlu1 %v11063_v30, %s9399_s8  ;;  %8454 = vmatpush.msk.msra.mxu2 %vm623_vm2, %v5453_v9 }
 0x3ec   : > { %8456 = vmatpush.msk.msra.mxu3 %vm623_vm2, %v5454_v11  ;;  %8455 = vmatmul.msk.f32.vlgmr.msra.gmra.mxu2 %vm619_vm5, %v8453_v48 }
 0x3ed   : > { %8457 = vmatmul.msk.f32.vlgmr.msra.gmra.mxu3 %vm619_vm5, %v8453_v48  ;;  %v7041_v48 = vld [vmem:[%s9895_s2] sm:$0x3f] }
 0x3ee   : > { %v6341_v10 = vld.sshfl [vmem:[#allocation1] sm:$0xff pattern:$0x73625140]  ;;  %v6342_v17 = vld.sshfl [vmem:[#allocation1 + $0x8] sm:$0xff pattern:$0x73625140] }
 0x3ef   : > { %v6343_v21 = vld.sshfl [vmem:[#allocation1 + $0x10] sm:$0xff pattern:$0x73625140] }
 0x3f0   : > { %6404 = vst [vmem:[#allocation1] ss:$4 sm:$0xff] %v6401_v15 }
 0x3f1   : > { %v5512_v14 = vpop.permute.xlu0 %5511 }
 0x3f2   : > { %6152 = vrot.lane.b32.xlu0 %v6149_v55, %s9401_s7  ;;  %6156 = vrot.lane.b32.xlu2 %v6151_v51, %s9401_s7  ;;  %v5514_v16 = vpop.permute.xlu1 %5513 }
 0x3f3   : > { %6154 = vrot.lane.b32.xlu1 %v6150_v52, %s9401_s7  ;;  %v5517_v18 = vsel %vm742_vm3, %v5512_v14, %v5514_v16  ;;  %v5518_v19 = vsel %vm742_vm3, %v5514_v16, %v5516_v58  ;;  %v6657_v52 = vld [vmem:[%s9895_s2] sm:$0x3f]  ;;  %v8463_v58 = vld [vmem:[%s11971_s1 + $0x54] sm:$0xf] }
 0x3f4   : > { %8459 = vmatpush.msk.msrb.mxu0 %vm623_vm2, %v5517_v18  ;;  %8461 = vmatpush.msk.msrb.mxu1 %vm623_vm2, %v5518_v19  ;;  %v6849_v14 = vld [vmem:[%s9895_s2] sm:$0x3f] }
 0x3f5   : > { %8460 = vmatmul.msk.f32.vlgmr.msrb.gmra.mxu0 %vm619_vm5, %v8458_v57  ;;  %8462 = vmatmul.msk.f32.vlgmr.msrb.gmra.mxu1 %vm619_vm5, %v8458_v57  ;;  %v11319_v57 = vpop.f32.mrf.mxu2 }
 0x3f7   : > { %v6406_v25 = vld.sshfl [vmem:[#allocation1 + $0x8] sm:$0xff pattern:$0x73625140]  ;;  %v6405_v26 = vld.sshfl [vmem:[#allocation1] sm:$0xff pattern:$0x73625140] }
 0x3f8   : > { %v6407_v30 = vld.sshfl [vmem:[#allocation1 + $0x10] sm:$0xff pattern:$0x73625140] }
 0x3f9   : > { %6468 = vst [vmem:[#allocation1] ss:$4 sm:$0xff] %v6465_v20  ;;  %v6913_v20 = vld [vmem:[%s9895_s2] sm:$0x3f] }
 0x3fa   : > { %6090 = vrot.lane.b32.xlu0 %v11085_v41, %s9400_s14  ;;  %6094 = vrot.lane.b32.xlu2 %v11093_v45, %s9400_s14  ;;  %v5576_v23 = vpop.permute.xlu0 %5575  ;;  %v6593_v41 = vld [vmem:[%s9895_s2] sm:$0x3f] }
 0x3fb   : > { %6092 = vrot.lane.b32.xlu1 %v11087_v42, %s9400_s14  ;;  %v5578_v24 = vpop.permute.xlu1 %5577 }
 0x3fc   : > { %v4173_v22 = vpop.permute.xlu2 %4172  ;;  %v5581_v28 = vsel %vm808_vm4, %v5576_v23, %v5578_v24  ;;  %v5582_v29 = vsel %vm808_vm4, %v5578_v24, %v5580_v3 }
 0x3fd   : > { %8464 = vmatpush.msk.msrb.mxu2 %vm623_vm2, %v5581_v28  ;;  %8466 = vmatpush.msk.msrb.mxu3 %vm623_vm2, %v5582_v29 }
 0x3fe   : > { %8465 = vmatmul.msk.f32.vlgmr.msrb.gmra.mxu2 %vm619_vm5, %v8463_v58  ;;  %8467 = vmatmul.msk.f32.vlgmr.msrb.gmra.mxu3 %vm619_vm5, %v8463_v58 }
 0x400   : > { %v11172_v35 = vld.sshfl [vmem:[#allocation1] sm:$0xff pattern:$0x73625140]  ;;  %v11174_v36 = vld.sshfl [vmem:[#allocation1 + $0x8] sm:$0xff pattern:$0x73625140] }
 0x401   : > { %v11180_v39 = vld.sshfl [vmem:[#allocation1 + $0x10] sm:$0xff pattern:$0x73625140] }
 0x402   : > { %6280 = vrot.lane.b32.xlu0 %v6277_v12, %s9403_s9  ;;  %6284 = vrot.lane.b32.xlu2 %v6279_v6, %s9403_s9  ;;  %v5640_v33 = vpop.permute.xlu0 %5639  ;;  %6532 = vst [vmem:[#allocation1] ss:$4 sm:$0xff] %v6529_v32  ;;  %v6785_v6 = vld [vmem:[%s9895_s2] sm:$0x3f] }
 0x403   : > { %6282 = vrot.lane.b32.xlu1 %v6278_v8, %s9403_s9  ;;  %v5642_v34 = vpop.permute.xlu1 %5641 }
 0x404   : > { %v4185_v31 = vpop.permute.xlu2 %4184  ;;  %v5645_v37 = vsel %vm874_vm6, %v5640_v33, %v5642_v34  ;;  %v5646_v38 = vsel %vm874_vm6, %v5642_v34, %v5644_v13 }
 0x405   : > { %8469 = vmatpush.msk.msra.mxu0 %vm623_vm2, %v5645_v37  ;;  %8471 = vmatpush.msk.msra.mxu1 %vm623_vm2, %v5646_v38 }
 0x409   : > { %v6534_v44 = vld.sshfl [vmem:[#allocation1 + $0x8] sm:$0xff pattern:$0x73625140]  ;;  %v6533_v45 = vld.sshfl [vmem:[#allocation1] sm:$0xff pattern:$0x73625140] }
 0x40a   : > { %6216 = vrot.lane.b32.xlu0 %v6213_v62, %s9402_s6  ;;  %6220 = vrot.lane.b32.xlu2 %v11129_v2, %s9402_s6  ;;  %v6535_v47 = vld.sshfl [vmem:[#allocation1 + $0x10] sm:$0xff pattern:$0x73625140] }
 0x40b   : > { %6218 = vrot.lane.b32.xlu1 %v11125_v63, %s9402_s6  ;;  %6596 = vst [vmem:[#allocation1] ss:$4 sm:$0xff] %v6593_v41  ;;  %v8468_v63 = vld [vmem:[%s11971_s1 + $0x58] sm:$0xf] }
 0x40c   : > { %v4215_v40 = vpop.permute.xlu2 %4214  ;;  %8470 = vmatmul.msk.f32.vlgmr.msra.gmra.mxu0 %vm619_vm5, %v8468_v63  ;;  %8472 = vmatmul.msk.f32.vlgmr.msra.gmra.mxu1 %vm619_vm5, %v8468_v63  ;;  %v7105_v63 = vld [vmem:[%s9895_s2] sm:$0x3f] }
 0x40d   : > { %4217 = vst.msk [vmem:[%s10553_s17 + $0xc] sm:$0xf] %vm2368_vm11, %v4215_v40 }
 0x412   : > { %6408 = vrot.lane.b32.xlu0 %v6405_v26, %s9405_s30  ;;  %6412 = vrot.lane.b32.xlu2 %v6407_v30, %s9405_s30  ;;  %v6597_v53 = vld.sshfl [vmem:[#allocation1] sm:$0xff pattern:$0x73625140]  ;;  %v6598_v54 = vld.sshfl [vmem:[#allocation1 + $0x8] sm:$0xff pattern:$0x73625140] }
 0x413   : > { %6410 = vrot.lane.b32.xlu1 %v6406_v25, %s9405_s30  ;;  %v6599_v55 = vld.sshfl [vmem:[#allocation1 + $0x10] sm:$0xff pattern:$0x73625140]  ;;  %v8478_v30 = vld [vmem:[%s11971_s1 + $0x60] sm:$0xf] }
 0x414   : > { %v4177_v42 = vpop.permute.xlu0 %4176  ;;  %v11191_v43 = vpop.permute.xlu2 %5707  ;;  %6660 = vst [vmem:[#allocation1] ss:$4 sm:$0xff] %v6657_v52 }
 0x415   : > { %4179 = vst.msk [vmem:[%s10553_s17 + $0x8] sm:$0xf] %vm2368_vm11, %v4177_v42  ;;  %v4169_v46 = vpop.permute.xlu1 %4168 }
 0x416   : > { %4171 = vst.msk [vmem:[%s10553_s17 + $0x4] sm:$0xf] %vm2399_vm9, %v4169_v46 }
 0x417   : > { %4175 = vst.msk [vmem:[%s10553_s17 + $0x4] sm:$0xf] %vm2411_vm7, %v4173_v22 }
 0x41a   : > { %6344 = vrot.lane.b32.xlu0 %v6341_v10, %s9404_s26  ;;  %6348 = vrot.lane.b32.xlu2 %v6343_v21, %s9404_s26  ;;  %v8473_v21 = vld [vmem:[%s11971_s1 + $0x5c] sm:$0xf] }
 0x41b   : > { %6346 = vrot.lane.b32.xlu1 %v6342_v17, %s9404_s26  ;;  %v6662_v1 = vld.sshfl [vmem:[#allocation1 + $0x8] sm:$0xff pattern:$0x73625140]  ;;  %v6661_v2 = vld.sshfl [vmem:[#allocation1] sm:$0xff pattern:$0x73625140] }
 0x41c   : > { %v4189_v49 = vpop.permute.xlu0 %4188  ;;  %v4227_v50 = vpop.permute.xlu2 %4226  ;;  %v6663_v3 = vld.sshfl [vmem:[#allocation1 + $0x10] sm:$0xff pattern:$0x73625140] }
 0x41d   : > { %v4181_v51 = vpop.permute.xlu1 %4180  ;;  %6724 = vst [vmem:[#allocation1] ss:$4 sm:$0xff] %v6721_v0 }
 0x41e   : > { %4183 = vst.msk [vmem:[%s10553_s17 + $0x8] sm:$0xf] %vm2374_vm13, %v4181_v51 }
 0x41f   : > { %4187 = vst.msk [vmem:[%s10553_s17 + $0x8] sm:$0xf] %vm2379_vm14, %v4185_v31 }
 0x420   : > { %4191 = vst.msk [vmem:[%s10553_s17 + $0x8] sm:$0xf] %vm2384_vm15, %v4189_v49 }
 0x422   : > { %6536 = vrot.lane.b32.xlu0 %v6533_v45, %s9407_s16  ;;  %6540 = vrot.lane.b32.xlu2 %v6535_v47, %s9407_s16  ;;  %v8488_v47 = vld [vmem:[%s11971_s1 + $0x68] sm:$0xf] }
 0x423   : > { %6538 = vrot.lane.b32.xlu1 %v6534_v44, %s9407_s16  ;;  %v11300_v44 = vpop.f32.mrf.mxu0 }
 0x424   : > { %v4207_v59 = vpop.permute.xlu0 %4206  ;;  %v4200_v56 = vpop.permute.xlu2 %4199  ;;  %v6725_v7 = vld.sshfl [vmem:[#allocation1] sm:$0xff pattern:$0x73625140]  ;;  %v6726_v8 = vld.sshfl [vmem:[#allocation1 + $0x8] sm:$0xff pattern:$0x73625140] }
 0x425   : > { %v4193_v60 = vpop.permute.xlu1 %4192  ;;  %v4201_v61 = vrot.slane %v4200_v56, 4  ;;  %v6727_v9 = vld.sshfl [vmem:[#allocation1 + $0x10] sm:$0xff pattern:$0x73625140] }
 0x426   : > { %4195 = vst.msk [vmem:[%s10553_s17 + $0x8] sm:$0xf] %vm11989_vm8, %v4193_v60  ;;  %v8493_v60 = vld [vmem:[%s11971_s1 + $0x4] sm:$0xf] }
 0x427   : > { %v4203_v62 = vsel %vm4202_vm10, %v4200_v56, %v4201_v61  ;;  %6788 = vst [vmem:[#allocation1] ss:$4 sm:$0xff] %v6785_v6  ;;  %vm11991_vm10 = vcmask 736256  }
 0x428   : > { %4205 = vst.msk [vmem:[%s10553_s17 + $0x8] sm:$0xf] %vm11990_vm12, %v4203_v62  ;;  %vm11992_vm8 = vmmov %vm11991_vm10  ;;  %vm11993_vm12 = vcmask 605184  }
 0x429   : > { %4209 = vst.msk [vmem:[%s10553_s17 + $0x8] sm:$0xf] %vm2399_vm9, %v4207_v59 }
 0x42a   : > { %6472 = vrot.lane.b32.xlu0 %v11172_v35, %s9406_s27  ;;  %6476 = vrot.lane.b32.xlu2 %v11180_v39, %s9406_s27  ;;  %v8483_v35 = vld [vmem:[%s11971_s1 + $0x64] sm:$0xf] }
 0x42b   : > { %6474 = vrot.lane.b32.xlu1 %v11174_v36, %s9406_s27  ;;  %v6977_v36 = vld [vmem:[%s9895_s2] sm:$0x3f]  ;;  %v11322_v56 = vpop.f32.mrf.mxu0  ;;  %s9453_s2 = smov 24  }
 0x42c   : > { %v4219_v4 = vpop.permute.xlu0 %4218  ;;  %v5772_v27 = vpop.permute.xlu2 %5771 }
 0x42d   : > { %4221 = vst.msk [vmem:[%s10553_s17 + $0xc] sm:$0xf] %vm2374_vm13, %v4219_v4  ;;  %v4211_v5 = vpop.permute.xlu1 %4210 }
 0x42e   : > { %4213 = vst.msk [vmem:[%s10553_s17 + $0x8] sm:$0xf] %vm2411_vm7, %v4211_v5  ;;  %v6790_v15 = vld.sshfl [vmem:[#allocation1 + $0x8] sm:$0xff pattern:$0x73625140] }
 0x42f   : > { %v6789_v16 = vld.sshfl [vmem:[#allocation1] sm:$0xff pattern:$0x73625140]  ;;  %v6791_v17 = vld.sshfl [vmem:[#allocation1 + $0x10] sm:$0xff pattern:$0x73625140] }
 0x430   : > { %6852 = vst [vmem:[#allocation1] ss:$4 sm:$0xff] %v6849_v14 }
 0x432   : > { %6664 = vrot.lane.b32.xlu0 %v6661_v2, %s9399_s8  ;;  %6668 = vrot.lane.b32.xlu2 %v6663_v3, %s9399_s8  ;;  %v11332_v3 = vpop.f32.mrf.mxu3 }
 0x433   : > { %6666 = vrot.lane.b32.xlu1 %v6662_v1, %s9399_s8  ;;  %v11353_v14 = vpop.f32.mrf.mxu0 }
 0x434   : > { %v5704_v11 = vpop.permute.xlu0 %5703  ;;  %v5836_v12 = vpop.permute.xlu2 %5835 }
 0x435   : > { %v4223_v13 = vpop.permute.xlu1 %4222 }
 0x436   : > { %4225 = vst.msk [vmem:[%s10553_s17 + $0xc] sm:$0xf] %vm2379_vm14, %v4223_v13 }
 0x437   : > { %4229 = vst.msk [vmem:[%s10553_s17 + $0xc] sm:$0xf] %vm2384_vm15, %v4227_v50  ;;  %v6853_v25 = vld.sshfl [vmem:[#allocation1] sm:$0xff pattern:$0x73625140] }
 0x438   : > { %v6854_v26 = vld.sshfl [vmem:[#allocation1 + $0x8] sm:$0xff pattern:$0x73625140]  ;;  %v6855_v31 = vld.sshfl [vmem:[#allocation1 + $0x10] sm:$0xff pattern:$0x73625140] }
 0x439   : > { %6916 = vst [vmem:[#allocation1] ss:$4 sm:$0xff] %v6913_v20  ;;  %v6024_v20 = vld [vmem:[%s11971_s1] sm:$0xf] }
 0x43a   : > { %6600 = vrot.lane.b32.xlu0 %v6597_v53, %s9400_s14  ;;  %6604 = vrot.lane.b32.xlu2 %v6599_v55, %s9400_s14  ;;  %v11315_v55 = vpop.f32.mrf.mxu1 }
 0x43b   : > { %6602 = vrot.lane.b32.xlu1 %v6598_v54, %s9400_s14 }
 0x43c   : > { %v5768_v10 = vpop.permute.xlu0 %5767  ;;  %v5900_v18 = vpop.permute.xlu2 %5899 }
 0x43d   : > { %v5706_v19 = vpop.permute.xlu1 %5705 }
 0x43e   : > { %v5709_v22 = vsel %vm11991_vm10, %v5704_v11, %v5706_v19  ;;  %v5710_v23 = vsel %vm11992_vm8, %v5706_v19, %v11191_v43  ;;  %vm11994_vm10 = vmmov %vm11993_vm12  ;;  %vm11995_vm8 = vcmask 596992   ;;  %v8502_v11 = vld [vmem:[%s11971_s1 + $0x8] sm:$0xf] }
 0x43f   : > { %8474 = vmatpush.msk.msra.mxu2 %vm623_vm2, %v5709_v22  ;;  %8476 = vmatpush.msk.msra.mxu3 %vm623_vm2, %v5710_v23 }
 0x440   : > { %8475 = vmatmul.msk.f32.vlgmr.msra.gmra.mxu2 %vm619_vm5, %v8473_v21  ;;  %8477 = vmatmul.msk.f32.vlgmr.msra.gmra.mxu3 %vm619_vm5, %v8473_v21  ;;  %v6918_v39 = vld.sshfl [vmem:[#allocation1 + $0x8] sm:$0xff pattern:$0x73625140]  ;;  %v6917_v40 = vld.sshfl [vmem:[#allocation1] sm:$0xff pattern:$0x73625140] }
 0x441   : > { %v6919_v43 = vld.sshfl [vmem:[#allocation1 + $0x10] sm:$0xff pattern:$0x73625140] }
 0x442   : > { %6792 = vrot.lane.b32.xlu0 %v6789_v16, %s9402_s6  ;;  %6796 = vrot.lane.b32.xlu2 %v6791_v17, %s9402_s6  ;;  %6980 = vst [vmem:[#allocation1] ss:$4 sm:$0xff] %v6977_v36  ;;  %v11357_v17 = vpop.f32.mrf.mxu3 }
 0x443   : > { %6794 = vrot.lane.b32.xlu1 %v6790_v15, %s9402_s6 }
 0x444   : > { %v5832_v24 = vpop.permute.xlu0 %5831  ;;  %v6036_v28 = vpop.permute.xlu2 %6035 }
 0x445   : > { %v5770_v29 = vpop.permute.xlu1 %5769 }
 0x446   : > { %v5773_v32 = vsel %vm11993_vm12, %v5768_v10, %v5770_v29  ;;  %v5774_v33 = vsel %vm11994_vm10, %v5770_v29, %v5772_v27  ;;  %vm11996_vm12 = vmmov %vm11995_vm8  ;;  %vm11997_vm10 = vcmask 588800   ;;  %v11338_v27 = vpop.f32.mrf.mxu1 }
 0x447   : > { %8479 = vmatpush.msk.msrb.mxu0 %vm623_vm2, %v5773_v32  ;;  %8481 = vmatpush.msk.msrb.mxu1 %vm623_vm2, %v5774_v33  ;;  %v4330_v33 = vadd.f32 %v11319_v57, %v11300_v44  ;;  %v4350_v44 = vadd.f32 %v11332_v3, %v11315_v55 }
 0x448   : > { %8480 = vmatmul.msk.f32.vlgmr.msrb.gmra.mxu0 %vm619_vm5, %v8478_v30  ;;  %8482 = vmatmul.msk.f32.vlgmr.msrb.gmra.mxu1 %vm619_vm5, %v8478_v30  ;;  %v11376_v30 = vpop.f32.mrf.mxu0 }
 0x449   : > { %v6981_v51 = vld.sshfl [vmem:[#allocation1] sm:$0xff pattern:$0x73625140]  ;;  %v6982_v52 = vld.sshfl [vmem:[#allocation1 + $0x8] sm:$0xff pattern:$0x73625140] }
 0x44a   : > { %6728 = vrot.lane.b32.xlu0 %v6725_v7, %s9401_s7  ;;  %6732 = vrot.lane.b32.xlu2 %v6727_v9, %s9401_s7  ;;  %v6983_v54 = vld.sshfl [vmem:[#allocation1 + $0x10] sm:$0xff pattern:$0x73625140]  ;;  %v11341_v7 = vpop.f32.mrf.mxu2  ;;  %v11380_v32 = vpop.f32.mrf.mxu3 }
 0x44b   : > { %6730 = vrot.lane.b32.xlu1 %v6726_v8, %s9401_s7  ;;  %7044 = vst [vmem:[#allocation1] ss:$4 sm:$0xff] %v7041_v48 }
 0x44c   : > { %v5896_v34 = vpop.permute.xlu0 %5895  ;;  %v6157_v37 = vpop.permute.xlu2 %6156 }
 0x44d   : > { %v5834_v38 = vpop.permute.xlu1 %5833 }
 0x44e   : > { %v5837_v41 = vsel %vm11995_vm8, %v5832_v24, %v5834_v38  ;;  %v5838_v42 = vsel %vm11996_vm12, %v5834_v38, %v5836_v12  ;;  %vm11998_vm8 = vmmov %vm11997_vm10  ;;  %v7169_v12 = vld [vmem:[%s9902_s29] sm:$0x3f]  ;;  %v11361_v21 = vpop.f32.mrf.mxu1  ;;  %vm11999_vm12 = vcmask 605184  }
 0x44f   : > { %8484 = vmatpush.msk.msrb.mxu2 %vm623_vm2, %v5837_v41  ;;  %8486 = vmatpush.msk.msrb.mxu3 %vm623_vm2, %v5838_v42  ;;  %v4414_v41 = vadd.f32 %v11322_v56, %v4330_v33  ;;  %v7297_v42 = vld [vmem:[%s9902_s29] sm:$0x3f] }
 0x450   : > { %8485 = vmatmul.msk.f32.vlgmr.msrb.gmra.mxu2 %vm619_vm5, %v8483_v35  ;;  %8487 = vmatmul.msk.f32.vlgmr.msrb.gmra.mxu3 %vm619_vm5, %v8483_v35 }
 0x452   : > { %6920 = vrot.lane.b32.xlu0 %v6917_v40, %s9404_s26  ;;  %6924 = vrot.lane.b32.xlu2 %v6919_v43, %s9404_s26  ;;  %v7046_v1 = vld.sshfl [vmem:[#allocation1 + $0x8] sm:$0xff pattern:$0x73625140]  ;;  %v7045_v2 = vld.sshfl [vmem:[#allocation1] sm:$0xff pattern:$0x73625140]  ;;  %v4583_v24 = vpop.f32.mrf.mxu2 }
 0x453   : > { %6922 = vrot.lane.b32.xlu1 %v6918_v39, %s9404_s26  ;;  %v7047_v4 = vld.sshfl [vmem:[#allocation1 + $0x10] sm:$0xff pattern:$0x73625140] }
 0x454   : > { %v11302_v45 = vpop.permute.xlu0 %5955  ;;  %v6095_v53 = vpop.permute.xlu2 %6094  ;;  %7108 = vst [vmem:[#allocation1] ss:$4 sm:$0xff] %v7105_v63  ;;  %v8512_v40 = vld [vmem:[%s11971_s1 + $0x10] sm:$0xf] }
 0x455   : > { %v5898_v46 = vpop.permute.xlu1 %5897 }
 0x456   : > { %v5901_v49 = vsel %vm11997_vm10, %v5896_v34, %v5898_v46  ;;  %v5902_v50 = vsel %vm11998_vm8, %v5898_v46, %v5900_v18  ;;  %v11389_v38 = vpop.f32.mrf.mxu1  ;;  %vm12000_vm10 = vmmov %vm11999_vm12  ;;  %vm12001_vm8 = vcmask 736256  }
 0x457   : > { %8489 = vmatpush.msk.msra.mxu0 %vm623_vm2, %v5901_v49  ;;  %8491 = vmatpush.msk.msra.mxu1 %vm623_vm2, %v5902_v50  ;;  %v11404_v49 = vpop.f32.mrf.mxu0  ;;  %v4478_v50 = vadd.f32 %v11341_v7, %v4414_v41 }
 0x458   : > { %8490 = vmatmul.msk.f32.vlgmr.msra.gmra.mxu0 %vm619_vm5, %v8488_v47  ;;  %8492 = vmatmul.msk.f32.vlgmr.msra.gmra.mxu1 %vm619_vm5, %v8488_v47 }
 0x459   : > { %v4542_v56 = vadd.f32 %v11353_v14, %v4478_v50  ;;  %v8532_v50 = vld [vmem:[%s11971_s1 + $0x20] sm:$0xf] }
 0x45a   : > { %6856 = vrot.lane.b32.xlu0 %v6853_v25, %s9403_s9  ;;  %6860 = vrot.lane.b32.xlu2 %v6855_v31, %s9403_s9  ;;  %v4711_v43 = vpop.f32.mrf.mxu2 }
 0x45b   : > { %6858 = vrot.lane.b32.xlu1 %v6854_v26, %s9403_s9  ;;  %v7109_v15 = vld.sshfl [vmem:[#allocation1] sm:$0xff pattern:$0x73625140]  ;;  %v7110_v16 = vld.sshfl [vmem:[#allocation1 + $0x8] sm:$0xff pattern:$0x73625140] }
 0x45c   : > { %v6032_v58 = vpop.permute.xlu0 %6031  ;;  %v6285_v0 = vpop.permute.xlu2 %6284  ;;  %v7111_v10 = vld.sshfl [vmem:[#allocation1 + $0x10] sm:$0xff pattern:$0x73625140]  ;;  %v7233_v26 = vld [vmem:[%s9902_s29] sm:$0x3f] }
 0x45d   : > { %v6034_v59 = vpop.permute.xlu1 %6033  ;;  %7172 = vst [vmem:[#allocation1] ss:$4 sm:$0xff] %v7169_v12 }
 0x45e   : > { %v6038_v61 = vsel %vm616_vm0, %v6034_v59, %v6036_v28  ;;  %v6037_v62 = vsel %vm616_vm0, %v6032_v58, %v6034_v59  ;;  %v8507_v58 = vld [vmem:[%s11971_s1 + $0xc] sm:$0xf] }
 0x45f   : > { %8494 = vmatpush.msk.msra.mxu2 %vm623_vm2, %v6037_v62  ;;  %8496 = vmatpush.msk.msra.mxu3 %vm623_vm2, %v6038_v61  ;;  %v7361_v62 = vld [vmem:[%s9902_s29] sm:$0x3f] }
 0x460   : > { %8495 = vmatmul.msk.f32.vlgmr.msra.gmra.mxu2 %vm619_vm5, %v8493_v60  ;;  %8497 = vmatmul.msk.f32.vlgmr.msra.gmra.mxu3 %vm619_vm5, %v8493_v60  ;;  %v4795_v60 = vpop.f32.mrf.mxu1 }
 0x462   : > { %7048 = vrot.lane.b32.xlu0 %v7045_v2, %s9406_s27  ;;  %7052 = vrot.lane.b32.xlu2 %v7047_v4, %s9406_s27  ;;  %v4606_v2 = vadd.f32 %v4583_v24, %v4542_v56 }
 0x463   : > { %7050 = vrot.lane.b32.xlu1 %v7046_v1, %s9406_s27  ;;  %v4839_v1 = vpop.f32.mrf.mxu2 }
 0x464   : > { %v6153_v5 = vpop.permute.xlu0 %6152  ;;  %v11351_v13 = vpop.permute.xlu2 %6220  ;;  %v7174_v28 = vld.sshfl [vmem:[#allocation1 + $0x8] sm:$0xff pattern:$0x73625140]  ;;  %v7173_v29 = vld.sshfl [vmem:[#allocation1] sm:$0xff pattern:$0x73625140]  ;;  %v4670_v12 = vadd.f32 %v11376_v30, %v4606_v2 }
 0x465   : > { %v6155_v6 = vpop.permute.xlu1 %6154  ;;  %v7175_v31 = vld.sshfl [vmem:[#allocation1 + $0x10] sm:$0xff pattern:$0x73625140] }
 0x466   : > { %v6159_v8 = vsel %vm742_vm3, %v6155_v6, %v6157_v37  ;;  %v6158_v9 = vsel %vm742_vm3, %v6153_v5, %v6155_v6  ;;  %7236 = vst [vmem:[#allocation1] ss:$4 sm:$0xff] %v7233_v26  ;;  %v4903_v5 = vpop.f32.mrf.mxu0  ;;  %v8517_v30 = vld [vmem:[%s11971_s1 + $0x14] sm:$0xf] }
 0x467   : > { %8503 = vmatpush.msk.msrb.mxu2 %vm623_vm2, %v6158_v9  ;;  %8505 = vmatpush.msk.msrb.mxu3 %vm623_vm2, %v6159_v8 }
 0x468   : > { %8504 = vmatmul.msk.f32.vlgmr.msrb.gmra.mxu2 %vm619_vm5, %v8502_v11  ;;  %8506 = vmatmul.msk.f32.vlgmr.msrb.gmra.mxu3 %vm619_vm5, %v8502_v11 }
 0x46a   : > { %6984 = vrot.lane.b32.xlu0 %v6981_v51, %s9405_s30  ;;  %6988 = vrot.lane.b32.xlu2 %v6983_v54, %s9405_s30  ;;  %v4415_v54 = vadd.f32 %v11338_v27, %v4350_v44 }
 0x46b   : > { %6986 = vrot.lane.b32.xlu1 %v6982_v52, %s9405_s30 }
 0x46c   : > { %v6091_v18 = vpop.permute.xlu0 %6090  ;;  %v11371_v25 = vpop.permute.xlu2 %6412  ;;  %v4479_v61 = vadd.f32 %v11357_v17, %v4415_v54 }
 0x46d   : > { %v6093_v19 = vpop.permute.xlu1 %6092  ;;  %v7237_v46 = vld.sshfl [vmem:[#allocation1] sm:$0xff pattern:$0x73625140]  ;;  %v7238_v47 = vld.sshfl [vmem:[#allocation1 + $0x8] sm:$0xff pattern:$0x73625140] }
 0x46e   : > { %v6097_v22 = vsel %vm678_vm1, %v6093_v19, %v6095_v53  ;;  %v6096_v23 = vsel %vm678_vm1, %v6091_v18, %v6093_v19  ;;  %v7239_v48 = vld.sshfl [vmem:[#allocation1 + $0x10] sm:$0xff pattern:$0x73625140]  ;;  %v11407_v53 = vpop.f32.mrf.mxu3  ;;  %v4543_v6 = vadd.f32 %v11361_v21, %v4479_v61  ;;  %v5031_v26 = vpop.f32.mrf.mxu0 }
 0x46f   : > { %8498 = vmatpush.msk.msrb.mxu0 %vm623_vm2, %v6096_v23  ;;  %8500 = vmatpush.msk.msrb.mxu1 %vm623_vm2, %v6097_v22  ;;  %7300 = vst [vmem:[#allocation1] ss:$4 sm:$0xff] %v7297_v42  ;;  %v4967_v23 = vpop.f32.mrf.mxu2 }
 0x470   : > { %8499 = vmatmul.msk.f32.vlgmr.msrb.gmra.mxu0 %vm619_vm5, %v6024_v20  ;;  %8501 = vmatmul.msk.f32.vlgmr.msrb.gmra.mxu1 %vm619_vm5, %v6024_v20  ;;  %v4607_v14 = vadd.f32 %v11380_v32, %v4543_v6 }
 0x472   : > { %7176 = vrot.lane.b32.xlu0 %v7173_v29, %s9400_s14  ;;  %7180 = vrot.lane.b32.xlu2 %v7175_v31, %s9400_s14  ;;  %v4671_v20 = vadd.f32 %v11389_v38, %v4607_v14 }
 0x473   : > { %7178 = vrot.lane.b32.xlu1 %v7174_v28, %s9400_s14  ;;  %s9438_s14 = smov 46  }
 0x474   : > { %v6281_v34 = vpop.permute.xlu0 %6280  ;;  %v11391_v39 = vpop.permute.xlu2 %6348  ;;  %v4735_v32 = vadd.f32 %v11407_v53, %v4671_v20 }
 0x475   : > { %v6283_v35 = vpop.permute.xlu1 %6282 }
 0x476   : > { %v6287_v36 = vsel %vm874_vm6, %v6283_v35, %v6285_v0  ;;  %v6286_v37 = vsel %vm874_vm6, %v6281_v34, %v6283_v35  ;;  %v7302_v63 = vld.sshfl [vmem:[#allocation1 + $0x8] sm:$0xff pattern:$0x73625140]  ;;  %v7301_v0 = vld.sshfl [vmem:[#allocation1] sm:$0xff pattern:$0x73625140]  ;;  %v4859_v9 = vpop.f32.mrf.mxu3 }
 0x477   : > { %8513 = vmatpush.msk.msra.mxu2 %vm623_vm2, %v6286_v37  ;;  %8515 = vmatpush.msk.msra.mxu3 %vm623_vm2, %v6287_v36  ;;  %v7303_v3 = vld.sshfl [vmem:[#allocation1 + $0x10] sm:$0xff pattern:$0x73625140]  ;;  %v7489_v34 = vld [vmem:[%s9902_s29] sm:$0x3f]  ;;  %v5095_v44 = vpop.f32.mrf.mxu2 }
 0x478   : > { %8514 = vmatmul.msk.f32.vlgmr.msra.gmra.mxu2 %vm619_vm5, %v8512_v40  ;;  %8516 = vmatmul.msk.f32.vlgmr.msra.gmra.mxu3 %vm619_vm5, %v8512_v40  ;;  %7364 = vst [vmem:[#allocation1] ss:$4 sm:$0xff] %v7361_v62  ;;  %v4799_v40 = vadd.f32 %v4795_v60, %v4735_v32 }
 0x47a   : > { %7112 = vrot.lane.b32.xlu0 %v7109_v15, %s9407_s16  ;;  %7116 = vrot.lane.b32.xlu2 %v7111_v10, %s9407_s16  ;;  %v7425_v15 = vld [vmem:[%s9902_s29] sm:$0x3f]  ;;  %v4734_v10 = vadd.f32 %v4711_v43, %v4670_v12 }
 0x47b   : > { %7114 = vrot.lane.b32.xlu1 %v7110_v16, %s9407_s16  ;;  %v4923_v16 = vpop.f32.mrf.mxu1 }
 0x47c   : > { %v6217_v51 = vpop.permute.xlu0 %6216  ;;  %v11419_v59 = vpop.permute.xlu2 %6540  ;;  %v4798_v29 = vadd.f32 %v11404_v49, %v4734_v10  ;;  %v4863_v49 = vadd.f32 %v4859_v9, %v4799_v40  ;;  %v7617_v9 = vld [vmem:[%s9902_s29] sm:$0x3f] }
 0x47d   : > { %v6219_v52 = vpop.permute.xlu1 %6218 }
 0x47e   : > { %v6223_v55 = vsel %vm808_vm4, %v6219_v52, %v11351_v13  ;;  %v6222_v57 = vsel %vm808_vm4, %v6217_v51, %v6219_v52  ;;  %v8522_v13 = vld [vmem:[%s11971_s1 + $0x18] sm:$0xf]  ;;  %v4987_v31 = vpop.f32.mrf.mxu3  ;;  %v4862_v33 = vadd.f32 %v4839_v1, %v4798_v29  ;;  %v8537_v29 = vld [vmem:[%s11971_s1 + $0x24] sm:$0xf] }
 0x47f   : > { %8508 = vmatpush.msk.msra.mxu0 %vm623_vm2, %v6222_v57  ;;  %8510 = vmatpush.msk.msra.mxu1 %vm623_vm2, %v6223_v55  ;;  %v7365_v18 = vld.sshfl [vmem:[#allocation1] sm:$0xff pattern:$0x73625140]  ;;  %v7366_v19 = vld.sshfl [vmem:[#allocation1 + $0x8] sm:$0xff pattern:$0x73625140]  ;;  %v4927_v57 = vadd.f32 %v4923_v16, %v4863_v49  ;;  %v5223_v1 = vpop.f32.mrf.mxu2 }
 0x480   : > { %8509 = vmatmul.msk.f32.vlgmr.msra.gmra.mxu0 %vm619_vm5, %v8507_v58  ;;  %8511 = vmatmul.msk.f32.vlgmr.msra.gmra.mxu1 %vm619_vm5, %v8507_v58  ;;  %v7367_v22 = vld.sshfl [vmem:[#allocation1 + $0x10] sm:$0xff pattern:$0x73625140]  ;;  %v7553_v55 = vld [vmem:[%s9902_s29] sm:$0x3f] }
 0x481   : > { %7428 = vst [vmem:[#allocation1] ss:$4 sm:$0xff] %v7425_v15  ;;  %v4991_v2 = vadd.f32 %v4987_v31, %v4927_v57  ;;  %v7681_v31 = vld [vmem:[%s9902_s29] sm:$0x3f]  ;;  %s12029_s29 = sld [smem:[#allocation36_spill]] }
 0x482   : > { %7304 = vrot.lane.b32.xlu0 %v7301_v0, %s9401_s7  ;;  %7308 = vrot.lane.b32.xlu2 %v7303_v3, %s9401_s7  ;;  %v8527_v3 = vld [vmem:[%s11971_s1 + $0x1c] sm:$0xf] }
 0x483   : > { %7306 = vrot.lane.b32.xlu1 %v7302_v63, %s9401_s7  ;;  %s9441_s7 = smov 38  }
 0x484   : > { %v6409_v4 = vpop.permute.xlu0 %6408  ;;  %v11435_v11 = vpop.permute.xlu2 %6476 }
 0x485   : > { %v6411_v27 = vpop.permute.xlu1 %6410 }
 0x486   : > { %v6415_v7 = vsel %vm11999_vm12, %v6411_v27, %v11371_v25  ;;  %v6414_v8 = vsel %vm12000_vm10, %v6409_v4, %v6411_v27  ;;  %vm12002_vm12 = vmmov %vm12001_vm8  ;;  %vm12003_vm10 = vcmask 588800   ;;  %v5115_v51 = vpop.f32.mrf.mxu3 }
 0x487   : > { %8523 = vmatpush.msk.msrb.mxu2 %vm623_vm2, %v6414_v8  ;;  %8525 = vmatpush.msk.msrb.mxu3 %vm623_vm2, %v6415_v7 }
 0x488   : > { %8524 = vmatmul.msk.f32.vlgmr.msrb.gmra.mxu2 %vm619_vm5, %v8522_v13  ;;  %8526 = vmatmul.msk.f32.vlgmr.msrb.gmra.mxu3 %vm619_vm5, %v8522_v13  ;;  %v7430_v36 = vld.sshfl [vmem:[#allocation1 + $0x8] sm:$0xff pattern:$0x73625140]  ;;  %v7429_v37 = vld.sshfl [vmem:[#allocation1] sm:$0xff pattern:$0x73625140] }
 0x489   : > { %v7431_v41 = vld.sshfl [vmem:[#allocation1 + $0x10] sm:$0xff pattern:$0x73625140]  ;;  %v8542_v13 = vld [vmem:[%s11971_s1 + $0x28] sm:$0xf] }
 0x48a   : > { %7240 = vrot.lane.b32.xlu0 %v7237_v46, %s9399_s8  ;;  %7244 = vrot.lane.b32.xlu2 %v7239_v48, %s9399_s8  ;;  %7492 = vst [vmem:[#allocation1] ss:$4 sm:$0xff] %v7489_v34  ;;  %v5159_v48 = vpop.f32.mrf.mxu0 }
 0x48b   : > { %7242 = vrot.lane.b32.xlu1 %v7238_v47, %s9399_s8  ;;  %v4926_v47 = vadd.f32 %v4903_v5, %v4862_v33  ;;  %s9429_s8 = smov 64  }
 0x48c   : > { %v6345_v17 = vpop.permute.xlu0 %6344  ;;  %v11454_v28 = vpop.permute.xlu2 %6668 }
 0x48d   : > { %v6347_v21 = vpop.permute.xlu1 %6346  ;;  %v4990_v52 = vadd.f32 %v4967_v23, %v4926_v47 }
 0x48e   : > { %v6351_v24 = vsel %vm12001_vm8, %v6347_v21, %v11391_v39  ;;  %v6350_v25 = vsel %vm12002_vm12, %v6345_v17, %v6347_v21  ;;  %v5051_v39 = vpop.f32.mrf.mxu1  ;;  %vm12004_vm8 = vmmov %vm12003_vm10  ;;  %vm12005_vm12 = vcmask 596992   ;;  %v5243_v7 = vpop.f32.mrf.mxu3 }
 0x48f   : > { %8518 = vmatpush.msk.msrb.mxu0 %vm623_vm2, %v6350_v25  ;;  %8520 = vmatpush.msk.msrb.mxu1 %vm623_vm2, %v6351_v24  ;;  %v5054_v0 = vadd.f32 %v5031_v26, %v4990_v52  ;;  %v5055_v8 = vadd.f32 %v5051_v39, %v4991_v2  ;;  %v5351_v21 = vpop.f32.mrf.mxu2 }
 0x490   : > { %8519 = vmatmul.msk.f32.vlgmr.msrb.gmra.mxu0 %vm619_vm5, %v8517_v30  ;;  %8521 = vmatmul.msk.f32.vlgmr.msrb.gmra.mxu1 %vm619_vm5, %v8517_v30 }
 0x491   : > { %v7493_v56 = vld.sshfl [vmem:[#allocation1] sm:$0xff pattern:$0x73625140]  ;;  %v7494_v60 = vld.sshfl [vmem:[#allocation1 + $0x8] sm:$0xff pattern:$0x73625140]  ;;  %v5118_v27 = vadd.f32 %v5095_v44, %v5054_v0 }
 0x492   : > { %7432 = vrot.lane.b32.xlu0 %v7429_v37, %s9403_s9  ;;  %7436 = vrot.lane.b32.xlu2 %v7431_v41, %s9403_s9  ;;  %v7495_v61 = vld.sshfl [vmem:[#allocation1 + $0x10] sm:$0xff pattern:$0x73625140]  ;;  %v5287_v4 = vpop.f32.mrf.mxu0 }
 0x493   : > { %7434 = vrot.lane.b32.xlu1 %v7430_v36, %s9403_s9  ;;  %7556 = vst [vmem:[#allocation1] ss:$4 sm:$0xff] %v7553_v55  ;;  %v5182_v17 = vadd.f32 %v5159_v48, %v5118_v27  ;;  %s9452_s9 = smov 8  }
 0x494   : > { %v6537_v35 = vpop.permute.xlu0 %6536  ;;  %v11471_v46 = vpop.permute.xlu2 %6604 }
 0x495   : > { %v6539_v38 = vpop.permute.xlu1 %6538 }
 0x496   : > { %v6543_v42 = vsel %vm12003_vm10, %v6539_v38, %v11419_v59  ;;  %v6542_v43 = vsel %vm12004_vm8, %v6537_v35, %v6539_v38  ;;  %vm12006_vm10 = vmmov %vm12005_vm12  ;;  %v5179_v62 = vpop.f32.mrf.mxu1  ;;  %v5371_v30 = vpop.f32.mrf.mxu3  ;;  %vm12007_vm8 = vcmask 736256  }
 0x497   : > { %8533 = vmatpush.msk.msra.mxu2 %vm623_vm2, %v6542_v43  ;;  %8535 = vmatpush.msk.msra.mxu3 %vm623_vm2, %v6543_v42  ;;  %v5479_v42 = vpop.f32.mrf.mxu2 }
 0x498   : > { %8534 = vmatmul.msk.f32.vlgmr.msra.gmra.mxu2 %vm619_vm5, %v8532_v50  ;;  %8536 = vmatmul.msk.f32.vlgmr.msra.gmra.mxu3 %vm619_vm5, %v8532_v50  ;;  %v8552_v50 = vld [vmem:[%s11971_s1 + $0x30] sm:$0xf] }
 0x49a   : > { %7368 = vrot.lane.b32.xlu0 %v7365_v18, %s9402_s6  ;;  %7372 = vrot.lane.b32.xlu2 %v7367_v22, %s9402_s6  ;;  %v7558_v14 = vld.sshfl [vmem:[#allocation1 + $0x8] sm:$0xff pattern:$0x73625140]  ;;  %v7557_v15 = vld.sshfl [vmem:[#allocation1] sm:$0xff pattern:$0x73625140]  ;;  %v5246_v22 = vadd.f32 %v5223_v1, %v5182_v17  ;;  %v5415_v24 = vpop.f32.mrf.mxu0 }
 0x49b   : > { %7370 = vrot.lane.b32.xlu1 %v7366_v19, %s9402_s6  ;;  %v7559_v10 = vld.sshfl [vmem:[#allocation1 + $0x10] sm:$0xff pattern:$0x73625140]  ;;  %v5119_v19 = vadd.f32 %v5115_v51, %v5055_v8  ;;  %v8562_v8 = vld [vmem:[%s11971_s1 + $0x38] sm:$0xf]  ;;  %s9432_s6 = smov 58  }
 0x49c   : > { %v6473_v53 = vpop.permute.xlu0 %6472  ;;  %v11487_v63 = vpop.permute.xlu2 %6796  ;;  %7620 = vst [vmem:[#allocation1] ss:$4 sm:$0xff] %v7617_v9  ;;  %v5310_v33 = vadd.f32 %v5287_v4, %v5246_v22 }
 0x49d   : > { %v6475_v54 = vpop.permute.xlu1 %6474  ;;  %v5183_v25 = vadd.f32 %v5179_v62, %v5119_v19 }
 0x49e   : > { %v6479_v58 = vsel %vm12005_vm12, %v6475_v54, %v11435_v11  ;;  %v6478_v59 = vsel %vm12006_vm10, %v6473_v53, %v6475_v54  ;;  %v5307_v18 = vpop.f32.mrf.mxu1  ;;  %v5374_v39 = vadd.f32 %v5351_v21, %v5310_v33  ;;  %v5499_v53 = vpop.f32.mrf.mxu3  ;;  %vm12008_vm12 = vmmov %vm12007_vm8 }
 0x49f   : > { %8528 = vmatpush.msk.msra.mxu0 %vm623_vm2, %v6478_v59  ;;  %8530 = vmatpush.msk.msra.mxu1 %vm623_vm2, %v6479_v58  ;;  %v5247_v37 = vadd.f32 %v5243_v7, %v5183_v25  ;;  %v5607_v0 = vpop.f32.mrf.mxu2 }
 0x4a0   : > { %8529 = vmatmul.msk.f32.vlgmr.msra.gmra.mxu0 %vm619_vm5, %v8527_v3  ;;  %8531 = vmatmul.msk.f32.vlgmr.msra.gmra.mxu1 %vm619_vm5, %v8527_v3  ;;  %v5438_v49 = vadd.f32 %v5415_v24, %v5374_v39  ;;  %v8572_v39 = vld [vmem:[%s11971_s1 + $0x40] sm:$0xf] }
 0x4a1   : > { %v5311_v43 = vadd.f32 %v5307_v18, %v5247_v37 }
 0x4a2   : > { %7560 = vrot.lane.b32.xlu0 %v7557_v15, %s9405_s30  ;;  %7564 = vrot.lane.b32.xlu2 %v7559_v10, %s9405_s30  ;;  %v5543_v47 = vpop.f32.mrf.mxu0  ;;  %v5502_v57 = vadd.f32 %v5479_v42, %v5438_v49 }
 0x4a3   : > { %7562 = vrot.lane.b32.xlu1 %v7558_v14, %s9405_s30  ;;  %v7621_v34 = vld.sshfl [vmem:[#allocation1] sm:$0xff pattern:$0x73625140]  ;;  %v7622_v35 = vld.sshfl [vmem:[#allocation1 + $0x8] sm:$0xff pattern:$0x73625140]  ;;  %v5375_v54 = vadd.f32 %v5371_v30, %v5311_v43 }
 0x4a4   : > { %v6665_v5 = vpop.permute.xlu0 %6664  ;;  %v11504_v16 = vpop.permute.xlu2 %6732  ;;  %v7623_v36 = vld.sshfl [vmem:[#allocation1 + $0x10] sm:$0xff pattern:$0x73625140]  ;;  %v5566_v2 = vadd.f32 %v5543_v47, %v5502_v57  ;;  %v7745_v14 = vld [vmem:[%s11970_s4] sm:$0xf]  ;;  %s9436_s30 = smov 48  }
 0x4a5   : > { %v6667_v6 = vpop.permute.xlu1 %6666  ;;  %7684 = vst [vmem:[#allocation1] ss:$4 sm:$0xff] %v7681_v31 }
 0x4a6   : > { %v6671_v11 = vsel %vm616_vm0, %v6667_v6, %v11454_v28  ;;  %v6670_v12 = vsel %vm616_vm0, %v6665_v5, %v6667_v6  ;;  %v5435_v38 = vpop.f32.mrf.mxu1  ;;  %v5627_v27 = vpop.f32.mrf.mxu3  ;;  %v5630_v5 = vadd.f32 %v5607_v0, %v5566_v2  ;;  %v8577_v0 = vld [vmem:[%s11971_s1 + $0x44] sm:$0xf] }
 0x4a7   : > { %8543 = vmatpush.msk.msrb.mxu2 %vm623_vm2, %v6670_v12  ;;  %8545 = vmatpush.msk.msrb.mxu3 %vm623_vm2, %v6671_v11 }
 0x4a8   : > { %8544 = vmatmul.msk.f32.vlgmr.msrb.gmra.mxu2 %vm619_vm5, %v8542_v13  ;;  %8546 = vmatmul.msk.f32.vlgmr.msrb.gmra.mxu3 %vm619_vm5, %v8542_v13 }
 0x4aa   : > { %7496 = vrot.lane.b32.xlu0 %v7493_v56, %s9404_s26  ;;  %7500 = vrot.lane.b32.xlu2 %v7495_v61, %s9404_s26  ;;  %v5439_v61 = vadd.f32 %v5435_v38, %v5375_v54  ;;  %v5671_v3 = vpop.f32.mrf.mxu0 }
 0x4ab   : > { %7498 = vrot.lane.b32.xlu1 %v7494_v60, %s9404_s26  ;;  %v8547_v60 = vld [vmem:[%s11971_s1 + $0x2c] sm:$0xf]  ;;  %s9435_s26 = smov 52  }
 0x4ac   : > { %v6601_v23 = vpop.permute.xlu0 %6600  ;;  %v11520_v32 = vpop.permute.xlu2 %6924  ;;  %v7686_v51 = vld.sshfl [vmem:[#allocation1 + $0x8] sm:$0xff pattern:$0x73625140]  ;;  %v7685_v52 = vld.sshfl [vmem:[#allocation1] sm:$0xff pattern:$0x73625140]  ;;  %v5503_v4 = vadd.f32 %v5499_v53, %v5439_v61 }
 0x4ad   : > { %v6603_v20 = vpop.permute.xlu1 %6602  ;;  %v7687_v55 = vld.sshfl [vmem:[#allocation1 + $0x10] sm:$0xff pattern:$0x73625140] }
 0x4ae   : > { %v6607_v26 = vsel %vm678_vm1, %v6603_v20, %v11471_v46  ;;  %v6606_v28 = vsel %vm678_vm1, %v6601_v23, %v6603_v20  ;;  %v5563_v59 = vpop.f32.mrf.mxu1  ;;  %v8557_v20 = vld [vmem:[%s11971_s1 + $0x34] sm:$0xf] }
 0x4af   : > { %8538 = vmatpush.msk.msrb.mxu0 %vm623_vm2, %v6606_v28  ;;  %8540 = vmatpush.msk.msrb.mxu1 %vm623_vm2, %v6607_v26  ;;  %v5567_v9 = vadd.f32 %v5563_v59, %v5503_v4 }
 0x4b0   : > { %8539 = vmatmul.msk.f32.vlgmr.msrb.gmra.mxu0 %vm619_vm5, %v8537_v29  ;;  %8541 = vmatmul.msk.f32.vlgmr.msrb.gmra.mxu1 %vm619_vm5, %v8537_v29 }
 0x4b1   : > { %v5631_v17 = vadd.f32 %v5627_v27, %v5567_v9 }
 0x4b2   : > { %7688 = vrot.lane.b32.xlu0 %v7685_v52, %s9407_s16  ;;  %7692 = vrot.lane.b32.xlu2 %v7687_v55, %s9407_s16 }
 0x4b3   : > { %7690 = vrot.lane.b32.xlu1 %v7686_v51, %s9407_s16  ;;  %v8567_v51 = vld [vmem:[%s11971_s1 + $0x3c] sm:$0xf] }
 0x4b4   : > { %v6793_v40 = vpop.permute.xlu0 %6792  ;;  %v6861_v48 = vpop.permute.xlu2 %6860 }
 0x4b5   : > { %v6795_v41 = vpop.permute.xlu1 %6794 }
 0x4b6   : > { %v6799_v44 = vsel %vm808_vm4, %v6795_v41, %v11487_v63  ;;  %v6798_v46 = vsel %vm808_vm4, %v6793_v40, %v6795_v41  ;;  %v5691_v13 = vpop.f32.mrf.mxu1 }
 0x4b7   : > { %8553 = vmatpush.msk.msra.mxu2 %vm623_vm2, %v6798_v46  ;;  %8555 = vmatpush.msk.msra.mxu3 %vm623_vm2, %v6799_v44  ;;  %v5695_v24 = vadd.f32 %v5691_v13, %v5631_v17  ;;  %v8602_v17 = vld [vmem:[%s11971_s1 + $0x58] sm:$0xf] }
 0x4b8   : > { %8554 = vmatmul.msk.f32.vlgmr.msra.gmra.mxu2 %vm619_vm5, %v8552_v50  ;;  %8556 = vmatmul.msk.f32.vlgmr.msra.gmra.mxu3 %vm619_vm5, %v8552_v50 }
 0x4ba   : > { %7624 = vrot.lane.b32.xlu0 %v7621_v34, %s9406_s27  ;;  %7628 = vrot.lane.b32.xlu2 %v7623_v36, %s9406_s27 }
 0x4bb   : > { %7626 = vrot.lane.b32.xlu1 %v7622_v35, %s9406_s27  ;;  %s9439_s27 = smov 42  }
 0x4bc   : > { %v6729_v58 = vpop.permute.xlu0 %6728  ;;  %v7053_v1 = vpop.permute.xlu2 %7052 }
 0x4bd   : > { %v6731_v56 = vpop.permute.xlu1 %6730 }
 0x4be   : > { %v6735_v62 = vsel %vm742_vm3, %v6731_v56, %v11504_v16  ;;  %v6734_v63 = vsel %vm742_vm3, %v6729_v58, %v6731_v56  ;;  %v5694_v16 = vadd.f32 %v5671_v3, %v5630_v5  ;;  %v8582_v56 = vld [vmem:[%s11971_s1 + $0x48] sm:$0xf]  ;;  %v8592_v5 = vld [vmem:[%s11971_s1 + $0x50] sm:$0xf] }
 0x4bf   : > { %8548 = vmatpush.msk.msra.mxu0 %vm623_vm2, %v6734_v63  ;;  %8550 = vmatpush.msk.msra.mxu1 %vm623_vm2, %v6735_v62 }
 0x4c0   : > { %8549 = vmatmul.msk.f32.vlgmr.msra.gmra.mxu0 %vm619_vm5, %v8547_v60  ;;  %8551 = vmatmul.msk.f32.vlgmr.msra.gmra.mxu1 %vm619_vm5, %v8547_v60 }
 0x4c3   : > { %v5735_v10 = vpop.f32.mrf.mxu2  ;;  %7748 = vperm.xlu1 %8953, %v7745_v14   ;;  %v5755_v22 = vpop.f32.mrf.mxu3 }
 0x4c4   : > { %v6921_v6 = vpop.permute.xlu0 %6920  ;;  %v6989_v15 = vpop.permute.xlu2 %6988  ;;  %v5758_v19 = vadd.f32 %v5735_v10, %v5694_v16  ;;  %v5759_v31 = vadd.f32 %v5755_v22, %v5695_v24 }
 0x4c5   : > { %v6923_v7 = vpop.permute.xlu1 %6922  ;;  %v5799_v18 = vpop.f32.mrf.mxu0 }
 0x4c6   : > { %v6927_v11 = vsel %vm12007_vm8, %v6923_v7, %v11520_v32  ;;  %v6926_v12 = vsel %vm12008_vm12, %v6921_v6, %v6923_v7  ;;  %v5822_v28 = vadd.f32 %v5799_v18, %v5758_v19  ;;  %v5819_v29 = vpop.f32.mrf.mxu1  ;;  %vm12009_vm8 = vmmov %vm12006_vm10  ;;  %vm12010_vm12 = vcmask 605184  }
 0x4c7   : > { %8563 = vmatpush.msk.msrb.mxu2 %vm623_vm2, %v6926_v12  ;;  %8565 = vmatpush.msk.msrb.mxu3 %vm623_vm2, %v6927_v11  ;;  %v5823_v36 = vadd.f32 %v5819_v29, %v5759_v31  ;;  %v8587_v12 = vld [vmem:[%s11971_s1 + $0x4c] sm:$0xf] }
 0x4c8   : > { %8564 = vmatmul.msk.f32.vlgmr.msrb.gmra.mxu2 %vm619_vm5, %v8562_v8  ;;  %8566 = vmatmul.msk.f32.vlgmr.msrb.gmra.mxu3 %vm619_vm5, %v8562_v8 }
 0x4cc   : > { %v6857_v21 = vpop.permute.xlu0 %6856  ;;  %v7181_v30 = vpop.permute.xlu2 %7180 }
 0x4cd   : > { %v6859_v23 = vpop.permute.xlu1 %6858 }
 0x4ce   : > { %v6863_v25 = vsel %vm874_vm6, %v6859_v23, %v6861_v48  ;;  %v6862_v26 = vsel %vm874_vm6, %v6857_v21, %v6859_v23 }
 0x4cf   : > { %8558 = vmatpush.msk.msrb.mxu0 %vm623_vm2, %v6862_v26  ;;  %8560 = vmatpush.msk.msrb.mxu1 %vm623_vm2, %v6863_v25 }
 0x4d0   : > { %8559 = vmatmul.msk.f32.vlgmr.msrb.gmra.mxu0 %vm619_vm5, %v8557_v20  ;;  %8561 = vmatmul.msk.f32.vlgmr.msrb.gmra.mxu1 %vm619_vm5, %v8557_v20  ;;  %v8597_v20 = vld [vmem:[%s11971_s1 + $0x54] sm:$0xf] }
 0x4d3   : > { %v5863_v32 = vpop.f32.mrf.mxu2  ;;  %v5883_v40 = vpop.f32.mrf.mxu3 }
 0x4d4   : > { %v5886_v33 = vadd.f32 %v5863_v32, %v5822_v28  ;;  %v7049_v34 = vpop.permute.xlu0 %7048  ;;  %v5887_v44 = vadd.f32 %v5883_v40, %v5823_v36  ;;  %v7117_v47 = vpop.permute.xlu2 %7116  ;;  %v8607_v36 = vld [vmem:[%s11971_s1 + $0x5c] sm:$0xf] }
 0x4d5   : > { %v5927_v35 = vpop.f32.mrf.mxu0  ;;  %v7051_v38 = vpop.permute.xlu1 %7050 }
 0x4d6   : > { %v5950_v37 = vadd.f32 %v5927_v35, %v5886_v33  ;;  %v7055_v41 = vsel %vm12006_vm10, %v7051_v38, %v7053_v1  ;;  %v7054_v42 = vsel %vm12009_vm8, %v7049_v34, %v7051_v38  ;;  %v5947_v46 = vpop.f32.mrf.mxu1  ;;  %vm12011_vm10 = vmmov %vm12010_vm12  ;;  %vm12012_vm8 = vcmask 1043456  }
 0x4d7   : > { %8573 = vmatpush.msk.msra.mxu2 %vm623_vm2, %v7054_v42  ;;  %8575 = vmatpush.msk.msra.mxu3 %vm623_vm2, %v7055_v41  ;;  %v5951_v49 = vadd.f32 %v5947_v46, %v5887_v44  ;;  %v8622_v42 = vld [vmem:[%s11971_s1 + $0x68] sm:$0xf] }
 0x4d8   : > { %v5958_v43 = vadd.f32 %v11302_v45, %v5950_v37  ;;  %8574 = vmatmul.msk.f32.vlgmr.msra.gmra.mxu2 %vm619_vm5, %v8572_v39  ;;  %8576 = vmatmul.msk.f32.vlgmr.msra.gmra.mxu3 %vm619_vm5, %v8572_v39 }
 0x4d9   : > { %v5959_v54 = vadd.f32 %v11302_v45, %v5951_v49 }
 0x4da   : > { %5961 = vrot.lane.b32.xlu2 %v5958_v43, %s9429_s8  ;;  %5969 = vrot.lane.b32.xlu1 %v5958_v43, %s9430_s0  ;;  %s9442_s8 = smov 40   ;;  %s9450_s0 = smov 18  }
 0x4db   : > { %5965 = vrot.lane.b32.xlu0 %v5958_v43, %s9431_s23  ;;  %v5990_v59 = vrot.slane %v5959_v54, 4  ;;  %s9451_s23 = smov 28  }
 0x4dc   : > { %v6985_v48 = vpop.permute.xlu0 %6984  ;;  %v7309_v57 = vpop.permute.xlu2 %7308 }
 0x4dd   : > { %v6987_v50 = vpop.permute.xlu1 %6986  ;;  %v5991_v45 = vsel %vm12012_vm8, %v5958_v43, %v5990_v59 }
 0x4de   : > { %v6991_v52 = vsel %vm12010_vm12, %v6987_v50, %v6989_v15  ;;  %v6990_v53 = vsel %vm12011_vm10, %v6985_v48, %v6987_v50  ;;  %v8617_v48 = vld [vmem:[%s11971_s1 + $0x64] sm:$0xf] }
 0x4df   : > { %8568 = vmatpush.msk.msra.mxu0 %vm623_vm2, %v6990_v53  ;;  %8570 = vmatpush.msk.msra.mxu1 %vm623_vm2, %v6991_v52 }
 0x4e0   : > { %8569 = vmatmul.msk.f32.vlgmr.msra.gmra.mxu0 %vm619_vm5, %v8567_v51  ;;  %8571 = vmatmul.msk.f32.vlgmr.msra.gmra.mxu1 %vm619_vm5, %v8567_v51 }
 0x4e2   : > { %5973 = vrot.lane.b32.xlu2 %v5958_v43, %s9432_s6  ;;  %5981 = vrot.lane.b32.xlu1 %v5958_v43, %s9433_s10  ;;  %s9454_s6 = smov 10   ;;  %s9455_s10 = smov 6  }
 0x4e3   : > { %5977 = vrot.lane.b32.xlu0 %v5958_v43, %s9434_s11  ;;  %v6063_v52 = vpop.f32.mrf.mxu2  ;;  %v6083_v53 = vpop.f32.mrf.mxu3  ;;  %s9456_s11 = smov 22  }
 0x4e4   : > { %v7177_v55 = vpop.permute.xlu0 %7176  ;;  %v7245_v3 = vpop.permute.xlu2 %7244 }
 0x4e5   : > { %v7179_v58 = vpop.permute.xlu1 %7178 }
 0x4e6   : > { %v7183_v60 = vsel %vm678_vm1, %v7179_v58, %v7181_v30  ;;  %v7182_v61 = vsel %vm678_vm1, %v7177_v55, %v7179_v58  ;;  %vm12013_vm1 = vcmask 588800   ;;  %v8612_v30 = vld [vmem:[%s11971_s1 + $0x60] sm:$0xf] }
 0x4e7   : > { %8583 = vmatpush.msk.msrb.mxu2 %vm623_vm2, %v7182_v61  ;;  %8585 = vmatpush.msk.msrb.mxu3 %vm623_vm2, %v7183_v60  ;;  %vm12014_vm12 = vmmov %vm12013_vm1 }
 0x4e8   : > { %8584 = vmatmul.msk.f32.vlgmr.msrb.gmra.mxu2 %vm619_vm5, %v8582_v56  ;;  %8586 = vmatmul.msk.f32.vlgmr.msrb.gmra.mxu3 %vm619_vm5, %v8582_v56  ;;  %vm12020_vm8 = vmmov %vm12013_vm1 }
 0x4ea   : > { %5985 = vrot.lane.b32.xlu2 %v5958_v43, %s9435_s26  ;;  %5999 = vrot.lane.b32.xlu1 %v5959_v54, %s9436_s30  ;;  %s7824_s26 = smul.u32 7, %s12028_s13 }
 0x4eb   : > { %5992 = vrot.lane.b32.xlu0 %v5991_v45, %s9437_s25  ;;  %v6204_v59 = vpop.f32.mrf.mxu3  ;;  %s8645_s30 = smul.u32 21, %s12029_s29 }
 0x4ec   : > { %v7113_v62 = vpop.permute.xlu0 %7112  ;;  %v7437_v8 = vpop.permute.xlu2 %7436 }
 0x4ed   : > { %v7115_v63 = vpop.permute.xlu1 %7114  ;;  %v6122_v55 = vpop.f32.mrf.mxu0  ;;  %s7828_s25 = sadd.s32 %s8645_s30, %s7824_s26 }
 0x4ee   : > { %v7119_v1 = vsel %vm12013_vm1, %v7115_v63, %v7117_v47  ;;  %v7118_v2 = vsel %vm12014_vm12, %v7113_v62, %v7115_v63  ;;  %v6142_v58 = vpop.f32.mrf.mxu1  ;;  %s8627_s16 = sshll.u32 %s7828_s25, 2 }
 0x4ef   : > { %8578 = vmatpush.msk.msrb.mxu0 %vm623_vm2, %v7118_v2  ;;  %8580 = vmatpush.msk.msrb.mxu1 %vm623_vm2, %v7119_v1 }
 0x4f0   : > { %8579 = vmatmul.msk.f32.vlgmr.msrb.gmra.mxu0 %vm619_vm5, %v8577_v0  ;;  %8581 = vmatmul.msk.f32.vlgmr.msrb.gmra.mxu1 %vm619_vm5, %v8577_v0 }
 0x4f2   : > { %6003 = vrot.lane.b32.xlu2 %v5959_v54, %s9438_s14  ;;  %6011 = vrot.lane.b32.xlu1 %v5959_v54, %s9439_s27  ;;  %s9443_s14 = smov 30   ;;  %s9444_s27 = smov 32  }
 0x4f3   : > { %6007 = vrot.lane.b32.xlu0 %v5959_v54, %s9440_s21  ;;  %s9445_s21 = smov 20  }
 0x4f4   : > { %v7305_v27 = vpop.permute.xlu0 %7304  ;;  %v7373_v15 = vpop.permute.xlu2 %7372 }
 0x4f5   : > { %v7307_v4 = vpop.permute.xlu1 %7306 }
 0x4f6   : > { %v7311_v6 = vsel %vm742_vm3, %v7307_v4, %v7309_v57  ;;  %v7310_v7 = vsel %vm742_vm3, %v7305_v27, %v7307_v4  ;;  %v6184_v57 = vpop.f32.mrf.mxu2 }
 0x4f7   : > { %8593 = vmatpush.msk.msra.mxu2 %vm623_vm2, %v7310_v7  ;;  %8595 = vmatpush.msk.msra.mxu3 %vm623_vm2, %v7311_v6 }
 0x4f8   : > { %8594 = vmatmul.msk.f32.vlgmr.msra.gmra.mxu2 %vm619_vm5, %v8592_v5  ;;  %8596 = vmatmul.msk.f32.vlgmr.msra.gmra.mxu3 %vm619_vm5, %v8592_v5 }
 0x4fa   : > { %6019 = vrot.lane.b32.xlu2 %v5959_v54, %s9441_s7  ;;  %s9448_s7 = smov 16  }
 0x4fb   : > { %6015 = vrot.lane.b32.xlu0 %v5959_v54, %s9442_s8  ;;  %v6332_v0 = vpop.f32.mrf.mxu3  ;;  %s9449_s8 = smov 26  }
 0x4fc   : > { %v7241_v11 = vpop.permute.xlu0 %7240  ;;  %v7565_v21 = vpop.permute.xlu2 %7564 }
 0x4fd   : > { %v7243_v9 = vpop.permute.xlu1 %7242  ;;  %v6248_v45 = vpop.f32.mrf.mxu0 }
 0x4fe   : > { %v7247_v13 = vsel %vm616_vm0, %v7243_v9, %v7245_v3  ;;  %v7246_v14 = vsel %vm616_vm0, %v7241_v11, %v7243_v9  ;;  %vm12015_vm0 = vmmov %vm12011_vm10  ;;  %v6312_v62 = vpop.f32.mrf.mxu2  ;;  %v6268_v63 = vpop.f32.mrf.mxu1  ;;  %v6123_v11 = vadd.f32 %v6122_v55, %v6063_v52 }
 0x4ff   : > { %8588 = vmatpush.msk.msra.mxu0 %vm623_vm2, %v7246_v14  ;;  %8590 = vmatpush.msk.msra.mxu1 %vm623_vm2, %v7247_v13  ;;  %vm12016_vm3 = vmmov %vm12015_vm0  ;;  %v6143_v13 = vadd.f32 %v6142_v58, %v6083_v53 }
 0x500   : > { %8589 = vmatmul.msk.f32.vlgmr.msra.gmra.mxu0 %vm619_vm5, %v8587_v12  ;;  %8591 = vmatmul.msk.f32.vlgmr.msra.gmra.mxu1 %vm619_vm5, %v8587_v12  ;;  %vm12019_vm10 = vmmov %vm12013_vm1  ;;  %vm12021_vm1 = vcmask 596992  }
 0x501   : > { %vm12022_vm12 = vmmov %vm12021_vm1 }
 0x504   : > { %v7433_v10 = vpop.permute.xlu0 %7432  ;;  %v7501_v26 = vpop.permute.xlu2 %7500 }
 0x505   : > { %v7435_v16 = vpop.permute.xlu1 %7434 }
 0x506   : > { %v7439_v18 = vsel %vm874_vm6, %v7435_v16, %v7437_v8  ;;  %v7438_v19 = vsel %vm874_vm6, %v7433_v10, %v7435_v16  ;;  %v6207_v16 = vadd.f32 %v6184_v57, %v6123_v11 }
 0x507   : > { %8603 = vmatpush.msk.msrb.mxu2 %vm623_vm2, %v7438_v19  ;;  %8605 = vmatpush.msk.msrb.mxu3 %vm623_vm2, %v7439_v18  ;;  %v6208_v19 = vadd.f32 %v6204_v59, %v6143_v13 }
 0x508   : > { %8604 = vmatmul.msk.f32.vlgmr.msrb.gmra.mxu2 %vm619_vm5, %v8602_v17  ;;  %8606 = vmatmul.msk.f32.vlgmr.msrb.gmra.mxu3 %vm619_vm5, %v8602_v17 }
 0x50b   : > { %v6440_v27 = vpop.f32.mrf.mxu2  ;;  %v6460_v8 = vpop.f32.mrf.mxu3 }
 0x50c   : > { %v7369_v23 = vpop.permute.xlu0 %7368  ;;  %v7693_v33 = vpop.permute.xlu2 %7692 }
 0x50d   : > { %v7371_v22 = vpop.permute.xlu1 %7370  ;;  %v6376_v4 = vpop.f32.mrf.mxu0 }
 0x50e   : > { %v7375_v24 = vsel %vm808_vm4, %v7371_v22, %v7373_v15  ;;  %v7374_v25 = vsel %vm808_vm4, %v7369_v23, %v7371_v22  ;;  %vm12017_vm4 = vcmask 736256   ;;  %v6396_v5 = vpop.f32.mrf.mxu1  ;;  %v6271_v22 = vadd.f32 %v6248_v45, %v6207_v16 }
 0x50f   : > { %8598 = vmatpush.msk.msrb.mxu0 %vm623_vm2, %v7374_v25  ;;  %8600 = vmatpush.msk.msrb.mxu1 %vm623_vm2, %v7375_v24  ;;  %vm12018_vm6 = vmmov %vm12017_vm4 }
 0x510   : > { %8599 = vmatmul.msk.f32.vlgmr.msrb.gmra.mxu0 %vm619_vm5, %v8597_v20  ;;  %8601 = vmatmul.msk.f32.vlgmr.msrb.gmra.mxu1 %vm619_vm5, %v8597_v20  ;;  %v6272_v20 = vadd.f32 %v6268_v63, %v6208_v19  ;;  %v6335_v24 = vadd.f32 %v6312_v62, %v6271_v22 }
 0x514   : > { %v7561_v29 = vpop.permute.xlu0 %7560  ;;  %v7629_v39 = vpop.permute.xlu2 %7628 }
 0x515   : > { %v7563_v28 = vpop.permute.xlu1 %7562 }
 0x516   : > { %v7567_v31 = vsel %vm12015_vm0, %v7563_v28, %v7565_v21  ;;  %v7566_v32 = vsel %vm12016_vm3, %v7561_v29, %v7563_v28  ;;  %vm12023_vm0 = vcmask 650752  }
 0x517   : > { %8613 = vmatpush.msk.msra.mxu2 %vm623_vm2, %v7566_v32  ;;  %8615 = vmatpush.msk.msra.mxu3 %vm623_vm2, %v7567_v31  ;;  %vm12025_vm3 = vmmov %vm12023_vm0  ;;  %v6399_v32 = vadd.f32 %v6376_v4, %v6335_v24 }
 0x518   : > { %8614 = vmatmul.msk.f32.vlgmr.msra.gmra.mxu2 %vm619_vm5, %v8612_v30  ;;  %8616 = vmatmul.msk.f32.vlgmr.msra.gmra.mxu3 %vm619_vm5, %v8612_v30 }
 0x51b   : > { %v6568_v10 = vpop.f32.mrf.mxu2  ;;  %v6588_v23 = vpop.f32.mrf.mxu3 }
 0x51c   : > { %v7497_v35 = vpop.permute.xlu0 %7496 }
 0x51d   : > { %v7499_v34 = vpop.permute.xlu1 %7498  ;;  %v6504_v14 = vpop.f32.mrf.mxu0 }
 0x51e   : > { %v7503_v37 = vsel %vm12017_vm4, %v7499_v34, %v7501_v26  ;;  %v7502_v38 = vsel %vm12018_vm6, %v7497_v35, %v7499_v34  ;;  %v6524_v17 = vpop.f32.mrf.mxu1  ;;  %v6336_v26 = vadd.f32 %v6332_v0, %v6272_v20  ;;  %v6463_v35 = vadd.f32 %v6440_v27, %v6399_v32 }
 0x51f   : > { %8608 = vmatpush.msk.msra.mxu0 %vm623_vm2, %v7502_v38  ;;  %8610 = vmatpush.msk.msra.mxu1 %vm623_vm2, %v7503_v37  ;;  %vm12027_vm6 = vcmask 1043456  }
 0x520   : > { %8609 = vmatmul.msk.f32.vlgmr.msra.gmra.mxu0 %vm619_vm5, %v8607_v36  ;;  %8611 = vmatmul.msk.f32.vlgmr.msra.gmra.mxu1 %vm619_vm5, %v8607_v36  ;;  %v6527_v37 = vadd.f32 %v6504_v14, %v6463_v35 }
 0x524   : > { %v7689_v41 = vpop.permute.xlu0 %7688 }
 0x525   : > { %v7691_v40 = vpop.permute.xlu1 %7690 }
 0x526   : > { %v7695_v43 = vsel %vm12019_vm10, %v7691_v40, %v7693_v33  ;;  %v7694_v44 = vsel %vm12020_vm8, %v7689_v41, %v7691_v40  ;;  %v6400_v33 = vadd.f32 %v6396_v5, %v6336_v26  ;;  %vm7788_vm10 = vcmask 146432   ;;  %vm12030_vm8 = vmmov %vm12023_vm0 }
 0x527   : > { %8623 = vmatpush.msk.msrb.mxu2 %vm623_vm2, %v7694_v44  ;;  %8625 = vmatpush.msk.msrb.mxu3 %vm623_vm2, %v7695_v43 }
 0x528   : > { %8624 = vmatmul.msk.f32.vlgmr.msrb.gmra.mxu2 %vm619_vm5, %v8622_v42  ;;  %8626 = vmatmul.msk.f32.vlgmr.msrb.gmra.mxu3 %vm619_vm5, %v8622_v42  ;;  %v6464_v36 = vadd.f32 %v6460_v8, %v6400_v33  ;;  %v6591_v42 = vadd.f32 %v6568_v10, %v6527_v37 }
 0x52a   : > { %v6528_v41 = vadd.f32 %v6524_v17, %v6464_v36 }
 0x52b   : > { %v6696_v28 = vpop.f32.mrf.mxu2  ;;  %v6716_v34 = vpop.f32.mrf.mxu3 }
 0x52c   : > { %v7625_v47 = vpop.permute.xlu0 %7624  ;;  %v6592_v44 = vadd.f32 %v6588_v23, %v6528_v41 }
 0x52d   : > { %v7627_v46 = vpop.permute.xlu1 %7626  ;;  %v6632_v25 = vpop.f32.mrf.mxu0 }
 0x52e   : > { %v7631_v49 = vsel %vm12021_vm1, %v7627_v46, %v7629_v39  ;;  %v7630_v50 = vsel %vm12022_vm12, %v7625_v47, %v7627_v46  ;;  %v6652_v31 = vpop.f32.mrf.mxu1  ;;  %v6655_v46 = vadd.f32 %v6632_v25, %v6591_v42 }
 0x52f   : > { %8618 = vmatpush.msk.msrb.mxu0 %vm623_vm2, %v7630_v50  ;;  %8620 = vmatpush.msk.msrb.mxu1 %vm623_vm2, %v7631_v49  ;;  %vm12024_vm2 = vcmask 781952   ;;  %v6656_v47 = vadd.f32 %v6652_v31, %v6592_v44 }
 0x530   : > { %8619 = vmatmul.msk.f32.vlgmr.msrb.gmra.mxu0 %vm619_vm5, %v8617_v48  ;;  %8621 = vmatmul.msk.f32.vlgmr.msrb.gmra.mxu1 %vm619_vm5, %v8617_v48  ;;  %vm5995_vm5 = vcmask 408576   ;;  %vm12026_vm4 = vmmov %vm12024_vm2 }
 0x531   : > { %v6720_v52 = vadd.f32 %v6716_v34, %v6656_v47 }
 0x534   : > { %v5962_v51 = vpop.permute.xlu2 %5961 }
 0x535   : > { %5964 = vst.msk [vmem:[%s10553_s17 + $0xc] sm:$0xf] %vm12023_vm0, %v5962_v51  ;;  %v11688_v54 = vpop.permute.xlu1 %7748  ;;  %v6719_v51 = vadd.f32 %v6696_v28, %v6655_v46 }
 0x53b   : > { %v6824_v38 = vpop.f32.mrf.mxu2  ;;  %v6844_v43 = vpop.f32.mrf.mxu3 }
 0x53c   : > { %v5974_v60 = vpop.permute.xlu2 %5973 }
 0x53d   : > { %v6760_v39 = vpop.f32.mrf.mxu0  ;;  %v6780_v40 = vpop.f32.mrf.mxu1 }
 0x53e   : > { %v6783_v55 = vadd.f32 %v6760_v39, %v6719_v51  ;;  %v6784_v57 = vadd.f32 %v6780_v40, %v6720_v52 }
 0x540   : > { %v6847_v58 = vadd.f32 %v6824_v38, %v6783_v55 }
 0x544   : > { %v5986_v3 = vpop.permute.xlu2 %5985 }
 0x54b   : > { %v6952_v48 = vpop.f32.mrf.mxu2  ;;  %v6972_v53 = vpop.f32.mrf.mxu3 }
 0x54c   : > { %v5970_v56 = vpop.permute.xlu1 %5969  ;;  %v6004_v15 = vpop.permute.xlu2 %6003 }
 0x54d   : > { %v5966_v61 = vpop.permute.xlu0 %5965  ;;  %v6888_v49 = vpop.f32.mrf.mxu0 }
 0x54e   : > { %5968 = vst.msk [vmem:[%s10553_s17 + $0xc] sm:$0xf] %vm12024_vm2, %v5966_v61  ;;  %v6908_v50 = vpop.f32.mrf.mxu1  ;;  %v6848_v61 = vadd.f32 %v6844_v43, %v6784_v57  ;;  %v6911_v45 = vadd.f32 %v6888_v49, %v6847_v58 }
 0x54f   : > { %5972 = vst.msk [vmem:[%s10553_s17 + $0xc] sm:$0xf] %vm2399_vm9, %v5970_v56 }
 0x550   : > { %5976 = vst.msk [vmem:[%s10553_s17 + $0xc] sm:$0xf] %vm2411_vm7, %v5974_v60  ;;  %v6912_v63 = vadd.f32 %v6908_v50, %v6848_v61  ;;  %v6975_v0 = vadd.f32 %v6952_v48, %v6911_v45 }
 0x554   : > { %v5982_v1 = vpop.permute.xlu1 %5981  ;;  %v6020_v30 = vpop.permute.xlu2 %6019 }
 0x555   : > { %v5978_v2 = vpop.permute.xlu0 %5977 }
 0x556   : > { %5980 = vst.msk [vmem:[%s10553_s17 + $0x10] sm:$0xf] %vm2368_vm11, %v5978_v2 }
 0x557   : > { %5984 = vst.msk [vmem:[%s10553_s17 + $0x10] sm:$0xf] %vm2374_vm13, %v5982_v1 }
 0x558   : > { %5988 = vst.msk [vmem:[%s10553_s17 + $0x10] sm:$0xf] %vm2379_vm14, %v5986_v3  ;;  %v6976_v3 = vadd.f32 %v6972_v53, %v6912_v63 }
 0x55b   : > { %v7080_v59 = vpop.f32.mrf.mxu2  ;;  %v7100_v62 = vpop.f32.mrf.mxu3 }
 0x55c   : > { %v6000_v6 = vpop.permute.xlu1 %5999 }
 0x55d   : > { %v5993_v7 = vpop.permute.xlu0 %5992  ;;  %v7016_v56 = vpop.f32.mrf.mxu0 }
 0x55e   : > { %v5994_v9 = vrot.slane %v5993_v7, 4  ;;  %v7036_v60 = vpop.f32.mrf.mxu1  ;;  %v7039_v27 = vadd.f32 %v7016_v56, %v6975_v0 }
 0x55f   : > { %v7040_v5 = vadd.f32 %v7036_v60, %v6976_v3 }
 0x560   : > { %v5996_v12 = vsel %vm5995_vm5, %v5993_v7, %v5994_v9  ;;  %v7103_v7 = vadd.f32 %v7080_v59, %v7039_v27 }
 0x561   : > { %5998 = vst.msk [vmem:[%s10553_s17 + $0x10] sm:$0xf] %vm2384_vm15, %v5996_v12  ;;  %v7104_v12 = vadd.f32 %v7100_v62, %v7040_v5 }
 0x562   : > { %6002 = vst.msk [vmem:[%s10553_s17 + $0x10] sm:$0xf] %vm12025_vm3, %v6000_v6 }
 0x563   : > { %6006 = vst.msk [vmem:[%s10553_s17 + $0x10] sm:$0xf] %vm12026_vm4, %v6004_v15 }
 0x564   : > { %v6012_v18 = vpop.permute.xlu1 %6011 }
 0x565   : > { %v6008_v21 = vpop.permute.xlu0 %6007 }
 0x566   : > { %6010 = vst.msk [vmem:[%s10553_s17 + $0x10] sm:$0xf] %vm2399_vm9, %v6008_v21 }
 0x567   : > { %6014 = vst.msk [vmem:[%s10553_s17 + $0x10] sm:$0xf] %vm2411_vm7, %v6012_v18 }
 0x56b   : > { %v7208_v2 = vpop.f32.mrf.mxu2  ;;  %v7228_v6 = vpop.f32.mrf.mxu3 }
 0x56d   : > { %v6016_v29 = vpop.permute.xlu0 %6015  ;;  %v7144_v1 = vpop.f32.mrf.mxu0 }
 0x56e   : > { %6018 = vst.msk [vmem:[%s10553_s17 + $0x14] sm:$0xf] %vm2368_vm11, %v6016_v29  ;;  %v7164_v4 = vpop.f32.mrf.mxu1  ;;  %v7167_v11 = vadd.f32 %v7144_v1, %v7103_v7 }
 0x56f   : > { %6022 = vst.msk [vmem:[%s10553_s17 + $0x14] sm:$0xf] %vm2374_vm13, %v6020_v30  ;;  %v7168_v15 = vadd.f32 %v7164_v4, %v7104_v12 }
 0x570   : > { %v7231_v14 = vadd.f32 %v7208_v2, %v7167_v11 }
 0x571   : > { %v7232_v19 = vadd.f32 %v7228_v6, %v7168_v15 }
 0x57b   : > { %v7336_v9 = vpop.f32.mrf.mxu2  ;;  %v7356_v16 = vpop.f32.mrf.mxu3 }
 0x57d   : > { %v7272_v8 = vpop.f32.mrf.mxu0  ;;  %v7292_v13 = vpop.f32.mrf.mxu1 }
 0x57e   : > { %v7295_v10 = vadd.f32 %v7272_v8, %v7231_v14  ;;  %v7296_v22 = vadd.f32 %v7292_v13, %v7232_v19 }
 0x580   : > { %v7359_v23 = vadd.f32 %v7336_v9, %v7295_v10  ;;  %v7360_v25 = vadd.f32 %v7356_v16, %v7296_v22 }
 0x58b   : > { %v7464_v18 = vpop.f32.mrf.mxu2  ;;  %v7484_v24 = vpop.f32.mrf.mxu3 }
 0x58d   : > { %v7400_v17 = vpop.f32.mrf.mxu0  ;;  %v7420_v21 = vpop.f32.mrf.mxu1 }
 0x58e   : > { %v7423_v20 = vadd.f32 %v7400_v17, %v7359_v23  ;;  %v7424_v29 = vadd.f32 %v7420_v21, %v7360_v25 }
 0x590   : > { %v7487_v30 = vadd.f32 %v7464_v18, %v7423_v20  ;;  %v7488_v33 = vadd.f32 %v7484_v24, %v7424_v29 }
 0x59b   : > { %v7592_v28 = vpop.f32.mrf.mxu2  ;;  %v7612_v34 = vpop.f32.mrf.mxu3 }
 0x59d   : > { %v7528_v26 = vpop.f32.mrf.mxu0  ;;  %v7548_v31 = vpop.f32.mrf.mxu1 }
 0x59e   : > { %v7551_v32 = vadd.f32 %v7528_v26, %v7487_v30  ;;  %v7552_v35 = vadd.f32 %v7548_v31, %v7488_v33 }
 0x5a0   : > { %v7615_v36 = vadd.f32 %v7592_v28, %v7551_v32  ;;  %v7616_v41 = vadd.f32 %v7612_v34, %v7552_v35 }
 0x5ab   : > { %v7720_v38 = vpop.f32.mrf.mxu2  ;;  %v7740_v46 = vpop.f32.mrf.mxu3 }
 0x5ad   : > { %v7656_v37 = vpop.f32.mrf.mxu0  ;;  %v7676_v40 = vpop.f32.mrf.mxu1 }
 0x5ae   : > { %v7679_v39 = vadd.f32 %v7656_v37, %v7615_v36  ;;  %v7680_v43 = vadd.f32 %v7676_v40, %v7616_v41 }
 0x5b0   : > { %v7743_v42 = vadd.f32 %v7720_v38, %v7679_v39  ;;  %v7744_v47 = vadd.f32 %v7740_v46, %v7680_v43 }
 0x5b2   : > { %v7751_v44 = vadd.f32 %v11688_v54, %v7743_v42  ;;  %v7752_v48 = vadd.f32 %v11688_v54, %v7744_v47 }
 0x5b4   : > { %7758 = vrot.lane.b32.xlu2 %v7751_v44, %s9443_s14  ;;  %7754 = vrot.lane.b32.xlu0 %v7751_v44, %s9444_s27  ;;  %v7783_v49 = vrot.slane %v7752_v48, 4  ;;  %s12034_s27 = sld [smem:[#allocation57_spill]] }
 0x5b5   : > { %7778 = vrot.lane.b32.xlu1 %v7751_v44, %s9445_s21  ;;  %s12036_s21 = sld [smem:[#allocation43_spill]] }
 0x5b6   : > { %v7784_v50 = vsel %vm12027_vm6, %v7751_v44, %v7783_v49 }
 0x5bb   : > { %p12037_p8 = scmp.ne.s32.totalorder %s12036_s21, 0 }
 0x5bc   : > { %7800 = vrot.lane.b32.xlu2 %v7752_v48, %s9446_s20  ;;  %7796 = vrot.lane.b32.xlu0 %v7752_v48, %s9447_s3  ;;  %s12035_s3 = smov %s12034_s27  ;;  %s7830_s20 = scalar_lea.hbm %s12034_s27, %s8627_s16 }
 0x5bd   : > { %7792 = vrot.lane.b32.xlu1 %v7752_v48, %s9448_s7  ;;  %s7832_s7 = sshll.u32 %s10553_s17, 4  ;;  %s7833_s7 = int_to_ptr.vmem [resolvable:$true] %s7832_s7 }
 0x5c4   : > { %7766 = vrot.lane.b32.xlu0 %v7751_v44, %s9449_s8  ;;  %7785 = vrot.lane.b32.xlu2 %v7784_v50, %s9450_s0  ;;  %s7834_s8 = sshll.u32 %s7830_s20, 4  ;;  %s7817_s0 = scalar_lea.sflag [#allocation4], %s586_s12  ;;  %s7835_s8 = int_to_ptr.hbm [resolvable:$true] %s7834_s8 }
 0x5c5   : > { %7762 = vrot.lane.b32.xlu1 %v7751_v44, %s9451_s23  ;;  %s9148_s23 = sshra.s32 %s7835_s8, 4  ;;  %s9149_s23 = int_to_ptr.hbm [resolvable:$true] %s9148_s23 }
 0x5c6   : > { %p9155_p9 = scmp.lt.s32.totalorder %s9149_s23, %s12035_s3 }
 0x5cc   : > { %7808 = vrot.lane.b32.xlu0 %v7752_v48, %s9452_s9  ;;  %7770 = vrot.lane.b32.xlu2 %v7751_v44, %s9453_s2  ;;  %s9150_s9 = scalar_lea.hbm %s9149_s23, 28 }
 0x5cd   : > { %7804 = vrot.lane.b32.xlu1 %v7752_v48, %s9454_s6  ;;  %p9151_p2 = scmp.ne.s32.totalorder %s9149_s23, %s9150_s9 }
 0x5cf   : > { %p9152_p13 = pnand %p9151_p2, %p12037_p8 }
 0x5d1   : > { %p9153_p4 = pneg %p9152_p13 }
 0x5d4   : > { %7812 = vrot.lane.b32.xlu2 %v7752_v48, %s9455_s10  ;;  %s9154_s10 = scalar_lea.hbm %s12035_s3, 168 }
 0x5d5   : > { %7774 = vrot.lane.b32.xlu1 %v7751_v44, %s9456_s11  ;;  %p9156_p5 = scmp.lt.s32.totalorder %s9154_s10, %s9150_s9 }
 0x5d7   : > { %p9157_p0 = por %p9156_p5, %p9155_p9 }
 0x5d9   : > { %p9158_p6 = pnand %p9157_p0, %p9153_p4 }
 0x60e   : > { %v7759_v54 = vpop.permute.xlu2 %7758 }
 0x616   : > { %v7801_v51 = vpop.permute.xlu2 %7800 }
 0x61e   : > { %v7786_v52 = vpop.permute.xlu2 %7785 }
 0x61f   : > { %v7787_v53 = vrot.slane %v7786_v52, 4 }
 0x621   : > { %v7789_v58 = vsel %vm7788_vm10, %v7786_v52, %v7787_v53 }
 0x626   : > { %v7755_v55 = vpop.permute.xlu0 %7754  ;;  %v7771_v61 = vpop.permute.xlu2 %7770 }
 0x627   : > { %v7779_v57 = vpop.permute.xlu1 %7778  ;;  %7757 = vst.msk [vmem:[%s10553_s17 + $0x14] sm:$0xf] %vm2379_vm14, %v7755_v55 }
 0x628   : > { %7781 = vst.msk [vmem:[%s10553_s17 + $0x18] sm:$0xf] %vm2368_vm11, %v7779_v57  ;;  %vm12031_vm11 = vmmov %vm12023_vm0 }
 0x629   : > { %7791 = vst.msk [vmem:[%s10553_s17 + $0x18] sm:$0xf] %vm2374_vm13, %v7789_v58  ;;  %vm12032_vm13 = vmmov %vm12024_vm2 }
 0x62a   : > { %7761 = vst.msk [vmem:[%s10553_s17 + $0x14] sm:$0xf] %vm2384_vm15, %v7759_v54 }
 0x62e   : > { %v7797_v59 = vpop.permute.xlu0 %7796  ;;  %v7813_v0 = vpop.permute.xlu2 %7812 }
 0x62f   : > { %v7793_v56 = vpop.permute.xlu1 %7792 }
 0x630   : > { %7795 = vst.msk [vmem:[%s10553_s17 + $0x18] sm:$0xf] %vm2379_vm14, %v7793_v56  ;;  %vm12033_vm14 = vmmov %vm12024_vm2 }
 0x631   : > { %7799 = vst.msk [vmem:[%s10553_s17 + $0x18] sm:$0xf] %vm2384_vm15, %v7797_v59 }
 0x632   : > { %7803 = vst.msk [vmem:[%s10553_s17 + $0x18] sm:$0xf] %vm12030_vm8, %v7801_v51 }
 0x636   : > { %v7767_v60 = vpop.permute.xlu0 %7766 }
 0x637   : > { %v7763_v45 = vpop.permute.xlu1 %7762 }
 0x638   : > { %7765 = vst.msk [vmem:[%s10553_s17 + $0x14] sm:$0xf] %vm12031_vm11, %v7763_v45 }
 0x639   : > { %7769 = vst.msk [vmem:[%s10553_s17 + $0x14] sm:$0xf] %vm12032_vm13, %v7767_v60 }
 0x63a   : > { %7773 = vst.msk [vmem:[%s10553_s17 + $0x14] sm:$0xf] %vm2399_vm9, %v7771_v61 }
 0x63e   : > { %v7809_v62 = vpop.permute.xlu0 %7808 }
 0x63f   : > { %v7805_v63 = vpop.permute.xlu1 %7804 }
 0x640   : > { %7807 = vst.msk [vmem:[%s10553_s17 + $0x18] sm:$0xf] %vm12033_vm14, %v7805_v63 }
 0x641   : > { %7811 = vst.msk [vmem:[%s10553_s17 + $0x18] sm:$0xf] %vm2399_vm9, %v7809_v62 }
 0x642   : > { %7815 = vst.msk [vmem:[%s10553_s17 + $0x18] sm:$0xf] %vm2411_vm7, %v7813_v0 }
 0x647   : > { %v7775_v1 = vpop.permute.xlu1 %7774 }
 0x648   : > { %7777 = vst.msk [vmem:[%s10553_s17 + $0x14] sm:$0xf] %vm2411_vm7, %v7775_v1 }
 0x649   : > { %9161 = shalt.err (!%p9158_p6)
}
 0x64a   : > { %8658 = dma.vmem_to_hbm [thread:$0]  (%p12037_p8), %s7833_s7, 448, %s7835_s8, %s7817_s0  }
 0x64b PF: > { %s12038_s12 = sld [smem:[#allocation21_spill]]  ;;  %p8684_p11 = scmp.ge.s32.totalorder %s9396_s5, 2 }
 0x64c   : > { %s12039_s17 = sld [smem:[#allocation44_spill]] }
 0x651   : > { %s7846_s29 = sand.u32 1, %s12038_s12  }
 0x652   : > { %p12040_p12 = scmp.ne.s32.totalorder %s12039_s17, 0  ;;  %s7847_s26 = scalar_lea.sflag [#allocation4], %s7846_s29 }
 0x654   : > { %p8680_p3 = pnand %p8684_p11, %p12040_p12 }
 0x656   : > { %p8681_p7 = pneg %p8680_p3 }
 0x658   : > { %9291 = dma.done.wait (%p8681_p7), %s7847_s26, 448  }
 0x659   : > { %9293 = vsyncadd (%p8681_p7), %s7847_s26, 4294966848  ;;  %s33_s5 = sadd.s32 1, %s9396_s5   ;;  %s12043_s16 = sld [smem:[#allocation22_spill]] }
 0x65a   : > { %p11770_p10 = scmp.ge.s32.totalorder %s33_s5, 8   ;;  %s12044_s29 = sld [smem:[#allocation42_spill]] }
 0x65b   : > { %s12045_s30 = sld [smem:[#allocation24_spill]]  ;;  %s12055_s27 = smov %s9300_s28 }
 0x65c   : > { %s12046_s9 = sld [smem:[#allocation25_spill]]  ;;  %s12061_s10 = smov %s12091_s19 }
 0x65d   : > { %s12047_s11 = sld [smem:[#allocation27_spill]]  ;;  %s12066_s14 = smov %s9336_s15 }
 0x65e   : > { %s12048_s12 = sld [smem:[#allocation28_spill]] }
 0x65f   : > { %s12049_s13 = sld [smem:[#allocation48_spill]]  ;;  %s12057_s28 = smov %s12043_s16 }
 0x660   : > { %s12050_s22 = sld [smem:[#allocation29_spill]] }
 0x661   : > { %s12051_s21 = sld [smem:[#allocation45_spill]] }
 0x662   : > { %s12052_s20 = sld [smem:[#allocation31_spill]] }
 0x663   : > { %s12053_s7 = sld [smem:[#allocation47_spill]] }
 0x664   : > { %s12054_s8 = sld [smem:[#allocation32_spill]] }
 0x665   : > { %s12056_s0 = sld [smem:[#allocation33_spill]] }
 0x666   : > { %s12058_s23 = sld [smem:[#allocation41_spill]]  ;;  %s12067_s15 = smov %s12050_s22 }
 0x667   : > { %s12059_s2 = sld [smem:[#allocation34_spill]]  ;;  %s12069_s16 = smov %s12051_s21 }
 0x668   : > { %s12060_s6 = sld [smem:[#allocation46_spill]] }
 0x669   : > { %s12062_s26 = sld [smem:[#allocation37_spill]]  ;;  %s12072_s19 = smov %s12053_s7 }
 0x66a   : > { %s12063_s1 = sld [smem:[#allocation38_spill]] }
 0x66b   : > { %s12064_s3 = sld [smem:[#allocation39_spill]]  ;;  %s12074_s21 = smov %s12056_s0 }
 0x66c   : > { %s12065_s4 = sld [smem:[#allocation40_spill]]  ;;  %s12075_s22 = smov %s12058_s23 }
 0x66d   : > { %12070 = sst [smem:[#allocation21_spill]] %s9348_s18  ;;  %s12071_s18 = smov %s12052_s20 }
 0x66e   : > { %s12073_s20 = smov %s12054_s8  ;;  %s12076_s23 = smov %s9372_s24 }
 0x66f   : > { %s12077_s24 = smov %s12059_s2  ;;  %s12078_s25 = smov %s12060_s6 }
 0x670   : > { %s12079_s8 = smov %s12063_s1  ;;  %32 = sbr.rel (!%p11770_p10) target bundleno = 33 (0x21), region = 184 }
 0x671   : > { %s12080_s6 = smov %s12064_s3 }
 0x672   : > { %s12081_s7 = smov %s12065_s4 }
 0x675   :  { %7853 = vsyncpa [#allocation3], 1 }
 0x676   :  { %7855 = vsyncpa [#allocation3 + $0x1], 1 }
 0x677   :  { %7856 = vsyncpa [#allocation6], 1 }
 0x678   :  { %7858 = vsyncpa [#allocation6 + $0x1], 1 }
 0x679   :  { %7859 = vsyncpa [#allocation9], 1 }
 0x67a   :  { %7861 = vsyncpa [#allocation9 + $0x1], 1 }
 0x67b   :  { %7862 = vsyncpa [#allocation12], 1 }
 0x67c   :  { %7864 = vsyncpa [#allocation12 + $0x1], 1 }
 0x67d   :  { %7865 = vsyncpa [#allocation4], 1 }
 0x67e   :  { %7867 = vsyncpa [#allocation4 + $0x1], 1 }

</bundles_post_ra>
